<compile_context>
chip_gen: v5e
topology: v5e:2x2
jax: 0.10.0
libtpu: 0.0.40
codegen_flags: <defaults>
</compile_context>

<pallas_src>
import jax
import jax.numpy as jnp
from jax import lax
from jax.experimental import pallas as pl
from jax.experimental.pallas import tpu as pltpu

# Constants from the PyTorch module
ATTN_DIM = 64
GCN_HID = 256
GCN_IN = 1024
GCN_OUT = 63          # padded to 64 lanes inside the wrapper
NUM_CLASSES = 1
LN_EPS = 1e-5
MASK_VALUE = -1e30    # finite key-padding mask (avoids NaN on fully-masked rows)


def _model_kernel(x_ref, adj_ref, bias_ref, cent_ref,
                  w1_ref, b1_ref, w2_ref, b2_ref,
                  wqkv_ref, wqkvb_ref, bqkv_ref,
                  wo_ref, bo_ref,
                  ln_g_ref, ln_b_ref,
                  fc_w_ref, fc_b_ref,
                  out_ref):
    f32 = jnp.float32
    bf16 = jnp.bfloat16
    G, N, Din = x_ref.shape
    D = ATTN_DIM

    bias = bias_ref[...]      # (G, N, N) f32
    cent = cent_ref[...]      # (G, N, 1) f32

    # ---- adjacency aggregation: out[g,i,:] = sum_j adj[g,i,j] * h[g,j,:] ----
    if N <= 32:
        # small graphs: unrolled VPU broadcast-multiply-accumulate (no tiny
        # 8xK MXU passes, no MXU drain per graph).
        adj_f32 = adj_ref[...].astype(f32)                    # (G, N, N)

        def adj_agg(h):                                       # h: (G, N, K) f32
            acc = adj_f32[:, :, 0:1] * h[:, 0:1, :]
            for j in range(1, N):
                acc = acc + adj_f32[:, :, j:j + 1] * h[:, j:j + 1, :]
            return acc
    else:
        adj_bf = adj_ref[...]                                 # bf16

        def adj_agg(h):
            return jnp.einsum('gij,gjk->gik', adj_bf, h.astype(bf16),
                              preferred_element_type=f32)

    # ---------------- GCN layer 1: relu(adj @ (x @ W1) + b1) ----------------
    # One (G*N, 1024) @ (1024, 256) bf16 matmul for all G graphs (f32 accum).
    x_flat = x_ref[...].reshape(G * N, Din)                   # bf16
    h = jnp.dot(x_flat, w1_ref[...], preferred_element_type=f32)
    h = adj_agg(h.reshape(G, N, GCN_HID))
    h = jnp.maximum(h + b1_ref[...][None], 0.0)               # (G, N, 256)

    # ---------------- GCN layer 2: adj @ (h @ W2) + b2 (63 padded to 64) ----
    h2 = jnp.dot(h.reshape(G * N, GCN_HID).astype(bf16), w2_ref[...],
                 preferred_element_type=f32)
    h2 = adj_agg(h2.reshape(G, N, D)) + b2_ref[...][None]     # (G, N, 64)

    # padding_mask: key k of graph g is padded iff h2[g, k, 0] == 0
    # (mirrors the reference `x[:, :, 0].eq(0)` on the GCN output).
    ind_col = (h2[:, :, 0:1] == 0.0).astype(f32)              # (G, N, 1)

    # ---- fused Q/K/V projection (concat with centrality folded into split
    # weights, 1/sqrt(D) scale folded into the Q part in the wrapper) --------
    h2_flat = h2.reshape(G * N, D)
    cent_flat = cent.reshape(G * N, 1)
    qkv = jnp.dot(h2_flat, wqkv_ref[...], preferred_element_type=f32)
    qkv = qkv + cent_flat * wqkvb_ref[...] + bqkv_ref[...]    # (G*N, 192)
    qkv = qkv.reshape(G, N, 3 * D)
    q = qkv[:, :, 0:D]            # already scaled by 1/sqrt(D)
    k = qkv[:, :, D:2 * D]
    v = qkv[:, :, 2 * D:3 * D]

    # Fold the additive key-padding mask into the score matmul: append a
    # constant-1 column to q and a MASK*indicator column to k, so
    # scores[g,q,k] = q.k * scale + MASK * ind[g,k] in a single MXU pass.
    ones_col = jnp.ones((G, N, 1), f32)
    q_ext = jnp.concatenate([q, ones_col], axis=-1)           # (G, N, 65)
    k_ext = jnp.concatenate([k, ind_col * MASK_VALUE], axis=-1)
    scores = jnp.einsum('gqd,gkd->gqk', q_ext, k_ext,
                        preferred_element_type=f32) + bias    # (G, N, N)

    m = jnp.max(scores, axis=-1, keepdims=True)
    p = jnp.exp(scores - m)
    attn = p * pl.reciprocal(jnp.sum(p, axis=-1, keepdims=True), approx=True)

    ctx = jnp.einsum('gqk,gkd->gqd', attn, v, preferred_element_type=f32)
    ctx = (jnp.dot(ctx.reshape(G * N, D), wo_ref[...], preferred_element_type=f32)
           + bo_ref[...]).reshape(G, N, D)

    # ---------------- mean over nodes, LayerNorm, Linear, sigmoid -----------
    x_avg = jnp.mean(ctx, axis=1)                             # (G, 64)
    mu = jnp.mean(x_avg, axis=-1, keepdims=True)
    var = jnp.mean((x_avg - mu) ** 2, axis=-1, keepdims=True)
    y = (x_avg - mu) * lax.rsqrt(var + LN_EPS)
    y = y * ln_g_ref[...] + ln_b_ref[...]

    logit = jnp.dot(y, fc_w_ref[...], preferred_element_type=f32) + fc_b_ref[...]
    sig = jax.nn.sigmoid(logit)                               # (G, 1)
    # tile-aligned (G, 128) store (unmasked vst path); wrapper keeps lane 0
    out_ref[...] = jnp.broadcast_to(sig, (G, 128))


def make_params(key):
    ks = jax.random.split(key, 8)
    f32 = jnp.float32

    def init(k, shape, fan_in):
        return jax.random.normal(k, shape, f32) * (1.0 / jnp.sqrt(float(fan_in)))

    return dict(
        w1=init(ks[0], (GCN_IN, GCN_HID), GCN_IN),
        b1=jnp.zeros((1, GCN_HID), f32),
        w2=init(ks[1], (GCN_HID, GCN_OUT), GCN_HID),
        b2=jnp.zeros((1, GCN_OUT), f32),
        wq=init(ks[2], (ATTN_DIM, ATTN_DIM), ATTN_DIM),
        bq=jnp.zeros((1, ATTN_DIM), f32),
        wk=init(ks[3], (ATTN_DIM, ATTN_DIM), ATTN_DIM),
        bk=jnp.zeros((1, ATTN_DIM), f32),
        wv=init(ks[4], (ATTN_DIM, ATTN_DIM), ATTN_DIM),
        bv=jnp.zeros((1, ATTN_DIM), f32),
        wo=init(ks[5], (ATTN_DIM, ATTN_DIM), ATTN_DIM),
        bo=jnp.zeros((1, ATTN_DIM), f32),
        ln_g=jnp.ones((1, ATTN_DIM), f32),
        ln_b=jnp.zeros((1, ATTN_DIM), f32),
        fc_w=init(ks[6], (ATTN_DIM, NUM_CLASSES), ATTN_DIM),
        fc_b=jnp.zeros((1, NUM_CLASSES), f32),
    )


def model_forward(params, x, adj, attn_bias, centrality, *, graphs_per_step=32):
    f32, bf16 = jnp.float32, jnp.bfloat16
    B, N, _ = x.shape
    assert N % 8 == 0, "node count must be a multiple of the 8-row sublane tile"
    # TODO(synk): pad the node axis in the wrapper to support arbitrary N.

    # Pick graphs-per-step G: aim for G*N >= 256 rows in the big projection,
    # but keep the grid length >= 2 when possible so the "parallel" batch axis
    # can be split across v7x's two TensorCores.
    if B <= graphs_per_step:
        G = min(graphs_per_step, max(8, ((B + 1) // 2 + 7) // 8 * 8))
    else:
        G = graphs_per_step
    assert G % 8 == 0
    B_pad = ((B + G - 1) // G) * G

    cent = centrality[..., None].astype(f32)     # (B, N, 1)

    def pad_b(a):
        if B_pad == B:
            return a
        widths = [(0, B_pad - B)] + [(0, 0)] * (a.ndim - 1)
        return jnp.pad(a, widths)

    # bf16 for the big DMA blocks (x, adj); bias/centrality stay f32.
    x_p = pad_b(x).astype(bf16)
    adj_p = pad_b(adj).astype(bf16)
    bias_p = pad_b(attn_bias).astype(f32)
    cent_p = pad_b(cent)

    # ---- weight prep: pad the ragged 63-wide GCN output to 64 lanes, fold
    # the feature-concat into split projection weights, fuse QKV into one
    # (64, 192) matrix, and fold the 1/sqrt(D) scale into the Q part.
    w2_pad = jnp.concatenate(
        [params['w2'], jnp.zeros((GCN_HID, ATTN_DIM - GCN_OUT), f32)], axis=1)
    b2_pad = jnp.concatenate(
        [params['b2'], jnp.zeros((1, ATTN_DIM - GCN_OUT), f32)], axis=1)

    def split_pad(w):
        wt = jnp.concatenate(
            [w[:GCN_OUT], jnp.zeros((ATTN_DIM - GCN_OUT, ATTN_DIM), f32)], axis=0)
        wb = w[GCN_OUT:GCN_OUT + 1]
        return wt, wb

    wq_t, wq_b = split_pad(params['wq'])
    wk_t, wk_b = split_pad(params['wk'])
    wv_t, wv_b = split_pad(params['wv'])

    scale = float(ATTN_DIM) ** -0.5
    wqkv_t = jnp.concatenate([wq_t * scale, wk_t, wv_t], axis=1)        # (64, 192)
    wqkv_b = jnp.concatenate([wq_b * scale, wk_b, wv_b], axis=1)        # (1, 192)
    bqkv = jnp.concatenate(
        [params['bq'] * scale, params['bk'], params['bv']], axis=1)     # (1, 192)

    weights = [
        params['w1'].astype(bf16), params['b1'],
        w2_pad.astype(bf16), b2_pad,
        wqkv_t, wqkv_b, bqkv,
        params['wo'], params['bo'],
        params['ln_g'], params['ln_b'],
        params['fc_w'], params['fc_b'],
    ]

    def full_spec(shape):
        return pl.BlockSpec(shape, lambda b, n=len(shape): (0,) * n)

    in_specs = [
        pl.BlockSpec((G, N, GCN_IN), lambda b: (b, 0, 0)),   # x (bf16)
        pl.BlockSpec((G, N, N), lambda b: (b, 0, 0)),        # adj (bf16)
        pl.BlockSpec((G, N, N), lambda b: (b, 0, 0)),        # attn_bias
        pl.BlockSpec((G, N, 1), lambda b: (b, 0, 0)),        # centrality
    ] + [full_spec(w.shape) for w in weights]

    # Scoped-VMEM budget: double-buffered per-step blocks + resident weights
    # + rough in-kernel intermediates, with 2x headroom (clamped).
    per_step = 2 * (G * N * GCN_IN * 2            # x (bf16)
                    + G * N * N * (2 + 4)         # adj (bf16) + bias (f32)
                    + G * N * 4                   # centrality
                    + G * 128 * 4)                # output block
    per_step += 2 * sum(int(w.size) * w.dtype.itemsize for w in weights)
    per_step += G * N * (2 * GCN_HID + 10 * ATTN_DIM + 3 * N) * 4
    vmem_limit = int(min(96 * 2**20, max(32 * 2**20, 2 * per_step)))

    out_full = pl.pallas_call(
        _model_kernel,
        out_shape=jax.ShapeDtypeStruct((B_pad, 128), f32),
        grid=(B_pad // G,),
        in_specs=in_specs,
        out_specs=pl.BlockSpec((G, 128), lambda b: (b, 0)),
        compiler_params=pltpu.CompilerParams(
            dimension_semantics=("parallel",),   # independent graphs -> megacore
            vmem_limit_bytes=vmem_limit),
    )(x_p, adj_p, bias_p, cent_p, *weights)

    out = out_full[:B, 0:1]                      # (B, 1)
    # torch .squeeze(0): only squeezes when the leading dim is of size 1
    if out.shape[0] == 1:
        out = out[0]
    return out


if __name__ == "__main__":
    B, N = 32, 8
    key = jax.random.PRNGKey(0)
    kx, kadj, kbias, kcent, kparam = jax.random.split(key, 5)

    x = jax.random.normal(kx, (B, N, GCN_IN), jnp.float32)
    adj_raw = jax.random.uniform(kadj, (B, N, N), jnp.float32)
    adj = adj_raw / jnp.sum(adj_raw, axis=-1, keepdims=True)     # row-normalized
    attn_bias = jax.random.normal(kbias, (B, N, N), jnp.float32) * 0.1
    centrality = jax.random.normal(kcent, (B, N), jnp.float32)

    params = make_params(kparam)

    out = model_forward(params, x, adj, attn_bias, centrality)
    out = jax.block_until_ready(out)
    assert out.shape == (B, NUM_CLASSES), out.shape
    assert bool(jnp.all(jnp.isfinite(out)))
    print("KERNEL_OK")
</pallas_src>

<mosaic_0001>
module attributes {stable_mosaic.version = 11 : i64} {
  func.func @_model_kernel(%arg0: i32, %arg1: memref<16x8x1024xbf16, #tpu.memory_space<vmem>>, %arg2: memref<16x8x8xbf16, #tpu.memory_space<vmem>>, %arg3: memref<16x8x8xf32, #tpu.memory_space<vmem>>, %arg4: memref<16x8x1xf32, #tpu.memory_space<vmem>>, %arg5: memref<1024x256xbf16, #tpu.memory_space<vmem>>, %arg6: memref<1x256xf32, #tpu.memory_space<vmem>>, %arg7: memref<256x64xbf16, #tpu.memory_space<vmem>>, %arg8: memref<1x64xf32, #tpu.memory_space<vmem>>, %arg9: memref<64x192xf32, #tpu.memory_space<vmem>>, %arg10: memref<1x192xf32, #tpu.memory_space<vmem>>, %arg11: memref<1x192xf32, #tpu.memory_space<vmem>>, %arg12: memref<64x64xf32, #tpu.memory_space<vmem>>, %arg13: memref<1x64xf32, #tpu.memory_space<vmem>>, %arg14: memref<1x64xf32, #tpu.memory_space<vmem>>, %arg15: memref<1x64xf32, #tpu.memory_space<vmem>>, %arg16: memref<64x1xf32, #tpu.memory_space<vmem>>, %arg17: memref<1x1xf32, #tpu.memory_space<vmem>>, %arg18: memref<16x128xf32, #tpu.memory_space<vmem>>) attributes {dimension_semantics = [#tpu.dimension_semantics<parallel>], iteration_bounds = array<i64: 2>, scalar_prefetch = 0 : i64, scratch_operands = 0 : i64, tpu.core_type = #tpu.core_type<tc>, window_params = [{transform_indices = @transform_0, window_bounds = array<i64: 16, 8, 1024>}, {transform_indices = @transform_1, window_bounds = array<i64: 16, 8, 8>}, {transform_indices = @transform_2, window_bounds = array<i64: 16, 8, 8>}, {transform_indices = @transform_3, window_bounds = array<i64: 16, 8, 1>}, {pipeline_mode = #tpu.pipeline_mode<synchronous>, transform_indices = @transform_4, window_bounds = array<i64: 1024, 256>}, {pipeline_mode = #tpu.pipeline_mode<synchronous>, transform_indices = @transform_5, window_bounds = array<i64: 1, 256>}, {pipeline_mode = #tpu.pipeline_mode<synchronous>, transform_indices = @transform_6, window_bounds = array<i64: 256, 64>}, {pipeline_mode = #tpu.pipeline_mode<synchronous>, transform_indices = @transform_7, window_bounds = array<i64: 1, 64>}, {pipeline_mode = #tpu.pipeline_mode<synchronous>, transform_indices = @transform_8, window_bounds = array<i64: 64, 192>}, {pipeline_mode = #tpu.pipeline_mode<synchronous>, transform_indices = @transform_9, window_bounds = array<i64: 1, 192>}, {pipeline_mode = #tpu.pipeline_mode<synchronous>, transform_indices = @transform_10, window_bounds = array<i64: 1, 192>}, {pipeline_mode = #tpu.pipeline_mode<synchronous>, transform_indices = @transform_11, window_bounds = array<i64: 64, 64>}, {pipeline_mode = #tpu.pipeline_mode<synchronous>, transform_indices = @transform_12, window_bounds = array<i64: 1, 64>}, {pipeline_mode = #tpu.pipeline_mode<synchronous>, transform_indices = @transform_13, window_bounds = array<i64: 1, 64>}, {pipeline_mode = #tpu.pipeline_mode<synchronous>, transform_indices = @transform_14, window_bounds = array<i64: 1, 64>}, {pipeline_mode = #tpu.pipeline_mode<synchronous>, transform_indices = @transform_15, window_bounds = array<i64: 64, 1>}, {pipeline_mode = #tpu.pipeline_mode<synchronous>, transform_indices = @transform_16, window_bounds = array<i64: 1, 1>}, {transform_indices = @transform_17, window_bounds = array<i64: 16, 128>}]} {
    %c0 = arith.constant 0 : index
    %c0_0 = arith.constant 0 : index
    %c0_1 = arith.constant 0 : index
    %0 = vector.load %arg3[%c0, %c0_0, %c0_1] : memref<16x8x8xf32, #tpu.memory_space<vmem>>, vector<16x8x8xf32>
    %c0_2 = arith.constant 0 : index
    %c0_3 = arith.constant 0 : index
    %c0_4 = arith.constant 0 : index
    %1 = vector.load %arg4[%c0_2, %c0_3, %c0_4] : memref<16x8x1xf32, #tpu.memory_space<vmem>>, vector<16x8x1xf32>
    %c0_5 = arith.constant 0 : index
    %c0_6 = arith.constant 0 : index
    %c0_7 = arith.constant 0 : index
    %2 = vector.load %arg2[%c0_5, %c0_6, %c0_7] : memref<16x8x8xbf16, #tpu.memory_space<vmem>>, vector<16x8x8xbf16>
    %3 = arith.extf %2 : vector<16x8x8xbf16> to vector<16x8x8xf32>
    %c0_8 = arith.constant 0 : index
    %c0_9 = arith.constant 0 : index
    %c0_10 = arith.constant 0 : index
    %4 = vector.load %arg1[%c0_8, %c0_9, %c0_10] : memref<16x8x1024xbf16, #tpu.memory_space<vmem>>, vector<16x8x1024xbf16>
    %5 = vector.shape_cast %4 : vector<16x8x1024xbf16> to vector<128x1024xbf16>
    %c0_11 = arith.constant 0 : index
    %c0_12 = arith.constant 0 : index
    %6 = vector.load %arg5[%c0_11, %c0_12] : memref<1024x256xbf16, #tpu.memory_space<vmem>>, vector<1024x256xbf16>
    %cst = arith.constant dense<0.000000e+00> : vector<128x256xf32>
    %7 = tpu.matmul %5, %6, %cst {dimension_numbers = #tpu.dot_dimension_numbers<[1], [0], [0], [1], [0, 0, 1, 1], [], []>} : vector<128x1024xbf16>, vector<1024x256xbf16>, vector<128x256xf32> -> vector<128x256xf32>
    %8 = vector.shape_cast %7 : vector<128x256xf32> to vector<16x8x256xf32>
    %9 = vector.extract_strided_slice %3 {offsets = [0, 0, 0], sizes = [16, 8, 1], strides = [1, 1, 1]} : vector<16x8x8xf32> to vector<16x8x1xf32>
    %10 = vector.extract_strided_slice %8 {offsets = [0, 0, 0], sizes = [16, 1, 256], strides = [1, 1, 1]} : vector<16x8x256xf32> to vector<16x1x256xf32>
    %11 = vector.broadcast %9 : vector<16x8x1xf32> to vector<16x8x256xf32>
    %12 = vector.broadcast %10 : vector<16x1x256xf32> to vector<16x8x256xf32>
    %13 = arith.mulf %11, %12 : vector<16x8x256xf32>
    %14 = vector.extract_strided_slice %3 {offsets = [0, 0, 1], sizes = [16, 8, 1], strides = [1, 1, 1]} : vector<16x8x8xf32> to vector<16x8x1xf32>
    %15 = vector.extract_strided_slice %8 {offsets = [0, 1, 0], sizes = [16, 1, 256], strides = [1, 1, 1]} : vector<16x8x256xf32> to vector<16x1x256xf32>
    %16 = vector.broadcast %14 : vector<16x8x1xf32> to vector<16x8x256xf32>
    %17 = vector.broadcast %15 : vector<16x1x256xf32> to vector<16x8x256xf32>
    %18 = arith.mulf %16, %17 : vector<16x8x256xf32>
    %19 = arith.addf %13, %18 : vector<16x8x256xf32>
    %20 = vector.extract_strided_slice %3 {offsets = [0, 0, 2], sizes = [16, 8, 1], strides = [1, 1, 1]} : vector<16x8x8xf32> to vector<16x8x1xf32>
    %21 = vector.extract_strided_slice %8 {offsets = [0, 2, 0], sizes = [16, 1, 256], strides = [1, 1, 1]} : vector<16x8x256xf32> to vector<16x1x256xf32>
    %22 = vector.broadcast %20 : vector<16x8x1xf32> to vector<16x8x256xf32>
    %23 = vector.broadcast %21 : vector<16x1x256xf32> to vector<16x8x256xf32>
    %24 = arith.mulf %22, %23 : vector<16x8x256xf32>
    %25 = arith.addf %19, %24 : vector<16x8x256xf32>
    %26 = vector.extract_strided_slice %3 {offsets = [0, 0, 3], sizes = [16, 8, 1], strides = [1, 1, 1]} : vector<16x8x8xf32> to vector<16x8x1xf32>
    %27 = vector.extract_strided_slice %8 {offsets = [0, 3, 0], sizes = [16, 1, 256], strides = [1, 1, 1]} : vector<16x8x256xf32> to vector<16x1x256xf32>
    %28 = vector.broadcast %26 : vector<16x8x1xf32> to vector<16x8x256xf32>
    %29 = vector.broadcast %27 : vector<16x1x256xf32> to vector<16x8x256xf32>
    %30 = arith.mulf %28, %29 : vector<16x8x256xf32>
    %31 = arith.addf %25, %30 : vector<16x8x256xf32>
    %32 = vector.extract_strided_slice %3 {offsets = [0, 0, 4], sizes = [16, 8, 1], strides = [1, 1, 1]} : vector<16x8x8xf32> to vector<16x8x1xf32>
    %33 = vector.extract_strided_slice %8 {offsets = [0, 4, 0], sizes = [16, 1, 256], strides = [1, 1, 1]} : vector<16x8x256xf32> to vector<16x1x256xf32>
    %34 = vector.broadcast %32 : vector<16x8x1xf32> to vector<16x8x256xf32>
    %35 = vector.broadcast %33 : vector<16x1x256xf32> to vector<16x8x256xf32>
    %36 = arith.mulf %34, %35 : vector<16x8x256xf32>
    %37 = arith.addf %31, %36 : vector<16x8x256xf32>
    %38 = vector.extract_strided_slice %3 {offsets = [0, 0, 5], sizes = [16, 8, 1], strides = [1, 1, 1]} : vector<16x8x8xf32> to vector<16x8x1xf32>
    %39 = vector.extract_strided_slice %8 {offsets = [0, 5, 0], sizes = [16, 1, 256], strides = [1, 1, 1]} : vector<16x8x256xf32> to vector<16x1x256xf32>
    %40 = vector.broadcast %38 : vector<16x8x1xf32> to vector<16x8x256xf32>
    %41 = vector.broadcast %39 : vector<16x1x256xf32> to vector<16x8x256xf32>
    %42 = arith.mulf %40, %41 : vector<16x8x256xf32>
    %43 = arith.addf %37, %42 : vector<16x8x256xf32>
    %44 = vector.extract_strided_slice %3 {offsets = [0, 0, 6], sizes = [16, 8, 1], strides = [1, 1, 1]} : vector<16x8x8xf32> to vector<16x8x1xf32>
    %45 = vector.extract_strided_slice %8 {offsets = [0, 6, 0], sizes = [16, 1, 256], strides = [1, 1, 1]} : vector<16x8x256xf32> to vector<16x1x256xf32>
    %46 = vector.broadcast %44 : vector<16x8x1xf32> to vector<16x8x256xf32>
    %47 = vector.broadcast %45 : vector<16x1x256xf32> to vector<16x8x256xf32>
    %48 = arith.mulf %46, %47 : vector<16x8x256xf32>
    %49 = arith.addf %43, %48 : vector<16x8x256xf32>
    %50 = vector.extract_strided_slice %3 {offsets = [0, 0, 7], sizes = [16, 8, 1], strides = [1, 1, 1]} : vector<16x8x8xf32> to vector<16x8x1xf32>
    %51 = vector.extract_strided_slice %8 {offsets = [0, 7, 0], sizes = [16, 1, 256], strides = [1, 1, 1]} : vector<16x8x256xf32> to vector<16x1x256xf32>
    %52 = vector.broadcast %50 : vector<16x8x1xf32> to vector<16x8x256xf32>
    %53 = vector.broadcast %51 : vector<16x1x256xf32> to vector<16x8x256xf32>
    %54 = arith.mulf %52, %53 : vector<16x8x256xf32>
    %55 = arith.addf %49, %54 : vector<16x8x256xf32>
    %c0_13 = arith.constant 0 : index
    %c0_14 = arith.constant 0 : index
    %56 = vector.load %arg6[%c0_13, %c0_14] : memref<1x256xf32, #tpu.memory_space<vmem>>, vector<1x256xf32>
    %57 = vector.shape_cast %56 : vector<1x256xf32> to vector<1x1x256xf32>
    %58 = vector.broadcast %57 : vector<1x1x256xf32> to vector<16x8x256xf32>
    %59 = arith.addf %55, %58 : vector<16x8x256xf32>
    %cst_15 = arith.constant 0.000000e+00 : f32
    %60 = vector.broadcast %cst_15 : f32 to vector<16x8x256xf32>
    %61 = arith.maximumf %59, %60 : vector<16x8x256xf32>
    %62 = vector.shape_cast %61 : vector<16x8x256xf32> to vector<128x256xf32>
    %63 = arith.truncf %62 : vector<128x256xf32> to vector<128x256xbf16>
    %c0_16 = arith.constant 0 : index
    %c0_17 = arith.constant 0 : index
    %64 = vector.load %arg7[%c0_16, %c0_17] : memref<256x64xbf16, #tpu.memory_space<vmem>>, vector<256x64xbf16>
    %cst_18 = arith.constant dense<0.000000e+00> : vector<128x64xf32>
    %65 = tpu.matmul %63, %64, %cst_18 {dimension_numbers = #tpu.dot_dimension_numbers<[1], [0], [0], [1], [0, 0, 1, 1], [], []>} : vector<128x256xbf16>, vector<256x64xbf16>, vector<128x64xf32> -> vector<128x64xf32>
    %66 = vector.shape_cast %65 : vector<128x64xf32> to vector<16x8x64xf32>
    %67 = vector.extract_strided_slice %3 {offsets = [0, 0, 0], sizes = [16, 8, 1], strides = [1, 1, 1]} : vector<16x8x8xf32> to vector<16x8x1xf32>
    %68 = vector.extract_strided_slice %66 {offsets = [0, 0, 0], sizes = [16, 1, 64], strides = [1, 1, 1]} : vector<16x8x64xf32> to vector<16x1x64xf32>
    %69 = vector.broadcast %67 : vector<16x8x1xf32> to vector<16x8x64xf32>
    %70 = vector.broadcast %68 : vector<16x1x64xf32> to vector<16x8x64xf32>
    %71 = arith.mulf %69, %70 : vector<16x8x64xf32>
    %72 = vector.extract_strided_slice %3 {offsets = [0, 0, 1], sizes = [16, 8, 1], strides = [1, 1, 1]} : vector<16x8x8xf32> to vector<16x8x1xf32>
    %73 = vector.extract_strided_slice %66 {offsets = [0, 1, 0], sizes = [16, 1, 64], strides = [1, 1, 1]} : vector<16x8x64xf32> to vector<16x1x64xf32>
    %74 = vector.broadcast %72 : vector<16x8x1xf32> to vector<16x8x64xf32>
    %75 = vector.broadcast %73 : vector<16x1x64xf32> to vector<16x8x64xf32>
    %76 = arith.mulf %74, %75 : vector<16x8x64xf32>
    %77 = arith.addf %71, %76 : vector<16x8x64xf32>
    %78 = vector.extract_strided_slice %3 {offsets = [0, 0, 2], sizes = [16, 8, 1], strides = [1, 1, 1]} : vector<16x8x8xf32> to vector<16x8x1xf32>
    %79 = vector.extract_strided_slice %66 {offsets = [0, 2, 0], sizes = [16, 1, 64], strides = [1, 1, 1]} : vector<16x8x64xf32> to vector<16x1x64xf32>
    %80 = vector.broadcast %78 : vector<16x8x1xf32> to vector<16x8x64xf32>
    %81 = vector.broadcast %79 : vector<16x1x64xf32> to vector<16x8x64xf32>
    %82 = arith.mulf %80, %81 : vector<16x8x64xf32>
    %83 = arith.addf %77, %82 : vector<16x8x64xf32>
    %84 = vector.extract_strided_slice %3 {offsets = [0, 0, 3], sizes = [16, 8, 1], strides = [1, 1, 1]} : vector<16x8x8xf32> to vector<16x8x1xf32>
    %85 = vector.extract_strided_slice %66 {offsets = [0, 3, 0], sizes = [16, 1, 64], strides = [1, 1, 1]} : vector<16x8x64xf32> to vector<16x1x64xf32>
    %86 = vector.broadcast %84 : vector<16x8x1xf32> to vector<16x8x64xf32>
    %87 = vector.broadcast %85 : vector<16x1x64xf32> to vector<16x8x64xf32>
    %88 = arith.mulf %86, %87 : vector<16x8x64xf32>
    %89 = arith.addf %83, %88 : vector<16x8x64xf32>
    %90 = vector.extract_strided_slice %3 {offsets = [0, 0, 4], sizes = [16, 8, 1], strides = [1, 1, 1]} : vector<16x8x8xf32> to vector<16x8x1xf32>
    %91 = vector.extract_strided_slice %66 {offsets = [0, 4, 0], sizes = [16, 1, 64], strides = [1, 1, 1]} : vector<16x8x64xf32> to vector<16x1x64xf32>
    %92 = vector.broadcast %90 : vector<16x8x1xf32> to vector<16x8x64xf32>
    %93 = vector.broadcast %91 : vector<16x1x64xf32> to vector<16x8x64xf32>
    %94 = arith.mulf %92, %93 : vector<16x8x64xf32>
    %95 = arith.addf %89, %94 : vector<16x8x64xf32>
    %96 = vector.extract_strided_slice %3 {offsets = [0, 0, 5], sizes = [16, 8, 1], strides = [1, 1, 1]} : vector<16x8x8xf32> to vector<16x8x1xf32>
    %97 = vector.extract_strided_slice %66 {offsets = [0, 5, 0], sizes = [16, 1, 64], strides = [1, 1, 1]} : vector<16x8x64xf32> to vector<16x1x64xf32>
    %98 = vector.broadcast %96 : vector<16x8x1xf32> to vector<16x8x64xf32>
    %99 = vector.broadcast %97 : vector<16x1x64xf32> to vector<16x8x64xf32>
    %100 = arith.mulf %98, %99 : vector<16x8x64xf32>
    %101 = arith.addf %95, %100 : vector<16x8x64xf32>
    %102 = vector.extract_strided_slice %3 {offsets = [0, 0, 6], sizes = [16, 8, 1], strides = [1, 1, 1]} : vector<16x8x8xf32> to vector<16x8x1xf32>
    %103 = vector.extract_strided_slice %66 {offsets = [0, 6, 0], sizes = [16, 1, 64], strides = [1, 1, 1]} : vector<16x8x64xf32> to vector<16x1x64xf32>
    %104 = vector.broadcast %102 : vector<16x8x1xf32> to vector<16x8x64xf32>
    %105 = vector.broadcast %103 : vector<16x1x64xf32> to vector<16x8x64xf32>
    %106 = arith.mulf %104, %105 : vector<16x8x64xf32>
    %107 = arith.addf %101, %106 : vector<16x8x64xf32>
    %108 = vector.extract_strided_slice %3 {offsets = [0, 0, 7], sizes = [16, 8, 1], strides = [1, 1, 1]} : vector<16x8x8xf32> to vector<16x8x1xf32>
    %109 = vector.extract_strided_slice %66 {offsets = [0, 7, 0], sizes = [16, 1, 64], strides = [1, 1, 1]} : vector<16x8x64xf32> to vector<16x1x64xf32>
    %110 = vector.broadcast %108 : vector<16x8x1xf32> to vector<16x8x64xf32>
    %111 = vector.broadcast %109 : vector<16x1x64xf32> to vector<16x8x64xf32>
    %112 = arith.mulf %110, %111 : vector<16x8x64xf32>
    %113 = arith.addf %107, %112 : vector<16x8x64xf32>
    %c0_19 = arith.constant 0 : index
    %c0_20 = arith.constant 0 : index
    %114 = vector.load %arg8[%c0_19, %c0_20] : memref<1x64xf32, #tpu.memory_space<vmem>>, vector<1x64xf32>
    %115 = vector.shape_cast %114 : vector<1x64xf32> to vector<1x1x64xf32>
    %116 = vector.broadcast %115 : vector<1x1x64xf32> to vector<16x8x64xf32>
    %117 = arith.addf %113, %116 : vector<16x8x64xf32>
    %118 = vector.extract_strided_slice %117 {offsets = [0, 0, 0], sizes = [16, 8, 1], strides = [1, 1, 1]} : vector<16x8x64xf32> to vector<16x8x1xf32>
    %cst_21 = arith.constant 0.000000e+00 : f32
    %119 = vector.broadcast %cst_21 : f32 to vector<16x8x1xf32>
    %120 = arith.cmpf oeq, %118, %119 : vector<16x8x1xf32>
    %121 = arith.extui %120 : vector<16x8x1xi1> to vector<16x8x1xi32>
    %122 = arith.sitofp %121 : vector<16x8x1xi32> to vector<16x8x1xf32>
    %123 = vector.shape_cast %117 : vector<16x8x64xf32> to vector<128x64xf32>
    %124 = vector.shape_cast %1 : vector<16x8x1xf32> to vector<128x1xf32>
    %c0_22 = arith.constant 0 : index
    %c0_23 = arith.constant 0 : index
    %125 = vector.load %arg9[%c0_22, %c0_23] : memref<64x192xf32, #tpu.memory_space<vmem>>, vector<64x192xf32>
    %cst_24 = arith.constant dense<0.000000e+00> : vector<128x192xf32>
    %126 = tpu.matmul %123, %125, %cst_24 {dimension_numbers = #tpu.dot_dimension_numbers<[1], [0], [0], [1], [0, 0, 1, 1], [], []>} : vector<128x64xf32>, vector<64x192xf32>, vector<128x192xf32> -> vector<128x192xf32>
    %c0_25 = arith.constant 0 : index
    %c0_26 = arith.constant 0 : index
    %127 = vector.load %arg10[%c0_25, %c0_26] : memref<1x192xf32, #tpu.memory_space<vmem>>, vector<1x192xf32>
    %128 = vector.broadcast %124 : vector<128x1xf32> to vector<128x192xf32>
    %129 = vector.broadcast %127 : vector<1x192xf32> to vector<128x192xf32>
    %130 = arith.mulf %128, %129 : vector<128x192xf32>
    %131 = arith.addf %126, %130 : vector<128x192xf32>
    %c0_27 = arith.constant 0 : index
    %c0_28 = arith.constant 0 : index
    %132 = vector.load %arg11[%c0_27, %c0_28] : memref<1x192xf32, #tpu.memory_space<vmem>>, vector<1x192xf32>
    %133 = vector.broadcast %132 : vector<1x192xf32> to vector<128x192xf32>
    %134 = arith.addf %131, %133 : vector<128x192xf32>
    %135 = vector.shape_cast %134 : vector<128x192xf32> to vector<16x8x192xf32>
    %136 = vector.extract_strided_slice %135 {offsets = [0, 0, 0], sizes = [16, 8, 64], strides = [1, 1, 1]} : vector<16x8x192xf32> to vector<16x8x64xf32>
    %137 = vector.extract_strided_slice %135 {offsets = [0, 0, 64], sizes = [16, 8, 64], strides = [1, 1, 1]} : vector<16x8x192xf32> to vector<16x8x64xf32>
    %138 = vector.extract_strided_slice %135 {offsets = [0, 0, 128], sizes = [16, 8, 64], strides = [1, 1, 1]} : vector<16x8x192xf32> to vector<16x8x64xf32>
    %cst_29 = arith.constant 1.000000e+00 : f32
    %139 = vector.broadcast %cst_29 : f32 to vector<16x8x1xf32>
    %140 = tpu.concatenate %136, %139 in 2 : vector<16x8x64xf32>, vector<16x8x1xf32> -> vector<16x8x65xf32>
    %cst_30 = arith.constant -1.000000e+30 : f32
    %141 = vector.broadcast %cst_30 : f32 to vector<16x8x1xf32>
    %142 = arith.mulf %122, %141 : vector<16x8x1xf32>
    %143 = tpu.concatenate %137, %142 in 2 : vector<16x8x64xf32>, vector<16x8x1xf32> -> vector<16x8x65xf32>
    "tpu.trace_start"() <{level = 10 : i32, message = "gqd,gkd->gqk"}> : () -> ()
    %cst_31 = arith.constant dense<0.000000e+00> : vector<16x8x8xf32>
    %144 = tpu.matmul %140, %143, %cst_31 {dimension_numbers = #tpu.dot_dimension_numbers<[2], [2], [1], [1], [0, 0, 0, 1, 1, 1], [0], [0]>} : vector<16x8x65xf32>, vector<16x8x65xf32>, vector<16x8x8xf32> -> vector<16x8x8xf32>
    "tpu.trace_stop"() : () -> ()
    %145 = arith.addf %144, %0 : vector<16x8x8xf32>
    %cst_32 = arith.constant dense<0xFF800000> : vector<16x8xf32>
    %146 = vector.multi_reduction <maximumf>, %145, %cst_32 [2] : vector<16x8x8xf32> to vector<16x8xf32>
    %147 = vector.shape_cast %146 : vector<16x8xf32> to vector<16x8x1xf32>
    %148 = vector.broadcast %147 : vector<16x8x1xf32> to vector<16x8x8xf32>
    %149 = arith.subf %145, %148 : vector<16x8x8xf32>
    %150 = math.exp %149 : vector<16x8x8xf32>
    %cst_33 = arith.constant dense<0.000000e+00> : vector<16x8xf32>
    %151 = vector.multi_reduction <add>, %150, %cst_33 [2] : vector<16x8x8xf32> to vector<16x8xf32>
    %152 = vector.shape_cast %151 : vector<16x8xf32> to vector<16x8x1xf32>
    %153 = tpu.reciprocal %152 {approx = true} : vector<16x8x1xf32> -> vector<16x8x1xf32>
    %154 = vector.broadcast %153 : vector<16x8x1xf32> to vector<16x8x8xf32>
    %155 = arith.mulf %150, %154 : vector<16x8x8xf32>
    "tpu.trace_start"() <{level = 10 : i32, message = "gqk,gkd->gqd"}> : () -> ()
    %cst_34 = arith.constant dense<0.000000e+00> : vector<16x8x64xf32>
    %156 = tpu.matmul %155, %138, %cst_34 {dimension_numbers = #tpu.dot_dimension_numbers<[2], [1], [1], [2], [0, 0, 0, 1, 1, 2], [0], [0]>} : vector<16x8x8xf32>, vector<16x8x64xf32>, vector<16x8x64xf32> -> vector<16x8x64xf32>
    "tpu.trace_stop"() : () -> ()
    %157 = vector.shape_cast %156 : vector<16x8x64xf32> to vector<128x64xf32>
    %c0_35 = arith.constant 0 : index
    %c0_36 = arith.constant 0 : index
    %158 = vector.load %arg12[%c0_35, %c0_36] : memref<64x64xf32, #tpu.memory_space<vmem>>, vector<64x64xf32>
    %cst_37 = arith.constant dense<0.000000e+00> : vector<128x64xf32>
    %159 = tpu.matmul %157, %158, %cst_37 {dimension_numbers = #tpu.dot_dimension_numbers<[1], [0], [0], [1], [0, 0, 1, 1], [], []>} : vector<128x64xf32>, vector<64x64xf32>, vector<128x64xf32> -> vector<128x64xf32>
    %c0_38 = arith.constant 0 : index
    %c0_39 = arith.constant 0 : index
    %160 = vector.load %arg13[%c0_38, %c0_39] : memref<1x64xf32, #tpu.memory_space<vmem>>, vector<1x64xf32>
    %161 = vector.broadcast %160 : vector<1x64xf32> to vector<128x64xf32>
    %162 = arith.addf %159, %161 : vector<128x64xf32>
    %163 = vector.shape_cast %162 : vector<128x64xf32> to vector<16x8x64xf32>
    %cst_40 = arith.constant dense<0.000000e+00> : vector<16x64xf32>
    %164 = vector.multi_reduction <add>, %163, %cst_40 [1] : vector<16x8x64xf32> to vector<16x64xf32>
    %cst_41 = arith.constant 8.000000e+00 : f32
    %165 = vector.broadcast %cst_41 : f32 to vector<16x64xf32>
    %166 = arith.divf %164, %165 : vector<16x64xf32>
    %cst_42 = arith.constant dense<0.000000e+00> : vector<16xf32>
    %167 = vector.multi_reduction <add>, %166, %cst_42 [1] : vector<16x64xf32> to vector<16xf32>
    %168 = vector.shape_cast %167 : vector<16xf32> to vector<16x1xf32>
    %cst_43 = arith.constant 6.400000e+01 : f32
    %169 = vector.broadcast %cst_43 : f32 to vector<16x1xf32>
    %170 = arith.divf %168, %169 : vector<16x1xf32>
    %171 = vector.broadcast %170 : vector<16x1xf32> to vector<16x64xf32>
    %172 = arith.subf %166, %171 : vector<16x64xf32>
    %173 = arith.mulf %172, %172 : vector<16x64xf32>
    %cst_44 = arith.constant dense<0.000000e+00> : vector<16xf32>
    %174 = vector.multi_reduction <add>, %173, %cst_44 [1] : vector<16x64xf32> to vector<16xf32>
    %175 = vector.shape_cast %174 : vector<16xf32> to vector<16x1xf32>
    %cst_45 = arith.constant 6.400000e+01 : f32
    %176 = vector.broadcast %cst_45 : f32 to vector<16x1xf32>
    %177 = arith.divf %175, %176 : vector<16x1xf32>
    %178 = vector.broadcast %170 : vector<16x1xf32> to vector<16x64xf32>
    %179 = arith.subf %166, %178 : vector<16x64xf32>
    %cst_46 = arith.constant 9.99999974E-6 : f32
    %180 = vector.broadcast %cst_46 : f32 to vector<16x1xf32>
    %181 = arith.addf %177, %180 : vector<16x1xf32>
    %182 = math.rsqrt %181 : vector<16x1xf32>
    %183 = vector.broadcast %182 : vector<16x1xf32> to vector<16x64xf32>
    %184 = arith.mulf %179, %183 : vector<16x64xf32>
    %c0_47 = arith.constant 0 : index
    %c0_48 = arith.constant 0 : index
    %185 = vector.load %arg14[%c0_47, %c0_48] : memref<1x64xf32, #tpu.memory_space<vmem>>, vector<1x64xf32>
    %186 = vector.broadcast %185 : vector<1x64xf32> to vector<16x64xf32>
    %187 = arith.mulf %184, %186 : vector<16x64xf32>
    %c0_49 = arith.constant 0 : index
    %c0_50 = arith.constant 0 : index
    %188 = vector.load %arg15[%c0_49, %c0_50] : memref<1x64xf32, #tpu.memory_space<vmem>>, vector<1x64xf32>
    %189 = vector.broadcast %188 : vector<1x64xf32> to vector<16x64xf32>
    %190 = arith.addf %187, %189 : vector<16x64xf32>
    %c0_51 = arith.constant 0 : index
    %c0_52 = arith.constant 0 : index
    %191 = vector.load %arg16[%c0_51, %c0_52] : memref<64x1xf32, #tpu.memory_space<vmem>>, vector<64x1xf32>
    %cst_53 = arith.constant dense<0.000000e+00> : vector<16x1xf32>
    %192 = tpu.matmul %190, %191, %cst_53 {dimension_numbers = #tpu.dot_dimension_numbers<[1], [0], [0], [1], [0, 0, 1, 1], [], []>} : vector<16x64xf32>, vector<64x1xf32>, vector<16x1xf32> -> vector<16x1xf32>
    %c0_54 = arith.constant 0 : index
    %c0_55 = arith.constant 0 : index
    %193 = vector.load %arg17[%c0_54, %c0_55] : memref<1x1xf32, #tpu.memory_space<vmem>>, vector<1x1xf32>
    %194 = vector.broadcast %193 : vector<1x1xf32> to vector<16x1xf32>
    %195 = arith.addf %192, %194 : vector<16x1xf32>
    %196 = arith.negf %195 : vector<16x1xf32>
    %197 = math.exp %196 : vector<16x1xf32>
    %cst_56 = arith.constant 1.000000e+00 : f32
    %198 = vector.broadcast %cst_56 : f32 to vector<16x1xf32>
    %199 = arith.addf %198, %197 : vector<16x1xf32>
    %200 = arith.divf %198, %199 : vector<16x1xf32>
    %201 = vector.shape_cast %200 : vector<16x1xf32> to vector<16x1xf32>
    %202 = vector.broadcast %201 : vector<16x1xf32> to vector<16x128xf32>
    %c0_57 = arith.constant 0 : index
    %c0_58 = arith.constant 0 : index
    %203 = vector.load %arg18[%c0_57, %c0_58] : memref<16x128xf32, #tpu.memory_space<vmem>>, vector<16x128xf32>
    tpu.vector_store %arg18[%c0_57, %c0_58], %202 {strides = array<i32>} : memref<16x128xf32, #tpu.memory_space<vmem>>, vector<16x128xf32>,
    return
  }
  func.func @transform_0(%arg0: i32) -> (i32, i32, i32) {
    %c0_i32 = arith.constant 0 : i32
    %c0_i32_0 = arith.constant 0 : i32
    %c0_i32_1 = arith.constant 0 : i32
    return %arg0, %c0_i32, %c0_i32_0 : i32, i32, i32
  }
  func.func @transform_1(%arg0: i32) -> (i32, i32, i32) {
    %c0_i32 = arith.constant 0 : i32
    %c0_i32_0 = arith.constant 0 : i32
    %c0_i32_1 = arith.constant 0 : i32
    return %arg0, %c0_i32, %c0_i32_0 : i32, i32, i32
  }
  func.func @transform_2(%arg0: i32) -> (i32, i32, i32) {
    %c0_i32 = arith.constant 0 : i32
    %c0_i32_0 = arith.constant 0 : i32
    %c0_i32_1 = arith.constant 0 : i32
    return %arg0, %c0_i32, %c0_i32_0 : i32, i32, i32
  }
  func.func @transform_3(%arg0: i32) -> (i32, i32, i32) {
    %c0_i32 = arith.constant 0 : i32
    %c0_i32_0 = arith.constant 0 : i32
    %c0_i32_1 = arith.constant 0 : i32
    return %arg0, %c0_i32, %c0_i32_0 : i32, i32, i32
  }
  func.func @transform_4(%arg0: i32) -> (i32, i32) {
    %c0_i32 = arith.constant 0 : i32
    %c0_i32_0 = arith.constant 0 : i32
    %c0_i32_1 = arith.constant 0 : i32
    return %c0_i32, %c0_i32_0 : i32, i32
  }
  func.func @transform_5(%arg0: i32) -> (i32, i32) {
    %c0_i32 = arith.constant 0 : i32
    %c0_i32_0 = arith.constant 0 : i32
    %c0_i32_1 = arith.constant 0 : i32
    return %c0_i32, %c0_i32_0 : i32, i32
  }
  func.func @transform_6(%arg0: i32) -> (i32, i32) {
    %c0_i32 = arith.constant 0 : i32
    %c0_i32_0 = arith.constant 0 : i32
    %c0_i32_1 = arith.constant 0 : i32
    return %c0_i32, %c0_i32_0 : i32, i32
  }
  func.func @transform_7(%arg0: i32) -> (i32, i32) {
    %c0_i32 = arith.constant 0 : i32
    %c0_i32_0 = arith.constant 0 : i32
    %c0_i32_1 = arith.constant 0 : i32
    return %c0_i32, %c0_i32_0 : i32, i32
  }
  func.func @transform_8(%arg0: i32) -> (i32, i32) {
    %c0_i32 = arith.constant 0 : i32
    %c0_i32_0 = arith.constant 0 : i32
    %c0_i32_1 = arith.constant 0 : i32
    return %c0_i32, %c0_i32_0 : i32, i32
  }
  func.func @transform_9(%arg0: i32) -> (i32, i32) {
    %c0_i32 = arith.constant 0 : i32
    %c0_i32_0 = arith.constant 0 : i32
    %c0_i32_1 = arith.constant 0 : i32
    return %c0_i32, %c0_i32_0 : i32, i32
  }
  func.func @transform_10(%arg0: i32) -> (i32, i32) {
    %c0_i32 = arith.constant 0 : i32
    %c0_i32_0 = arith.constant 0 : i32
    %c0_i32_1 = arith.constant 0 : i32
    return %c0_i32, %c0_i32_0 : i32, i32
  }
  func.func @transform_11(%arg0: i32) -> (i32, i32) {
    %c0_i32 = arith.constant 0 : i32
    %c0_i32_0 = arith.constant 0 : i32
    %c0_i32_1 = arith.constant 0 : i32
    return %c0_i32, %c0_i32_0 : i32, i32
  }
  func.func @transform_12(%arg0: i32) -> (i32, i32) {
    %c0_i32 = arith.constant 0 : i32
    %c0_i32_0 = arith.constant 0 : i32
    %c0_i32_1 = arith.constant 0 : i32
    return %c0_i32, %c0_i32_0 : i32, i32
  }
  func.func @transform_13(%arg0: i32) -> (i32, i32) {
    %c0_i32 = arith.constant 0 : i32
    %c0_i32_0 = arith.constant 0 : i32
    %c0_i32_1 = arith.constant 0 : i32
    return %c0_i32, %c0_i32_0 : i32, i32
  }
  func.func @transform_14(%arg0: i32) -> (i32, i32) {
    %c0_i32 = arith.constant 0 : i32
    %c0_i32_0 = arith.constant 0 : i32
    %c0_i32_1 = arith.constant 0 : i32
    return %c0_i32, %c0_i32_0 : i32, i32
  }
  func.func @transform_15(%arg0: i32) -> (i32, i32) {
    %c0_i32 = arith.constant 0 : i32
    %c0_i32_0 = arith.constant 0 : i32
    %c0_i32_1 = arith.constant 0 : i32
    return %c0_i32, %c0_i32_0 : i32, i32
  }
  func.func @transform_16(%arg0: i32) -> (i32, i32) {
    %c0_i32 = arith.constant 0 : i32
    %c0_i32_0 = arith.constant 0 : i32
    %c0_i32_1 = arith.constant 0 : i32
    return %c0_i32, %c0_i32_0 : i32, i32
  }
  func.func @transform_17(%arg0: i32) -> (i32, i32) {
    %c0_i32 = arith.constant 0 : i32
    %c0_i32_0 = arith.constant 0 : i32
    return %arg0, %c0_i32 : i32, i32
  }
}

</mosaic_0001>

<bundles_post_ra>
// kernel: tpu_custom_call.1
= control target key start
LH: loop header
LB: loop body
LE: loop exit
PB: predicated region body
PF: predicated region fallthrough
CT: control target
= control target key end

     0   :  { %s12499_s0 = inlined_call_operand.hbm [shape: bf16[32,8,1024], index: 0, kind: input, shape index: {}]   ;;  %s12500_s1 = inlined_call_operand.vmem [shape: bf16[32,8,8], index: 1, kind: input, shape index: {}]   ;;  %s12501_s2 = inlined_call_operand.vmem [shape: f32[32,8,8], index: 2, kind: input, shape index: {}]   ;;  %s12502_s3 = inlined_call_operand.vmem [shape: f32[32,8,1], index: 3, kind: input, shape index: {}]   ;;  %s12503_s4 = inlined_call_operand.hbm [shape: bf16[1024,256], index: 4, kind: input, shape index: {}]   ;;  %s12504_s5 = inlined_call_operand.vmem [shape: f32[1,256], index: 5, kind: input, shape index: {}]   ;;  %s12505_s6 = inlined_call_operand.vmem [shape: bf16[256,64], index: 6, kind: input, shape index: {}]   ;;  %s12506_s7 = inlined_call_operand.vmem [shape: f32[1,64], index: 7, kind: input, shape index: {}]   ;;  %s12507_s8 = inlined_call_operand.vmem [shape: f32[64,192], index: 8, kind: input, shape index: {}]   ;;  %s12508_s9 = inlined_call_operand.vmem [shape: f32[1,192], index: 9, kind: input, shape index: {}]   ;;  %s12509_s10 = inlined_call_operand.vmem [shape: f32[1,192], index: 10, kind: input, shape index: {}]   ;;  %s12510_s11 = inlined_call_operand.vmem [shape: f32[64,64], index: 11, kind: input, shape index: {}]   ;;  %s12511_s12 = inlined_call_operand.vmem [shape: f32[1,64], index: 12, kind: input, shape index: {}]   ;;  %s12512_s13 = inlined_call_operand.vmem [shape: f32[1,64], index: 13, kind: input, shape index: {}]   ;;  %s12513_s14 = inlined_call_operand.vmem [shape: f32[1,64], index: 14, kind: input, shape index: {}]   ;;  %s12514_s15 = inlined_call_operand.vmem [shape: f32[64,1], index: 15, kind: input, shape index: {}]   ;;  %s12515_s16 = inlined_call_operand.<no memory space> [shape: f32[1,1], index: 16, kind: input, shape index: {}]   ;;  %s12516_s17 = inlined_call_operand.hbm [shape: f32[32,128], index: 17, kind: output, shape index: {}]  }
   0x1   :  { %12806 = sst [smem:[#allocation178_spill]] %s12499_s0  ;;  %v22_v0 = vstv %s12515_s16 }
   0x2   :  { %12807 = sst [smem:[#allocation179_spill]] %s12500_s1  ;;  %23 = vst [vmem:[#allocation2] sm:$0x1] %v22_v0 }
   0x3   :  { %12808 = sst [smem:[#allocation180_spill]] %s12501_s2 }
   0x4   :  { %12809 = sst [smem:[#allocation181_spill]] %s12503_s4 }
   0x5   :  { %12810 = sst [smem:[#allocation182_spill]] %s12513_s14 }
   0x6   :  { %12811 = sst [smem:[#allocation183_spill]] %s12516_s17 }
   0x7   :  { %24 = vsyncpa [#allocation4], 0 }
   0x8   :  { %26 = vsyncpa [#allocation4 + $0x1], 0 }
   0x9   :  { %27 = vsyncpa [#allocation7], 0 }
   0xa   :  { %28 = vsyncpa [#allocation5], 0 }
   0xb   :  { %30 = vsyncpa [#allocation5 + $0x1], 0  ;;  %s9004_s26 = smov 0   ;;  %s9006_s27 = smov 0  }
   0xc   :  { %s9008_s28 = smov 0   ;;  %s9010_s29 = smov 0  }
   0xd LB: > { %12812 = sst [smem:[#allocation12_spill]] %s8878_s26  ;;  %s9025_s16 = sadd.s32 4294967295, %s8890_s29   ;;  %s8890_s29 = sphi %s9010_s29, %s13434_s29   ;;  %s8886_s28 = sphi %s9008_s28, %s13436_s28   ;;  %s8882_s27 = sphi %s9006_s27, %s13438_s27   ;;  %s8878_s26 = sphi %s9004_s26, %s13437_s26  }
   0xe   : > { %12813 = sst [smem:[#allocation13_spill]] %s8886_s28  ;;  %s6968_s0 = sadd.s32 4294967294, %s8890_s29  }
   0xf   : > { %p56_p0 = scmp.ne.s32.totalorder %s8882_s27, %s8878_s26  ;;  %p57_p1 = scmp.eq.s32.totalorder %s9025_s16, 0 }
  0x10   : > { %p431_p2 = scmp.eq.s32.totalorder %s9025_s16, 1  ;;  %p437_p3 = scmp.eq.s32.totalorder %s6968_s0, 1 }
  0x11   : > { %p9034_p4 = por %p57_p1, %p56_p0  ;;  %p6969_p5 = scmp.ge.s32.totalorder %s8890_s29, 1 }
  0x12   : > { %p9039_p6 = por %p437_p3, %p56_p0  ;;  %p444_p7 = scmp.lt.s32.totalorder %s8890_s29, 3 }
  0x13   : > { %s12817_s4 = sld [smem:[#allocation181_spill]]  ;;  %s8892_s22 = smov [#allocation6]  }
  0x14   : > { %s12815_s18 = scalar_select %p9039_p6, 1, 0 }
  0x15   : > { %p9047_p8 = pnand %p6969_p5, %p444_p7  ;;  %s457_s23 = sshll.u32 %s8892_s22, 4  ;;  %s458_s23 = int_to_ptr.vmem [resolvable:$true] %s457_s23 }
  0x16   : > { %12816 = sst [smem:[#allocation14_spill]] %s12815_s18  ;;  %s9057_s24 = sadd.s32 1, %s8890_s29  }
  0x17   : > { %p8221_p9 = pneg %p9047_p8  ;;  %12819 = sst [smem:[#allocation15_spill]] %s9057_s24 }
  0x18   : > { %s8893_s25 = smov 128   ;;  %s8894_s0 = smov 8  }
  0x19   : > { %s455_s20 = sshll.u32 %s12817_s4, 4  ;;  %p8222_p10 = pnand %p8221_p9, %p57_p1  ;;  %s456_s20 = int_to_ptr.hbm [resolvable:$true] %s455_s20 }
  0x1a   : > { %s40_s19 = ssub.s32 %s8890_s29, %s9057_s24  ;;  %s43_s1 = sadd.s32 1, %s8886_s28 }
  0x1b   : > { %8224 = dma.hbm_to_vmem [thread:$0]  (!%p8222_p10), %s456_s20, 16384, %s458_s23, [#allocation7], %s8893_s25, %s8893_s25, %s8894_s0  }
  0x1c   : > { %p41_p12 = scmp.eq.s32.totalorder %s40_s19, 0  ;;  %p50_p13 = scmp.ne.s32.totalorder %s8886_s28, %s8882_s27 }
  0x1d   : > { %p51_p0 = scmp.eq.s32.totalorder %s8890_s29, 0  ;;  %p8234_p3 = scmp.lt.s32.totalorder %s8890_s29, 2 }
  0x1e   : > { %s9067_s22 = scalar_select %p41_p12, %s8886_s28, %s43_s1  }
  0x1f   : > { %p52_p5 = por %p51_p0, %p50_p13  ;;  %p9071_p7 = por %p431_p2, %p50_p13 }
  0x20   : > { %12820 = sst [smem:[#allocation16_spill]] %s9067_s22  ;;  %s507_s18 = sand.u32 1, %s8886_s28  }
  0x21   : > { %s12821_s4 = scalar_select %p9071_p7, 1, 0 }
  0x22   : > { %s7940_s26 = sshll.u32 %s8890_s29, 9  ;;  %s6972_s17 = sshll.u32 %s507_s18, 9 }
  0x23   : > { %12822 = sst [smem:[#allocation17_spill]] %s12821_s4  ;;  %s511_s19 = scalar_lea.vmem [#allocation3], %s6972_s17 }
  0x24   : > { %s12823_s23 = sld [smem:[#allocation178_spill]]  ;;  %s520_s24 = sshll.u32 %s511_s19, 4  ;;  %s521_s24 = int_to_ptr.vmem [resolvable:$true] %s520_s24 }
  0x25   : > { %p9082_p9 = pnand %p8234_p3, %p52_p5  ;;  %s508_s22 = scalar_lea.sflag [#allocation4], %s507_s18 }
  0x27   : > { %p8794_p10 = pneg %p9082_p9 }
  0x2a   : > { %s517_s25 = scalar_lea.hbm %s12823_s23, %s7940_s26  ;;  %s8797_s26 = scalar_lea.hbm %s12823_s23, 1024 }
  0x2b   : > { %s518_s0 = sshll.u32 %s517_s25, 4  ;;  %s519_s0 = int_to_ptr.hbm [resolvable:$true] %s518_s0 }
  0x2c   : > { %s8790_s4 = sshra.s32 %s519_s0, 4  ;;  %s8791_s4 = int_to_ptr.hbm [resolvable:$true] %s8790_s4 }
  0x2d   : > { %s8792_s28 = scalar_lea.hbm %s8791_s4, 512  ;;  %p8798_p0 = scmp.lt.s32.totalorder %s8791_s4, %s12823_s23 }
  0x2e   : > { %p8793_p2 = scmp.ne.s32.totalorder %s8791_s4, %s8792_s28  ;;  %p8799_p3 = scmp.lt.s32.totalorder %s8797_s26, %s8792_s28 }
  0x30   : > { %p8795_p12 = pnand %p8794_p10, %p8793_p2  ;;  %p8800_p5 = por %p8799_p3, %p8798_p0 }
  0x32   : > { %p8796_p13 = pneg %p8795_p12 }
  0x34   : > { %p8801_p11 = pnand %p8800_p5, %p8796_p13 }
  0x36   : > { %8804 = shalt.err (!%p8801_p11)
}
  0x37   : > { %s8895_s18 = smov 512   ;;  %s8896_s19 = smov 32  }
  0x38   : > { %8228 = dma.hbm_to_vmem [thread:$0]  (!%p9082_p9), %s519_s0, 8192, %s521_s24, %s508_s22, %s8895_s18, %s8895_s18, %s8896_s19  }
  0x39   : > { %559 = sbr.rel (%p9047_p8) target bundleno = 2566 (0xa06), region = 88 }
  0x3e   : > { %s9099_s14 = sand.u32 1, %s8882_s27  }
  0x3f   : > { %s6977_s17 = sshll.u32 %s9099_s14, 9  ;;  %s562_s4 = scalar_lea.sflag [#allocation4], %s9099_s14 }
  0x40   : > { %s9103_s28 = scalar_lea.vmem [#allocation3], %s6977_s17 }
  0x41   : > { %8865 = dma.done.wait (%p9034_p4), %s562_s4, 8192  }
  0x42   : > { %8867 = vsyncadd (%p9034_p4), %s562_s4, 4294959104 }
  0x43   : > { %8869 = dma.done.wait (%p57_p1), [#allocation7], 16384  }
  0x44   : > { %8871 = vsyncadd (%p57_p1), [#allocation7], 4294950912  ;;  %v7300_v1 = vld [vmem:[#allocation6 + $0x70] sm:$0xf]  ;;  %v8020_v2 = vld [vmem:[#allocation6 + $0x74] sm:$0xf0] }
  0x45   : > { %v7364_v3 = vld [vmem:[#allocation6 + $0xf0] sm:$0xf]  ;;  %v7301_v4 = vor.u32 %v8020_v2, %v7300_v1  ;;  %v8036_v5 = vld [vmem:[#allocation6 + $0xf4] sm:$0xf0]  ;;  %v7292_v6 = vld [vmem:[#allocation6 + $0x60] sm:$0xf] }
  0x46   : > { %v8018_v7 = vld [vmem:[#allocation6 + $0x64] sm:$0xf0]  ;;  %v7365_v8 = vor.u32 %v8036_v5, %v7364_v3  ;;  %v7356_v9 = vld [vmem:[#allocation6 + $0xe0] sm:$0xf]  ;;  %v7284_v13 = vld [vmem:[#allocation6 + $0x50] sm:$0xf] }
  0x47   : > { %v8034_v10 = vld [vmem:[#allocation6 + $0xe4] sm:$0xf0]  ;;  %1873 = vmatpush.bf16.msra.mxu0 %v7301_v4  ;;  %8189 = vmatpush.bf16.msra.mxu2 %v7301_v4  ;;  %v7293_v11 = vor.u32 %v8018_v7, %v7292_v6  ;;  %v8016_v14 = vld [vmem:[#allocation6 + $0x54] sm:$0xf0]  ;;  %v7348_v15 = vld [vmem:[#allocation6 + $0xd0] sm:$0xf] }
  0x48   : > { %8190 = vmatpush.bf16.msra.mxu3 %v7301_v4  ;;  %1922 = vmatpush.bf16.msra.mxu1 %v7365_v8  ;;  %v7357_v12 = vor.u32 %v8034_v10, %v7356_v9  ;;  %v8032_v16 = vld [vmem:[#allocation6 + $0xd4] sm:$0xf0]  ;;  %v7285_v17 = vor.u32 %v8016_v14, %v7284_v13  ;;  %v7276_v19 = vld [vmem:[#allocation6 + $0x40] sm:$0xf]  ;;  %v8014_v20 = vld [vmem:[#allocation6 + $0x44] sm:$0xf0] }
  0x49   : > { %v7349_v18 = vor.u32 %v8032_v16, %v7348_v15  ;;  %v7340_v21 = vld [vmem:[#allocation6 + $0xc0] sm:$0xf]  ;;  %v8030_v22 = vld [vmem:[#allocation6 + $0xc4] sm:$0xf0]  ;;  %v7277_v23 = vor.u32 %v8014_v20, %v7276_v19  ;;  %v7268_v25 = vld [vmem:[#allocation6 + $0x30] sm:$0xf] }
  0x4a   : > { %v7341_v24 = vor.u32 %v8030_v22, %v7340_v21  ;;  %v8012_v26 = vld [vmem:[#allocation6 + $0x34] sm:$0xf0]  ;;  %v7332_v27 = vld [vmem:[#allocation6 + $0xb0] sm:$0xf]  ;;  %v7260_v31 = vld [vmem:[#allocation6 + $0x20] sm:$0xf] }
  0x4b   : > { %1874 = vmatpush.bf16.msra.mxu0 %v7293_v11  ;;  %8191 = vmatpush.bf16.msra.mxu2 %v7293_v11  ;;  %v8028_v28 = vld [vmem:[#allocation6 + $0xb4] sm:$0xf0]  ;;  %v7269_v29 = vor.u32 %v8012_v26, %v7268_v25  ;;  %v8010_v32 = vld [vmem:[#allocation6 + $0x24] sm:$0xf0]  ;;  %v7324_v33 = vld [vmem:[#allocation6 + $0xa0] sm:$0xf] }
  0x4c   : > { %8192 = vmatpush.bf16.msra.mxu3 %v7293_v11  ;;  %1923 = vmatpush.bf16.msra.mxu1 %v7357_v12  ;;  %v7333_v30 = vor.u32 %v8028_v28, %v7332_v27  ;;  %v8026_v34 = vld [vmem:[#allocation6 + $0xa4] sm:$0xf0]  ;;  %v7261_v35 = vor.u32 %v8010_v32, %v7260_v31  ;;  %v7252_v37 = vld [vmem:[#allocation6 + $0x10] sm:$0xf]  ;;  %v8008_v38 = vld [vmem:[#allocation6 + $0x14] sm:$0xf0] }
  0x4d   : > { %v7325_v36 = vor.u32 %v8026_v34, %v7324_v33  ;;  %v7316_v39 = vld [vmem:[#allocation6 + $0x90] sm:$0xf]  ;;  %v8024_v40 = vld [vmem:[#allocation6 + $0x94] sm:$0xf0]  ;;  %v7253_v41 = vor.u32 %v8008_v38, %v7252_v37  ;;  %v7244_v42 = vld [vmem:[#allocation6] sm:$0xf] }
  0x4e   : > { %v8006_v43 = vld [vmem:[#allocation6 + $0x4] sm:$0xf0]  ;;  %v7317_v44 = vor.u32 %v8024_v40, %v7316_v39  ;;  %v7308_v45 = vld [vmem:[#allocation6 + $0x80] sm:$0xf]  ;;  %v7556_v51 = vld [vmem:[#allocation6 + $0x270] sm:$0xf] }
  0x4f   : > { %1875 = vmatpush.bf16.msra.mxu0 %v7285_v17  ;;  %8193 = vmatpush.bf16.msra.mxu2 %v7285_v17  ;;  %v8022_v46 = vld [vmem:[#allocation6 + $0x84] sm:$0xf0]  ;;  %v6988_v47 = vld [vmem:[%s9103_s28] sm:$0xf]  ;;  %v8084_v54 = vld [vmem:[#allocation6 + $0x274] sm:$0xf0]  ;;  %v7245_v57 = vor.u32 %v8006_v43, %v7244_v42 }
  0x50   : > { %8194 = vmatpush.bf16.msra.mxu3 %v7285_v17  ;;  %1924 = vmatpush.bf16.msra.mxu1 %v7349_v18  ;;  %v7945_v48 = vld [vmem:[%s9103_s28 + $0x1c] sm:$0xf0]  ;;  %v7428_v55 = vld [vmem:[#allocation6 + $0x170] sm:$0xf]  ;;  %v8052_v56 = vld [vmem:[#allocation6 + $0x174] sm:$0xf0]  ;;  %v7309_v58 = vor.u32 %v8022_v46, %v7308_v45  ;;  %v7557_v61 = vor.u32 %v8084_v54, %v7556_v51 }
  0x51   : > { %v7052_v49 = vld [vmem:[%s9103_s28 + $0x80] sm:$0xf]  ;;  %v7941_v59 = vld [vmem:[%s9103_s28 + $0x4] sm:$0xf]  ;;  %v7429_v63 = vor.u32 %v8052_v56, %v7428_v55  ;;  %v7492_v0 = vld [vmem:[#allocation6 + $0x1f0] sm:$0xf]  ;;  %v9121_v2 = vor.u32 %v7945_v48, %v6988_v47 }
  0x52   : > { %v7961_v50 = vld [vmem:[%s9103_s28 + $0x9c] sm:$0xf0]  ;;  %v6990_v60 = vld [vmem:[%s9103_s28 + $0x20] sm:$0xf0]  ;;  %v8068_v1 = vld [vmem:[#allocation6 + $0x1f4] sm:$0xf0] }
  0x53   : > { %1876 = vmatpush.bf16.msra.mxu0 %v7277_v23  ;;  %8195 = vmatpush.bf16.msra.mxu2 %v7277_v23  ;;  %v7148_v52 = vld [vmem:[%s9103_s28 + $0x140] sm:$0xf]  ;;  %v9123_v3 = vor.u32 %v7961_v50, %v7052_v49  ;;  %v8082_v4 = vld [vmem:[#allocation6 + $0x264] sm:$0xf0]  ;;  %v9127_v8 = vor.u32 %v7941_v59, %v6990_v60  ;;  %v7493_v9 = vor.u32 %v8068_v1, %v7492_v0  ;;  %v7540_v11 = vld [vmem:[#allocation6 + $0x250] sm:$0xf] }
  0x54   : > { %8196 = vmatpush.bf16.msra.mxu3 %v7277_v23  ;;  %1925 = vmatpush.bf16.msra.mxu1 %v7341_v24  ;;  %v7985_v53 = vld [vmem:[%s9103_s28 + $0x15c] sm:$0xf0]  ;;  %v8050_v6 = vld [vmem:[#allocation6 + $0x164] sm:$0xf0]  ;;  %v8080_v15 = vld [vmem:[#allocation6 + $0x254] sm:$0xf0] }
  0x55   : > { %v7548_v62 = vld [vmem:[#allocation6 + $0x260] sm:$0xf]  ;;  %v9125_v7 = vor.u32 %v7985_v53, %v7148_v52  ;;  %v8066_v14 = vld [vmem:[#allocation6 + $0x1e4] sm:$0xf0]  ;;  %v7412_v16 = vld [vmem:[#allocation6 + $0x150] sm:$0xf]  ;;  %v7541_v19 = vor.u32 %v8080_v15, %v7540_v11 }
  0x56   : > { %v7420_v5 = vld [vmem:[#allocation6 + $0x160] sm:$0xf]  ;;  %v7549_v10 = vor.u32 %v8082_v4, %v7548_v62  ;;  %v8048_v17 = vld [vmem:[#allocation6 + $0x154] sm:$0xf0]  ;;  %v7476_v22 = vld [vmem:[#allocation6 + $0x1d0] sm:$0xf] }
  0x57   : > { %1877 = vmatpush.bf16.msra.mxu0 %v7269_v29  ;;  %8197 = vmatpush.bf16.msra.mxu2 %v7269_v29  ;;  %v7421_v12 = vor.u32 %v8050_v6, %v7420_v5  ;;  %v7484_v13 = vld [vmem:[#allocation6 + $0x1e0] sm:$0xf]  ;;  %v7413_v21 = vor.u32 %v8048_v17, %v7412_v16  ;;  %v8064_v23 = vld [vmem:[#allocation6 + $0x1d4] sm:$0xf0]  ;;  %v8078_v24 = vld [vmem:[#allocation6 + $0x244] sm:$0xf0] }
  0x58   : > { %8198 = vmatpush.bf16.msra.mxu3 %v7269_v29  ;;  %1926 = vmatpush.bf16.msra.mxu1 %v7333_v30  ;;  %v7485_v18 = vor.u32 %v8066_v14, %v7484_v13  ;;  %v7532_v20 = vld [vmem:[#allocation6 + $0x240] sm:$0xf]  ;;  %v8046_v26 = vld [vmem:[#allocation6 + $0x144] sm:$0xf0]  ;;  %v7477_v27 = vor.u32 %v8064_v23, %v7476_v22  ;;  %v7524_v31 = vld [vmem:[#allocation6 + $0x230] sm:$0xf] }
  0x59   : > { %v7404_v25 = vld [vmem:[#allocation6 + $0x140] sm:$0xf]  ;;  %v7533_v28 = vor.u32 %v8078_v24, %v7532_v20  ;;  %v8062_v34 = vld [vmem:[#allocation6 + $0x1c4] sm:$0xf0]  ;;  %v8044_v37 = vld [vmem:[#allocation6 + $0x134] sm:$0xf0] }
  0x5a   : > { %v7020_v29 = vld [vmem:[%s9103_s28 + $0x40] sm:$0xf]  ;;  %v7405_v32 = vor.u32 %v8046_v26, %v7404_v25  ;;  %v7949_v42 = vld [vmem:[%s9103_s28 + $0x44] sm:$0xf]  ;;  %v7460_v48 = vld [vmem:[#allocation6 + $0x1b0] sm:$0xf] }
  0x5b   : > { %1878 = vmatpush.bf16.msra.mxu0 %v7261_v35  ;;  %8199 = vmatpush.bf16.msra.mxu2 %v7261_v35  ;;  %v7953_v30 = vld [vmem:[%s9103_s28 + $0x5c] sm:$0xf0]  ;;  %v7022_v43 = vld [vmem:[%s9103_s28 + $0x60] sm:$0xf0]  ;;  %v8060_v49 = vld [vmem:[#allocation6 + $0x1b4] sm:$0xf0] }
  0x5c   : > { %8200 = vmatpush.bf16.msra.mxu3 %v7261_v35  ;;  %1927 = vmatpush.bf16.msra.mxu1 %v7325_v36  ;;  %v7468_v33 = vld [vmem:[#allocation6 + $0x1c0] sm:$0xf]  ;;  %v8076_v35 = vld [vmem:[#allocation6 + $0x234] sm:$0xf0]  ;;  %v7396_v36 = vld [vmem:[#allocation6 + $0x130] sm:$0xf]  ;;  %v9141_v50 = vor.u32 %v7953_v30, %v7020_v29  ;;  %v9147_v56 = vor.u32 %v7949_v42, %v7022_v43 }
  0x5d   : > { %v7084_v38 = vld [vmem:[%s9103_s28 + $0xc0] sm:$0xf]  ;;  %v7525_v45 = vor.u32 %v8076_v35, %v7524_v31  ;;  %v7397_v47 = vor.u32 %v8044_v37, %v7396_v36  ;;  %v8074_v52 = vld [vmem:[#allocation6 + $0x224] sm:$0xf0]  ;;  %v7508_v59 = vld [vmem:[#allocation6 + $0x210] sm:$0xf] }
  0x5e   : > { %v7969_v39 = vld [vmem:[%s9103_s28 + $0xdc] sm:$0xf0]  ;;  %v8042_v54 = vld [vmem:[#allocation6 + $0x124] sm:$0xf0]  ;;  %v7380_v0 = vld [vmem:[#allocation6 + $0x110] sm:$0xf] }
  0x5f   : > { %1879 = vmatpush.bf16.msra.mxu0 %v7253_v41  ;;  %8201 = vmatpush.bf16.msra.mxu2 %v7253_v41  ;;  %v7180_v40 = vld [vmem:[%s9103_s28 + $0x180] sm:$0xf]  ;;  %v9143_v51 = vor.u32 %v7969_v39, %v7084_v38  ;;  %v8058_v62 = vld [vmem:[#allocation6 + $0x1a4] sm:$0xf0]  ;;  %v8040_v1 = vld [vmem:[#allocation6 + $0x114] sm:$0xf0] }
  0x60   : > { %8202 = vmatpush.bf16.msra.mxu3 %v7253_v41  ;;  %1928 = vmatpush.bf16.msra.mxu1 %v7317_v44  ;;  %v7993_v41 = vld [vmem:[%s9103_s28 + $0x19c] sm:$0xf0]  ;;  %v7469_v44 = vor.u32 %v8062_v34, %v7468_v33  ;;  %v8056_v11 = vld [vmem:[#allocation6 + $0x194] sm:$0xf0]  ;;  %v8038_v14 = vld [vmem:[#allocation6 + $0x104] sm:$0xf0] }
  0x61   : > { %v7516_v46 = vld [vmem:[#allocation6 + $0x220] sm:$0xf]  ;;  %v9145_v55 = vor.u32 %v7993_v41, %v7180_v40  ;;  %v7004_v23 = vld [vmem:[%s9103_s28 + $0x10] sm:$0xf]  ;;  %v7957_v26 = vld [vmem:[%s9103_s28 + $0x84] sm:$0xf] }
  0x62   : > { %v7388_v53 = vld [vmem:[#allocation6 + $0x120] sm:$0xf]  ;;  %v7947_v24 = vld [vmem:[%s9103_s28 + $0x2c] sm:$0xf0]  ;;  %s9172_s30 = sshll.u32 %s9025_s16, 4  ;;  %s12829_s0 = sld [smem:[#allocation179_spill]] }
  0x63   : > { %1880 = vmatpush.bf16.msra.mxu0 %v7245_v57  ;;  %8203 = vmatpush.bf16.msra.mxu2 %v7245_v57  ;;  %v7389_v60 = vor.u32 %v8042_v54, %v7388_v53  ;;  %v7500_v6 = vld [vmem:[#allocation6 + $0x200] sm:$0xf]  ;;  %v9163_v30 = vor.u32 %v7947_v24, %v7004_v23  ;;  %p639_p1 = scmp.lt.s32.totalorder %s9172_s30, 31  ;;  %v7965_v33 = vld [vmem:[%s9103_s28 + $0xc4] sm:$0xf]  ;;  %vm4803_vm0 = vcmask 523264  }
  0x64   : > { %8204 = vmatpush.bf16.msra.mxu3 %v7245_v57  ;;  %1929 = vmatpush.bf16.msra.mxu1 %v7309_v58  ;;  %v7461_v57 = vor.u32 %v8060_v49, %v7460_v48  ;;  %v7517_v58 = vor.u32 %v8074_v52, %v7516_v46  ;;  %v7372_v13 = vld [vmem:[#allocation6 + $0x100] sm:$0xf]  ;;  %v6996_v34 = vld [vmem:[%s9103_s28 + $0x8] sm:$0xf]  ;;  %v7036_v36 = vld [vmem:[%s9103_s28 + $0x50] sm:$0xf] }
  0x65   : > { %v7373_v17 = vor.u32 %v8038_v14, %v7372_v13  ;;  %v7116_v20 = vld [vmem:[%s9103_s28 + $0x100] sm:$0xf]  ;;  %s9178_s21 = scalar_select %p639_p1, %s9172_s30, 31  ;;  %v7946_v35 = vld [vmem:[%s9103_s28 + $0x24] sm:$0xf0]  ;;  %v12528_v46 = vmov 2  }
  0x66   : > { %1881 = vmatmul.bf16.vlgmr.msra.gmra.mxu0 %v9121_v2  ;;  %1891 = vmatmul.bf16.vlgmr.msra.gmra.mxu2 %v9123_v3  ;;  %v7212_v22 = vld [vmem:[%s9103_s28 + $0x1c0] sm:$0xf]  ;;  %v7955_v37 = vld [vmem:[%s9103_s28 + $0x6c] sm:$0xf0]  ;;  %v7086_v38 = vld [vmem:[%s9103_s28 + $0xe0] sm:$0xf0]  ;;  %v9189_v41 = vor.u32 %v7946_v35, %v6996_v34 }
  0x67   : > { %2069 = vmatpush.bf16.msrb.mxu0 %v7557_v61  ;;  %1971 = vmatpush.bf16.msrb.mxu2 %v7429_v63  ;;  %v7452_v61 = vld [vmem:[#allocation6 + $0x1a0] sm:$0xf]  ;;  %v8072_v63 = vld [vmem:[#allocation6 + $0x214] sm:$0xf0]  ;;  %v7942_v39 = vld [vmem:[%s9103_s28 + $0xc] sm:$0xf]  ;;  %v9191_v42 = vor.u32 %v7955_v37, %v7036_v36  ;;  %v9193_v43 = vor.u32 %v7965_v33, %v7086_v38 }
  0x68   : > { %1906 = vmatmul.bf16.vlgmr.msra.gmra.mxu3 %v9125_v7  ;;  %1930 = vmatmul.bf16.vlgmr.msra.gmra.mxu1 %v9127_v8  ;;  %v7453_v4 = vor.u32 %v8058_v62, %v7452_v61  ;;  %v7509_v5 = vor.u32 %v8072_v63, %v7508_v59  ;;  %v8001_v25 = vld [vmem:[%s9103_s28 + $0x1dc] sm:$0xf0]  ;;  %v6998_v40 = vld [vmem:[%s9103_s28 + $0x28] sm:$0xf0]  ;;  %s6981_s16 = sshll.u32 %s9178_s21, 2  ;;  %12825 = vst [vmem:[#allocation18_spill] sm:$0xff] %v9189_v41 }
  0x69   : > { %2020 = vmatpush.bf16.msrb.mxu3 %v7493_v9  ;;  %v7381_v9 = vor.u32 %v8040_v1, %v7380_v0  ;;  %v9165_v31 = vor.u32 %v8001_v25, %v7212_v22  ;;  %12826 = vst [vmem:[#allocation19_spill] sm:$0xff] %v9191_v42  ;;  %s9200_s1 = scalar_lea.vmem %s12829_s0, %s6981_s16  ;;  %8300 = vset.pattern.permute.xlu1 %v12528_v46  ;;  %v7973_v52 = vld [vmem:[%s9103_s28 + $0x104] sm:$0xf]  ;;  %v7028_v53 = vld [vmem:[%s9103_s28 + $0x48] sm:$0xf]  ;;  %s6983_s18 = sshll.u32 %s9178_s21, 3 }
  0x6a   : > { %12827 = vst [vmem:[#allocation20_spill] sm:$0xff] %v9193_v43  ;;  %v7954_v54 = vld [vmem:[%s9103_s28 + $0x64] sm:$0xf0]  ;;  %v7118_v59 = vld [vmem:[%s9103_s28 + $0x120] sm:$0xf0]  ;;  %s8906_s26 = smov 64  }
  0x6b   : > { %2070 = vmatpush.bf16.msrb.mxu0 %v7549_v10  ;;  %1972 = vmatpush.bf16.msrb.mxu2 %v7421_v12  ;;  %v7444_v10 = vld [vmem:[#allocation6 + $0x190] sm:$0xf]  ;;  %v8070_v12 = vld [vmem:[#allocation6 + $0x204] sm:$0xf0]  ;;  %v7030_v61 = vld [vmem:[%s9103_s28 + $0x68] sm:$0xf0]  ;;  %v9219_v62 = vor.u32 %v7954_v54, %v7028_v53  ;;  %v9223_v0 = vor.u32 %v7973_v52, %v7118_v59 }
  0x6c   : > { %v7445_v15 = vor.u32 %v8056_v11, %v7444_v10  ;;  %v7501_v16 = vor.u32 %v8070_v12, %v7500_v6  ;;  %v8098_v10 = vld [vmem:[#allocation6 + $0x2e4] sm:$0xf0]  ;;  %v12534_v11 = vmov 3   ;;  %v7604_v13 = vld [vmem:[#allocation6 + $0x2d0] sm:$0xf]  ;;  %vm5196_vm10 = vcmask 531456  }
  0x6d   : > { %2021 = vmatpush.bf16.msrb.mxu3 %v7485_v18  ;;  %v7436_v18 = vld [vmem:[#allocation6 + $0x180] sm:$0xf]  ;;  %12830 = vst [vmem:[#allocation22_spill] sm:$0xff] %v9219_v62  ;;  %v8096_v14 = vld [vmem:[#allocation6 + $0x2d4] sm:$0xf0]  ;;  %s13427_s2 = sld [smem:[#allocation180_spill]] }
  0x6e   : > { %12832 = vst [vmem:[#allocation24_spill] sm:$0xff] %v9223_v0  ;;  %v7971_v22 = vld [vmem:[%s9103_s28 + $0xec] sm:$0xf0]  ;;  %v7150_v23 = vld [vmem:[%s9103_s28 + $0x160] sm:$0xf0]  ;;  %s13428_s17 = sld [smem:[#allocation182_spill]] }
  0x6f   : > { %2071 = vmatpush.bf16.msrb.mxu0 %v7541_v19  ;;  %1973 = vmatpush.bf16.msrb.mxu2 %v7413_v21  ;;  %v8054_v19 = vld [vmem:[#allocation6 + $0x184] sm:$0xf0]  ;;  %v7977_v21 = vld [vmem:[%s9103_s28 + $0x11c] sm:$0xf0]  ;;  %v7958_v24 = vld [vmem:[%s9103_s28 + $0x8c] sm:$0xf] }
  0x70   : > { %v9161_v29 = vor.u32 %v7977_v21, %v7116_v20  ;;  %v7962_v20 = vld [vmem:[%s9103_s28 + $0xa4] sm:$0xf0]  ;;  %v7100_v21 = vld [vmem:[%s9103_s28 + $0xd0] sm:$0xf]  ;;  %v7062_v25 = vld [vmem:[%s9103_s28 + $0xa8] sm:$0xf0] }
  0x71   : > { %2022 = vmatpush.bf16.msrb.mxu3 %v7477_v27  ;;  %v7054_v27 = vld [vmem:[%s9103_s28 + $0xa0] sm:$0xf0]  ;;  %v9244_v33 = vor.u32 %v7971_v22, %v7100_v21  ;;  %v9249_v35 = vor.u32 %v7958_v24, %v7062_v25  ;;  %v7588_v36 = vld [vmem:[#allocation6 + $0x2b0] sm:$0xf]  ;;  %v8092_v37 = vld [vmem:[#allocation6 + $0x2b4] sm:$0xf0] }
  0x72   : > { %v7589_v38 = vor.u32 %v8092_v37, %v7588_v36  ;;  %v12540_v21 = vmov 5   ;;  %v8019_v22 = vld [vmem:[#allocation6 + $0x74] sm:$0xf]  ;;  %v8017_v25 = vld [vmem:[#allocation6 + $0x64] sm:$0xf]  ;;  %v12536_v37 = vmov 7  }
  0x73   : > { %2072 = vmatpush.bf16.msrb.mxu0 %v7533_v28  ;;  %1974 = vmatpush.bf16.msrb.mxu2 %v7405_v32  ;;  %v7437_v28 = vor.u32 %v8054_v19, %v7436_v18  ;;  %v9167_v32 = vor.u32 %v7957_v26, %v7054_v27  ;;  %v7596_v18 = vld [vmem:[#allocation6 + $0x2c0] sm:$0xf]  ;;  %v8094_v19 = vld [vmem:[#allocation6 + $0x2c4] sm:$0xf0]  ;;  %v12526_v27 = vmov 6   ;;  %12835 = vst [vmem:[#allocation27_spill] sm:$0xff] %v9244_v33 }
  0x74   : > { %v7597_v26 = vor.u32 %v8094_v19, %v7596_v18  ;;  %12837 = vst [vmem:[#allocation29_spill] sm:$0xff] %v9249_v35  ;;  %s13430_s16 = sld [smem:[#allocation183_spill]] }
  0x75   : > { %2023 = vmatpush.bf16.msrb.mxu3 %v7469_v44  ;;  %v9195_v44 = vor.u32 %v7942_v39, %v6998_v40  ;;  %v7580_v39 = vld [vmem:[#allocation6 + $0x2a0] sm:$0xf]  ;;  %v8090_v40 = vld [vmem:[#allocation6 + $0x2a4] sm:$0xf0] }
  0x76   : > { %1886 = vmatmul.bf16.gmra.mxu0 %v9141_v50  ;;  %1896 = vmatmul.bf16.gmra.mxu2 %v9143_v51  ;;  %v7581_v52 = vor.u32 %v8090_v40, %v7580_v39  ;;  %v7286_v39 = vld [vmem:[#allocation6 + $0x58] sm:$0xf0]  ;;  %v7997_v40 = vld [vmem:[%s9103_s28 + $0x1c4] sm:$0xf] }
  0x77   : > { %2073 = vmatpush.bf16.msrb.mxu0 %v7525_v45  ;;  %1975 = vmatpush.bf16.msrb.mxu2 %v7397_v47  ;;  %12828 = vst [vmem:[#allocation21_spill] sm:$0xff] %v9195_v44  ;;  %v8151_v45 = vld [vmem:[%s9200_s1] sm:$0xff]  }
  0x78   : > { %1911 = vmatmul.bf16.gmra.mxu3 %v9145_v55  ;;  %1935 = vmatmul.bf16.gmra.mxu1 %v9147_v56  ;;  %v8152_v47 = vunpack.c.l.bf16 %v8151_v45  ;;  %v8153_v48 = vunpack.c.h.bf16 %v8151_v45  ;;  %v12538_v45 = vmov 4  }
  0x79   : > { %2024 = vmatpush.bf16.msrb.mxu3 %v7461_v57  ;;  %v7068_v57 = vld [vmem:[%s9103_s28 + $0x90] sm:$0xf]  ;;  %8312 = vset.pattern.permute.xlu2 %v12538_v45 }
  0x7a   : > { %v9208_v49 = vpack.i.bf16 %v8153_v48, %v8152_v47  ;;  %v8182_v47 = vld [vmem:[%s9200_s1 + $0x8] sm:$0xff]   ;;  %v12532_v48 = vmov 1   ;;  %s6845_s24 = scalar_lea.hbm %s13430_s16, %s9172_s30 }
  0x7b   : > { %2074 = vmatpush.bf16.msrb.mxu0 %v7517_v58  ;;  %1976 = vmatpush.bf16.msrb.mxu2 %v7389_v60  ;;  %v7963_v58 = vld [vmem:[%s9103_s28 + $0xac] sm:$0xf0]  ;;  %v7950_v60 = vld [vmem:[%s9103_s28 + $0x4c] sm:$0xf]  ;;  %v8156_v53 = vunpack.c.l.bf16 %v8182_v47  ;;  %v8157_v54 = vunpack.c.h.bf16 %v8182_v47  ;;  %v7124_v47 = vld [vmem:[%s9103_s28 + $0x108] sm:$0xf] }
  0x7c   : > { %8302 = vperm.xlu1 %8300, %v9208_v49   ;;  %v9221_v63 = vor.u32 %v7963_v58, %v7068_v57  ;;  %v9225_v1 = vor.u32 %v7950_v60, %v7030_v61  ;;  %8288 = vset.pattern.permute.xlu0 %v12532_v48  ;;  %v7572_v57 = vld [vmem:[#allocation6 + $0x290] sm:$0xf]  ;;  %v8088_v58 = vld [vmem:[#allocation6 + $0x294] sm:$0xf0]  ;;  %v7989_v61 = vld [vmem:[%s9103_s28 + $0x184] sm:$0xf] }
  0x7d   : > { %2025 = vmatpush.bf16.msrb.mxu3 %v7453_v4  ;;  %v7620_v4 = vld [vmem:[#allocation6 + $0x2f0] sm:$0xf]  ;;  %8314 = vperm.xlu2 %8312, %v9208_v49   ;;  %v9260_v59 = vpack.i.bf16 %v8157_v54, %v8156_v53  ;;  %v7573_v60 = vor.u32 %v8088_v58, %v7572_v57  ;;  %v7978_v53 = vld [vmem:[%s9103_s28 + $0x124] sm:$0xf0]  ;;  %v7214_v58 = vld [vmem:[%s9103_s28 + $0x1e0] sm:$0xf0] }
  0x7e   : > { %12831 = vst [vmem:[#allocation23_spill] sm:$0xff] %v9221_v63  ;;  %v7164_v54 = vld [vmem:[%s9103_s28 + $0x150] sm:$0xf]  ;;  %8290 = vperm.xlu0 %8288, %v9208_v49   ;;  %s6848_s0 = sshll.u32 %s6845_s24, 4  ;;  %s6849_s0 = int_to_ptr.hbm [resolvable:$true] %s6848_s0 }
  0x7f   : > { %2075 = vmatpush.bf16.msrb.mxu0 %v7509_v5  ;;  %1977 = vmatpush.bf16.msrb.mxu2 %v7381_v9  ;;  %12833 = vst [vmem:[#allocation25_spill] sm:$0xff] %v9225_v1  ;;  %v8100_v5 = vld [vmem:[#allocation6 + $0x2f4] sm:$0xf0]  ;;  %v7612_v9 = vld [vmem:[#allocation6 + $0x2e0] sm:$0xf]  ;;  %s8834_s20 = sshra.s32 %s6849_s0, 4  ;;  %s8835_s20 = int_to_ptr.hbm [resolvable:$true] %s8834_s20 }
  0x80   : > { %v7621_v6 = vor.u32 %v8100_v5, %v7620_v4  ;;  %v7613_v12 = vor.u32 %v8098_v10, %v7612_v9  ;;  %v7092_v4 = vld [vmem:[%s9103_s28 + $0xc8] sm:$0xf]  ;;  %v7979_v9 = vld [vmem:[%s9103_s28 + $0x12c] sm:$0xf0]  ;;  %v7182_v10 = vld [vmem:[%s9103_s28 + $0x1a0] sm:$0xf0]  ;;  %p8841_p9 = scmp.lt.s32.totalorder %s8835_s20, %s13430_s16 }
  0x81   : > { %2026 = vmatpush.bf16.msrb.mxu3 %v7445_v15  ;;  %v7060_v15 = vld [vmem:[%s9103_s28 + $0x88] sm:$0xf]  ;;  %v9275_v19 = vor.u32 %v7989_v61, %v7182_v10  ;;  %v7987_v57 = vld [vmem:[%s9103_s28 + $0x16c] sm:$0xf0]  ;;  %v7126_v61 = vld [vmem:[%s9103_s28 + $0x128] sm:$0xf0]  ;;  %v9303_v10 = vor.u32 %v7997_v40, %v7214_v58 }
  0x82   : > { %2118 = vmatpush.bf16.msrb.mxu1 %v7621_v6  ;;  %v7970_v5 = vld [vmem:[%s9103_s28 + $0xe4] sm:$0xf0]  ;;  %v7132_v6 = vld [vmem:[%s9103_s28 + $0x110] sm:$0xf]  ;;  %v8009_v58 = vld [vmem:[#allocation6 + $0x24] sm:$0xf] }
  0x83   : > { %2076 = vmatpush.bf16.msrb.mxu0 %v7501_v16  ;;  %1978 = vmatpush.bf16.msrb.mxu2 %v7373_v17  ;;  %v7605_v16 = vor.u32 %v8096_v14, %v7604_v13  ;;  %v7981_v17 = vld [vmem:[%s9103_s28 + $0x144] sm:$0xf]  ;;  %v7094_v13 = vld [vmem:[%s9103_s28 + $0xe8] sm:$0xf0]  ;;  %v7564_v14 = vld [vmem:[#allocation6 + $0x280] sm:$0xf] }
  0x84   : > { %8306 = vset.pattern.permute.xlu1 %v12534_v11  ;;  %v9247_v34 = vor.u32 %v7981_v17, %v7150_v23  ;;  %v9273_v17 = vor.u32 %v7979_v9, %v7132_v6  ;;  %12840 = vst [vmem:[#allocation32_spill] sm:$0xff] %v9275_v19  ;;  %v7302_v23 = vld [vmem:[#allocation6 + $0x78] sm:$0xf0]  ;;  %v9298_v6 = vor.u32 %v7978_v53, %v7124_v47  ;;  %v7676_v47 = vld [vmem:[#allocation6 + $0x360] sm:$0xf]  ;;  %s8836_s25 = scalar_lea.hbm %s8835_s20, 16 }
  0x85   : > { %2027 = vmatpush.bf16.msrb.mxu3 %v7437_v28  ;;  %8308 = vperm.xlu1 %8306, %v9208_v49   ;;  %v9242_v28 = vor.u32 %v7962_v20, %v7060_v15  ;;  %v8086_v15 = vld [vmem:[#allocation6 + $0x284] sm:$0xf0]  ;;  %v7305_v24 = vor.u32 %v8019_v22, %v7302_v23  ;;  %v9300_v9 = vor.u32 %v7987_v57, %v7164_v54  ;;  %v8132_v22 = vld [vmem:[#allocation6 + $0x3f4] sm:$0xf0]  ;;  %v7740_v53 = vld [vmem:[#allocation6 + $0x3e0] sm:$0xf]  ;;  %p8837_p4 = scmp.ne.s32.totalorder %s8835_s20, %s8836_s25 }
  0x86   : > { %1901 = vmatmul.bf16.gmra.mxu2 %v9161_v29  ;;  %2077 = vmatmul.bf16.vlgmr.msrb.gmra.mxu0 %v9163_v30  ;;  %12836 = vst [vmem:[#allocation28_spill] sm:$0xff] %v9247_v34  ;;  %v7565_v18 = vor.u32 %v8086_v15, %v7564_v14  ;;  %v7684_v14 = vld [vmem:[#allocation6 + $0x370] sm:$0xf]  ;;  %v8116_v15 = vld [vmem:[#allocation6 + $0x374] sm:$0xf0] }
  0x87   : > { %2119 = vmatpush.bf16.msrb.mxu1 %v7613_v12  ;;  %12834 = vst [vmem:[#allocation26_spill] sm:$0xff] %v9242_v28  ;;  %v7966_v12 = vld [vmem:[%s9103_s28 + $0xcc] sm:$0xf]  ;;  %8318 = vset.pattern.permute.xlu2 %v12540_v21  ;;  %v7685_v23 = vor.u32 %v8116_v15, %v7684_v14  ;;  %v8130_v57 = vld [vmem:[#allocation6 + $0x3e4] sm:$0xf0]  ;;  %p8838_p8 = pnand %p8837_p4, %p9071_p7 }
  0x88   : > { %1916 = vmatmul.bf16.gmra.mxu3 %v9165_v31  ;;  %1940 = vmatmul.bf16.gmra.mxu1 %v9167_v32  ;;  %12839 = vst [vmem:[#allocation31_spill] sm:$0xff] %v9273_v17  ;;  %v9277_v20 = vor.u32 %v7966_v12, %v7094_v13  ;;  %v7156_v14 = vld [vmem:[%s9103_s28 + $0x148] sm:$0xf]  ;;  %v7038_v21 = vld [vmem:[%s9103_s28 + $0x70] sm:$0xf0] }
  0x89   : > { %8320 = vperm.xlu2 %8318, %v9208_v49   ;;  %2265 = vmatpush.bf16.msra.mxu0 %v7305_v24  ;;  %12842 = vst [vmem:[#allocation34_spill] sm:$0xff] %v9298_v6  ;;  %v7986_v15 = vld [vmem:[%s9103_s28 + $0x164] sm:$0xf0]  ;;  %p8839_p11 = pneg %p8838_p8 }
  0x8a   : > { %12841 = vst [vmem:[#allocation33_spill] sm:$0xff] %v9277_v20  ;;  %2167 = vmatpush.bf16.msra.mxu2 %v7685_v23  ;;  %v7732_v23 = vld [vmem:[#allocation6 + $0x3d0] sm:$0xf] }
  0x8b   : > { %2120 = vmatpush.bf16.msrb.mxu1 %v7605_v16  ;;  %v9271_v16 = vor.u32 %v7970_v5, %v7092_v4  ;;  %v8013_v4 = vld [vmem:[#allocation6 + $0x44] sm:$0xf]  ;;  %v7278_v5 = vld [vmem:[#allocation6 + $0x48] sm:$0xf0]  ;;  %12843 = vst [vmem:[#allocation35_spill] sm:$0xff] %v9300_v9 }
  0x8c   : > { %12844 = vst [vmem:[#allocation36_spill] sm:$0xff] %v9303_v10  ;;  %v7281_v13 = vor.u32 %v8013_v4, %v7278_v5  ;;  %v7741_v5 = vor.u32 %v8130_v57, %v7740_v53  ;;  %v7943_v53 = vld [vmem:[%s9103_s28 + $0x14] sm:$0xf] }
  0x8d   : > { %8324 = vset.pattern.permute.xlu1 %v12526_v27  ;;  %12838 = vst [vmem:[#allocation30_spill] sm:$0xff] %v9271_v16  ;;  %v7006_v57 = vld [vmem:[%s9103_s28 + $0x30] sm:$0xf0] }
  0x8e   : > { %8326 = vperm.xlu1 %8324, %v9208_v49  }
  0x8f   : > { %2121 = vmatpush.bf16.msrb.mxu1 %v7597_v26  ;;  %v7294_v26 = vld [vmem:[#allocation6 + $0x68] sm:$0xf0] }
  0x90   : > { %v7297_v36 = vor.u32 %v8017_v25, %v7294_v26  ;;  %v8011_v25 = vld [vmem:[#allocation6 + $0x34] sm:$0xf]  ;;  %v7270_v26 = vld [vmem:[#allocation6 + $0x38] sm:$0xf0] }
  0x91   : > { %8330 = vset.pattern.permute.xlu2 %v12536_v37 }
  0x92   : > { %2266 = vmatpush.bf16.msra.mxu0 %v7297_v36  ;;  %8332 = vperm.xlu2 %8330, %v9208_v49   ;;  %v8183_v36 = vld [vmem:[%s9200_s1 + $0x10] sm:$0xff]  }
  0x93   : > { %2122 = vmatpush.bf16.msrb.mxu1 %v7589_v38  ;;  %v8015_v38 = vld [vmem:[#allocation6 + $0x54] sm:$0xf]  ;;  %v8161_v40 = vunpack.c.h.bf16 %v8183_v36 }
  0x96   : > { %1979 = vmatmul.bf16.vlgmr.msrb.gmra.mxu2 %v9189_v41  ;;  %2082 = vmatmul.bf16.gmra.mxu0 %v9191_v42 }
  0x97   : > { %8341 = vset.pattern.permute.xlu1 %v12532_v48  ;;  %2123 = vmatpush.bf16.msrb.mxu1 %v7581_v52  ;;  %v7289_v52 = vor.u32 %v8015_v38, %v7286_v39  ;;  %v7273_v38 = vor.u32 %v8011_v25, %v7270_v26  ;;  %v8160_v39 = vunpack.c.l.bf16 %v8183_v36  ;;  %v8128_v25 = vld [vmem:[#allocation6 + $0x3d4] sm:$0xf0]  ;;  %v8007_v26 = vld [vmem:[#allocation6 + $0x14] sm:$0xf]  ;;  %v7254_v36 = vld [vmem:[#allocation6 + $0x18] sm:$0xf0]  ;;  %v9333_v48 = vor.u32 %v7943_v53, %v7006_v57 }
  0x98   : > { %1945 = vmatmul.bf16.gmra.mxu1 %v9193_v43  ;;  %2028 = vmatmul.bf16.vlgmr.msrb.gmra.mxu3 %v9195_v44  ;;  %v7708_v57 = vld [vmem:[#allocation6 + $0x3a0] sm:$0xf] }
  0x99   : > { %8343 = vperm.xlu1 %8341, %v9260_v59   ;;  %2267 = vmatpush.bf16.msra.mxu0 %v7289_v52  ;;  %v8114_v52 = vld [vmem:[#allocation6 + $0x364] sm:$0xf0]  ;;  %v9315_v4 = vpack.i.bf16 %v8161_v40, %v8160_v39  ;;  %v7982_v39 = vld [vmem:[%s9103_s28 + $0x14c] sm:$0xf]  ;;  %v7995_v40 = vld [vmem:[%s9103_s28 + $0x1ac] sm:$0xf0] }
  0x9a   : > { %8347 = vset.pattern.permute.xlu2 %v12528_v46  ;;  %v7677_v54 = vor.u32 %v8114_v52, %v7676_v47  ;;  %v7733_v47 = vor.u32 %v8128_v25, %v7732_v23  ;;  %v7158_v52 = vld [vmem:[%s9103_s28 + $0x168] sm:$0xf0]  ;;  %v7724_v46 = vld [vmem:[#allocation6 + $0x3c0] sm:$0xf]  ;;  %12849 = vst [vmem:[#allocation41_spill] sm:$0xff] %v9333_v48 }
  0x9b   : > { %2124 = vmatpush.bf16.msrb.mxu1 %v7573_v60  ;;  %v7974_v60 = vld [vmem:[%s9103_s28 + $0x10c] sm:$0xf]  ;;  %8349 = vperm.xlu2 %8347, %v9260_v59   ;;  %v9331_v25 = vor.u32 %v7982_v39, %v7158_v52  ;;  %v8108_v39 = vld [vmem:[#allocation6 + $0x334] sm:$0xf0]  ;;  %v8106_v52 = vld [vmem:[#allocation6 + $0x324] sm:$0xf0] }
  0x9c   : > { %v9305_v12 = vor.u32 %v7974_v60, %v7126_v61  ;;  %v7262_v60 = vld [vmem:[#allocation6 + $0x28] sm:$0xf0]  ;;  %v12530_v61 = vmov 0   ;;  %2168 = vmatpush.bf16.msra.mxu2 %v7677_v54  ;;  %v9327_v54 = vor.u32 %v7986_v15, %v7156_v14 }
  0x9d   : > { %2268 = vmatpush.bf16.msra.mxu0 %v7281_v13  ;;  %v7265_v13 = vor.u32 %v8009_v58, %v7262_v60  ;;  %v7257_v58 = vor.u32 %v8007_v26, %v7254_v36  ;;  %v7660_v60 = vld [vmem:[#allocation6 + $0x340] sm:$0xf]  ;;  %12848 = vst [vmem:[#allocation40_spill] sm:$0xff] %v9331_v25 }
  0x9e   : > { %12845 = vst [vmem:[#allocation37_spill] sm:$0xff] %v9305_v12 }
  0x9f   : > { %2125 = vmatpush.bf16.msrb.mxu1 %v7565_v18  ;;  %v7748_v18 = vld [vmem:[#allocation6 + $0x3f0] sm:$0xf]  ;;  %12846 = vst [vmem:[#allocation38_spill] sm:$0xff] %v9327_v54 }
  0xa0   : > { %v7749_v24 = vor.u32 %v8132_v22, %v7748_v18  ;;  %v7668_v18 = vld [vmem:[#allocation6 + $0x350] sm:$0xf]  ;;  %v8112_v22 = vld [vmem:[#allocation6 + $0x354] sm:$0xf0] }
  0xa1   : > { %8353 = vset.pattern.permute.xlu1 %v12534_v11  ;;  %2269 = vmatpush.bf16.msra.mxu0 %v7273_v38  ;;  %v7196_v38 = vld [vmem:[%s9103_s28 + $0x190] sm:$0xf] }
  0xa2   : > { %8355 = vperm.xlu1 %8353, %v9260_v59   ;;  %2216 = vmatpush.bf16.msra.mxu3 %v7749_v24  ;;  %v7669_v24 = vor.u32 %v8112_v22, %v7668_v18  ;;  %v8126_v18 = vld [vmem:[#allocation6 + $0x3c4] sm:$0xf0]  ;;  %v8005_v22 = vld [vmem:[#allocation6 + $0x4] sm:$0xf] }
  0xa3   : > { %8359 = vset.pattern.permute.xlu2 %v12538_v45  ;;  %v7725_v14 = vor.u32 %v8126_v18, %v7724_v46  ;;  %v7951_v45 = vld [vmem:[%s9103_s28 + $0x54] sm:$0xf] }
  0xa4   : > { %2169 = vmatpush.bf16.msra.mxu2 %v7669_v24  ;;  %8361 = vperm.xlu2 %8359, %v9260_v59   ;;  %v7652_v24 = vld [vmem:[#allocation6 + $0x330] sm:$0xf] }
  0xa5   : > { %2270 = vmatpush.bf16.msra.mxu0 %v7265_v13 }
  0xa6   : > { %1984 = vmatmul.bf16.gmra.mxu2 %v9219_v62  ;;  %2087 = vmatmul.bf16.gmra.mxu0 %v9221_v63 }
  0xa7   : > { %2217 = vmatpush.bf16.msra.mxu3 %v7741_v5  ;;  %v9329_v5 = vor.u32 %v7995_v40, %v7196_v38  ;;  %v7716_v38 = vld [vmem:[#allocation6 + $0x3b0] sm:$0xf]  ;;  %v8124_v40 = vld [vmem:[#allocation6 + $0x3b4] sm:$0xf0] }
  0xa8   : > { %1950 = vmatmul.bf16.gmra.mxu1 %v9223_v0  ;;  %2033 = vmatmul.bf16.gmra.mxu3 %v9225_v1  ;;  %v7717_v46 = vor.u32 %v8124_v40, %v7716_v38  ;;  %v7700_v38 = vld [vmem:[#allocation6 + $0x390] sm:$0xf]  ;;  %v8120_v40 = vld [vmem:[#allocation6 + $0x394] sm:$0xf0] }
  0xa9   : > { %12847 = vst [vmem:[#allocation39_spill] sm:$0xff] %v9329_v5  ;;  %2271 = vmatpush.bf16.msra.mxu0 %v7257_v58  ;;  %v8122_v58 = vld [vmem:[#allocation6 + $0x3a4] sm:$0xf0] }
  0xaa   : > { %8371 = vset.pattern.permute.xlu1 %v12526_v27  ;;  %v8110_v27 = vld [vmem:[#allocation6 + $0x344] sm:$0xf0] }
  0xab   : > { %8373 = vperm.xlu1 %8371, %v9260_v59   ;;  %2218 = vmatpush.bf16.msra.mxu3 %v7733_v47  ;;  %v7661_v26 = vor.u32 %v8110_v27, %v7660_v60  ;;  %v7653_v27 = vor.u32 %v8108_v39, %v7652_v24  ;;  %v8104_v24 = vld [vmem:[#allocation6 + $0x314] sm:$0xf0]  ;;  %v7990_v39 = vld [vmem:[%s9103_s28 + $0x18c] sm:$0xf] }
  0xac   : > { %8377 = vset.pattern.permute.xlu2 %v12536_v37  ;;  %v7228_v37 = vld [vmem:[%s9103_s28 + $0x1d0] sm:$0xf] }
  0xad   : > { %2170 = vmatpush.bf16.msra.mxu2 %v7661_v26  ;;  %8379 = vperm.xlu2 %8377, %v9260_v59   ;;  %v7994_v26 = vld [vmem:[%s9103_s28 + $0x1a4] sm:$0xf0] }
  0xaf   : > { %2219 = vmatpush.bf16.msra.mxu3 %v7725_v14  ;;  %v7709_v14 = vor.u32 %v8122_v58, %v7708_v57  ;;  %v7628_v57 = vld [vmem:[#allocation6 + $0x300] sm:$0xf]  ;;  %v8102_v58 = vld [vmem:[#allocation6 + $0x304] sm:$0xf0] }
  0xb1   : > { %2171 = vmatpush.bf16.msra.mxu2 %v7653_v27  ;;  %v8003_v27 = vld [vmem:[%s9103_s28 + $0x1ec] sm:$0xf0] }
  0xb3   : > { %8383 = vset.pattern.permute.xlu1 %v12530_v61  ;;  %v7246_v61 = vld [vmem:[#allocation6 + $0x8] sm:$0xf0]  ;;  %2220 = vmatpush.bf16.msra.mxu3 %v7717_v46  ;;  %v7701_v46 = vor.u32 %v8120_v40, %v7700_v38  ;;  %v12855_v38 = vmov 1   ;;  %v7629_v40 = vor.u32 %v8102_v58, %v7628_v57  ;;  %v7070_v57 = vld [vmem:[%s9103_s28 + $0xb0] sm:$0xf0] }
  0xb4   : > { %8385 = vperm.xlu1 %8383, %v9315_v4   ;;  %v7249_v15 = vor.u32 %v8005_v22, %v7246_v61  ;;  %v7644_v61 = vld [vmem:[#allocation6 + $0x320] sm:$0xf] }
  0xb5   : > { %v7645_v22 = vor.u32 %v8106_v52, %v7644_v61  ;;  %v8184_v52 = vld [vmem:[%s9200_s1 + $0x18] sm:$0xff]   ;;  %8389 = vset.pattern.permute.xlu2 %v12855_v38 }
  0xb6   : > { %1989 = vmatmul.bf16.gmra.mxu2 %v9242_v28  ;;  %2092 = vmatmul.bf16.gmra.mxu0 %v9244_v33 }
  0xb7   : > { %2272 = vmatpush.bf16.msra.mxu0 %v7249_v15  ;;  %v7636_v15 = vld [vmem:[#allocation6 + $0x310] sm:$0xf]  ;;  %2172 = vmatpush.bf16.msra.mxu2 %v7645_v22  ;;  %v8165_v22 = vunpack.c.h.bf16 %v8184_v52 }
  0xb8   : > { %1955 = vmatmul.bf16.gmra.mxu1 %v9247_v34  ;;  %2038 = vmatmul.bf16.gmra.mxu3 %v9249_v35  ;;  %v7637_v61 = vor.u32 %v8104_v24, %v7636_v15 }
  0xb9   : > { %2221 = vmatpush.bf16.msra.mxu3 %v7709_v14  ;;  %8391 = vperm.xlu2 %8389, %v9315_v4  }
  0xbb   : > { %2173 = vmatpush.bf16.msra.mxu2 %v7637_v61  ;;  %v7998_v61 = vld [vmem:[%s9103_s28 + $0x1cc] sm:$0xf] }
  0xbc   : > { %8401 = vset.pattern.permute.xlu1 %v12534_v11  ;;  %v7190_v11 = vld [vmem:[%s9103_s28 + $0x1a8] sm:$0xf0] }
  0xbd   : > { %8403 = vperm.xlu1 %8401, %v9315_v4   ;;  %v9371_v24 = vor.u32 %v7990_v39, %v7190_v11  ;;  %2222 = vmatpush.bf16.msra.mxu3 %v7701_v46  ;;  %v7220_v39 = vld [vmem:[%s9103_s28 + $0x1c8] sm:$0xf]  ;;  %v7959_v46 = vld [vmem:[%s9103_s28 + $0x94] sm:$0xf] }
  0xbf   : > { %12853 = vst [vmem:[#allocation44_spill] sm:$0xff] %v9371_v24  ;;  %2174 = vmatpush.bf16.msra.mxu2 %v7629_v40 }
  0xc6   : > { %1994 = vmatmul.bf16.gmra.mxu2 %v9271_v16  ;;  %2097 = vmatmul.bf16.gmra.mxu0 %v9273_v17  ;;  %v7952_v16 = vld [vmem:[%s9103_s28 + $0x5c] sm:$0xf] }
  0xc8   : > { %1960 = vmatmul.bf16.gmra.mxu1 %v9275_v19  ;;  %2043 = vmatmul.bf16.gmra.mxu3 %v9277_v20  ;;  %v12866_v19 = vmov 7  }
  0xd6   : > { %1999 = vmatmul.bf16.gmra.mxu2 %v9298_v6  ;;  %2102 = vmatmul.bf16.gmra.mxu0 %v9300_v9  ;;  %v9373_v9 = vor.u32 %v7951_v45, %v7038_v21  ;;  %v12856_v21 = vmov 0  }
  0xd7   : > { %8294 = vset.pattern.permute.xlu0 %v12856_v21 }
  0xd8   : > { %1965 = vmatmul.bf16.gmra.mxu1 %v9303_v10  ;;  %2048 = vmatmul.bf16.gmra.mxu3 %v9305_v12  ;;  %v8118_v12 = vld [vmem:[#allocation6 + $0x384] sm:$0xf0]  ;;  %v8164_v10 = vunpack.c.l.bf16 %v8184_v52  ;;  %12854 = vst [vmem:[#allocation45_spill] sm:$0xff] %v9373_v9  ;;  %v7222_v52 = vld [vmem:[%s9103_s28 + $0x1e8] sm:$0xf0] }
  0xd9   : > { %8296 = vperm.xlu0 %8294, %v9208_v49  }
  0xda   : > { %v9381_v11 = vpack.i.bf16 %v8165_v22, %v8164_v10 }
  0xe1   : > { %8337 = vperm.xlu0 %8294, %v9260_v59  }
  0xe3   : > { %v1882_v23 = vpop.f32.mrf.mxu0 }
  0xe5   : > { %v1931_v13 = vpop.f32.mrf.mxu1 }
  0xe6   : > { %v9336_v36 = vadd.f32 %v1931_v13, %v1882_v23  ;;  %2004 = vmatmul.bf16.gmra.mxu2 %v9327_v54  ;;  %2107 = vmatmul.bf16.gmra.mxu0 %v9329_v5  ;;  %v7188_v13 = vld [vmem:[%s9103_s28 + $0x188] sm:$0xf]  ;;  %v9369_v5 = vor.u32 %v8003_v27, %v7228_v37  ;;  %v7692_v54 = vld [vmem:[#allocation6 + $0x380] sm:$0xf] }
  0xe7   : > { %v7693_v37 = vor.u32 %v8118_v12, %v7692_v54  ;;  %v8002_v27 = vld [vmem:[%s9103_s28 + $0x1e4] sm:$0xf0] }
  0xe8   : > { %2053 = vmatmul.bf16.gmra.mxu3 %v9331_v25  ;;  %2126 = vmatmul.bf16.vlgmr.msrb.gmra.mxu1 %v9333_v48  ;;  %v12850_v48 = vmov 5   ;;  %v9367_v25 = vor.u32 %v7994_v26, %v7188_v13  ;;  %12852 = vst [vmem:[#allocation43_spill] sm:$0xff] %v9369_v5  ;;  %v12857_v26 = vmov 4  }
  0xe9   : > { %v9344_v47 = vpop.f32.mrf.mxu2  ;;  %8413 = vset.pattern.permute.xlu1 %v12850_v48  ;;  %2223 = vmatpush.bf16.msra.mxu3 %v7693_v37  ;;  %v9405_v37 = vor.u32 %v7998_v61, %v7222_v52 }
  0xea   : > { %8415 = vperm.xlu1 %8413, %v9315_v4   ;;  %12851 = vst [vmem:[#allocation42_spill] sm:$0xff] %v9367_v25  ;;  %8407 = vset.pattern.permute.xlu2 %v12857_v26 }
  0xeb   : > { %v9346_v53 = vpop.f32.mrf.mxu3  ;;  %v1884_v60 = vpop.f32.mrf.mxu0  ;;  %8409 = vperm.xlu2 %8407, %v9315_v4   ;;  %12860 = vst [vmem:[#allocation47_spill] sm:$0xff] %v9405_v37  ;;  %8365 = vset.pattern.permute.xlu0 %v12850_v48 }
  0xec   : > { %8367 = vperm.xlu0 %8365, %v9260_v59   ;;  %v7046_v59 = vld [vmem:[%s9103_s28 + $0x78] sm:$0xf0] }
  0xed   : > { %v1933_v18 = vpop.f32.mrf.mxu1 }
  0xee   : > { %v9350_v23 = vadd.f32 %v1933_v18, %v1884_v60 }
  0xf1   : > { %v9362_v60 = vpop.f32.mrf.mxu2 }
  0xf2   : > { %8431 = vset.pattern.permute.xlu1 %v12856_v21 }
  0xf3   : > { %v9365_v18 = vpop.f32.mrf.mxu3  ;;  %v1887_v15 = vpop.f32.mrf.mxu0  ;;  %8433 = vperm.xlu1 %8431, %v9381_v11  }
  0xf5   : > { %v1936_v14 = vpop.f32.mrf.mxu1 }
  0xf6   : > { %v9376_v6 = vadd.f32 %v1936_v14, %v1887_v15  ;;  %2009 = vmatmul.bf16.gmra.mxu2 %v9367_v25  ;;  %2112 = vmatmul.bf16.gmra.mxu0 %v9369_v5  ;;  %v9402_v15 = vor.u32 %v8002_v27, %v7220_v39  ;;  %v12859_v14 = vmov 2   ;;  %v12862_v39 = vmov 6  }
  0xf7   : > { %8419 = vset.pattern.permute.xlu2 %v12862_v39  ;;  %8395 = vset.pattern.permute.xlu0 %v12859_v14 }
  0xf8   : > { %2058 = vmatmul.bf16.gmra.mxu3 %v9371_v24  ;;  %2131 = vmatmul.bf16.gmra.mxu1 %v9373_v9  ;;  %12858 = vst [vmem:[#allocation46_spill] sm:$0xff] %v9402_v15 }
  0xf9   : > { %v1897_v45 = vpop.f32.mrf.mxu2  ;;  %8421 = vperm.xlu2 %8419, %v9315_v4   ;;  %8397 = vperm.xlu0 %8395, %v9315_v4  }
  0xfb   : > { %v9386_v12 = vpop.f32.mrf.mxu3  ;;  %v1889_v54 = vpop.f32.mrf.mxu0  ;;  %8443 = vset.pattern.permute.xlu1 %v12859_v14 }
  0xfc   : > { %8445 = vperm.xlu1 %8443, %v9381_v11  }
  0xfd   : > { %v1938_v10 = vpop.f32.mrf.mxu1 }
  0xfe   : > { %v9389_v13 = vadd.f32 %v1938_v10, %v1889_v54  ;;  %v9407_v54 = vor.u32 %v7959_v46, %v7070_v57  ;;  %v7967_v46 = vld [vmem:[%s9103_s28 + $0xd4] sm:$0xf]  ;;  %v7012_v57 = vld [vmem:[%s9103_s28 + $0x18] sm:$0xf] }
 0x100   : > { %12861 = vst [vmem:[#allocation48_spill] sm:$0xff] %v9407_v54 }
 0x101   : > { %v1899_v58 = vpop.f32.mrf.mxu2  ;;  %8437 = vset.pattern.permute.xlu2 %v12855_v38  ;;  %8425 = vset.pattern.permute.xlu0 %v12866_v19 }
 0x102   : > { %8439 = vperm.xlu2 %8437, %v9381_v11   ;;  %8427 = vperm.xlu0 %8425, %v9315_v4  }
 0x103   : > { %v9400_v22 = vpop.f32.mrf.mxu3  ;;  %v2078_v40 = vpop.f32.mrf.mxu0 }
 0x104   : > { %8461 = vset.pattern.permute.xlu1 %v12850_v48 }
 0x105   : > { %v1941_v10 = vpop.f32.mrf.mxu1  ;;  %8463 = vperm.xlu1 %8461, %v9381_v11  }
 0x106   : > { %v9411_v9 = vadd.f32 %v1941_v10, %v9344_v47  ;;  %2014 = vmatmul.bf16.gmra.mxu2 %v9402_v15  ;;  %2273 = vmatmul.bf16.vlgmr.msra.gmra.mxu0 %v9121_v2  ;;  %v7948_v10 = vld [vmem:[%s9103_s28 + $0x34] sm:$0xf0]  ;;  %v7014_v15 = vld [vmem:[%s9103_s28 + $0x38] sm:$0xf0] }
 0x107   : > { %v9444_v5 = vor.u32 %v7948_v10, %v7012_v57  ;;  %v8185_v57 = vld [vmem:[%s9200_s1 + $0x20] sm:$0xff]  }
 0x108   : > { %2063 = vmatmul.bf16.gmra.mxu3 %v9405_v37  ;;  %2136 = vmatmul.bf16.gmra.mxu1 %v9407_v54  ;;  %v7102_v54 = vld [vmem:[%s9103_s28 + $0xf0] sm:$0xf0]  ;;  %v7944_v37 = vld [vmem:[%s9103_s28 + $0x1c] sm:$0xf] }
 0x109   : > { %v9419_v47 = vpop.f32.mrf.mxu2  ;;  %12863 = vst [vmem:[#allocation49_spill] sm:$0xff] %v9444_v5  ;;  %v9451_v25 = vor.u32 %v7944_v37, %v7014_v15  ;;  %v12867_v37 = vmov 3  }
 0x10a   : > { %8449 = vset.pattern.permute.xlu2 %v12867_v37  ;;  %8455 = vset.pattern.permute.xlu0 %v12857_v26 }
 0x10b   : > { %v9423_v27 = vpop.f32.mrf.mxu3  ;;  %v9425_v2 = vpop.f32.mrf.mxu0  ;;  %12865 = vst [vmem:[#allocation51_spill] sm:$0xff] %v9451_v25  ;;  %8451 = vperm.xlu2 %8449, %v9381_v11   ;;  %8457 = vperm.xlu0 %8455, %v9381_v11  }
 0x10d   : > { %v1943_v61 = vpop.f32.mrf.mxu1  ;;  %8473 = vset.pattern.permute.xlu1 %v12866_v19 }
 0x10e   : > { %v9430_v52 = vadd.f32 %v1943_v61, %v9362_v60  ;;  %v9449_v61 = vor.u32 %v7967_v46, %v7102_v54  ;;  %8475 = vperm.xlu1 %8473, %v9381_v11   ;;  %v8168_v54 = vunpack.c.l.bf16 %v8185_v57  ;;  %v8169_v46 = vunpack.c.h.bf16 %v8185_v57 }
 0x110   : > { %12864 = vst [vmem:[#allocation50_spill] sm:$0xff] %v9449_v61 }
 0x111   : > { %v9438_v49 = vpop.f32.mrf.mxu2 }
 0x113   : > { %v9442_v24 = vpop.f32.mrf.mxu3  ;;  %v9447_v60 = vpop.f32.mrf.mxu0  ;;  %8467 = vset.pattern.permute.xlu2 %v12862_v39  ;;  %8485 = vset.pattern.permute.xlu0 %v12855_v38 }
 0x114   : > { %8469 = vperm.xlu2 %8467, %v9381_v11   ;;  %v7108_v11 = vld [vmem:[%s9103_s28 + $0xd8] sm:$0xf] }
 0x115   : > { %v1946_v20 = vpop.f32.mrf.mxu1 }
 0x116   : > { %v9454_v17 = vadd.f32 %v1946_v20, %v1897_v45  ;;  %2175 = vmatmul.bf16.vlgmr.msra.gmra.mxu2 %v9444_v5  ;;  %2278 = vmatmul.bf16.gmra.mxu0 %v9141_v50  ;;  %v9465_v50 = vpack.i.bf16 %v8169_v46, %v8168_v54  ;;  %v7044_v5 = vld [vmem:[%s9103_s28 + $0x58] sm:$0xf]  ;;  %v7134_v46 = vld [vmem:[%s9103_s28 + $0x130] sm:$0xf0] }
 0x117   : > { %8491 = vset.pattern.permute.xlu1 %v12859_v14  ;;  %v7956_v54 = vld [vmem:[%s9103_s28 + $0x74] sm:$0xf0] }
 0x118   : > { %2141 = vmatmul.bf16.gmra.mxu1 %v9449_v61  ;;  %2224 = vmatmul.bf16.vlgmr.msra.gmra.mxu3 %v9451_v25 }
 0x119   : > { %v1980_v15 = vpop.f32.mrf.mxu2  ;;  %8493 = vperm.xlu1 %8491, %v9465_v50   ;;  %8487 = vperm.xlu0 %8485, %v9465_v50  }
 0x11a   : > { %v1981_v20 = vadd.f32 %v1980_v15, %v9336_v36  ;;  %v7975_v15 = vld [vmem:[%s9103_s28 + $0x114] sm:$0xf] }
 0x11b   : > { %v2029_v45 = vpop.f32.mrf.mxu3  ;;  %v9468_v10 = vpop.f32.mrf.mxu0 }
 0x11c   : > { %v2030_v57 = vadd.f32 %v2029_v45, %v1981_v20  ;;  %v9484_v20 = vor.u32 %v7956_v54, %v7044_v5  ;;  %v8035_v5 = vld [vmem:[#allocation6 + $0xf4] sm:$0xf]  ;;  %8479 = vset.pattern.permute.xlu2 %v12856_v21 }
 0x11d   : > { %v1948_v25 = vpop.f32.mrf.mxu1  ;;  %8481 = vperm.xlu2 %8479, %v9465_v50  }
 0x11e   : > { %v9471_v61 = vadd.f32 %v1948_v25, %v1899_v58  ;;  %v9475_v36 = vadd.f32 %v2078_v40, %v2030_v57  ;;  %12868 = vst [vmem:[#allocation52_spill] sm:$0xff] %v9484_v20  ;;  %v9489_v58 = vor.u32 %v7975_v15, %v7134_v46  ;;  %v9491_v40 = vor.u32 %v7952_v16, %v7046_v59 }
 0x120   : > { %12869 = vst [vmem:[#allocation53_spill] sm:$0xff] %v9489_v58 }
 0x121   : > { %v1982_v35 = vpop.f32.mrf.mxu2  ;;  %12870 = vst [vmem:[#allocation54_spill] sm:$0xff] %v9491_v40  ;;  %8503 = vset.pattern.permute.xlu1 %v12857_v26  ;;  %8515 = vset.pattern.permute.xlu0 %v12862_v39 }
 0x122   : > { %v1983_v34 = vadd.f32 %v1982_v35, %v9350_v23  ;;  %v7366_v23 = vld [vmem:[#allocation6 + $0xf8] sm:$0xf0]  ;;  %8505 = vperm.xlu1 %8503, %v9465_v50   ;;  %8517 = vperm.xlu0 %8515, %v9465_v50  }
 0x123   : > { %v2031_v33 = vpop.f32.mrf.mxu3  ;;  %v9487_v25 = vpop.f32.mrf.mxu0  ;;  %v7369_v16 = vor.u32 %v8035_v5, %v7366_v23  ;;  %v8031_v23 = vld [vmem:[#allocation6 + $0xd4] sm:$0xf] }
 0x124   : > { %v2032_v45 = vadd.f32 %v2031_v33, %v1983_v34  ;;  %v8033_v34 = vld [vmem:[#allocation6 + $0xe4] sm:$0xf]  ;;  %v9520_v5 = vpop.permute.xlu1 %8302 }
 0x125   : > { %v1951_v57 = vpop.f32.mrf.mxu1  ;;  %2314 = vmatpush.bf16.msra.mxu1 %v7369_v16  ;;  %v7350_v16 = vld [vmem:[#allocation6 + $0xd8] sm:$0xf0]  ;;  %8497 = vset.pattern.permute.xlu2 %v12867_v37 }
 0x126   : > { %v9497_v35 = vadd.f32 %v1951_v57, %v9419_v47  ;;  %2180 = vmatmul.bf16.gmra.mxu2 %v9484_v20  ;;  %2283 = vmatmul.bf16.gmra.mxu0 %v9123_v3  ;;  %v9504_v15 = vadd.f32 %v9425_v2, %v2032_v45  ;;  %v7358_v47 = vld [vmem:[#allocation6 + $0xe8] sm:$0xf0]  ;;  %v9518_v57 = vpop.permute.xlu2 %8314 }
 0x127   : > { %v7361_v46 = vor.u32 %v8033_v34, %v7358_v47  ;;  %v7166_v34 = vld [vmem:[%s9103_s28 + $0x170] sm:$0xf0]  ;;  %v7076_v47 = vld [vmem:[%s9103_s28 + $0x98] sm:$0xf]  ;;  %v7342_v20 = vld [vmem:[#allocation6 + $0xc8] sm:$0xf0]  ;;  %8499 = vperm.xlu2 %8497, %v9465_v50  }
 0x128   : > { %2146 = vmatmul.bf16.gmra.mxu1 %v9489_v58  ;;  %2229 = vmatmul.bf16.gmra.mxu3 %v9491_v40  ;;  %v7960_v40 = vld [vmem:[%s9103_s28 + $0x9c] sm:$0xf] }
 0x129   : > { %v1985_v33 = vpop.f32.mrf.mxu2  ;;  %2315 = vmatpush.bf16.msra.mxu1 %v7361_v46  ;;  %v8029_v46 = vld [vmem:[#allocation6 + $0xc4] sm:$0xf] }
 0x12a   : > { %v1986_v3 = vadd.f32 %v1985_v33, %v9376_v6  ;;  %v7983_v33 = vld [vmem:[%s9103_s28 + $0x154] sm:$0xf]  ;;  %8521 = vset.pattern.permute.xlu1 %v12866_v19  ;;  %8545 = vset.pattern.permute.xlu0 %v12867_v37 }
 0x12b   : > { %v2034_v54 = vpop.f32.mrf.mxu3  ;;  %v9509_v59 = vpop.f32.mrf.mxu0  ;;  %8523 = vperm.xlu1 %8521, %v9465_v50  }
 0x12c   : > { %v2035_v2 = vadd.f32 %v2034_v54, %v1986_v3  ;;  %v7964_v3 = vld [vmem:[%s9103_s28 + $0xb4] sm:$0xf0]  ;;  %v7353_v54 = vor.u32 %v8031_v23, %v7350_v16  ;;  %v7345_v23 = vor.u32 %v8029_v46, %v7342_v20  ;;  %v8027_v20 = vld [vmem:[#allocation6 + $0xb4] sm:$0xf] }
 0x12d   : > { %v1953_v45 = vpop.f32.mrf.mxu1  ;;  %v9534_v0 = vor.u32 %v7964_v3, %v7076_v47  ;;  %v8025_v47 = vld [vmem:[#allocation6 + $0xa4] sm:$0xf]  ;;  %v7326_v3 = vld [vmem:[#allocation6 + $0xa8] sm:$0xf0]  ;;  %v8023_v46 = vld [vmem:[#allocation6 + $0x94] sm:$0xf] }
 0x12e   : > { %v9515_v6 = vadd.f32 %v1953_v45, %v9438_v49  ;;  %v9527_v4 = vadd.f32 %v9447_v60, %v2035_v2  ;;  %v7078_v49 = vld [vmem:[%s9103_s28 + $0xb8] sm:$0xf0]  ;;  %v8186_v45 = vld [vmem:[%s9200_s1 + $0x28] sm:$0xff]   ;;  %2316 = vmatpush.bf16.msra.mxu1 %v7353_v54  ;;  %v9539_v60 = vor.u32 %v7983_v33, %v7166_v34 }
 0x12f   : > { %12871 = vst [vmem:[#allocation55_spill] sm:$0xff] %v9534_v0  ;;  %v9541_v2 = vor.u32 %v7960_v40, %v7078_v49  ;;  %v8172_v63 = vunpack.c.l.bf16 %v8186_v45  ;;  %v8173_v62 = vunpack.c.h.bf16 %v8186_v45  ;;  %v7334_v40 = vld [vmem:[#allocation6 + $0xb8] sm:$0xf0]  ;;  %8509 = vset.pattern.permute.xlu2 %v12850_v48 }
 0x130   : > { %12872 = vst [vmem:[#allocation56_spill] sm:$0xff] %v9539_v60  ;;  %8511 = vperm.xlu2 %8509, %v9465_v50   ;;  %v7142_v50 = vld [vmem:[%s9103_s28 + $0x138] sm:$0xf0] }
 0x131   : > { %v1987_v58 = vpop.f32.mrf.mxu2  ;;  %12873 = vst [vmem:[#allocation57_spill] sm:$0xff] %v9541_v2 }
 0x132   : > { %v1988_v28 = vadd.f32 %v1987_v58, %v9389_v13  ;;  %2317 = vmatpush.bf16.msra.mxu1 %v7345_v23  ;;  %v9547_v13 = vpop.permute.xlu2 %8320  ;;  %v9549_v58 = vpop.permute.xlu1 %8308  ;;  %v7318_v23 = vld [vmem:[#allocation6 + $0x98] sm:$0xf0] }
 0x133   : > { %v2036_v1 = vpop.f32.mrf.mxu3  ;;  %v9537_v16 = vpop.f32.mrf.mxu0  ;;  %8533 = vset.pattern.permute.xlu1 %v12855_v38 }
 0x134   : > { %v2037_v44 = vadd.f32 %v2036_v1, %v1988_v28  ;;  %v9555_v1 = vpack.i.bf16 %v8173_v62, %v8172_v63  ;;  %v7337_v28 = vor.u32 %v8027_v20, %v7334_v40  ;;  %v7329_v62 = vor.u32 %v8025_v47, %v7326_v3  ;;  %v7991_v20 = vld [vmem:[%s9103_s28 + $0x194] sm:$0xf]  ;;  %v7972_v40 = vld [vmem:[%s9103_s28 + $0xf4] sm:$0xf0]  ;;  %v7968_v3 = vld [vmem:[%s9103_s28 + $0xdc] sm:$0xf] }
 0x135   : > { %v9543_v54 = vpop.f32.mrf.mxu1  ;;  %v7198_v47 = vld [vmem:[%s9103_s28 + $0x1b0] sm:$0xf0]  ;;  %v9585_v43 = vor.u32 %v7972_v40, %v7108_v11 }
 0x136   : > { %2185 = vmatmul.bf16.gmra.mxu2 %v9534_v0  ;;  %2288 = vmatmul.bf16.gmra.mxu0 %v9143_v51  ;;  %v9559_v33 = vadd.f32 %v9468_v10, %v2037_v44  ;;  %v8083_v40 = vld [vmem:[#allocation6 + $0x274] sm:$0xf] }
 0x137   : > { %2318 = vmatpush.bf16.msra.mxu1 %v7337_v28  ;;  %8535 = vperm.xlu1 %8533, %v9555_v1   ;;  %v7321_v28 = vor.u32 %v8023_v46, %v7318_v23  ;;  %12876 = vst [vmem:[#allocation60_spill] sm:$0xff] %v9585_v43  ;;  %v9590_v46 = vor.u32 %v7991_v20, %v7198_v47  ;;  %v8081_v20 = vld [vmem:[#allocation6 + $0x264] sm:$0xf]  ;;  %v7550_v47 = vld [vmem:[#allocation6 + $0x268] sm:$0xf0] }
 0x138   : > { %2151 = vmatmul.bf16.gmra.mxu1 %v9539_v60  ;;  %2234 = vmatmul.bf16.gmra.mxu3 %v9541_v2  ;;  %v7110_v2 = vld [vmem:[%s9103_s28 + $0xf8] sm:$0xf0] }
 0x139   : > { %v1990_v34 = vpop.f32.mrf.mxu2  ;;  %12877 = vst [vmem:[#allocation61_spill] sm:$0xff] %v9590_v46  ;;  %v9592_v23 = vor.u32 %v7968_v3, %v7110_v2  ;;  %8527 = vset.pattern.permute.xlu2 %v12856_v21  ;;  %8547 = vperm.xlu0 %8545, %v9555_v1  }
 0x13a   : > { %v1991_v51 = vadd.f32 %v1990_v34, %v9411_v9  ;;  %v9569_v45 = vpop.permute.xlu2 %8332  ;;  %v9571_v9 = vpop.permute.xlu1 %8326  ;;  %8529 = vperm.xlu2 %8527, %v9555_v1  }
 0x13b   : > { %v2039_v49 = vpop.f32.mrf.mxu3  ;;  %v9564_v63 = vpop.f32.mrf.mxu0  ;;  %2319 = vmatpush.bf16.msra.mxu1 %v7329_v62  ;;  %12874 = vst [vmem:[#allocation58_spill] sm:$0xff] %v9569_v45  ;;  %v7310_v62 = vld [vmem:[#allocation6 + $0x88] sm:$0xf0] }
 0x13c   : > { %v2040_v44 = vadd.f32 %v2039_v49, %v1991_v51  ;;  %12875 = vst [vmem:[#allocation59_spill] sm:$0xff] %v9571_v9  ;;  %v8021_v49 = vld [vmem:[#allocation6 + $0x84] sm:$0xf] }
 0x13d   : > { %v9567_v10 = vpop.f32.mrf.mxu1  ;;  %12878 = vst [vmem:[#allocation62_spill] sm:$0xff] %v9592_v23 }
 0x13e   : > { %v9577_v34 = vadd.f32 %v9487_v25, %v2040_v44  ;;  %v7313_v25 = vor.u32 %v8021_v49, %v7310_v62 }
 0x13f   : > { %2320 = vmatpush.bf16.msra.mxu1 %v7321_v28  ;;  %8551 = vset.pattern.permute.xlu1 %v12857_v26 }
 0x140   : > { %8553 = vperm.xlu1 %8551, %v9555_v1  }
 0x141   : > { %v1992_v51 = vpop.f32.mrf.mxu2  ;;  %8575 = vset.pattern.permute.xlu0 %v12856_v21 }
 0x142   : > { %v1993_v60 = vadd.f32 %v1992_v51, %v9430_v52  ;;  %v9599_v52 = vpop.permute.xlu2 %8349  ;;  %v9601_v11 = vpop.permute.xlu1 %8343  ;;  %v7558_v51 = vld [vmem:[#allocation6 + $0x278] sm:$0xf0]  ;;  %8539 = vset.pattern.permute.xlu2 %v12859_v14 }
 0x143   : > { %v2041_v0 = vpop.f32.mrf.mxu3  ;;  %v9588_v44 = vpop.f32.mrf.mxu0  ;;  %2321 = vmatpush.bf16.msra.mxu1 %v7313_v25  ;;  %12879 = vst [vmem:[#allocation63_spill] sm:$0xff] %v9599_v52  ;;  %v7534_v52 = vld [vmem:[#allocation6 + $0x248] sm:$0xf0]  ;;  %8541 = vperm.xlu2 %8539, %v9555_v1  }
 0x144   : > { %v2042_v28 = vadd.f32 %v2041_v0, %v1993_v60  ;;  %12880 = vst [vmem:[#allocation64_spill] sm:$0xff] %v9601_v11  ;;  %v7561_v0 = vor.u32 %v8083_v40, %v7558_v51  ;;  %v8187_v40 = vld [vmem:[%s9200_s1 + $0x30] sm:$0xff]  }
 0x145   : > { %v9596_v42 = vpop.f32.mrf.mxu1  ;;  %v8079_v51 = vld [vmem:[#allocation6 + $0x254] sm:$0xf]  ;;  %v8177_v11 = vunpack.c.h.bf16 %v8187_v40 }
 0x146   : > { %2190 = vmatmul.bf16.gmra.mxu2 %v9585_v43  ;;  %2293 = vmatmul.bf16.gmra.mxu0 %v9161_v29  ;;  %v9608_v60 = vadd.f32 %v9509_v59, %v2042_v28  ;;  %v7553_v29 = vor.u32 %v8081_v20, %v7550_v47  ;;  %v7140_v20 = vld [vmem:[%s9103_s28 + $0x118] sm:$0xf]  ;;  %v8176_v43 = vunpack.c.l.bf16 %v8187_v40 }
 0x147   : > { %2461 = vmatpush.bf16.msrb.mxu0 %v7561_v0  ;;  %v7542_v0 = vld [vmem:[#allocation6 + $0x258] sm:$0xf0]  ;;  %v7980_v47 = vld [vmem:[%s9103_s28 + $0x134] sm:$0xf0] }
 0x148   : > { %2156 = vmatmul.bf16.gmra.mxu1 %v9590_v46  ;;  %2239 = vmatmul.bf16.gmra.mxu3 %v9592_v23  ;;  %v7230_v23 = vld [vmem:[%s9103_s28 + $0x1f0] sm:$0xf0]  ;;  %v7976_v46 = vld [vmem:[%s9103_s28 + $0x11c] sm:$0xf]  ;;  %v9636_v9 = vor.u32 %v7980_v47, %v7140_v20  ;;  %v9648_v45 = vpack.i.bf16 %v8177_v11, %v8176_v43 }
 0x149   : > { %v1995_v2 = vpop.f32.mrf.mxu2  ;;  %8563 = vset.pattern.permute.xlu1 %v12862_v39 }
 0x14a   : > { %v1996_v3 = vadd.f32 %v1995_v2, %v9454_v17  ;;  %8565 = vperm.xlu1 %8563, %v9555_v1   ;;  %v9621_v17 = vpop.permute.xlu2 %8361  ;;  %v9623_v28 = vpop.permute.xlu1 %8355  ;;  %v7999_v2 = vld [vmem:[%s9103_s28 + $0x1d4] sm:$0xf]  ;;  %12883 = vst [vmem:[#allocation67_spill] sm:$0xff] %v9636_v9  ;;  %8577 = vperm.xlu0 %8575, %v9648_v45  }
 0x14b   : > { %v2044_v49 = vpop.f32.mrf.mxu3  ;;  %v9613_v62 = vpop.f32.mrf.mxu0  ;;  %2462 = vmatpush.bf16.msrb.mxu0 %v7553_v29  ;;  %12881 = vst [vmem:[#allocation65_spill] sm:$0xff] %v9621_v17  ;;  %v8077_v17 = vld [vmem:[#allocation6 + $0x244] sm:$0xf]  ;;  %8557 = vset.pattern.permute.xlu2 %v12850_v48 }
 0x14c   : > { %v2045_v59 = vadd.f32 %v2044_v49, %v1996_v3  ;;  %12882 = vst [vmem:[#allocation66_spill] sm:$0xff] %v9623_v28  ;;  %v7545_v3 = vor.u32 %v8079_v51, %v7542_v0  ;;  %v7537_v51 = vor.u32 %v8077_v17, %v7534_v52  ;;  %v7430_v17 = vld [vmem:[#allocation6 + $0x178] sm:$0xf0]  ;;  %8559 = vperm.xlu2 %8557, %v9555_v1  }
 0x14d   : > { %v9616_v25 = vpop.f32.mrf.mxu1 }
 0x14e   : > { %v9630_v49 = vadd.f32 %v9537_v16, %v2045_v59  ;;  %v9641_v16 = vor.u32 %v7999_v2, %v7230_v23  ;;  %v9643_v59 = vor.u32 %v7976_v46, %v7142_v50  ;;  %v8051_v23 = vld [vmem:[#allocation6 + $0x174] sm:$0xf]  ;;  %v7494_v46 = vld [vmem:[#allocation6 + $0x1f8] sm:$0xf0] }
 0x14f   : > { %2463 = vmatpush.bf16.msrb.mxu0 %v7545_v3  ;;  %v7433_v43 = vor.u32 %v8051_v23, %v7430_v17  ;;  %v7526_v2 = vld [vmem:[#allocation6 + $0x238] sm:$0xf0]  ;;  %v8065_v23 = vld [vmem:[#allocation6 + $0x1e4] sm:$0xf] }
 0x150   : > { %12884 = vst [vmem:[#allocation68_spill] sm:$0xff] %v9641_v16 }
 0x151   : > { %v1997_v29 = vpop.f32.mrf.mxu2  ;;  %12885 = vst [vmem:[#allocation69_spill] sm:$0xff] %v9643_v59  ;;  %2363 = vmatpush.bf16.msrb.mxu2 %v7433_v43 }
 0x152   : > { %v1998_v28 = vadd.f32 %v1997_v29, %v9471_v61  ;;  %8581 = vset.pattern.permute.xlu1 %v12855_v38  ;;  %v9652_v61 = vpop.permute.xlu2 %8379  ;;  %v9654_v52 = vpop.permute.xlu1 %8373  ;;  %8605 = vset.pattern.permute.xlu0 %v12850_v48 }
 0x153   : > { %v2046_v41 = vpop.f32.mrf.mxu3  ;;  %v9639_v0 = vpop.f32.mrf.mxu0  ;;  %2464 = vmatpush.bf16.msrb.mxu0 %v7537_v51  ;;  %12886 = vst [vmem:[#allocation70_spill] sm:$0xff] %v9654_v52  ;;  %8583 = vperm.xlu1 %8581, %v9648_v45   ;;  %v8049_v51 = vld [vmem:[#allocation6 + $0x164] sm:$0xf] }
 0x154   : > { %v2047_v40 = vadd.f32 %v2046_v41, %v1998_v28  ;;  %v8067_v41 = vld [vmem:[#allocation6 + $0x1f4] sm:$0xf]  ;;  %8569 = vset.pattern.permute.xlu2 %v12866_v19  ;;  %8607 = vperm.xlu0 %8605, %v9648_v45  }
 0x155   : > { %v9646_v3 = vpop.f32.mrf.mxu1  ;;  %v8075_v28 = vld [vmem:[#allocation6 + $0x234] sm:$0xf]  ;;  %v7497_v11 = vor.u32 %v8067_v41, %v7494_v46  ;;  %v7486_v46 = vld [vmem:[#allocation6 + $0x1e8] sm:$0xf0]  ;;  %8571 = vperm.xlu2 %8569, %v9555_v1   ;;  %v1957_v1 = vadd.f32 %v9543_v54, %v9346_v53 }
 0x156   : > { %2195 = vmatmul.bf16.gmra.mxu2 %v9636_v9  ;;  %2298 = vmatmul.bf16.gmra.mxu0 %v9125_v7  ;;  %v7529_v20 = vor.u32 %v8075_v28, %v7526_v2  ;;  %v9662_v47 = vadd.f32 %v9564_v63, %v2047_v40  ;;  %v8073_v63 = vld [vmem:[#allocation6 + $0x224] sm:$0xf]  ;;  %v7518_v40 = vld [vmem:[#allocation6 + $0x228] sm:$0xf0]  ;;  %v7172_v9 = vld [vmem:[%s9103_s28 + $0x158] sm:$0xf] }
 0x157   : > { %2412 = vmatpush.bf16.msrb.mxu3 %v7497_v11  ;;  %v7521_v11 = vor.u32 %v8073_v63, %v7518_v40  ;;  %v7984_v63 = vld [vmem:[%s9103_s28 + $0x15c] sm:$0xf] }
 0x158   : > { %2161 = vmatmul.bf16.gmra.mxu1 %v9641_v16  ;;  %2244 = vmatmul.bf16.gmra.mxu3 %v9643_v59  ;;  %12887 = vst [vmem:[#allocation71_spill] sm:$0xff] %v9662_v47  ;;  %v7422_v59 = vld [vmem:[#allocation6 + $0x168] sm:$0xf0]  ;;  %v7510_v16 = vld [vmem:[#allocation6 + $0x218] sm:$0xf0] }
 0x159   : > { %v2000_v50 = vpop.f32.mrf.mxu2  ;;  %2465 = vmatpush.bf16.msrb.mxu0 %v7529_v20  ;;  %v7425_v41 = vor.u32 %v8049_v51, %v7422_v59  ;;  %v8047_v59 = vld [vmem:[#allocation6 + $0x154] sm:$0xf]  ;;  %v7988_v47 = vld [vmem:[%s9103_s28 + $0x174] sm:$0xf0]  ;;  %v7174_v40 = vld [vmem:[%s9103_s28 + $0x178] sm:$0xf0] }
 0x15a   : > { %v2001_v7 = vadd.f32 %v2000_v50, %v9497_v35  ;;  %v7489_v35 = vor.u32 %v8065_v23, %v7486_v46  ;;  %v9672_v2 = vpop.permute.xlu2 %8391  ;;  %v9674_v20 = vpop.permute.xlu1 %8385  ;;  %v7414_v50 = vld [vmem:[#allocation6 + $0x158] sm:$0xf0]  ;;  %v8063_v51 = vld [vmem:[#allocation6 + $0x1d4] sm:$0xf] }
 0x15b   : > { %v2049_v29 = vpop.f32.mrf.mxu3  ;;  %v9666_v17 = vpop.f32.mrf.mxu0  ;;  %2364 = vmatpush.bf16.msrb.mxu2 %v7425_v41  ;;  %12888 = vst [vmem:[#allocation72_spill] sm:$0xff] %v9672_v2  ;;  %v7417_v52 = vor.u32 %v8047_v59, %v7414_v50  ;;  %8593 = vset.pattern.permute.xlu1 %v12867_v37  ;;  %v9686_v2 = vor.u32 %v7988_v47, %v7172_v9  ;;  %v8045_v59 = vld [vmem:[#allocation6 + $0x144] sm:$0xf] }
 0x15c   : > { %v2050_v28 = vadd.f32 %v2049_v29, %v2001_v7  ;;  %12889 = vst [vmem:[#allocation73_spill] sm:$0xff] %v9674_v20  ;;  %2413 = vmatpush.bf16.msrb.mxu3 %v7489_v35  ;;  %v7478_v7 = vld [vmem:[#allocation6 + $0x1d8] sm:$0xf0]  ;;  %v8071_v29 = vld [vmem:[#allocation6 + $0x214] sm:$0xf]  ;;  %8595 = vperm.xlu1 %8593, %v9648_v45  }
 0x15d   : > { %v9669_v43 = vpop.f32.mrf.mxu1  ;;  %2466 = vmatpush.bf16.msrb.mxu0 %v7521_v11  ;;  %v7481_v23 = vor.u32 %v8063_v51, %v7478_v7  ;;  %v7513_v46 = vor.u32 %v8071_v29, %v7510_v16  ;;  %12891 = vst [vmem:[#allocation75_spill] sm:$0xff] %v9686_v2  ;;  %v7406_v16 = vld [vmem:[#allocation6 + $0x148] sm:$0xf0]  ;;  %v8061_v50 = vld [vmem:[#allocation6 + $0x1c4] sm:$0xf]  ;;  %8587 = vset.pattern.permute.xlu2 %v12859_v14 }
 0x15e   : > { %v9679_v41 = vadd.f32 %v9588_v44, %v2050_v28  ;;  %v9690_v28 = vor.u32 %v7984_v63, %v7174_v40  ;;  %v7409_v51 = vor.u32 %v8045_v59, %v7406_v16  ;;  %v7470_v7 = vld [vmem:[#allocation6 + $0x1c8] sm:$0xf0]  ;;  %v8069_v29 = vld [vmem:[#allocation6 + $0x204] sm:$0xf]  ;;  %v8043_v63 = vld [vmem:[#allocation6 + $0x134] sm:$0xf]  ;;  %8589 = vperm.xlu2 %8587, %v9648_v45   ;;  %8635 = vset.pattern.permute.xlu0 %v12859_v14 }
 0x15f   : > { %2365 = vmatpush.bf16.msrb.mxu2 %v7417_v52  ;;  %v7502_v52 = vld [vmem:[#allocation6 + $0x208] sm:$0xf0]  ;;  %v7473_v9 = vor.u32 %v8061_v50, %v7470_v7  ;;  %v7398_v40 = vld [vmem:[#allocation6 + $0x138] sm:$0xf0]  ;;  %v1962_v14 = vadd.f32 %v9596_v42, %v9386_v12 }
 0x160   : > { %12890 = vst [vmem:[#allocation74_spill] sm:$0xff] %v9679_v41  ;;  %2414 = vmatpush.bf16.msrb.mxu3 %v7481_v23  ;;  %v7505_v47 = vor.u32 %v8069_v29, %v7502_v52  ;;  %v8188_v16 = vld [vmem:[%s9200_s1 + $0x38] sm:$0xff]   ;;  %v7390_v29 = vld [vmem:[#allocation6 + $0x128] sm:$0xf0]  ;;  %v8057_v52 = vld [vmem:[#allocation6 + $0x1a4] sm:$0xf]  ;;  %s11233_s1 = scalar_lea.vmem %s12502_s3, %s6983_s18 }
 0x161   : > { %v2002_v20 = vpop.f32.mrf.mxu2  ;;  %2467 = vmatpush.bf16.msrb.mxu0 %v7513_v46  ;;  %12892 = vst [vmem:[#allocation76_spill] sm:$0xff] %v9690_v28  ;;  %v8180_v54 = vunpack.c.l.bf16 %v8188_v16 }
 0x162   : > { %v2003_v35 = vadd.f32 %v2002_v20, %v9515_v6  ;;  %v9699_v23 = vpop.permute.xlu2 %8409  ;;  %v9701_v46 = vpop.permute.xlu1 %8403 }
 0x163   : > { %v2051_v11 = vpop.f32.mrf.mxu3  ;;  %v9688_v44 = vpop.f32.mrf.mxu0  ;;  %2366 = vmatpush.bf16.msrb.mxu2 %v7409_v51 }
 0x164   : > { %v2052_v41 = vadd.f32 %v2051_v11, %v2003_v35  ;;  %v7462_v35 = vld [vmem:[#allocation6 + $0x1b8] sm:$0xf0]  ;;  %2415 = vmatpush.bf16.msrb.mxu3 %v7473_v9  ;;  %v7401_v11 = vor.u32 %v8043_v63, %v7398_v40  ;;  %8611 = vset.pattern.permute.xlu1 %v12862_v39 }
 0x165   : > { %v2127_v6 = vpop.f32.mrf.mxu1  ;;  %2468 = vmatpush.bf16.msrb.mxu0 %v7505_v47  ;;  %8613 = vperm.xlu1 %8611, %v9648_v45   ;;  %v7454_v47 = vld [vmem:[#allocation6 + $0x1a8] sm:$0xf0] }
 0x166   : > { %v9696_v20 = vadd.f32 %v2127_v6, %v9475_v36  ;;  %2200 = vmatmul.bf16.gmra.mxu2 %v9686_v2  ;;  %2303 = vmatmul.bf16.gmra.mxu0 %v9145_v55  ;;  %v8059_v36 = vld [vmem:[#allocation6 + $0x1b4] sm:$0xf]  ;;  %v9712_v55 = vadd.f32 %v9613_v62, %v2052_v41  ;;  %v8181_v6 = vunpack.c.h.bf16 %v8188_v16  ;;  %v7457_v62 = vor.u32 %v8057_v52, %v7454_v47  ;;  %v7992_v52 = vld [vmem:[%s9103_s28 + $0x19c] sm:$0xf] }
 0x167   : > { %v7465_v59 = vor.u32 %v8059_v36, %v7462_v35  ;;  %2367 = vmatpush.bf16.msrb.mxu2 %v7401_v11  ;;  %v7382_v11 = vld [vmem:[#allocation6 + $0x118] sm:$0xf0]  ;;  %v8055_v16 = vld [vmem:[#allocation6 + $0x194] sm:$0xf]  ;;  %8599 = vset.pattern.permute.xlu2 %v12857_v26 }
 0x168   : > { %2249 = vmatmul.bf16.gmra.mxu3 %v9690_v28  ;;  %2322 = vmatmul.bf16.vlgmr.msra.gmra.mxu1 %v9127_v8  ;;  %12893 = vst [vmem:[#allocation77_spill] sm:$0xff] %v9712_v55  ;;  %v8041_v8 = vld [vmem:[#allocation6 + $0x124] sm:$0xf]  ;;  %v7206_v47 = vld [vmem:[%s9103_s28 + $0x1b8] sm:$0xf0] }
 0x169   : > { %v2005_v50 = vpop.f32.mrf.mxu2  ;;  %v7393_v9 = vor.u32 %v8041_v8, %v7390_v29  ;;  %2416 = vmatpush.bf16.msrb.mxu3 %v7465_v59  ;;  %v7446_v59 = vld [vmem:[#allocation6 + $0x198] sm:$0xf0]  ;;  %v1959_v29 = vadd.f32 %v9567_v10, %v9365_v18  ;;  %v8053_v18 = vld [vmem:[#allocation6 + $0x184] sm:$0xf]  ;;  %v7438_v10 = vld [vmem:[#allocation6 + $0x188] sm:$0xf0]  ;;  %8601 = vperm.xlu2 %8599, %v9648_v45  }
 0x16a   : > { %v2006_v51 = vadd.f32 %v2005_v50, %v1957_v1  ;;  %v9723_v36 = vpop.permute.xlu2 %8421  ;;  %v9725_v35 = vpop.permute.xlu1 %8415  ;;  %v8039_v1 = vld [vmem:[#allocation6 + $0x114] sm:$0xf]  ;;  %v7204_v50 = vld [vmem:[%s9103_s28 + $0x198] sm:$0xf] }
 0x16b   : > { %v2054_v7 = vpop.f32.mrf.mxu3  ;;  %v9715_v53 = vpop.f32.mrf.mxu0  ;;  %2368 = vmatpush.bf16.msrb.mxu2 %v7393_v9 }
 0x16c   : > { %v2055_v63 = vadd.f32 %v2054_v7, %v2006_v51  ;;  %v9730_v51 = vpack.i.bf16 %v8181_v6, %v8180_v54  ;;  %v7385_v7 = vor.u32 %v8039_v1, %v7382_v11  ;;  %v8037_v54 = vld [vmem:[#allocation6 + $0x104] sm:$0xf]  ;;  %v7374_v6 = vld [vmem:[#allocation6 + $0x108] sm:$0xf0] }
 0x16d   : > { %v2129_v40 = vpop.f32.mrf.mxu1  ;;  %2417 = vmatpush.bf16.msrb.mxu3 %v7457_v62  ;;  %8623 = vset.pattern.permute.xlu1 %v12856_v21  ;;  %v7377_v11 = vor.u32 %v8037_v54, %v7374_v6  ;;  %v8000_v54 = vld [vmem:[%s9103_s28 + $0x1dc] sm:$0xf] }
 0x16e   : > { %v9719_v41 = vadd.f32 %v2129_v40, %v9504_v15  ;;  %v7996_v15 = vld [vmem:[%s9103_s28 + $0x1b4] sm:$0xf0]  ;;  %v9733_v8 = vadd.f32 %v9639_v0, %v2055_v63  ;;  %v7449_v40 = vor.u32 %v8055_v16, %v7446_v59  ;;  %v9744_v0 = vor.u32 %v7992_v52, %v7206_v47  ;;  %8625 = vperm.xlu1 %8623, %v9730_v51   ;;  %v7238_v6 = vld [vmem:[%s9103_s28 + $0x1f8] sm:$0xf0] }
 0x16f   : > { %v9739_v9 = vor.u32 %v7996_v15, %v7204_v50  ;;  %2369 = vmatpush.bf16.msrb.mxu2 %v7385_v7  ;;  %v7441_v50 = vor.u32 %v8053_v18, %v7438_v10  ;;  %8637 = vperm.xlu0 %8635, %v9730_v51   ;;  %v7236_v52 = vld [vmem:[%s9103_s28 + $0x1d8] sm:$0xf] }
 0x170   : > { %12895 = vst [vmem:[#allocation79_spill] sm:$0xff] %v9744_v0  ;;  %v8004_v47 = vld [vmem:[%s9103_s28 + $0x1f4] sm:$0xf0]  ;;  %s11821_s28 = scalar_lea.vmem %s13427_s2, %s6983_s18 }
 0x171   : > { %v2007_v28 = vpop.f32.mrf.mxu2  ;;  %12894 = vst [vmem:[#allocation78_spill] sm:$0xff] %v9739_v9  ;;  %2418 = vmatpush.bf16.msrb.mxu3 %v7449_v40  ;;  %8617 = vset.pattern.permute.xlu2 %v12866_v19 }
 0x172   : > { %v2008_v2 = vadd.f32 %v2007_v28, %v1959_v29  ;;  %v9751_v16 = vpop.permute.xlu2 %8439  ;;  %v9753_v59 = vpop.permute.xlu1 %8433  ;;  %8619 = vperm.xlu2 %8617, %v9648_v45  }
 0x173   : > { %v2056_v55 = vpop.f32.mrf.mxu3  ;;  %v9742_v1 = vpop.f32.mrf.mxu0  ;;  %2370 = vmatpush.bf16.msrb.mxu2 %v7377_v11 }
 0x174   : > { %v2057_v63 = vadd.f32 %v2056_v55, %v2008_v2 }
 0x175   : > { %v2132_v62 = vpop.f32.mrf.mxu1  ;;  %2419 = vmatpush.bf16.msrb.mxu3 %v7441_v50 }
 0x176   : > { %v9748_v28 = vadd.f32 %v2132_v62, %v9527_v4  ;;  %2205 = vmatmul.bf16.gmra.mxu2 %v9739_v9  ;;  %2308 = vmatmul.bf16.gmra.mxu0 %v9165_v31  ;;  %v9760_v2 = vadd.f32 %v9666_v17, %v2057_v63  ;;  %v9771_v17 = vpop.permute.xlu0 %8290  ;;  %v9792_v63 = vor.u32 %v8004_v47, %v7236_v52 }
 0x177   : > { %8641 = vset.pattern.permute.xlu1 %v12867_v37  ;;  %v1964_v37 = vadd.f32 %v9616_v25, %v9400_v22  ;;  %8665 = vset.pattern.permute.xlu0 %v12866_v19  ;;  %v9797_v62 = vor.u32 %v8000_v54, %v7238_v6  ;;  %v9843_v54 = vunpack.i.l.bf16 %v9518_v57  ;;  %v9849_v6 = vunpack.i.h.bf16 %v9520_v5 }
 0x178   : > { %2254 = vmatmul.bf16.gmra.mxu3 %v9744_v0  ;;  %2327 = vmatmul.bf16.gmra.mxu1 %v9147_v56  ;;  %12896 = vst [vmem:[#allocation80_spill] sm:$0xff] %v9792_v63  ;;  %v12937_v0 = vld [vmem:[#allocation70_spill] sm:$0xff] }
 0x179   : > { %v2010_v4 = vpop.f32.mrf.mxu2  ;;  %8643 = vperm.xlu1 %8641, %v9730_v51   ;;  %8667 = vperm.xlu0 %8665, %v9730_v51   ;;  %12898 = vst [vmem:[#allocation82_spill] sm:$0xff] %v9797_v62  ;;  %v9927_v9 = vunpack.i.l.bf16 %v12937_v0 }
 0x17a   : > { %v2011_v31 = vadd.f32 %v2010_v4, %v1962_v14  ;;  %v9776_v7 = vpop.permute.xlu2 %8451  ;;  %v9778_v29 = vpop.permute.xlu1 %8445  ;;  %8629 = vset.pattern.permute.xlu2 %v12855_v38  ;;  %v1969_v38 = vadd.f32 %v9669_v43, %v9442_v24  ;;  %12903 = vst [vmem:[#allocation87_spill] sm:$0xff] %v9843_v54  ;;  %v9852_v24 = vunpack.i.l.bf16 %v9520_v5  ;;  %v9855_v43 = vunpack.i.h.bf16 %v9547_v13  ;;  %v12912_v5 = vld [vmem:[#allocation58_spill] sm:$0xff] }
 0x17b   : > { %v2059_v55 = vpop.f32.mrf.mxu3  ;;  %v9767_v56 = vpop.f32.mrf.mxu0  ;;  %8631 = vperm.xlu2 %8629, %v9730_v51   ;;  %12905 = vst [vmem:[#allocation89_spill] sm:$0xff] %v9849_v6 }
 0x17c   : > { %v2060_v42 = vadd.f32 %v2059_v55, %v2011_v31  ;;  %12906 = vst [vmem:[#allocation90_spill] sm:$0xff] %v9852_v24 }
 0x17d   : > { %v2134_v12 = vpop.f32.mrf.mxu1  ;;  %12907 = vst [vmem:[#allocation91_spill] sm:$0xff] %v9855_v43 }
 0x17e   : > { %v9774_v15 = vadd.f32 %v2134_v12, %v9559_v33  ;;  %v9783_v40 = vadd.f32 %v9688_v44, %v2060_v42  ;;  %v9806_v19 = vpop.permute.xlu0 %8296  ;;  %12939 = vst [vmem:[#allocation101_spill] sm:$0xff] %v9927_v9 }
 0x181   : > { %v2012_v18 = vpop.f32.mrf.mxu2  ;;  %8653 = vset.pattern.permute.xlu1 %v12850_v48  ;;  %8673 = vset.pattern.permute.xlu0 %v12856_v21 }
 0x182   : > { %v2013_v33 = vadd.f32 %v2012_v18, %v1964_v37  ;;  %8655 = vperm.xlu1 %8653, %v9730_v51   ;;  %v9813_v50 = vpop.permute.xlu2 %8469  ;;  %v9815_v48 = vpop.permute.xlu1 %8463 }
 0x183   : > { %v2061_v10 = vpop.f32.mrf.mxu3  ;;  %v9795_v44 = vpop.f32.mrf.mxu0  ;;  %8647 = vset.pattern.permute.xlu2 %v12857_v26  ;;  %v9865_v26 = vunpack.i.l.bf16 %v9549_v58 }
 0x184   : > { %12897 = vst [vmem:[#allocation81_spill] sm:$0xff] %v9795_v44  ;;  %v2062_v22 = vadd.f32 %v2061_v10, %v2013_v33  ;;  %8649 = vperm.xlu2 %8647, %v9730_v51   ;;  %v9862_v10 = vunpack.i.h.bf16 %v9549_v58 }
 0x185   : > { %v2137_v25 = vpop.f32.mrf.mxu1  ;;  %12910 = vst [vmem:[#allocation94_spill] sm:$0xff] %v9865_v26 }
 0x186   : > { %v9801_v11 = vadd.f32 %v2137_v25, %v9577_v34  ;;  %2210 = vmatmul.bf16.gmra.mxu2 %v9792_v63  ;;  %2469 = vmatmul.bf16.vlgmr.msrb.gmra.mxu0 %v9163_v30  ;;  %v9809_v45 = vadd.f32 %v9715_v53, %v2062_v22  ;;  %v1967_v34 = vadd.f32 %v9646_v3, %v9423_v27  ;;  %v9837_v12 = vpop.permute.xlu0 %8337  ;;  %v9871_v25 = vunpack.i.h.bf16 %v12912_v5 }
 0x187   : > { %12909 = vst [vmem:[#allocation93_spill] sm:$0xff] %v9862_v10 }
 0x188   : > { %12899 = vst [vmem:[#allocation83_spill] sm:$0xff] %v9809_v45  ;;  %2259 = vmatmul.bf16.gmra.mxu3 %v9797_v62  ;;  %2332 = vmatmul.bf16.gmra.mxu1 %v9167_v32 }
 0x189   : > { %v2015_v14 = vpop.f32.mrf.mxu2  ;;  %12913 = vst [vmem:[#allocation58_spill] sm:$0xff] %v9871_v25 }
 0x18a   : > { %v2016_v30 = vadd.f32 %v2015_v14, %v1967_v34  ;;  %8671 = vset.pattern.permute.xlu1 %v12856_v21  ;;  %v9831_v3 = vpop.permute.xlu2 %8481  ;;  %v9833_v42 = vpop.permute.xlu1 %8475  ;;  %v9874_v34 = vunpack.i.l.bf16 %v12912_v5  ;;  %v12915_v14 = vld [vmem:[#allocation59_spill] sm:$0xff] }
 0x18b   : > { %v2064_v4 = vpop.f32.mrf.mxu3  ;;  %v9821_v53 = vpop.f32.mrf.mxu0  ;;  %v9885_v58 = vunpack.i.l.bf16 %v12915_v14 }
 0x18c   : > { %12900 = vst [vmem:[#allocation84_spill] sm:$0xff] %v9821_v53  ;;  %v2065_v31 = vadd.f32 %v2064_v4, %v2016_v30  ;;  %v9877_v30 = vunpack.i.h.bf16 %v12915_v14  ;;  %v12918_v4 = vld [vmem:[#allocation19_spill] sm:$0xff]  ;;  %8659 = vset.pattern.permute.xlu2 %v12862_v39 }
 0x18d   : > { %v2139_v32 = vpop.f32.mrf.mxu1  ;;  %12914 = vst [vmem:[#allocation96_spill] sm:$0xff] %v9874_v34  ;;  %8661 = vperm.xlu2 %8659, %v9730_v51   ;;  %v9990_v51 = vunpack.i.l.bf16 %v9751_v16 }
 0x18e   : > { %v9825_v55 = vadd.f32 %v2139_v32, %v9608_v60  ;;  %v9829_v27 = vadd.f32 %v9742_v1, %v2065_v31  ;;  %v9840_v60 = vunpack.i.h.bf16 %v9518_v57  ;;  %v9859_v57 = vunpack.i.l.bf16 %v9547_v13  ;;  %12916 = vst [vmem:[#allocation59_spill] sm:$0xff] %v9877_v30  ;;  %v12917_v13 = vld [vmem:[#allocation18_spill] sm:$0xff] }
 0x18f   : > { %12920 = vst [vmem:[#allocation19_spill] sm:$0xff] %v9885_v58 }
 0x190   : > { %12901 = vst [vmem:[#allocation85_spill] sm:$0xff] %v9829_v27 }
 0x191   : > { %v2017_v52 = vpop.f32.mrf.mxu2  ;;  %12902 = vst [vmem:[#allocation86_spill] sm:$0xff] %v9840_v60 }
 0x192   : > { %v2018_v47 = vadd.f32 %v2017_v52, %v1969_v38  ;;  %12908 = vst [vmem:[#allocation92_spill] sm:$0xff] %v9859_v57  ;;  %v12924_v52 = vld [vmem:[#allocation64_spill] sm:$0xff]  ;;  %v9912_v62 = vpop.permute.xlu1 %8493 }
 0x193   : > { %v2066_v37 = vpop.f32.mrf.mxu3  ;;  %v9845_v1 = vpop.f32.mrf.mxu0  ;;  %v9899_v5 = vunpack.i.l.bf16 %v12924_v52  ;;  %12960 = vst [vmem:[#allocation116_spill] sm:$0xff] %v9990_v51 }
 0x194   : > { %12904 = vst [vmem:[#allocation88_spill] sm:$0xff] %v9845_v1  ;;  %v2067_v18 = vadd.f32 %v2066_v37, %v2018_v47  ;;  %v9894_v47 = vunpack.i.h.bf16 %v12924_v52  ;;  %v12926_v37 = vld [vmem:[#allocation20_spill] sm:$0xff]  ;;  %v9921_v52 = vunpack.i.l.bf16 %v9652_v61 }
 0x195   : > { %v2142_v33 = vpop.f32.mrf.mxu1  ;;  %12928 = vst [vmem:[#allocation20_spill] sm:$0xff] %v9899_v5  ;;  %v12940_v1 = vld [vmem:[#allocation72_spill] sm:$0xff]  ;;  %8672 = vset.pattern.permute.xlu2 %v12856_v21  ;;  %v10063_v21 = vunpack.i.l.bf16 %v9831_v3 }
 0x196   : > { %v9868_v22 = vadd.f32 %v2142_v33, %v9630_v49  ;;  %2371 = vmatmul.bf16.vlgmr.msrb.gmra.mxu2 %v12917_v13  ;;  %2474 = vmatmul.bf16.gmra.mxu0 %v12918_v4  ;;  %v9882_v31 = vadd.f32 %v9767_v56, %v2067_v18  ;;  %v12921_v49 = vld [vmem:[#allocation63_spill] sm:$0xff]  ;;  %12925 = vst [vmem:[#allocation64_spill] sm:$0xff] %v9894_v47  ;;  %v12927_v33 = vld [vmem:[#allocation21_spill] sm:$0xff]  ;;  %v12932_v13 = vld [vmem:[#allocation66_spill] sm:$0xff]  ;;  %v9930_v53 = vunpack.i.h.bf16 %v12940_v1  ;;  %v9936_v27 = vunpack.i.l.bf16 %v12940_v1 }
 0x197   : > { %v9888_v32 = vunpack.i.h.bf16 %v12921_v49  ;;  %v9891_v38 = vunpack.i.l.bf16 %v12921_v49  ;;  %v12929_v56 = vld [vmem:[#allocation65_spill] sm:$0xff]  ;;  %v9908_v4 = vunpack.i.h.bf16 %v12932_v13  ;;  %v9910_v49 = vpop.permute.xlu2 %8499  ;;  %12936 = vst [vmem:[#allocation100_spill] sm:$0xff] %v9921_v52 }
 0x198   : > { %12911 = vst [vmem:[#allocation95_spill] sm:$0xff] %v9868_v22  ;;  %2337 = vmatmul.bf16.gmra.mxu1 %v12926_v37  ;;  %2420 = vmatmul.bf16.vlgmr.msrb.gmra.mxu3 %v12927_v33  ;;  %v9902_v18 = vunpack.i.h.bf16 %v12929_v56  ;;  %v9905_v14 = vunpack.i.l.bf16 %v12929_v56  ;;  %v9915_v37 = vunpack.i.l.bf16 %v12932_v13  ;;  %v9918_v33 = vunpack.i.h.bf16 %v9652_v61  ;;  %v12943_v61 = vld [vmem:[#allocation73_spill] sm:$0xff] }
 0x199   : > { %12919 = vst [vmem:[#allocation18_spill] sm:$0xff] %v9882_v31  ;;  %v2176_v63 = vpop.f32.mrf.mxu2  ;;  %v9924_v56 = vunpack.i.h.bf16 %v12937_v0  ;;  %v9933_v31 = vpop.permute.xlu0 %8367  ;;  %v9942_v45 = vunpack.i.l.bf16 %v12943_v61  ;;  %v9945_v0 = vunpack.i.h.bf16 %v9699_v23  ;;  %v9984_v22 = vunpack.i.l.bf16 %v9725_v35 }
 0x19a   : > { %12922 = vst [vmem:[#allocation63_spill] sm:$0xff] %v9888_v32  ;;  %v2177_v44 = vadd.f32 %v2176_v63, %v9696_v20  ;;  %v9953_v20 = vunpack.i.l.bf16 %v9771_v17 }
 0x19b   : > { %12923 = vst [vmem:[#allocation97_spill] sm:$0xff] %v9891_v38  ;;  %v2225_v13 = vpop.f32.mrf.mxu3  ;;  %v9947_v52 = vpop.f32.mrf.mxu0 }
 0x19c   : > { %12930 = vst [vmem:[#allocation21_spill] sm:$0xff] %v9902_v18  ;;  %v9955_v63 = vadd.f32 %v2225_v13, %v2177_v44  ;;  %v9975_v44 = vunpack.i.l.bf16 %v9723_v36 }
 0x19d   : > { %12931 = vst [vmem:[#allocation65_spill] sm:$0xff] %v9905_v14  ;;  %v2144_v1 = vpop.f32.mrf.mxu1 }
 0x19e   : > { %12933 = vst [vmem:[#allocation66_spill] sm:$0xff] %v9908_v4  ;;  %v2737_v13 = vperm.slane %v9955_v63, 0  ;;  %v2865_v39 = vperm.slane %v9955_v63, 1 }
 0x19f   : > { %12934 = vst [vmem:[#allocation98_spill] sm:$0xff] %v9915_v37 }
 0x1a0   : > { %12935 = vst [vmem:[#allocation99_spill] sm:$0xff] %v9918_v33  ;;  %v9939_v33 = vunpack.i.h.bf16 %v12943_v61  ;;  %v9962_v61 = vunpack.i.h.bf16 %v9701_v46 }
 0x1a1   : > { %12938 = vst [vmem:[#allocation70_spill] sm:$0xff] %v9924_v56  ;;  %v9958_v56 = vunpack.i.l.bf16 %v9806_v19 }
 0x1a2   : > { %12941 = vst [vmem:[#allocation72_spill] sm:$0xff] %v9930_v53  ;;  %v9950_v53 = vunpack.i.l.bf16 %v9699_v23  ;;  %v9968_v23 = vunpack.i.h.bf16 %v9723_v36  ;;  %v9993_v36 = vunpack.i.h.bf16 %v9753_v59 }
 0x1a3   : > { %12942 = vst [vmem:[#allocation102_spill] sm:$0xff] %v9936_v27  ;;  %v2227_v51 = vpop.f32.mrf.mxu3 }
 0x1a4   : > { %12944 = vst [vmem:[#allocation73_spill] sm:$0xff] %v9939_v33 }
 0x1a5   : > { %12945 = vst [vmem:[#allocation103_spill] sm:$0xff] %v9942_v45 }
 0x1a6   : > { %12946 = vst [vmem:[#allocation104_spill] sm:$0xff] %v9945_v0  ;;  %v9965_v0 = vunpack.i.l.bf16 %v9701_v46  ;;  %v9981_v46 = vunpack.i.h.bf16 %v9725_v35  ;;  %v10002_v35 = vpop.permute.xlu1 %8505 }
 0x1a7   : > { %12947 = vst [vmem:[#allocation105_spill] sm:$0xff] %v9947_v52  ;;  %v12954_v52 = vld [vmem:[#allocation71_spill] sm:$0xff] }
 0x1a8   : > { %12948 = vst [vmem:[#allocation106_spill] sm:$0xff] %v9950_v53  ;;  %v9971_v33 = vadd.f32 %v2144_v1, %v12954_v52  ;;  %v9987_v52 = vunpack.i.h.bf16 %v9751_v16  ;;  %v9996_v1 = vunpack.i.l.bf16 %v9753_v59  ;;  %v10008_v16 = vunpack.i.h.bf16 %v9776_v7 }
 0x1a9   : > { %12949 = vst [vmem:[#allocation107_spill] sm:$0xff] %v9953_v20  ;;  %v3185_v59 = vperm.slane %v9955_v63, 3 }
 0x1aa   : > { %12950 = vst [vmem:[#allocation108_spill] sm:$0xff] %v9958_v56 }
 0x1ab   : > { %12951 = vst [vmem:[#allocation109_spill] sm:$0xff] %v9962_v61  ;;  %v3025_v61 = vperm.slane %v9955_v63, 2 }
 0x1ac   : > { %12952 = vst [vmem:[#allocation110_spill] sm:$0xff] %v9965_v0 }
 0x1ad   : > { %12953 = vst [vmem:[#allocation111_spill] sm:$0xff] %v9968_v23  ;;  %v2769_v23 = vmul.f32 %v9958_v56, %v2737_v13  ;;  %v10015_v13 = vunpack.i.h.bf16 %v9778_v29 }
 0x1ae   : > { %12955 = vst [vmem:[#allocation71_spill] sm:$0xff] %v9971_v33  ;;  %v2897_v33 = vmul.f32 %v9953_v20, %v2865_v39  ;;  %v3057_v39 = vmul.f32 %v9852_v24, %v3025_v61  ;;  %v12974_v24 = vld [vmem:[#allocation74_spill] sm:$0xff] }
 0x1af   : > { %12956 = vst [vmem:[#allocation112_spill] sm:$0xff] %v9975_v44  ;;  %v10005_v44 = vunpack.i.h.bf16 %v9771_v17  ;;  %v10020_v17 = vunpack.i.l.bf16 %v9778_v29  ;;  %v10039_v29 = vunpack.i.l.bf16 %v9815_v48 }
 0x1b0   : > { %12957 = vst [vmem:[#allocation113_spill] sm:$0xff] %v9981_v46  ;;  %v10000_v46 = vpop.permute.xlu2 %8511  ;;  %v2929_v20 = vadd.f32 %v2897_v33, %v2769_v23  ;;  %v2147_v33 = vpop.f32.mrf.mxu1  ;;  %v3217_v23 = vmul.f32 %v9865_v26, %v3185_v59  ;;  %v12982_v26 = vld [vmem:[#allocation25_spill] sm:$0xff] }
 0x1b1   : > { %12958 = vst [vmem:[#allocation114_spill] sm:$0xff] %v9984_v22  ;;  %2425 = vmatmul.bf16.gmra.mxu3 %v12982_v26 }
 0x1b2   : > { %12959 = vst [vmem:[#allocation115_spill] sm:$0xff] %v9987_v52  ;;  %v10011_v52 = vunpack.i.l.bf16 %v9776_v7  ;;  %v10025_v7 = vpop.f32.mrf.mxu0 }
 0x1b3   : > { %12961 = vst [vmem:[#allocation117_spill] sm:$0xff] %v9993_v36  ;;  %v2178_v36 = vpop.f32.mrf.mxu2 }
 0x1b4   : > { %12962 = vst [vmem:[#allocation118_spill] sm:$0xff] %v9996_v1  ;;  %v2179_v56 = vadd.f32 %v2178_v36, %v9719_v41  ;;  %v10031_v1 = vunpack.i.l.bf16 %v9813_v50  ;;  %v10036_v41 = vunpack.i.h.bf16 %v9815_v48  ;;  %v3345_v36 = vperm.slane %v9955_v63, 4  ;;  %v12979_v48 = vld [vmem:[#allocation23_spill] sm:$0xff] }
 0x1b5   : > { %12963 = vst [vmem:[#allocation119_spill] sm:$0xff] %v10005_v44  ;;  %2479 = vmatmul.bf16.gmra.mxu0 %v12979_v48  ;;  %v8099_v48 = vld [vmem:[#allocation6 + $0x2f4] sm:$0xf] }
 0x1b6   : > { %12964 = vst [vmem:[#allocation120_spill] sm:$0xff] %v10008_v16  ;;  %v10023_v16 = vunpack.i.h.bf16 %v9806_v19  ;;  %v10033_v61 = vadd.f32 %v2227_v51, %v2179_v56  ;;  %v8398_v19 = vpop.permute.xlu0 %8397  ;;  %v10051_v56 = vunpack.i.l.bf16 %v9837_v12  ;;  %v10056_v51 = vunpack.i.h.bf16 %v9831_v3 }
 0x1b7   : > { %12965 = vst [vmem:[#allocation121_spill] sm:$0xff] %v10011_v52  ;;  %v10028_v52 = vunpack.i.h.bf16 %v9813_v50  ;;  %v10047_v50 = vunpack.i.h.bf16 %v9837_v12  ;;  %v10066_v12 = vunpack.i.h.bf16 %v9833_v42 }
 0x1b8   : > { %12966 = vst [vmem:[#allocation122_spill] sm:$0xff] %v10015_v13  ;;  %v3089_v13 = vadd.f32 %v3057_v39, %v2929_v20  ;;  %v12978_v20 = vld [vmem:[#allocation22_spill] sm:$0xff]  ;;  %v2739_v59 = vperm.slane %v10033_v61, 0  ;;  %v10078_v26 = vpop.permute.xlu2 %8529 }
 0x1b9   : > { %12967 = vst [vmem:[#allocation123_spill] sm:$0xff] %v10020_v17  ;;  %2376 = vmatmul.bf16.gmra.mxu2 %v12978_v20  ;;  %v10069_v20 = vunpack.i.l.bf16 %v9833_v42  ;;  %v10082_v42 = vpop.permute.xlu1 %8523 }
 0x1ba   : > { %12968 = vst [vmem:[#allocation124_spill] sm:$0xff] %v10023_v16  ;;  %v3249_v39 = vadd.f32 %v3217_v23, %v3089_v13  ;;  %v10076_v13 = vunpack.i.l.bf16 %v9933_v31  ;;  %v3377_v23 = vmul.f32 %v9843_v54, %v3345_v36  ;;  %v10094_v36 = vunpack.i.h.bf16 %v9912_v62 }
 0x1bb   : > { %12969 = vst [vmem:[#allocation125_spill] sm:$0xff] %v10025_v7  ;;  %v10044_v7 = vadd.f32 %v2147_v33, %v12974_v24  ;;  %v2867_v24 = vperm.slane %v10033_v61, 1  ;;  %v12981_v33 = vld [vmem:[#allocation24_spill] sm:$0xff]  ;;  %v10106_v54 = vunpack.i.l.bf16 %v8398_v19 }
 0x1bc   : > { %12970 = vst [vmem:[#allocation126_spill] sm:$0xff] %v10028_v52  ;;  %2342 = vmatmul.bf16.gmra.mxu1 %v12981_v33  ;;  %v3505_v52 = vperm.slane %v9955_v63, 5  ;;  %v3665_v33 = vperm.slane %v9955_v63, 6 }
 0x1bd   : > { %12971 = vst [vmem:[#allocation127_spill] sm:$0xff] %v10031_v1  ;;  %v10073_v1 = vunpack.i.h.bf16 %v9933_v31  ;;  %v10088_v31 = vunpack.i.h.bf16 %v9910_v49 }
 0x1be   : > { %12972 = vst [vmem:[#allocation128_spill] sm:$0xff] %v10036_v41  ;;  %v2899_v41 = vmul.f32 %v10005_v44, %v2867_v24  ;;  %v10101_v24 = vunpack.i.h.bf16 %v8398_v19  ;;  %v3027_v44 = vperm.slane %v10033_v61, 2  ;;  %v8428_v19 = vpop.permute.xlu0 %8427 }
 0x1bf   : > { %12973 = vst [vmem:[#allocation129_spill] sm:$0xff] %v10039_v29  ;;  %v2230_v29 = vpop.f32.mrf.mxu3 }
 0x1c0   : > { %12975 = vst [vmem:[#allocation74_spill] sm:$0xff] %v10044_v7  ;;  %v10091_v7 = vunpack.i.l.bf16 %v9910_v49  ;;  %v2149_v49 = vpop.f32.mrf.mxu1 }
 0x1c1   : > { %12976 = vst [vmem:[#allocation130_spill] sm:$0xff] %v10047_v50 }
 0x1c2   : > { %12977 = vst [vmem:[#allocation131_spill] sm:$0xff] %v10051_v56 }
 0x1c3   : > { %12980 = vst [vmem:[#allocation22_spill] sm:$0xff] %v10056_v51  ;;  %v7622_v51 = vld [vmem:[#allocation6 + $0x2f8] sm:$0xf0] }
 0x1c4   : > { %12983 = vst [vmem:[#allocation23_spill] sm:$0xff] %v10063_v21  ;;  %v7625_v3 = vor.u32 %v8099_v48, %v7622_v51  ;;  %v3409_v51 = vadd.f32 %v3377_v23, %v3249_v39  ;;  %v10096_v48 = vpop.f32.mrf.mxu0  ;;  %v3537_v39 = vmul.f32 %v9859_v57, %v3505_v52  ;;  %v3697_v23 = vmul.f32 %v9885_v58, %v3665_v33 }
 0x1c5   : > { %12984 = vst [vmem:[#allocation24_spill] sm:$0xff] %v10066_v12  ;;  %v2181_v12 = vpop.f32.mrf.mxu2  ;;  %v10121_v52 = vunpack.i.l.bf16 %v10000_v46  ;;  %v10124_v33 = vunpack.i.h.bf16 %v10002_v35 }
 0x1c6   : > { %12985 = vst [vmem:[#allocation25_spill] sm:$0xff] %v10069_v20  ;;  %v2771_v20 = vmul.f32 %v10023_v16, %v2739_v59  ;;  %v2182_v21 = vadd.f32 %v2181_v12, %v9748_v28  ;;  %2510 = vmatpush.bf16.msrb.mxu1 %v7625_v3  ;;  %v10099_v59 = vunpack.i.l.bf16 %v9912_v62  ;;  %v8097_v28 = vld [vmem:[#allocation6 + $0x2e4] sm:$0xf]  ;;  %v7614_v12 = vld [vmem:[#allocation6 + $0x2e8] sm:$0xf0]  ;;  %v3825_v3 = vperm.slane %v9955_v63, 7 }
 0x1c7   : > { %12986 = vst [vmem:[#allocation132_spill] sm:$0xff] %v10073_v1  ;;  %v12995_v62 = vld [vmem:[#allocation77_spill] sm:$0xff]  ;;  %v3569_v63 = vadd.f32 %v3537_v39, %v3409_v51  ;;  %v10135_v39 = vunpack.i.l.bf16 %v8428_v19 }
 0x1c8   : > { %12987 = vst [vmem:[#allocation133_spill] sm:$0xff] %v10076_v13  ;;  %v10104_v16 = vadd.f32 %v2230_v29, %v2182_v21  ;;  %v10117_v29 = vunpack.i.h.bf16 %v10000_v46  ;;  %v3187_v21 = vperm.slane %v10033_v61, 3  ;;  %v8095_v46 = vld [vmem:[#allocation6 + $0x2d4] sm:$0xf]  ;;  %v3857_v57 = vmul.f32 %v9874_v34, %v3825_v3 }
 0x1c9   : > { %12988 = vst [vmem:[#allocation134_spill] sm:$0xff] %v10088_v31  ;;  %v7617_v31 = vor.u32 %v8097_v28, %v7614_v12  ;;  %v10130_v12 = vunpack.i.l.bf16 %v10002_v35  ;;  %v3347_v35 = vperm.slane %v10033_v61, 4  ;;  %v3827_v3 = vperm.slane %v10033_v61, 7 }
 0x1ca   : > { %12989 = vst [vmem:[#allocation135_spill] sm:$0xff] %v10091_v7  ;;  %v2741_v7 = vperm.slane %v10104_v16, 0 }
 0x1cb   : > { %12990 = vst [vmem:[#allocation136_spill] sm:$0xff] %v10094_v36  ;;  %v2931_v36 = vadd.f32 %v2899_v41, %v2771_v20  ;;  %2511 = vmatpush.bf16.msrb.mxu1 %v7617_v31  ;;  %v3059_v41 = vmul.f32 %v9849_v6, %v3027_v44  ;;  %v3029_v31 = vperm.slane %v10104_v16, 2  ;;  %v3729_v6 = vadd.f32 %v3697_v23, %v3569_v63  ;;  %v2152_v23 = vpop.f32.mrf.mxu1 }
 0x1cc   : > { %12991 = vst [vmem:[#allocation137_spill] sm:$0xff] %v10096_v48  ;;  %v10112_v48 = vadd.f32 %v2149_v49, %v12995_v62  ;;  %v2773_v28 = vmul.f32 %v10051_v56, %v2741_v7  ;;  %v10132_v49 = vunpack.i.h.bf16 %v8428_v19  ;;  %v7606_v62 = vld [vmem:[#allocation6 + $0x2d8] sm:$0xf0]  ;;  %v3219_v7 = vmul.f32 %v9862_v10, %v3187_v21  ;;  %v10144_v19 = vpop.permute.xlu1 %8535  ;;  %v7598_v10 = vld [vmem:[#allocation6 + $0x2c8] sm:$0xf0] }
 0x1cd   : > { %12992 = vst [vmem:[#allocation138_spill] sm:$0xff] %v10099_v59  ;;  %v2869_v59 = vperm.slane %v10104_v16, 1  ;;  %v2183_v51 = vpop.f32.mrf.mxu2  ;;  %v3091_v58 = vadd.f32 %v3059_v41, %v2931_v36  ;;  %v3507_v56 = vperm.slane %v10033_v61, 5  ;;  %v3667_v36 = vperm.slane %v10033_v61, 6  ;;  %v8093_v61 = vld [vmem:[#allocation6 + $0x2c4] sm:$0xf] }
 0x1ce   : > { %12993 = vst [vmem:[#allocation139_spill] sm:$0xff] %v10101_v24  ;;  %v2184_v44 = vadd.f32 %v2183_v51, %v9774_v15  ;;  %v3921_v15 = vld [vmem:[%s12504_s5] sm:$0x3]  ;;  %v3189_v21 = vperm.slane %v10104_v16, 3  ;;  %v3349_v41 = vperm.slane %v10104_v16, 4  ;;  %v7609_v63 = vor.u32 %v8095_v46, %v7606_v62 }
 0x1cf   : > { %12994 = vst [vmem:[#allocation140_spill] sm:$0xff] %v10106_v54  ;;  %v2901_v20 = vmul.f32 %v9899_v5, %v2869_v59  ;;  %v2232_v59 = vpop.f32.mrf.mxu3  ;;  %v8542_v5 = vpop.permute.xlu2 %8541  ;;  %v10158_v34 = vadd.f32 %v2152_v23, %v9733_v8  ;;  %v3539_v46 = vmul.f32 %v9855_v43, %v3507_v56  ;;  %v10165_v62 = vperm.slane %v3921_v15, 0  ;;  %v13006_v8 = vld [vmem:[#allocation29_spill] sm:$0xff] }
 0x1d0   : > { %12996 = vst [vmem:[#allocation77_spill] sm:$0xff] %v10117_v29  ;;  %v10153_v51 = vadd.f32 %v2232_v59, %v2184_v44  ;;  %v3379_v44 = vmul.f32 %v9840_v60, %v3347_v35  ;;  %v13005_v59 = vld [vmem:[#allocation28_spill] sm:$0xff]  ;;  %2430 = vmatmul.bf16.gmra.mxu3 %v13006_v8  ;;  %v10170_v23 = vunpack.i.h.bf16 %v10078_v26  ;;  %2512 = vmatpush.bf16.msrb.mxu1 %v7609_v63  ;;  %v10196_v63 = vunpack.i.h.bf16 %v8542_v5 }
 0x1d1   : > { %12997 = vst [vmem:[#allocation141_spill] sm:$0xff] %v10121_v52  ;;  %v2933_v29 = vadd.f32 %v2901_v20, %v2773_v28  ;;  %v3061_v20 = vmul.f32 %v9891_v38, %v3029_v31  ;;  %v3669_v28 = vperm.slane %v10104_v16, 6  ;;  %v3509_v52 = vperm.slane %v10104_v16, 5  ;;  %2347 = vmatmul.bf16.gmra.mxu1 %v13005_v59  ;;  %v7590_v59 = vld [vmem:[#allocation6 + $0x2b8] sm:$0xf0] }
 0x1d2   : > { %12998 = vst [vmem:[#allocation142_spill] sm:$0xff] %v10124_v33  ;;  %v10142_v33 = vpop.f32.mrf.mxu0  ;;  %v7601_v56 = vor.u32 %v8093_v61, %v7598_v10  ;;  %v3889_v35 = vadd.f32 %v3857_v57, %v3729_v6  ;;  %v2743_v38 = vperm.slane %v10153_v51, 0  ;;  %v10189_v6 = vunpack.i.h.bf16 %v10082_v42 }
 0x1d3   : > { %12999 = vst [vmem:[#allocation143_spill] sm:$0xff] %v10130_v12  ;;  %v13003_v12 = vld [vmem:[#allocation26_spill] sm:$0xff]  ;;  %v3093_v31 = vadd.f32 %v3061_v20, %v2933_v29  ;;  %v10179_v29 = vmul.f32 %v9927_v9, %v3669_v28  ;;  %v8091_v20 = vld [vmem:[#allocation6 + $0x2b4] sm:$0xf]  ;;  %v10198_v28 = vunpack.i.l.bf16 %v8542_v5 }
 0x1d4   : > { %13000 = vst [vmem:[#allocation144_spill] sm:$0xff] %v10132_v49  ;;  %2381 = vmatmul.bf16.gmra.mxu2 %v13003_v12  ;;  %v13004_v49 = vld [vmem:[#allocation27_spill] sm:$0xff]  ;;  %v10174_v12 = vmul.f32 %v9871_v25, %v3827_v3  ;;  %v3541_v3 = vmul.f32 %v10076_v13, %v3509_v52  ;;  %v8458_v52 = vpop.permute.xlu0 %8457  ;;  %2513 = vmatpush.bf16.msrb.mxu1 %v7601_v56  ;;  %v8089_v9 = vld [vmem:[#allocation6 + $0x2a4] sm:$0xf]  ;;  %v8087_v25 = vld [vmem:[#allocation6 + $0x294] sm:$0xf] }
 0x1d5   : > { %13001 = vst [vmem:[#allocation145_spill] sm:$0xff] %v10135_v39  ;;  %2484 = vmatmul.bf16.gmra.mxu0 %v13004_v49  ;;  %v3221_v49 = vmul.f32 %v9915_v37, %v3189_v21  ;;  %v2186_v15 = vpop.f32.mrf.mxu2  ;;  %v7582_v13 = vld [vmem:[#allocation6 + $0x2a8] sm:$0xf0] }
 0x1d6   : > { %13002 = vst [vmem:[#allocation146_spill] sm:$0xff] %v10142_v33  ;;  %v3251_v33 = vadd.f32 %v3219_v7, %v3091_v58  ;;  %v3699_v58 = vmul.f32 %v9877_v30, %v3667_v36  ;;  %v3381_v7 = vmul.f32 %v9905_v14, %v3349_v41  ;;  %v2871_v36 = vperm.slane %v10153_v51, 1  ;;  %v7574_v30 = vld [vmem:[#allocation6 + $0x298] sm:$0xf0] }
 0x1d7   : > { %13007 = vst [vmem:[#allocation26_spill] sm:$0xff] %v10170_v23  ;;  %v2187_v21 = vadd.f32 %v2186_v15, %v9801_v11  ;;  %v2235_v37 = vpop.f32.mrf.mxu3  ;;  %v10186_v41 = vunpack.i.l.bf16 %v10078_v26  ;;  %v3253_v57 = vadd.f32 %v3221_v49, %v3093_v31  ;;  %v2154_v11 = vpop.f32.mrf.mxu1  ;;  %v10203_v15 = vadd.f32 %v10165_v62, %v3889_v35 }
 0x1d8   : > { %v3411_v8 = vadd.f32 %v3379_v44, %v3251_v33  ;;  %13009 = vst [vmem:[#allocation28_spill] sm:$0xff] %v10189_v6  ;;  %v10194_v33 = vunpack.i.l.bf16 %v10082_v42  ;;  %v8560_v26 = vpop.permute.xlu2 %8559  ;;  %v7593_v44 = vor.u32 %v8091_v20, %v7590_v59  ;;  %v3031_v31 = vperm.slane %v10153_v51, 2  ;;  %v8554_v42 = vpop.permute.xlu1 %8553 }
 0x1d9   : > { %13008 = vst [vmem:[#allocation27_spill] sm:$0xff] %v10186_v41  ;;  %v10200_v61 = vadd.f32 %v2235_v37, %v2187_v21  ;;  %v10207_v49 = vadd.f32 %v2154_v11, %v9760_v2  ;;  %v2775_v14 = vmul.f32 %v10047_v50, %v2743_v38  ;;  %v2903_v37 = vmul.f32 %v9894_v47, %v2871_v36 }
 0x1da   : > { %v10191_v10 = vpop.f32.mrf.mxu0  ;;  %13011 = vst [vmem:[#allocation147_spill] sm:$0xff] %v10194_v33  ;;  %v3571_v5 = vadd.f32 %v3539_v46, %v3411_v8  ;;  %v10215_v59 = vunpack.i.h.bf16 %v10144_v19  ;;  %v3413_v21 = vadd.f32 %v3381_v7, %v3253_v57  ;;  %v10218_v2 = vunpack.i.l.bf16 %v10144_v19  ;;  %2514 = vmatpush.bf16.msrb.mxu1 %v7593_v44 }
 0x1db   : > { %13010 = vst [vmem:[#allocation29_spill] sm:$0xff] %v10191_v10  ;;  %v2745_v56 = vperm.slane %v10200_v61, 0  ;;  %v2873_v20 = vperm.slane %v10200_v61, 1  ;;  %v3033_v35 = vperm.slane %v10200_v61, 2  ;;  %v10220_v11 = vunpack.i.l.bf16 %v8458_v52 }
 0x1dc   : > { %13012 = vst [vmem:[#allocation148_spill] sm:$0xff] %v10196_v63  ;;  %v3191_v46 = vperm.slane %v10153_v51, 3  ;;  %v10225_v36 = vunpack.i.h.bf16 %v8458_v52  ;;  %v7585_v47 = vor.u32 %v8089_v9, %v7582_v13  ;;  %v3731_v43 = vadd.f32 %v3699_v58, %v3571_v5  ;;  %v7662_v63 = vld [vmem:[#allocation6 + $0x348] sm:$0xf0] }
 0x1dd   : > { %13013 = vst [vmem:[#allocation149_spill] sm:$0xff] %v10198_v28  ;;  %v2777_v38 = vmul.f32 %v9942_v45, %v2745_v56  ;;  %v2905_v8 = vmul.f32 %v9936_v27, %v2873_v20  ;;  %v2188_v50 = vpop.f32.mrf.mxu2  ;;  %v3959_v7 = vmax.f32 %v10203_v15, 0.0  ;;  %v2935_v19 = vadd.f32 %v2903_v37, %v2775_v14 }
 0x1de   : > { %13014 = vst [vmem:[#allocation150_spill] sm:$0xff] %v10215_v59  ;;  %v3063_v57 = vmul.f32 %v9888_v32, %v3031_v31  ;;  %v3193_v10 = vperm.slane %v10200_v61, 3  ;;  %v3065_v56 = vmul.f32 %v10106_v54, %v3033_v35  ;;  %v2189_v20 = vadd.f32 %v2188_v50, %v9825_v55  ;;  %2515 = vmatpush.bf16.msrb.mxu1 %v7585_v47  ;;  %v10245_v50 = vpop.permute.xlu0 %8487  ;;  %v7566_v35 = vld [vmem:[#allocation6 + $0x288] sm:$0xf0]  ;;  %v13020_v47 = vld [vmem:[#allocation30_spill] sm:$0xff] }
 0x1df   : > { %13015 = vst [vmem:[#allocation151_spill] sm:$0xff] %v10218_v2  ;;  %v2937_v60 = vadd.f32 %v2905_v8, %v2777_v38  ;;  %v2237_v52 = vpop.f32.mrf.mxu3  ;;  %v3573_v27 = vadd.f32 %v3541_v3, %v3413_v21  ;;  %v10232_v44 = vunpack.i.h.bf16 %v8560_v26  ;;  %v3223_v9 = vmul.f32 %v9908_v4, %v3191_v46  ;;  %v2157_v14 = vpop.f32.mrf.mxu1  ;;  %v8085_v3 = vld [vmem:[#allocation6 + $0x284] sm:$0xf] }
 0x1e0   : > { %13016 = vst [vmem:[#allocation152_spill] sm:$0xff] %v10220_v11  ;;  %v3351_v13 = vperm.slane %v10153_v51, 4  ;;  %v10236_v15 = vadd.f32 %v2237_v52, %v2189_v20  ;;  %v10238_v31 = vunpack.i.l.bf16 %v8560_v26  ;;  %v7577_v5 = vor.u32 %v8087_v25, %v7574_v30  ;;  %v13021_v25 = vld [vmem:[#allocation31_spill] sm:$0xff]  ;;  %v10257_v8 = vpop.permute.xlu2 %8571 }
 0x1e1   : > { %13017 = vst [vmem:[#allocation153_spill] sm:$0xff] %v10232_v44  ;;  %v3097_v58 = vadd.f32 %v3065_v56, %v2937_v60  ;;  %v10241_v37 = vadd.f32 %v2157_v14, %v9783_v40  ;;  %v3891_v21 = vadd.f32 %v10174_v12, %v3731_v43  ;;  %v3095_v46 = vadd.f32 %v3063_v57, %v2935_v19  ;;  %v13024_v56 = vld [vmem:[#allocation32_spill] sm:$0xff]  ;;  %v13025_v43 = vld [vmem:[#allocation33_spill] sm:$0xff]  ;;  %v10261_v12 = vpop.permute.xlu1 %8565 }
 0x1e2   : > { %13018 = vst [vmem:[#allocation154_spill] sm:$0xff] %v10238_v31  ;;  %v10243_v55 = vpop.f32.mrf.mxu0  ;;  %v3511_v60 = vperm.slane %v10153_v51, 5  ;;  %v3225_v38 = vmul.f32 %v9965_v0, %v3193_v10  ;;  %v3353_v26 = vperm.slane %v10200_v61, 4  ;;  %v10253_v40 = vunpack.i.h.bf16 %v8554_v42  ;;  %2352 = vmatmul.bf16.gmra.mxu1 %v13024_v56  ;;  %2435 = vmatmul.bf16.gmra.mxu3 %v13025_v43 }
 0x1e3   : > { %13019 = vst [vmem:[#allocation155_spill] sm:$0xff] %v10243_v55  ;;  %v10255_v30 = vunpack.i.l.bf16 %v8554_v42  ;;  %v3929_v10 = vadd.f32 %v10165_v62, %v3891_v21  ;;  %v3255_v19 = vadd.f32 %v3223_v9, %v3095_v46  ;;  %v3383_v57 = vmul.f32 %v9902_v18, %v3351_v13  ;;  %2516 = vmatpush.bf16.msrb.mxu1 %v7577_v5  ;;  %v13027_v46 = vld [vmem:[#allocation70_spill] sm:$0xff] }
 0x1e4   : > { %2386 = vmatmul.bf16.gmra.mxu2 %v13020_v47  ;;  %13022 = vst [vmem:[#allocation30_spill] sm:$0xff] %v10253_v40  ;;  %v3671_v20 = vperm.slane %v10153_v51, 6  ;;  %v3733_v52 = vadd.f32 %v10179_v29, %v3573_v27  ;;  %v3257_v14 = vadd.f32 %v3225_v38, %v3097_v58  ;;  %v7569_v42 = vor.u32 %v8085_v3, %v7566_v35  ;;  %v8140_v47 = vld [vmem:[%s12505_s6 + $0x38] sm:$0xff]  ;;  %v13026_v29 = vld [vmem:[#allocation95_spill] sm:$0xff]  ;;  %v8109_v40 = vld [vmem:[#allocation6 + $0x344] sm:$0xf] }
 0x1e5   : > { %2489 = vmatmul.bf16.gmra.mxu0 %v13021_v25  ;;  %13023 = vst [vmem:[#allocation31_spill] sm:$0xff] %v10255_v30  ;;  %v3829_v25 = vperm.slane %v10104_v16, 7  ;;  %v2191_v56 = vpop.f32.mrf.mxu2  ;;  %v3961_v43 = vmax.f32 %v3929_v10, 0.0  ;;  %v3415_v0 = vadd.f32 %v3383_v57, %v3255_v19  ;;  %v3543_v9 = vmul.f32 %v10073_v1, %v3511_v60  ;;  %v8139_v57 = vld [vmem:[%s12505_s6 + $0x30] sm:$0xff] }
 0x1e6   : > { %v3831_v13 = vperm.slane %v10153_v51, 7  ;;  %v3385_v21 = vmul.f32 %v9950_v53, %v3353_v26  ;;  %v3513_v27 = vperm.slane %v10200_v61, 5  ;;  %v2192_v58 = vadd.f32 %v2191_v56, %v13026_v29  ;;  %4135 = vmatpush.bf16.msra.mxu0 %v8140_v47  ;;  %v13028_v47 = vld [vmem:[#allocation100_spill] sm:$0xff] }
 0x1e7   : > { %v2240_v5 = vpop.f32.mrf.mxu3  ;;  %v2747_v3 = vperm.slane %v10236_v15, 0  ;;  %v10277_v35 = vpack.c.bf16 %v3961_v43, %v3959_v7  ;;  %v3575_v16 = vadd.f32 %v3543_v9, %v3415_v0  ;;  %v3703_v38 = vmul.f32 %v13027_v46, %v3671_v20  ;;  %v2159_v26 = vpop.f32.mrf.mxu1  ;;  %2517 = vmatpush.bf16.msrb.mxu1 %v7569_v42  ;;  %v13029_v0 = vld [vmem:[#allocation83_spill] sm:$0xff] }
 0x1e8   : > { %v2875_v10 = vperm.slane %v10236_v15, 1  ;;  %v3673_v60 = vperm.slane %v10200_v61, 6  ;;  %v3417_v51 = vadd.f32 %v3385_v21, %v3257_v14  ;;  %v10282_v19 = vadd.f32 %v2240_v5, %v2192_v58  ;;  %v13030_v9 = vld [vmem:[#allocation99_spill] sm:$0xff] }
 0x1e9   : > { %v3861_v56 = vmul.f32 %v13028_v47, %v3829_v25  ;;  %v3833_v7 = vperm.slane %v10200_v61, 7  ;;  %v10290_v43 = vadd.f32 %v2159_v26, %v13029_v0  ;;  %v3735_v20 = vadd.f32 %v3703_v38, %v3575_v16  ;;  %v8518_v61 = vpop.permute.xlu0 %8517  ;;  %v13033_v26 = vld [vmem:[#allocation73_spill] sm:$0xff]  ;;  %v13034_v16 = vld [vmem:[#allocation72_spill] sm:$0xff] }
 0x1ea   : > { %v3863_v29 = vmul.f32 %v13030_v9, %v3831_v13  ;;  %v3545_v14 = vmul.f32 %v9984_v22, %v3513_v27  ;;  %v2749_v21 = vperm.slane %v10282_v19, 0  ;;  %v2877_v42 = vperm.slane %v10282_v19, 1  ;;  %4136 = vmatpush.bf16.msra.mxu0 %v8139_v57  ;;  %v10296_v5 = vpop.f32.mrf.mxu0  ;;  %v13035_v9 = vld [vmem:[#allocation118_spill] sm:$0xff]  ;;  %v13036_v22 = vld [vmem:[#allocation116_spill] sm:$0xff] }
 0x1eb   : > { %v3893_v58 = vadd.f32 %v3861_v56, %v3733_v52  ;;  %13031 = vst [vmem:[#allocation32_spill] sm:$0xff] %v10296_v5  ;;  %v10299_v25 = vunpack.i.h.bf16 %v10245_v50  ;;  %v2779_v0 = vmul.f32 %v13033_v26, %v2747_v3  ;;  %v2907_v38 = vmul.f32 %v13034_v16, %v2875_v10  ;;  %v8590_v52 = vpop.permute.xlu2 %8589  ;;  %v8138_v57 = vld [vmem:[%s12505_s6 + $0x28] sm:$0xff]  ;;  %v13038_v56 = vld [vmem:[#allocation112_spill] sm:$0xff] }
 0x1ec   : > { %v3895_v53 = vadd.f32 %v3863_v29, %v3735_v20  ;;  %v3577_v13 = vadd.f32 %v3545_v14, %v3417_v51  ;;  %v2781_v27 = vmul.f32 %v13035_v9, %v2749_v21  ;;  %v2909_v54 = vmul.f32 %v13036_v22, %v2877_v42  ;;  %v8584_v51 = vpop.permute.xlu1 %8583 }
 0x1ed   : > { %13032 = vst [vmem:[#allocation33_spill] sm:$0xff] %v10299_v25  ;;  %v10306_v46 = vunpack.i.l.bf16 %v10245_v50  ;;  %v3705_v5 = vmul.f32 %v13038_v56, %v3673_v60  ;;  %v3865_v20 = vmul.f32 %v10135_v39, %v3833_v7  ;;  %v2193_v3 = vpop.f32.mrf.mxu2  ;;  %v10314_v10 = vunpack.i.h.bf16 %v10257_v8  ;;  %v13040_v50 = vld [vmem:[#allocation71_spill] sm:$0xff] }
 0x1ee   : > { %v3035_v29 = vperm.slane %v10236_v15, 2  ;;  %v3037_v14 = vperm.slane %v10282_v19, 2  ;;  %v2194_v21 = vadd.f32 %v2193_v3, %v13040_v50  ;;  %4137 = vmatpush.bf16.msra.mxu0 %v8138_v57  ;;  %v3931_v22 = vadd.f32 %v10165_v62, %v3893_v58  ;;  %v8137_v58 = vld [vmem:[%s12505_s6 + $0x20] sm:$0xff] }
 0x1ef   : > { %13037 = vst [vmem:[#allocation95_spill] sm:$0xff] %v10306_v46  ;;  %v2242_v42 = vpop.f32.mrf.mxu3  ;;  %v3933_v9 = vadd.f32 %v10165_v62, %v3895_v53  ;;  %v10322_v60 = vunpack.i.l.bf16 %v10257_v8  ;;  %v10325_v7 = vunpack.i.h.bf16 %v10261_v12  ;;  %v10328_v39 = vunpack.i.l.bf16 %v10261_v12  ;;  %v2162_v3 = vpop.f32.mrf.mxu1  ;;  %v13044_v50 = vld [vmem:[#allocation85_spill] sm:$0xff] }
 0x1f0   : > { %13039 = vst [vmem:[#allocation83_spill] sm:$0xff] %v10314_v10  ;;  %v2939_v56 = vadd.f32 %v2907_v38, %v2779_v0  ;;  %v3737_v16 = vadd.f32 %v3705_v5, %v3577_v13  ;;  %v2941_v26 = vadd.f32 %v2909_v54, %v2781_v27  ;;  %v10330_v55 = vadd.f32 %v2242_v42, %v2194_v21  ;;  %v13046_v0 = vld [vmem:[#allocation34_spill] sm:$0xff]  ;;  %v13047_v38 = vld [vmem:[#allocation35_spill] sm:$0xff]  ;;  %v13048_v21 = vld [vmem:[#allocation36_spill] sm:$0xff] }
 0x1f1   : > { %13041 = vst [vmem:[#allocation71_spill] sm:$0xff] %v10322_v60  ;;  %v3195_v53 = vperm.slane %v10236_v15, 3  ;;  %v3197_v8 = vperm.slane %v10282_v19, 3  ;;  %v3357_v57 = vperm.slane %v10282_v19, 4  ;;  %v10339_v45 = vadd.f32 %v2162_v3, %v13044_v50  ;;  %v13049_v42 = vld [vmem:[#allocation37_spill] sm:$0xff] }
 0x1f2   : > { %13042 = vst [vmem:[#allocation156_spill] sm:$0xff] %v10325_v7  ;;  %v3067_v12 = vmul.f32 %v10101_v24, %v3035_v29  ;;  %v3069_v54 = vmul.f32 %v10020_v17, %v3037_v14  ;;  %v3517_v5 = vperm.slane %v10282_v19, 5  ;;  %v3963_v13 = vmax.f32 %v3931_v22, 0.0  ;;  %2357 = vmatmul.bf16.gmra.mxu1 %v13048_v21  ;;  %2440 = vmatmul.bf16.gmra.mxu3 %v13049_v42  ;;  %v10354_v29 = vpop.permute.xlu0 %8547  ;;  %v8115_v14 = vld [vmem:[#allocation6 + $0x374] sm:$0xf]  ;;  %v10362_v42 = vpop.f32.mrf.mxu0 }
 0x1f3   : > { %13043 = vst [vmem:[#allocation157_spill] sm:$0xff] %v10328_v39  ;;  %v3965_v27 = vmax.f32 %v3933_v9, 0.0  ;;  %v10348_v47 = vunpack.i.h.bf16 %v8518_v61  ;;  %v10350_v3 = vunpack.i.l.bf16 %v8518_v61  ;;  %v10352_v50 = vunpack.i.h.bf16 %v8590_v52  ;;  %v7686_v17 = vld [vmem:[#allocation6 + $0x378] sm:$0xf0]  ;;  %v8131_v24 = vld [vmem:[#allocation6 + $0x3f4] sm:$0xf]  ;;  %4138 = vmatpush.bf16.msra.mxu0 %v8137_v58 }
 0x1f4   : > { %13045 = vst [vmem:[#allocation85_spill] sm:$0xff] %v10339_v45  ;;  %2391 = vmatmul.bf16.gmra.mxu2 %v13046_v0  ;;  %v3099_v0 = vadd.f32 %v3067_v12, %v2939_v56  ;;  %v3101_v1 = vadd.f32 %v3069_v54, %v2941_v26  ;;  %v7689_v22 = vor.u32 %v8115_v14, %v7686_v17  ;;  %v7750_v9 = vld [vmem:[#allocation6 + $0x3f8] sm:$0xf0]  ;;  %v3355_v61 = vperm.slane %v10236_v15, 4  ;;  %v13059_v14 = vld [vmem:[#allocation74_spill] sm:$0xff] }
 0x1f5   : > { %2494 = vmatmul.bf16.gmra.mxu0 %v13047_v38  ;;  %13050 = vst [vmem:[#allocation34_spill] sm:$0xff] %v10348_v47  ;;  %v8136_v38 = vld [vmem:[%s12505_s6 + $0x18] sm:$0xff]  ;;  %v10359_v21 = vpack.c.bf16 %v3965_v27, %v3963_v13  ;;  %v2196_v18 = vpop.f32.mrf.mxu2  ;;  %v10364_v4 = vunpack.i.l.bf16 %v8590_v52  ;;  %v10366_v32 = vunpack.i.h.bf16 %v8584_v51  ;;  %v7753_v56 = vor.u32 %v8131_v24, %v7750_v9 }
 0x1f6   : > { %13051 = vst [vmem:[#allocation35_spill] sm:$0xff] %v10350_v3  ;;  %v13057_v26 = vld [vmem:[#allocation109_spill] sm:$0xff]  ;;  %v3897_v17 = vadd.f32 %v3865_v20, %v3737_v16  ;;  %v10371_v13 = vunpack.i.l.bf16 %v8584_v51  ;;  %2559 = vmatpush.bf16.msra.mxu2 %v7689_v22  ;;  %v3389_v52 = vmul.f32 %v10220_v11, %v3357_v57  ;;  %v10378_v24 = vunpack.i.l.bf16 %v10354_v29  ;;  %v8113_v16 = vld [vmem:[#allocation6 + $0x364] sm:$0xf]  ;;  %v7678_v20 = vld [vmem:[#allocation6 + $0x368] sm:$0xf0] }
 0x1f7   : > { %13052 = vst [vmem:[#allocation36_spill] sm:$0xff] %v10352_v50  ;;  %v3227_v58 = vmul.f32 %v13057_v26, %v3195_v53  ;;  %v13058_v12 = vld [vmem:[#allocation121_spill] sm:$0xff]  ;;  %v2197_v50 = vadd.f32 %v2196_v18, %v13059_v14  ;;  %v2245_v10 = vpop.f32.mrf.mxu3  ;;  %2608 = vmatpush.bf16.msra.mxu3 %v7753_v56  ;;  %v8129_v53 = vld [vmem:[#allocation6 + $0x3e4] sm:$0xf]  ;;  %v2164_v51 = vpop.f32.mrf.mxu1  ;;  %4139 = vmatpush.bf16.msra.mxu0 %v8136_v38  ;;  %v8135_v57 = vld [vmem:[%s12505_s6 + $0x10] sm:$0xff]  ;;  %v3515_v26 = vperm.slane %v10236_v15, 5 }
 0x1f8   : > { %13053 = vst [vmem:[#allocation37_spill] sm:$0xff] %v10359_v21  ;;  %v3229_v54 = vmul.f32 %v13058_v12, %v3197_v8  ;;  %v13061_v27 = vld [vmem:[#allocation129_spill] sm:$0xff]  ;;  %v8596_v21 = vpop.permute.xlu1 %8595  ;;  %v7681_v22 = vor.u32 %v8113_v16, %v7678_v20  ;;  %v13063_v14 = vld [vmem:[#allocation104_spill] sm:$0xff]  ;;  %v13064_v11 = vld [vmem:[#allocation18_spill] sm:$0xff]  ;;  %v2751_v16 = vperm.slane %v10330_v55, 0 }
 0x1f9   : > { %13054 = vst [vmem:[#allocation158_spill] sm:$0xff] %v10362_v42  ;;  %v10374_v7 = vmul.f32 %v13061_v27, %v3517_v5  ;;  %v8602_v42 = vpop.permute.xlu2 %8601  ;;  %v3259_v8 = vadd.f32 %v3227_v58, %v3099_v0  ;;  %v10380_v9 = vadd.f32 %v2245_v10, %v2197_v50  ;;  %v7742_v5 = vld [vmem:[#allocation6 + $0x3e8] sm:$0xf0]  ;;  %v3387_v27 = vmul.f32 %v13063_v14, %v3355_v61  ;;  %v8111_v61 = vld [vmem:[#allocation6 + $0x354] sm:$0xf] }
 0x1fa   : > { %13055 = vst [vmem:[#allocation159_spill] sm:$0xff] %v10364_v4  ;;  %v3261_v18 = vadd.f32 %v3229_v54, %v3101_v1  ;;  %v10387_v12 = vadd.f32 %v2164_v51, %v13064_v11  ;;  %v7745_v56 = vor.u32 %v8129_v53, %v7742_v5  ;;  %v3675_v1 = vperm.slane %v10236_v15, 6  ;;  %2560 = vmatpush.bf16.msra.mxu2 %v7681_v22  ;;  %v13068_v20 = vld [vmem:[#allocation23_spill] sm:$0xff]  ;;  %v8127_v22 = vld [vmem:[#allocation6 + $0x3d4] sm:$0xf]  ;;  %v8578_v60 = vpop.permute.xlu0 %8577 }
 0x1fb   : > { %13056 = vst [vmem:[#allocation160_spill] sm:$0xff] %v10366_v32  ;;  %v2753_v10 = vperm.slane %v10380_v9, 0  ;;  %v2881_v50 = vperm.slane %v10380_v9, 1  ;;  %v3041_v0 = vperm.slane %v10380_v9, 2  ;;  %v10394_v38 = vunpack.i.h.bf16 %v8602_v42  ;;  %4140 = vmatpush.bf16.msra.mxu0 %v8135_v57 }
 0x1fc   : > { %13060 = vst [vmem:[#allocation74_spill] sm:$0xff] %v10371_v13  ;;  %v10396_v58 = vunpack.i.l.bf16 %v8602_v42  ;;  %2609 = vmatpush.bf16.msra.mxu3 %v7745_v56  ;;  %v3419_v11 = vadd.f32 %v3387_v27, %v3259_v8  ;;  %v3835_v54 = vperm.slane %v10236_v15, 7  ;;  %v10402_v5 = vunpack.i.h.bf16 %v8596_v21  ;;  %v7734_v42 = vld [vmem:[#allocation6 + $0x3d8] sm:$0xf0]  ;;  %v8134_v15 = vld [vmem:[%s12505_s6 + $0x8] sm:$0xff] }
 0x1fd   : > { %13062 = vst [vmem:[#allocation161_spill] sm:$0xff] %v10378_v24  ;;  %v2785_v53 = vmul.f32 %v13068_v20, %v2753_v10  ;;  %v2913_v51 = vmul.f32 %v10306_v46, %v2881_v50  ;;  %v10404_v14 = vunpack.i.l.bf16 %v8596_v21  ;;  %v3421_v32 = vadd.f32 %v3389_v52, %v3261_v18  ;;  %v2198_v56 = vpop.f32.mrf.mxu2  ;;  %v13071_v27 = vld [vmem:[#allocation113_spill] sm:$0xff]  ;;  %v13072_v10 = vld [vmem:[#allocation111_spill] sm:$0xff]  ;;  %v13073_v21 = vld [vmem:[#allocation138_spill] sm:$0xff] }
 0x1fe   : > { %13065 = vst [vmem:[#allocation18_spill] sm:$0xff] %v10387_v12  ;;  %v3547_v8 = vmul.f32 %v13071_v27, %v3515_v26  ;;  %v3707_v20 = vmul.f32 %v13072_v10, %v3675_v1  ;;  %v10412_v50 = vadd.f32 %v10165_v62, %v3897_v17  ;;  %v3073_v46 = vmul.f32 %v13073_v21, %v3041_v0  ;;  %v10417_v12 = vpop.f32.mrf.mxu0  ;;  %v8125_v26 = vld [vmem:[#allocation6 + $0x3c4] sm:$0xf]  ;;  %v13075_v1 = vld [vmem:[#allocation144_spill] sm:$0xff] }
 0x1ff   : > { %13066 = vst [vmem:[#allocation162_spill] sm:$0xff] %v10394_v38  ;;  %v7670_v38 = vld [vmem:[#allocation6 + $0x358] sm:$0xf0]  ;;  %v3201_v57 = vperm.slane %v10380_v9, 3  ;;  %v2199_v52 = vadd.f32 %v2198_v56, %v10112_v48  ;;  %v2247_v18 = vpop.f32.mrf.mxu3  ;;  %v7737_v44 = vor.u32 %v8127_v22, %v7734_v42  ;;  %v3867_v10 = vmul.f32 %v13075_v1, %v3835_v54  ;;  %v10422_v0 = vpop.f32.mrf.mxu1  ;;  %4141 = vmatpush.bf16.msra.mxu0 %v8134_v15  ;;  %v13077_v15 = vld [vmem:[#allocation135_spill] sm:$0xff] }
 0x200   : > { %13067 = vst [vmem:[#allocation163_spill] sm:$0xff] %v10396_v58  ;;  %v7673_v39 = vor.u32 %v8111_v61, %v7670_v38  ;;  %v3579_v27 = vadd.f32 %v3547_v8, %v3419_v11  ;;  %v8133_v48 = vld [vmem:[%s12505_s6] sm:$0xff]  ;;  %v2879_v61 = vperm.slane %v10330_v55, 1  ;;  %v8614_v42 = vpop.permute.xlu1 %8613  ;;  %v7665_v11 = vor.u32 %v8109_v40, %v7662_v63  ;;  %v13081_v63 = vld [vmem:[#allocation40_spill] sm:$0xff] }
 0x201   : > { %13069 = vst [vmem:[#allocation164_spill] sm:$0xff] %v10402_v5  ;;  %v2945_v5 = vadd.f32 %v2913_v51, %v2785_v53  ;;  %v10420_v45 = vadd.f32 %v2247_v18, %v2199_v52  ;;  %v7726_v53 = vld [vmem:[#allocation6 + $0x3c8] sm:$0xf0]  ;;  %v13076_v51 = vld [vmem:[#allocation117_spill] sm:$0xff]  ;;  %v8620_v22 = vpop.permute.xlu2 %8619  ;;  %2610 = vmatpush.bf16.msra.mxu3 %v7737_v44  ;;  %v10431_v56 = vadd.f32 %v10374_v7, %v3421_v32  ;;  %v3361_v52 = vperm.slane %v10380_v9, 4  ;;  %v13078_v18 = vld [vmem:[#allocation38_spill] sm:$0xff] }
 0x202   : > { %13070 = vst [vmem:[#allocation165_spill] sm:$0xff] %v10404_v14  ;;  %v2783_v38 = vmul.f32 %v13076_v51, %v2751_v16  ;;  %2561 = vmatpush.bf16.msra.mxu2 %v7673_v39  ;;  %v3739_v54 = vadd.f32 %v3707_v20, %v3579_v27  ;;  %v3233_v8 = vmul.f32 %v13077_v15, %v3201_v57  ;;  %v13079_v16 = vld [vmem:[#allocation39_spill] sm:$0xff]  ;;  %v10438_v21 = vunpack.i.h.bf16 %v10354_v29  ;;  %v13082_v44 = vld [vmem:[#allocation41_spill] sm:$0xff] }
 0x203   : > { %13074 = vst [vmem:[#allocation166_spill] sm:$0xff] %v10417_v12  ;;  %v3105_v17 = vadd.f32 %v3073_v46, %v2945_v5  ;;  %v7729_v46 = vor.u32 %v8125_v26, %v7726_v53  ;;  %v3039_v5 = vperm.slane %v10330_v55, 2  ;;  %v3521_v39 = vperm.slane %v10380_v9, 5  ;;  %2445 = vmatmul.bf16.gmra.mxu3 %v13081_v63  ;;  %2518 = vmatmul.bf16.vlgmr.msrb.gmra.mxu1 %v13082_v44  ;;  %v13084_v7 = vld [vmem:[#allocation115_spill] sm:$0xff]  ;;  %v13086_v63 = vld [vmem:[#allocation122_spill] sm:$0xff] }
 0x204   : > { %2396 = vmatmul.bf16.gmra.mxu2 %v13078_v18  ;;  %13080 = vst [vmem:[#allocation38_spill] sm:$0xff] %v10438_v21  ;;  %v10443_v40 = vunpack.i.h.bf16 %v8578_v60  ;;  %v3899_v32 = vadd.f32 %v3867_v10, %v3739_v54  ;;  %v2911_v20 = vmul.f32 %v13084_v7, %v2879_v61  ;;  %v3681_v27 = vperm.slane %v10380_v9, 6  ;;  %4142 = vmatpush.bf16.msra.mxu0 %v8133_v48  ;;  %v13087_v54 = vld [vmem:[#allocation143_spill] sm:$0xff]  ;;  %v8121_v12 = vld [vmem:[#allocation6 + $0x3a4] sm:$0xf] }
 0x205   : > { %2499 = vmatmul.bf16.gmra.mxu0 %v13079_v16  ;;  %v3265_v57 = vadd.f32 %v3233_v8, %v3105_v17  ;;  %v10447_v26 = vunpack.i.l.bf16 %v8578_v60  ;;  %v3967_v29 = vmax.f32 %v10412_v50, 0.0  ;;  %v2201_v53 = vpop.f32.mrf.mxu2  ;;  %2611 = vmatpush.bf16.msra.mxu3 %v7729_v46  ;;  %v3071_v44 = vmul.f32 %v13086_v63, %v3039_v5  ;;  %v13090_v50 = vld [vmem:[#allocation141_spill] sm:$0xff]  ;;  %v8608_v46 = vpop.permute.xlu0 %8607 }
 0x206   : > { %13083 = vst [vmem:[#allocation39_spill] sm:$0xff] %v10443_v40  ;;  %2562 = vmatpush.bf16.msra.mxu2 %v7665_v11  ;;  %v3937_v18 = vadd.f32 %v10165_v62, %v3899_v32  ;;  %v2943_v16 = vadd.f32 %v2911_v20, %v2783_v38  ;;  %v3199_v10 = vperm.slane %v10330_v55, 3  ;;  %v3393_v61 = vmul.f32 %v13087_v54, %v3361_v52 }
 0x207   : > { %13085 = vst [vmem:[#allocation40_spill] sm:$0xff] %v10447_v26  ;;  %v2202_v15 = vadd.f32 %v2201_v53, %v10158_v34  ;;  %v2250_v17 = vpop.f32.mrf.mxu3  ;;  %v10455_v60 = vunpack.i.h.bf16 %v8620_v22  ;;  %v10457_v48 = vunpack.i.l.bf16 %v8620_v22  ;;  %v3553_v8 = vmul.f32 %v13090_v50, %v3521_v39  ;;  %v10465_v52 = vpop.f32.mrf.mxu1  ;;  %v8107_v34 = vld [vmem:[#allocation6 + $0x334] sm:$0xf]  ;;  %v7654_v53 = vld [vmem:[#allocation6 + $0x338] sm:$0xf0] }
 0x208   : > { %v10460_v11 = vunpack.i.h.bf16 %v8614_v42  ;;  %v3969_v32 = vmax.f32 %v3937_v18, 0.0  ;;  %v3103_v38 = vadd.f32 %v3071_v44, %v2943_v16  ;;  %v3425_v20 = vadd.f32 %v3393_v61, %v3265_v57  ;;  %v10468_v22 = vpop.f32.mrf.mxu0  ;;  %v13094_v50 = vld [vmem:[#allocation120_spill] sm:$0xff]  ;;  %v7718_v44 = vld [vmem:[#allocation6 + $0x3b8] sm:$0xf0] }
 0x209   : > { %13088 = vst [vmem:[#allocation41_spill] sm:$0xff] %v10455_v60  ;;  %v3713_v5 = vmul.f32 %v10350_v3, %v3681_v27  ;;  %v10463_v63 = vadd.f32 %v2250_v17, %v2202_v15  ;;  %v3359_v54 = vperm.slane %v10330_v55, 4  ;;  %v7657_v7 = vor.u32 %v8107_v34, %v7654_v53  ;;  %v8123_v16 = vld [vmem:[#allocation6 + $0x3b4] sm:$0xf]  ;;  %v13098_v17 = vld [vmem:[#allocation81_spill] sm:$0xff]  ;;  %v8626_v34 = vpop.permute.xlu1 %8625 }
 0x20a   : > { %13089 = vst [vmem:[#allocation167_spill] sm:$0xff] %v10457_v48  ;;  %v10470_v39 = vpack.c.bf16 %v3969_v32, %v3967_v29  ;;  %v3231_v51 = vmul.f32 %v13094_v50, %v3199_v10  ;;  %v3519_v18 = vperm.slane %v10330_v55, 5  ;;  %v10474_v57 = vunpack.i.l.bf16 %v8614_v42  ;;  %v8632_v32 = vpop.permute.xlu2 %8631  ;;  %v8105_v42 = vld [vmem:[#allocation6 + $0x324] sm:$0xf]  ;;  %v7646_v53 = vld [vmem:[#allocation6 + $0x328] sm:$0xf0] }
 0x20b   : > { %13091 = vst [vmem:[#allocation168_spill] sm:$0xff] %v10460_v11  ;;  %v10476_v27 = vunpack.i.h.bf16 %v8608_v46  ;;  %v10478_v15 = vunpack.i.l.bf16 %v8608_v46  ;;  %v3677_v61 = vperm.slane %v10282_v19, 6  ;;  %v10483_v3 = vadd.f32 %v10422_v0, %v13098_v17  ;;  %2563 = vmatpush.bf16.msra.mxu2 %v7657_v7  ;;  %v13104_v7 = vld [vmem:[#allocation128_spill] sm:$0xff] }
 0x20c   : > { %13092 = vst [vmem:[#allocation169_spill] sm:$0xff] %v10468_v22  ;;  %v2757_v29 = vperm.slane %v10463_v63, 0  ;;  %v2885_v10 = vperm.slane %v10463_v63, 1  ;;  %v3263_v50 = vadd.f32 %v3231_v51, %v3103_v38  ;;  %v10487_v46 = vunpack.i.h.bf16 %v8632_v32 }
 0x20d   : > { %13093 = vst [vmem:[#allocation170_spill] sm:$0xff] %v10470_v39  ;;  %v10489_v1 = vunpack.i.l.bf16 %v8632_v32  ;;  %v10491_v22 = vunpack.i.h.bf16 %v8626_v34  ;;  %v7710_v39 = vld [vmem:[#allocation6 + $0x3a8] sm:$0xf0]  ;;  %v3679_v0 = vperm.slane %v10330_v55, 6  ;;  %v3585_v17 = vadd.f32 %v3553_v8, %v3425_v20  ;;  %v2203_v60 = vpop.f32.mrf.mxu2 }
 0x20e   : > { %13095 = vst [vmem:[#allocation171_spill] sm:$0xff] %v10474_v57  ;;  %v10494_v11 = vunpack.i.l.bf16 %v8626_v34  ;;  %v3391_v48 = vmul.f32 %v10225_v36, %v3359_v54  ;;  %v2204_v51 = vadd.f32 %v2203_v60, %v10207_v49  ;;  %v7649_v32 = vor.u32 %v8105_v42, %v7646_v53  ;;  %v13106_v54 = vld [vmem:[#allocation126_spill] sm:$0xff]  ;;  %v13110_v42 = vld [vmem:[#allocation25_spill] sm:$0xff]  ;;  %v13111_v53 = vld [vmem:[#allocation24_spill] sm:$0xff] }
 0x20f   : > { %13096 = vst [vmem:[#allocation172_spill] sm:$0xff] %v10476_v27  ;;  %v3551_v27 = vmul.f32 %v13104_v7, %v3519_v18  ;;  %v2252_v38 = vpop.f32.mrf.mxu3  ;;  %v7713_v21 = vor.u32 %v8121_v12, %v7710_v39  ;;  %v10504_v34 = vpop.f32.mrf.mxu1  ;;  %v3711_v18 = vmul.f32 %v13106_v54, %v3679_v0  ;;  %v3837_v49 = vperm.slane %v10282_v19, 7  ;;  %v13108_v39 = vld [vmem:[#allocation43_spill] sm:$0xff]  ;;  %v13115_v0 = vld [vmem:[#allocation22_spill] sm:$0xff] }
 0x210   : > { %13097 = vst [vmem:[#allocation173_spill] sm:$0xff] %v10478_v15  ;;  %v3423_v8 = vadd.f32 %v3391_v48, %v3263_v50  ;;  %v10502_v20 = vadd.f32 %v2252_v38, %v2204_v51  ;;  %2564 = vmatpush.bf16.msra.mxu2 %v7649_v32  ;;  %v3839_v60 = vperm.slane %v10330_v55, 7  ;;  %v2883_v12 = vperm.slane %v10420_v45, 1  ;;  %v13107_v50 = vld [vmem:[#allocation42_spill] sm:$0xff]  ;;  %v13116_v38 = vld [vmem:[#allocation84_spill] sm:$0xff] }
 0x211   : > { %13099 = vst [vmem:[#allocation81_spill] sm:$0xff] %v10483_v3  ;;  %v13105_v3 = vld [vmem:[#allocation127_spill] sm:$0xff]  ;;  %v10512_v48 = vadd.f32 %v3713_v5, %v3585_v17  ;;  %v3869_v19 = vmul.f32 %v13110_v42, %v3837_v49  ;;  %v10529_v32 = vadd.f32 %v10465_v52, %v13116_v38 }
 0x212   : > { %13100 = vst [vmem:[#allocation174_spill] sm:$0xff] %v10487_v46  ;;  %v7721_v46 = vor.u32 %v8123_v16, %v7718_v44  ;;  %v3709_v40 = vmul.f32 %v13105_v3, %v3677_v61  ;;  %v8638_v16 = vpop.permute.xlu0 %8637  ;;  %v3583_v44 = vadd.f32 %v3551_v27, %v3423_v8  ;;  %v3871_v55 = vmul.f32 %v13111_v53, %v3839_v60  ;;  %v13114_v27 = vld [vmem:[#allocation45_spill] sm:$0xff] }
 0x213   : > { %13101 = vst [vmem:[#allocation175_spill] sm:$0xff] %v10489_v1  ;;  %v2917_v1 = vmul.f32 %v10218_v2, %v2885_v10  ;;  %v10516_v10 = vunpack.i.h.bf16 %v8638_v16  ;;  %2523 = vmatmul.bf16.gmra.mxu1 %v13114_v27  ;;  %v2915_v51 = vmul.f32 %v10299_v25, %v2883_v12  ;;  %v3205_v8 = vperm.slane %v10463_v63, 3 }
 0x214   : > { %13102 = vst [vmem:[#allocation176_spill] sm:$0xff] %v10491_v22  ;;  %v2789_v22 = vmul.f32 %v10186_v41, %v2757_v29  ;;  %2612 = vmatpush.bf16.msra.mxu3 %v7721_v46  ;;  %v3741_v61 = vadd.f32 %v3709_v40, %v10431_v56  ;;  %v2755_v29 = vperm.slane %v10420_v45, 0  ;;  %2401 = vmatmul.bf16.gmra.mxu2 %v13107_v50  ;;  %v10520_v46 = vpop.f32.mrf.mxu0  ;;  %v3045_v56 = vperm.slane %v10463_v63, 2  ;;  %v13113_v40 = vld [vmem:[#allocation44_spill] sm:$0xff] }
 0x215   : > { %13103 = vst [vmem:[#allocation177_spill] sm:$0xff] %v10494_v11  ;;  %2504 = vmatmul.bf16.gmra.mxu0 %v13108_v39  ;;  %2450 = vmatmul.bf16.gmra.mxu3 %v13113_v40  ;;  %v3743_v5 = vadd.f32 %v3711_v18, %v3583_v44  ;;  %v10532_v49 = vunpack.i.l.bf16 %v8638_v16  ;;  %v3043_v60 = vperm.slane %v10420_v45, 2  ;;  %v3365_v39 = vperm.slane %v10463_v63, 4  ;;  %v2206_v40 = vpop.f32.mrf.mxu2  ;;  %v8650_v18 = vpop.permute.xlu2 %8649  ;;  %v8103_v41 = vld [vmem:[#allocation6 + $0x314] sm:$0xf] }
 0x216   : > { %13109 = vst [vmem:[#allocation128_spill] sm:$0xff] %v10516_v10  ;;  %v2787_v17 = vmul.f32 %v13115_v0, %v2755_v29  ;;  %v2949_v50 = vadd.f32 %v2917_v1, %v2789_v22  ;;  %v3901_v44 = vadd.f32 %v3869_v19, %v3741_v61  ;;  %v3525_v12 = vperm.slane %v10463_v63, 5  ;;  %v7638_v1 = vld [vmem:[#allocation6 + $0x318] sm:$0xf0]  ;;  %v8119_v22 = vld [vmem:[#allocation6 + $0x394] sm:$0xf] }
 0x217   : > { %13112 = vst [vmem:[#allocation127_spill] sm:$0xff] %v10520_v46  ;;  %v3903_v29 = vadd.f32 %v3871_v55, %v3743_v5  ;;  %v2207_v27 = vadd.f32 %v2206_v40, %v10241_v37  ;;  %v2255_v52 = vpop.f32.mrf.mxu3  ;;  %v10538_v38 = vunpack.i.h.bf16 %v8650_v18  ;;  %v3077_v16 = vmul.f32 %v10198_v28, %v3045_v56  ;;  %v10547_v55 = vpop.f32.mrf.mxu1  ;;  %v7702_v5 = vld [vmem:[#allocation6 + $0x398] sm:$0xf0]  ;;  %v13120_v40 = vld [vmem:[#allocation136_spill] sm:$0xff] }
 0x218   : > { %13117 = vst [vmem:[#allocation126_spill] sm:$0xff] %v10532_v49  ;;  %2613 = vmatpush.bf16.msra.mxu3 %v7713_v21  ;;  %v2947_v2 = vadd.f32 %v2915_v51, %v2787_v17  ;;  %v10541_v21 = vunpack.i.l.bf16 %v8650_v18  ;;  %v3939_v25 = vadd.f32 %v10165_v62, %v3901_v44  ;;  %v7641_v37 = vor.u32 %v8103_v41, %v7638_v1  ;;  %v7630_v1 = vld [vmem:[#allocation6 + $0x308] sm:$0xf0] }
 0x219   : > { %13118 = vst [vmem:[#allocation42_spill] sm:$0xff] %v10538_v38  ;;  %v3941_v61 = vadd.f32 %v10165_v62, %v3903_v29  ;;  %v10545_v19 = vadd.f32 %v2255_v52, %v2207_v27  ;;  %v3075_v0 = vmul.f32 %v13120_v40, %v3043_v60  ;;  %v3203_v17 = vperm.slane %v10420_v45, 3  ;;  %v8644_v27 = vpop.permute.xlu1 %8643  ;;  %v8101_v52 = vld [vmem:[#allocation6 + $0x304] sm:$0xf] }
 0x21a   : > { %13119 = vst [vmem:[#allocation43_spill] sm:$0xff] %v10541_v21  ;;  %v3109_v56 = vadd.f32 %v3077_v16, %v2949_v50  ;;  %v7705_v51 = vor.u32 %v8119_v22, %v7702_v5  ;;  %v3971_v18 = vmax.f32 %v3939_v25, 0.0  ;;  %2565 = vmatpush.bf16.msra.mxu2 %v7641_v37  ;;  %v3397_v41 = vmul.f32 %v10255_v30, %v3365_v39  ;;  %v8117_v37 = vld [vmem:[#allocation6 + $0x384] sm:$0xf]  ;;  %v7694_v5 = vld [vmem:[#allocation6 + $0x388] sm:$0xf0] }
 0x21b   : > { %v3973_v28 = vmax.f32 %v3941_v61, 0.0  ;;  %v2761_v53 = vperm.slane %v10545_v19, 0  ;;  %v2889_v44 = vperm.slane %v10545_v19, 1  ;;  %v3049_v29 = vperm.slane %v10545_v19, 2 }
 0x21c   : > { %v3107_v46 = vadd.f32 %v3075_v0, %v2947_v2  ;;  %v3237_v60 = vmul.f32 %v10378_v24, %v3205_v8  ;;  %2614 = vmatpush.bf16.msra.mxu3 %v7705_v51  ;;  %v3363_v25 = vperm.slane %v10420_v45, 4  ;;  %v10560_v16 = vmul.f32 %v10238_v31, %v3525_v12  ;;  %v13121_v2 = vld [vmem:[#allocation134_spill] sm:$0xff]  ;;  %v10565_v30 = vpop.f32.mrf.mxu0 }
 0x21d   : > { %v10556_v50 = vpack.c.bf16 %v3973_v28, %v3971_v18  ;;  %v2921_v22 = vmul.f32 %v10371_v13, %v2889_v44  ;;  %v2793_v61 = vmul.f32 %v10447_v26, %v2761_v53  ;;  %v3235_v0 = vmul.f32 %v13121_v2, %v3203_v17  ;;  %13122 = vst [vmem:[#allocation25_spill] sm:$0xff] %v10565_v30  ;;  %v2208_v51 = vpop.f32.mrf.mxu2  ;;  %v13123_v53 = vld [vmem:[#allocation142_spill] sm:$0xff] }
 0x21e   : > { %v3269_v39 = vadd.f32 %v3237_v60, %v3109_v56  ;;  %v3081_v8 = vmul.f32 %v10364_v4, %v3049_v29  ;;  %v3209_v28 = vperm.slane %v10545_v19, 3  ;;  %v7633_v18 = vor.u32 %v8101_v52, %v7630_v1  ;;  %v10581_v1 = vpop.permute.xlu2 %8661 }
 0x21f   : > { %v2953_v24 = vadd.f32 %v2921_v22, %v2793_v61  ;;  %v2209_v12 = vadd.f32 %v2208_v51, %v10290_v43  ;;  %v2257_v31 = vpop.f32.mrf.mxu3  ;;  %v7697_v44 = vor.u32 %v8117_v37, %v7694_v5  ;;  %v3267_v13 = vadd.f32 %v3235_v0, %v3107_v46  ;;  %v10576_v30 = vpop.f32.mrf.mxu1  ;;  %v13125_v22 = vld [vmem:[#allocation77_spill] sm:$0xff] }
 0x220   : > { %2566 = vmatpush.bf16.msra.mxu2 %v7633_v18  ;;  %v3395_v26 = vmul.f32 %v13123_v53, %v3363_v25  ;;  %v3523_v17 = vperm.slane %v10420_v45, 5  ;;  %v3683_v56 = vperm.slane %v10420_v45, 6  ;;  %v3841_v60 = vperm.slane %v10380_v9, 7 }
 0x221   : > { %v3113_v29 = vadd.f32 %v3081_v8, %v2953_v24  ;;  %v10574_v4 = vadd.f32 %v2257_v31, %v2209_v12  ;;  %v10578_v52 = vunpack.i.h.bf16 %v8644_v27  ;;  %2615 = vmatpush.bf16.msra.mxu3 %v7697_v44  ;;  %v2759_v43 = vperm.slane %v10502_v20, 0  ;;  %v13126_v24 = vld [vmem:[#allocation46_spill] sm:$0xff] }
 0x222   : > { %v3429_v46 = vadd.f32 %v3397_v41, %v3269_v39  ;;  %v3427_v25 = vadd.f32 %v3395_v26, %v3267_v13  ;;  %v3555_v61 = vmul.f32 %v13125_v22, %v3523_v17  ;;  %v3843_v37 = vperm.slane %v10420_v45, 7  ;;  %v13128_v39 = vld [vmem:[#allocation47_spill] sm:$0xff]  ;;  %v13129_v13 = vld [vmem:[#allocation48_spill] sm:$0xff] }
 0x223   : > { %13124 = vst [vmem:[#allocation44_spill] sm:$0xff] %v10578_v52  ;;  %v3241_v9 = vmul.f32 %v10404_v14, %v3209_v28  ;;  %v3369_v31 = vperm.slane %v10545_v19, 4  ;;  %v3715_v5 = vmul.f32 %v10348_v47, %v3683_v56  ;;  %v2887_v0 = vperm.slane %v10502_v20, 1  ;;  %2528 = vmatmul.bf16.gmra.mxu1 %v13129_v13 }
 0x224   : > { %2406 = vmatmul.bf16.gmra.mxu2 %v13126_v24  ;;  %v10591_v41 = vunpack.i.l.bf16 %v8644_v27  ;;  %v3587_v26 = vadd.f32 %v3555_v61, %v3427_v25  ;;  %v3873_v45 = vmul.f32 %v10194_v33, %v3841_v60  ;;  %v2791_v8 = vmul.f32 %v10170_v23, %v2759_v43  ;;  %v13131_v43 = vld [vmem:[#allocation85_spill] sm:$0xff]  ;;  %v13138_v23 = vld [vmem:[#allocation30_spill] sm:$0xff] }
 0x225   : > { %4143 = vmatmul.bf16.vlgmr.msra.gmra.mxu0 %v10277_v35  ;;  %2455 = vmatmul.bf16.gmra.mxu3 %v13128_v39  ;;  %v3273_v28 = vadd.f32 %v3241_v9, %v3113_v29  ;;  %v10598_v51 = vunpack.i.l.bf16 %v10581_v1  ;;  %v8656_v35 = vpop.permute.xlu1 %8655  ;;  %v2919_v18 = vmul.f32 %v10215_v59, %v2887_v0  ;;  %v3047_v12 = vperm.slane %v10502_v20, 2  ;;  %v2211_v44 = vpop.f32.mrf.mxu2  ;;  %v13139_v33 = vld [vmem:[#allocation153_spill] sm:$0xff] }
 0x226   : > { %13127 = vst [vmem:[#allocation45_spill] sm:$0xff] %v10591_v41  ;;  %v3529_v27 = vperm.slane %v10545_v19, 5  ;;  %v3747_v17 = vadd.f32 %v3715_v5, %v3587_v26  ;;  %v3875_v56 = vmul.f32 %v10189_v6, %v3843_v37  ;;  %v3905_v25 = vadd.f32 %v3873_v45, %v10512_v48  ;;  %v10609_v39 = vpop.f32.mrf.mxu0 }
 0x227   : > { %13130 = vst [vmem:[#allocation84_spill] sm:$0xff] %v10598_v51  ;;  %v3401_v60 = vmul.f32 %v10396_v58, %v3369_v31  ;;  %v2212_v29 = vadd.f32 %v2211_v44, %v13131_v43  ;;  %v2260_v61 = vpop.f32.mrf.mxu3  ;;  %v10607_v9 = vunpack.i.h.bf16 %v8656_v35  ;;  %v2951_v24 = vadd.f32 %v2919_v18, %v2791_v8  ;;  %v10617_v48 = vpop.f32.mrf.mxu1  ;;  %v13135_v31 = vld [vmem:[#allocation148_spill] sm:$0xff]  ;;  %v13137_v58 = vld [vmem:[#allocation175_spill] sm:$0xff] }
 0x228   : > { %13133 = vst [vmem:[#allocation47_spill] sm:$0xff] %v10609_v39  ;;  %v3689_v0 = vperm.slane %v10545_v19, 6  ;;  %v10612_v13 = vunpack.i.l.bf16 %v8656_v35  ;;  %v3907_v14 = vadd.f32 %v3875_v56, %v3747_v17  ;;  %v3207_v5 = vperm.slane %v10502_v20, 3 }
 0x229   : > { %13132 = vst [vmem:[#allocation46_spill] sm:$0xff] %v10607_v9  ;;  %v3433_v37 = vadd.f32 %v3401_v60, %v3273_v28  ;;  %v10615_v26 = vadd.f32 %v2260_v61, %v2212_v29  ;;  %v3079_v45 = vmul.f32 %v13135_v31, %v3047_v12  ;;  %v3367_v44 = vperm.slane %v10502_v20, 4 }
 0x22a   : > { %13134 = vst [vmem:[#allocation48_spill] sm:$0xff] %v10612_v13  ;;  %v3561_v8 = vmul.f32 %v10478_v15, %v3529_v27  ;;  %v3943_v18 = vadd.f32 %v10165_v62, %v3905_v25  ;;  %v3527_v43 = vperm.slane %v10502_v20, 5  ;;  %v3685_v35 = vperm.slane %v10463_v63, 6  ;;  %v13136_v27 = vld [vmem:[#allocation38_spill] sm:$0xff] }
 0x22b   : > { %v2765_v17 = vperm.slane %v10615_v26, 0  ;;  %v2893_v28 = vperm.slane %v10615_v26, 1  ;;  %v3945_v56 = vadd.f32 %v10165_v62, %v3907_v14  ;;  %v3111_v60 = vadd.f32 %v3079_v45, %v2951_v24  ;;  %v13141_v45 = vld [vmem:[#allocation18_spill] sm:$0xff] }
 0x22c   : > { %v3589_v29 = vadd.f32 %v10560_v16, %v3429_v46  ;;  %v3721_v12 = vmul.f32 %v10474_v57, %v3689_v0  ;;  %v3053_v61 = vperm.slane %v10615_v26, 2  ;;  %v3239_v15 = vmul.f32 %v13136_v27, %v3207_v5  ;;  %v13140_v16 = vld [vmem:[#allocation157_spill] sm:$0xff] }
 0x22d   : > { %v3593_v25 = vadd.f32 %v3561_v8, %v3433_v37  ;;  %v2925_v31 = vmul.f32 %v13137_v58, %v2893_v28  ;;  %v2797_v59 = vmul.f32 %v10494_v11, %v2765_v17  ;;  %v3399_v6 = vmul.f32 %v13138_v23, %v3367_v44  ;;  %v2213_v39 = vpop.f32.mrf.mxu2 }
 0x22e   : > { %v3975_v47 = vmax.f32 %v3943_v18, 0.0  ;;  %v3559_v14 = vmul.f32 %v13139_v33, %v3527_v43  ;;  %v3687_v24 = vperm.slane %v10502_v20, 6  ;;  %v3717_v46 = vmul.f32 %v13140_v16, %v3685_v35  ;;  %v13153_v33 = vld [vmem:[#allocation36_spill] sm:$0xff] }
 0x22f   : > { %v2957_v0 = vadd.f32 %v2925_v31, %v2797_v59  ;;  %v2214_v57 = vadd.f32 %v2213_v39, %v13141_v45  ;;  %v2262_v22 = vpop.f32.mrf.mxu3  ;;  %v3977_v5 = vmax.f32 %v3945_v56, 0.0  ;;  %v3271_v37 = vadd.f32 %v3239_v15, %v3111_v60  ;;  %v10644_v43 = vpop.f32.mrf.mxu1  ;;  %v13142_v60 = vld [vmem:[#allocation71_spill] sm:$0xff] }
 0x230   : > { %v3213_v8 = vperm.slane %v10615_v26, 3  ;;  %v3085_v17 = vmul.f32 %v10532_v49, %v3053_v61  ;;  %v3749_v28 = vadd.f32 %v3717_v46, %v3589_v29  ;;  %v3845_v44 = vperm.slane %v10463_v63, 7  ;;  %v10649_v39 = vpop.f32.mrf.mxu0  ;;  %v10652_v56 = vpop.permute.xlu0 %8667  ;;  %v13145_v61 = vld [vmem:[#allocation156_spill] sm:$0xff] }
 0x231   : > { %v10642_v18 = vadd.f32 %v2262_v22, %v2214_v57  ;;  %v10646_v58 = vpack.c.bf16 %v3977_v5, %v3975_v47  ;;  %v3431_v35 = vadd.f32 %v3399_v6, %v3271_v37  ;;  %v3847_v59 = vperm.slane %v10502_v20, 7  ;;  %v13143_v57 = vld [vmem:[#allocation49_spill] sm:$0xff]  ;;  %v13147_v5 = vld [vmem:[#allocation51_spill] sm:$0xff]  ;;  %v13151_v49 = vld [vmem:[#allocation160_spill] sm:$0xff] }
 0x232   : > { %v3373_v15 = vperm.slane %v10615_v26, 4  ;;  %v3117_v31 = vadd.f32 %v3085_v17, %v2957_v0  ;;  %v3877_v29 = vmul.f32 %v13142_v60, %v3845_v44  ;;  %v2763_v63 = vperm.slane %v10574_v4, 0  ;;  %v13144_v22 = vld [vmem:[#allocation37_spill] sm:$0xff]  ;;  %v13146_v0 = vld [vmem:[#allocation50_spill] sm:$0xff]  ;;  %v13148_v17 = vld [vmem:[#allocation39_spill] sm:$0xff] }
 0x233   : > { %v3591_v47 = vadd.f32 %v3559_v14, %v3431_v35  ;;  %v3719_v6 = vmul.f32 %v13145_v61, %v3687_v24  ;;  %v2891_v20 = vperm.slane %v10574_v4, 1  ;;  %v3051_v46 = vperm.slane %v10574_v4, 2  ;;  %2533 = vmatmul.bf16.gmra.mxu1 %v13146_v0  ;;  %v13150_v24 = vld [vmem:[#allocation83_spill] sm:$0xff] }
 0x234   : > { %2567 = vmatmul.bf16.vlgmr.msra.gmra.mxu2 %v13143_v57  ;;  %v3245_v45 = vmul.f32 %v10591_v41, %v3213_v8  ;;  %v3909_v37 = vadd.f32 %v3877_v29, %v3749_v28  ;;  %v2795_v44 = vmul.f32 %v13148_v17, %v2763_v63  ;;  %v3211_v57 = vperm.slane %v10574_v4, 3  ;;  %v13152_v28 = vld [vmem:[#allocation81_spill] sm:$0xff] }
 0x235   : > { %4148 = vmatmul.bf16.gmra.mxu0 %v13144_v22  ;;  %2616 = vmatmul.bf16.vlgmr.msra.gmra.mxu3 %v13147_v5  ;;  %v10667_v22 = vunpack.i.l.bf16 %v10652_v56  ;;  %v3751_v14 = vadd.f32 %v3719_v6, %v3591_v47  ;;  %v3879_v35 = vmul.f32 %v13150_v24, %v3847_v59  ;;  %v2923_v11 = vmul.f32 %v13151_v49, %v2891_v20  ;;  %v2372_v8 = vpop.f32.mrf.mxu2  ;;  %v13154_v6 = vld [vmem:[#allocation164_spill] sm:$0xff] }
 0x236   : > { %v3753_v61 = vadd.f32 %v3721_v12, %v3593_v25  ;;  %v3277_v60 = vadd.f32 %v3245_v45, %v3117_v31  ;;  %v3947_v0 = vadd.f32 %v10165_v62, %v3909_v37  ;;  %v3371_v5 = vperm.slane %v10574_v4, 4 }
 0x237   : > { %13149 = vst [vmem:[#allocation85_spill] sm:$0xff] %v10667_v22  ;;  %v2373_v29 = vadd.f32 %v2372_v8, %v13152_v28  ;;  %v2421_v63 = vpop.f32.mrf.mxu3  ;;  %v3911_v41 = vadd.f32 %v3879_v35, %v3751_v14  ;;  %v2955_v17 = vadd.f32 %v2923_v11, %v2795_v44  ;;  %v3083_v23 = vmul.f32 %v13153_v33, %v3051_v46  ;;  %v10679_v31 = vpop.f32.mrf.mxu1  ;;  %v13155_v14 = vld [vmem:[#allocation162_spill] sm:$0xff] }
 0x238   : > { %v3693_v47 = vperm.slane %v10615_v26, 6  ;;  %v3405_v59 = vmul.f32 %v10541_v21, %v3373_v15  ;;  %v3243_v20 = vmul.f32 %v13154_v6, %v3211_v57  ;;  %v3531_v12 = vperm.slane %v10574_v4, 5  ;;  %v13159_v33 = vld [vmem:[#allocation174_spill] sm:$0xff] }
 0x239   : > { %v2422_v25 = vadd.f32 %v2421_v63, %v2373_v29  ;;  %v3949_v45 = vadd.f32 %v10165_v62, %v3911_v41  ;;  %v3115_v37 = vadd.f32 %v3083_v23, %v2955_v17  ;;  %v3849_v8 = vperm.slane %v10545_v19, 7  ;;  %v2472_v29 = vpop.f32.mrf.mxu0  ;;  %v13156_v63 = vld [vmem:[#allocation172_spill] sm:$0xff] }
 0x23a   : > { %v3533_v11 = vperm.slane %v10615_v26, 5  ;;  %v3437_v44 = vadd.f32 %v3405_v59, %v3277_v60  ;;  %v3979_v46 = vmax.f32 %v3947_v0, 0.0  ;;  %v3403_v35 = vmul.f32 %v13155_v14, %v3371_v5  ;;  %v13157_v0 = vld [vmem:[#allocation167_spill] sm:$0xff]  ;;  %v13158_v59 = vld [vmem:[#allocation176_spill] sm:$0xff] }
 0x23b   : > { %v3981_v28 = vmax.f32 %v3949_v45, 0.0  ;;  %v3275_v15 = vadd.f32 %v3243_v20, %v3115_v37  ;;  %v3691_v57 = vperm.slane %v10574_v4, 6  ;;  %v2767_v21 = vperm.slane %v10642_v18, 0 }
 0x23c   : > { %v3563_v6 = vmul.f32 %v13156_v63, %v3531_v12  ;;  %v3851_v41 = vperm.slane %v10574_v4, 7  ;;  %v2895_v23 = vperm.slane %v10642_v18, 1  ;;  %v3055_v19 = vperm.slane %v10642_v18, 2 }
 0x23d   : > { %v10691_v17 = vpack.c.bf16 %v3981_v28, %v3979_v46  ;;  %v3435_v60 = vadd.f32 %v3403_v35, %v3275_v15  ;;  %v3881_v5 = vmul.f32 %v13157_v0, %v3849_v8  ;;  %v2799_v20 = vmul.f32 %v13158_v59, %v2767_v21  ;;  %v2374_v14 = vpop.f32.mrf.mxu2  ;;  %v13160_v46 = vld [vmem:[#allocation168_spill] sm:$0xff] }
 0x23e   : > { %v3565_v45 = vmul.f32 %v10612_v13, %v3533_v11  ;;  %v3853_v37 = vperm.slane %v10615_v26, 7  ;;  %v2927_v12 = vmul.f32 %v13159_v33, %v2895_v23  ;;  %v3215_v4 = vperm.slane %v10642_v18, 3  ;;  %v13161_v33 = vld [vmem:[#allocation41_spill] sm:$0xff] }
 0x23f   : > { %v2375_v63 = vadd.f32 %v2374_v14, %v10529_v32  ;;  %v2423_v49 = vpop.f32.mrf.mxu3  ;;  %v3595_v24 = vadd.f32 %v3563_v6, %v3435_v60  ;;  %v3723_v28 = vmul.f32 %v13160_v46, %v3691_v57  ;;  %v3913_v35 = vadd.f32 %v3881_v5, %v3753_v61  ;;  %v10713_v57 = vpop.f32.mrf.mxu1  ;;  %v13167_v5 = vld [vmem:[#allocation88_spill] sm:$0xff] }
 0x240   : > { %v3597_v15 = vadd.f32 %v3565_v45, %v3437_v44  ;;  %v2959_v8 = vadd.f32 %v2927_v12, %v2799_v20  ;;  %v3087_v21 = vmul.f32 %v10516_v10, %v3055_v19  ;;  %v3375_v11 = vperm.slane %v10642_v18, 4  ;;  %v13163_v19 = vld [vmem:[#allocation52_spill] sm:$0xff]  ;;  %v13199_v10 = vld [vmem:[#allocation90_spill] sm:$0xff] }
 0x241   : > { %v2424_v13 = vadd.f32 %v2423_v49, %v2375_v63  ;;  %v10704_v26 = vadd.f32 %v10649_v39, %v2422_v25  ;;  %v3755_v23 = vadd.f32 %v3723_v28, %v3595_v24  ;;  %v3883_v59 = vmul.f32 %v13161_v33, %v3851_v41  ;;  %v13164_v49 = vld [vmem:[#allocation170_spill] sm:$0xff]  ;;  %v13165_v63 = vld [vmem:[#allocation53_spill] sm:$0xff] }
 0x242   : > { %v3725_v32 = vmul.f32 %v10598_v51, %v3693_v47  ;;  %v3119_v14 = vadd.f32 %v3087_v21, %v2959_v8  ;;  %v3247_v6 = vmul.f32 %v10578_v52, %v3215_v4  ;;  %v3535_v61 = vperm.slane %v10642_v18, 5  ;;  %v13166_v47 = vld [vmem:[#allocation54_spill] sm:$0xff]  ;;  %v2475_v4 = vpop.f32.mrf.mxu0  ;;  %v13197_v52 = vld [vmem:[#allocation108_spill] sm:$0xff] }
 0x243   : > { %v10711_v44 = vunpack.i.h.bf16 %v10581_v1  ;;  %v3915_v39 = vadd.f32 %v3883_v59, %v3755_v23  ;;  %v3951_v24 = vadd.f32 %v10165_v62, %v3913_v35  ;;  %2538 = vmatmul.bf16.gmra.mxu1 %v13165_v63  ;;  %v3407_v60 = vmul.f32 %v10538_v38, %v3375_v11 }
 0x244   : > { %2572 = vmatmul.bf16.gmra.mxu2 %v13163_v19  ;;  %v3757_v25 = vadd.f32 %v3725_v32, %v3597_v15  ;;  %v3279_v41 = vadd.f32 %v3247_v6, %v3119_v14  ;;  %v3695_v1 = vperm.slane %v10642_v18, 6  ;;  %v2329_v20 = vadd.f32 %v10504_v34, %v13167_v5 }
 0x245   : > { %13162 = vst [vmem:[#allocation18_spill] sm:$0xff] %v10711_v44  ;;  %4153 = vmatmul.bf16.gmra.mxu0 %v13164_v49  ;;  %2621 = vmatmul.bf16.gmra.mxu3 %v13166_v47  ;;  %v10725_v45 = vunpack.i.h.bf16 %v10652_v56  ;;  %v3953_v59 = vadd.f32 %v10165_v62, %v3915_v39  ;;  %v3885_v12 = vmul.f32 %v10667_v22, %v3853_v37  ;;  %v2377_v28 = vpop.f32.mrf.mxu2  ;;  %v3855_v8 = vperm.slane %v10642_v18, 7  ;;  %v13169_v18 = vld [vmem:[#allocation105_spill] sm:$0xff] }
 0x246   : > { %v3439_v35 = vadd.f32 %v3407_v60, %v3279_v41  ;;  %v3567_v15 = vmul.f32 %v10607_v9, %v3535_v61  ;;  %v2378_v21 = vadd.f32 %v2377_v28, %v2329_v20  ;;  %v3983_v23 = vmax.f32 %v3951_v24, 0.0  ;;  %v13170_v28 = vld [vmem:[#allocation55_spill] sm:$0xff] }
 0x247   : > { %13168 = vst [vmem:[#allocation49_spill] sm:$0xff] %v10725_v45  ;;  %v2426_v11 = vpop.f32.mrf.mxu3  ;;  %v3985_v32 = vmax.f32 %v3953_v59, 0.0  ;;  %v3917_v14 = vadd.f32 %v3885_v12, %v3757_v25  ;;  %v3727_v56 = vmul.f32 %v10711_v44, %v3695_v1  ;;  %v10734_v49 = vadd.f32 %v2472_v29, %v2424_v13  ;;  %v10740_v24 = vpop.f32.mrf.mxu1 }
 0x248   : > { %v3599_v34 = vadd.f32 %v3567_v15, %v3439_v35  ;;  %v2427_v6 = vadd.f32 %v2426_v11, %v2378_v21  ;;  %v3887_v39 = vmul.f32 %v10725_v45, %v3855_v8  ;;  %v2331_v47 = vadd.f32 %v10547_v55, %v13169_v18  ;;  %v13171_v35 = vld [vmem:[#allocation56_spill] sm:$0xff]  ;;  %v13172_v55 = vld [vmem:[#allocation57_spill] sm:$0xff] }
 0x249   : > { %v10732_v19 = vpack.c.bf16 %v3985_v32, %v3983_v23  ;;  %v3955_v61 = vadd.f32 %v10165_v62, %v3917_v14  ;;  %v13173_v15 = vld [vmem:[#allocation125_spill] sm:$0xff] }
 0x24a   : > { %v3759_v37 = vadd.f32 %v3727_v56, %v3599_v34  ;;  %v2477_v5 = vpop.f32.mrf.mxu0  ;;  %v10743_v59 = vadd.f32 %v2475_v4, %v2427_v6  ;;  %v13174_v34 = vld [vmem:[#allocation137_spill] sm:$0xff] }
 0x24b   : > { %v3987_v20 = vmax.f32 %v3955_v61, 0.0  ;;  %v2336_v56 = vadd.f32 %v10617_v48, %v13174_v34 }
 0x24c   : > { %v3919_v63 = vadd.f32 %v3887_v39, %v3759_v37 }
 0x24d   : > { %v2379_v25 = vpop.f32.mrf.mxu2 }
 0x24e   : > { %v3957_v41 = vadd.f32 %v10165_v62, %v3919_v63  ;;  %v2380_v60 = vadd.f32 %v2379_v25, %v2331_v47  ;;  %v2334_v62 = vadd.f32 %v10576_v30, %v13173_v15  ;;  %v13175_v30 = vld [vmem:[#allocation60_spill] sm:$0xff]  ;;  %v13176_v47 = vld [vmem:[#allocation61_spill] sm:$0xff]  ;;  %v13177_v25 = vld [vmem:[#allocation62_spill] sm:$0xff] }
 0x24f   : > { %v2428_v1 = vpop.f32.mrf.mxu3  ;;  %v10751_v21 = vpop.f32.mrf.mxu1 }
 0x250   : > { %v3989_v13 = vmax.f32 %v3957_v41, 0.0  ;;  %v2429_v29 = vadd.f32 %v2428_v1, %v2380_v60  ;;  %v13178_v41 = vld [vmem:[#allocation146_spill] sm:$0xff] }
 0x251   : > { %v2339_v48 = vadd.f32 %v10644_v43, %v13178_v41  ;;  %v13181_v43 = vld [vmem:[#allocation68_spill] sm:$0xff] }
 0x252   : > { %v4005_v12 = vpack.c.bf16 %v3989_v13, %v3987_v20  ;;  %v10753_v4 = vadd.f32 %v2477_v5, %v2429_v29  ;;  %v2480_v14 = vpop.f32.mrf.mxu0 }
 0x253   : > { %2543 = vmatmul.bf16.gmra.mxu1 %v13171_v35 }
 0x254   : > { %2577 = vmatmul.bf16.gmra.mxu2 %v13170_v28  ;;  %v13179_v28 = vld [vmem:[#allocation29_spill] sm:$0xff] }
 0x255   : > { %4158 = vmatmul.bf16.gmra.mxu0 %v10556_v50  ;;  %2626 = vmatmul.bf16.gmra.mxu3 %v13172_v55  ;;  %v2341_v35 = vadd.f32 %v10679_v31, %v13179_v28  ;;  %v8148_v28 = vld [vmem:[%s12505_s6 + $0x78] sm:$0xff] }
 0x256   : > { %4184 = vmatpush.bf16.msra.mxu1 %v8148_v28  ;;  %v8143_v28 = vld [vmem:[%s12505_s6 + $0x50] sm:$0xff] }
 0x257   : > { %v2382_v8 = vpop.f32.mrf.mxu2  ;;  %v2431_v23 = vpop.f32.mrf.mxu3 }
 0x258   : > { %v2383_v11 = vadd.f32 %v2382_v8, %v2334_v62  ;;  %v10757_v39 = vpop.f32.mrf.mxu1 }
 0x25a   : > { %v2432_v32 = vadd.f32 %v2431_v23, %v2383_v11  ;;  %v2482_v18 = vpop.f32.mrf.mxu0  ;;  %v13180_v23 = vld [vmem:[#allocation67_spill] sm:$0xff] }
 0x25c   : > { %v10759_v61 = vadd.f32 %v2480_v14, %v2432_v32  ;;  %v13182_v32 = vld [vmem:[#allocation69_spill] sm:$0xff] }
 0x25f   : > { %v2384_v50 = vpop.f32.mrf.mxu2  ;;  %v2433_v37 = vpop.f32.mrf.mxu3 }
 0x260   : > { %v2385_v6 = vadd.f32 %v2384_v50, %v2336_v56  ;;  %v10769_v29 = vpop.f32.mrf.mxu1 }
 0x262   : > { %v2434_v63 = vadd.f32 %v2433_v37, %v2385_v6 }
 0x263   : > { %2548 = vmatmul.bf16.gmra.mxu1 %v13176_v47 }
 0x264   : > { %2582 = vmatmul.bf16.gmra.mxu2 %v13175_v30  ;;  %v10767_v13 = vadd.f32 %v2482_v18, %v2434_v63  ;;  %v13185_v30 = vld [vmem:[#allocation76_spill] sm:$0xff] }
 0x265   : > { %4163 = vmatmul.bf16.gmra.mxu0 %v10646_v58  ;;  %2631 = vmatmul.bf16.gmra.mxu3 %v13177_v25  ;;  %v2485_v58 = vpop.f32.mrf.mxu0 }
 0x267   : > { %v2387_v60 = vpop.f32.mrf.mxu2  ;;  %v2436_v5 = vpop.f32.mrf.mxu3 }
 0x268   : > { %v2388_v1 = vadd.f32 %v2387_v60, %v2339_v48  ;;  %v10779_v14 = vpop.f32.mrf.mxu1 }
 0x26a   : > { %v2437_v20 = vadd.f32 %v2436_v5, %v2388_v1  ;;  %v13187_v1 = vld [vmem:[#allocation78_spill] sm:$0xff]  ;;  %v13188_v5 = vld [vmem:[#allocation79_spill] sm:$0xff] }
 0x26c   : > { %v10773_v11 = vadd.f32 %v2485_v58, %v2437_v20 }
 0x26d   : > { %v2487_v56 = vpop.f32.mrf.mxu0 }
 0x26f   : > { %v2389_v55 = vpop.f32.mrf.mxu2  ;;  %v2438_v62 = vpop.f32.mrf.mxu3 }
 0x270   : > { %v2390_v15 = vadd.f32 %v2389_v55, %v2341_v35  ;;  %v10789_v37 = vpop.f32.mrf.mxu1 }
 0x271   : > { %13183 = vst [vmem:[#allocation37_spill] sm:$0xff] %v10789_v37 }
 0x272   : > { %v2439_v8 = vadd.f32 %v2438_v62, %v2390_v15  ;;  %v13191_v15 = vld [vmem:[#allocation80_spill] sm:$0xff]  ;;  %v13192_v62 = vld [vmem:[#allocation82_spill] sm:$0xff] }
 0x273   : > { %2553 = vmatmul.bf16.gmra.mxu1 %v13181_v43 }
 0x274   : > { %2587 = vmatmul.bf16.gmra.mxu2 %v13180_v23  ;;  %v10785_v50 = vadd.f32 %v2487_v56, %v2439_v8  ;;  %v8146_v8 = vld [vmem:[%s12505_s6 + $0x68] sm:$0xff]  ;;  %v8145_v56 = vld [vmem:[%s12505_s6 + $0x60] sm:$0xff] }
 0x275   : > { %4168 = vmatmul.bf16.gmra.mxu0 %v10691_v17  ;;  %2636 = vmatmul.bf16.gmra.mxu3 %v13182_v32  ;;  %v13184_v17 = vld [vmem:[#allocation75_spill] sm:$0xff] }
 0x277   : > { %v10781_v34 = vpop.f32.mrf.mxu2  ;;  %v10783_v31 = vpop.f32.mrf.mxu3 }
 0x278   : > { %v10800_v25 = vpop.f32.mrf.mxu1 }
 0x279   : > { %13186 = vst [vmem:[#allocation50_spill] sm:$0xff] %v10800_v25 }
 0x27f   : > { %v10787_v6 = vpop.f32.mrf.mxu2  ;;  %v10791_v63 = vpop.f32.mrf.mxu3 }
 0x280   : > { %v2519_v60 = vpop.f32.mrf.mxu1 }
 0x284   : > { %2592 = vmatmul.bf16.gmra.mxu2 %v13184_v17  ;;  %v8144_v17 = vld [vmem:[%s12505_s6 + $0x58] sm:$0xff] }
 0x285   : > { %4173 = vmatmul.bf16.gmra.mxu0 %v10732_v19  ;;  %2641 = vmatmul.bf16.gmra.mxu3 %v13185_v30 }
 0x287   : > { %v10796_v18 = vpop.f32.mrf.mxu2  ;;  %v10798_v47 = vpop.f32.mrf.mxu3 }
 0x288   : > { %v2521_v35 = vpop.f32.mrf.mxu1 }
 0x289   : > { %v2522_v38 = vadd.f32 %v2521_v35, %v10734_v49 }
 0x28f   : > { %v10802_v41 = vpop.f32.mrf.mxu2  ;;  %v10804_v48 = vpop.f32.mrf.mxu3 }
 0x290   : > { %v2524_v43 = vpop.f32.mrf.mxu1 }
 0x294   : > { %2597 = vmatmul.bf16.gmra.mxu2 %v13187_v1 }
 0x295   : > { %4178 = vmatmul.bf16.gmra.mxu0 %v4005_v12  ;;  %2646 = vmatmul.bf16.gmra.mxu3 %v13188_v5  ;;  %v8147_v12 = vld [vmem:[%s12505_s6 + $0x70] sm:$0xff] }
 0x296   : > { %4185 = vmatpush.bf16.msra.mxu1 %v8147_v12  ;;  %v8142_v12 = vld [vmem:[%s12505_s6 + $0x48] sm:$0xff] }
 0x297   : > { %v10808_v20 = vpop.f32.mrf.mxu2 }
 0x298   : > { %v10810_v19 = vpop.f32.mrf.mxu3  ;;  %v10841_v5 = vpop.f32.mrf.mxu1 }
 0x29a   : > { %4186 = vmatpush.bf16.msra.mxu1 %v8146_v8 }
 0x29e   : > { %4187 = vmatpush.bf16.msra.mxu1 %v8145_v56 }
 0x29f   : > { %v10815_v58 = vpop.f32.mrf.mxu2 }
 0x2a0   : > { %13189 = vst [vmem:[#allocation51_spill] sm:$0xff] %v10815_v58  ;;  %v10817_v55 = vpop.f32.mrf.mxu3  ;;  %v10853_v44 = vpop.f32.mrf.mxu1 }
 0x2a1   : > { %13190 = vst [vmem:[#allocation81_spill] sm:$0xff] %v10817_v55 }
 0x2a2   : > { %4188 = vmatpush.bf16.msra.mxu1 %v8144_v17  ;;  %v8141_v17 = vld [vmem:[%s12505_s6 + $0x40] sm:$0xff] }
 0x2a4   : > { %2602 = vmatmul.bf16.gmra.mxu2 %v13191_v15  ;;  %v2520_v15 = vadd.f32 %v2519_v60, %v10704_v26  ;;  %v13198_v26 = vld [vmem:[#allocation107_spill] sm:$0xff] }
 0x2a5   : > { %2651 = vmatmul.bf16.gmra.mxu3 %v13192_v62 }
 0x2a6   : > { %4189 = vmatpush.bf16.msra.mxu1 %v8143_v28 }
 0x2a7   : > { %v10827_v23 = vpop.f32.mrf.mxu2 }
 0x2a8   : > { %13193 = vst [vmem:[#allocation52_spill] sm:$0xff] %v10827_v23  ;;  %v10829_v32 = vpop.f32.mrf.mxu3 }
 0x2a9   : > { %13194 = vst [vmem:[#allocation170_spill] sm:$0xff] %v10829_v32  ;;  %v13200_v32 = vld [vmem:[#allocation94_spill] sm:$0xff] }
 0x2aa   : > { %4190 = vmatpush.bf16.msra.mxu1 %v8142_v12 }
 0x2ae   : > { %4191 = vmatpush.bf16.msra.mxu1 %v8141_v17 }
 0x2af   : > { %v10837_v30 = vpop.f32.mrf.mxu2 }
 0x2b0   : > { %13195 = vst [vmem:[#allocation53_spill] sm:$0xff] %v10837_v30  ;;  %v10839_v1 = vpop.f32.mrf.mxu3 }
 0x2b1   : > { %13196 = vst [vmem:[#allocation54_spill] sm:$0xff] %v10839_v1 }
 0x2b7   : > { %v2568_v62 = vpop.f32.mrf.mxu2 }
 0x2b8   : > { %v2569_v8 = vadd.f32 %v2568_v62, %v2520_v15  ;;  %v2617_v56 = vpop.f32.mrf.mxu3 }
 0x2ba   : > { %v2618_v45 = vadd.f32 %v2617_v56, %v2569_v8 }
 0x2bc   : > { %v2738_v22 = vperm.slane %v2618_v45, 0  ;;  %v2866_v9 = vperm.slane %v2618_v45, 1  ;;  %v3026_v28 = vperm.slane %v2618_v45, 2  ;;  %v3186_v62 = vperm.slane %v2618_v45, 3 }
 0x2bd   : > { %v3346_v46 = vperm.slane %v2618_v45, 4  ;;  %v3506_v27 = vperm.slane %v2618_v45, 5  ;;  %v3826_v25 = vperm.slane %v2618_v45, 7 }
 0x2be   : > { %v2770_v51 = vmul.f32 %v13197_v52, %v2738_v22  ;;  %v2898_v60 = vmul.f32 %v13198_v26, %v2866_v9  ;;  %v3058_v33 = vmul.f32 %v13199_v10, %v3026_v28  ;;  %v3218_v30 = vmul.f32 %v13200_v32, %v3186_v62  ;;  %v13201_v22 = vld [vmem:[#allocation87_spill] sm:$0xff] }
 0x2bf   : > { %v2570_v15 = vpop.f32.mrf.mxu2  ;;  %v3378_v52 = vmul.f32 %v13201_v22, %v3346_v46  ;;  %v3666_v9 = vperm.slane %v2618_v45, 6  ;;  %v2525_v26 = vadd.f32 %v2524_v43, %v10743_v59  ;;  %v13203_v28 = vld [vmem:[#allocation119_spill] sm:$0xff] }
 0x2c0   : > { %v2571_v12 = vadd.f32 %v2570_v15, %v2522_v38  ;;  %v2619_v8 = vpop.f32.mrf.mxu3  ;;  %v2930_v56 = vadd.f32 %v2898_v60, %v2770_v51  ;;  %v10862_v38 = vpop.f32.mrf.mxu1  ;;  %v13202_v51 = vld [vmem:[#allocation124_spill] sm:$0xff]  ;;  %v13206_v59 = vld [vmem:[#allocation19_spill] sm:$0xff] }
 0x2c1   : > { %v3698_v43 = vmul.f32 %v13206_v59, %v3666_v9  ;;  %v13209_v45 = vld [vmem:[#allocation91_spill] sm:$0xff] }
 0x2c2   : > { %v2620_v0 = vadd.f32 %v2619_v8, %v2571_v12  ;;  %v3090_v1 = vadd.f32 %v3058_v33, %v2930_v56  ;;  %v13204_v56 = vld [vmem:[#allocation92_spill] sm:$0xff] }
 0x2c3   : > { %v3538_v32 = vmul.f32 %v13204_v56, %v3506_v27 }
 0x2c4   : > { %v2740_v17 = vperm.slane %v2620_v0, 0  ;;  %v2868_v16 = vperm.slane %v2620_v0, 1  ;;  %v3028_v49 = vperm.slane %v2620_v0, 2  ;;  %v3250_v35 = vadd.f32 %v3218_v30, %v3090_v1  ;;  %v13205_v1 = vld [vmem:[#allocation89_spill] sm:$0xff] }
 0x2c5   : > { %v3188_v12 = vperm.slane %v2620_v0, 3  ;;  %v3348_v8 = vperm.slane %v2620_v0, 4  ;;  %v3508_v22 = vperm.slane %v2620_v0, 5 }
 0x2c6   : > { %v2772_v60 = vmul.f32 %v13202_v51, %v2740_v17  ;;  %v2900_v15 = vmul.f32 %v13203_v28, %v2868_v16  ;;  %v3410_v62 = vadd.f32 %v3378_v52, %v3250_v35  ;;  %v3060_v46 = vmul.f32 %v13205_v1, %v3028_v49  ;;  %v13207_v16 = vld [vmem:[#allocation93_spill] sm:$0xff]  ;;  %v13208_v51 = vld [vmem:[#allocation86_spill] sm:$0xff] }
 0x2c7   : > { %v2573_v33 = vpop.f32.mrf.mxu2  ;;  %v3220_v28 = vmul.f32 %v13207_v16, %v3188_v12  ;;  %v3380_v58 = vmul.f32 %v13208_v51, %v3348_v8  ;;  %v3668_v52 = vperm.slane %v2620_v0, 6  ;;  %v3828_v12 = vperm.slane %v2620_v0, 7 }
 0x2c8   : > { %v2574_v10 = vadd.f32 %v2573_v33, %v2525_v26  ;;  %v2622_v23 = vpop.f32.mrf.mxu3  ;;  %v2932_v30 = vadd.f32 %v2900_v15, %v2772_v60  ;;  %v3570_v55 = vadd.f32 %v3538_v32, %v3410_v62  ;;  %v2527_v32 = vadd.f32 %v10841_v5, %v10753_v4  ;;  %v13211_v33 = vld [vmem:[#allocation131_spill] sm:$0xff]  ;;  %v13212_v62 = vld [vmem:[#allocation20_spill] sm:$0xff]  ;;  %v10889_v5 = vpop.f32.mrf.mxu1 }
 0x2ca   : > { %v10869_v37 = vadd.f32 %v2622_v23, %v2574_v10  ;;  %v3092_v17 = vadd.f32 %v3060_v46, %v2932_v30  ;;  %v3730_v35 = vadd.f32 %v3698_v43, %v3570_v55  ;;  %v3540_v10 = vmul.f32 %v13209_v45, %v3508_v22  ;;  %v13210_v23 = vld [vmem:[#allocation96_spill] sm:$0xff]  ;;  %v13213_v30 = vld [vmem:[#allocation59_spill] sm:$0xff] }
 0x2cb   : > { %v3858_v9 = vmul.f32 %v13210_v23, %v3826_v25  ;;  %v3700_v46 = vmul.f32 %v13213_v30, %v3668_v52 }
 0x2cc   : > { %v3252_v27 = vadd.f32 %v3220_v28, %v3092_v17  ;;  %v2742_v26 = vperm.slane %v10869_v37, 0  ;;  %v2870_v60 = vperm.slane %v10869_v37, 1  ;;  %v3030_v49 = vperm.slane %v10869_v37, 2  ;;  %v8759_v17 = vld [vmem:[%s12504_s5] sm:$0x3] }
 0x2cd   : > { %v3890_v43 = vadd.f32 %v3858_v9, %v3730_v35  ;;  %v10886_v51 = vperm.slane %v8759_v17, 1  ;;  %v3190_v4 = vperm.slane %v10869_v37, 3  ;;  %v13215_v9 = vld [vmem:[#allocation58_spill] sm:$0xff]  ;;  %v3510_v16 = vperm.slane %v10869_v37, 5 }
 0x2ce   : > { %v3412_v15 = vadd.f32 %v3380_v58, %v3252_v27  ;;  %v2774_v8 = vmul.f32 %v13211_v33, %v2742_v26  ;;  %v2902_v55 = vmul.f32 %v13212_v62, %v2870_v60  ;;  %v13214_v27 = vld [vmem:[#allocation97_spill] sm:$0xff]  ;;  %v3350_v60 = vperm.slane %v10869_v37, 4  ;;  %v13216_v33 = vld [vmem:[#allocation98_spill] sm:$0xff] }
 0x2cf   : > { %v2575_v28 = vpop.f32.mrf.mxu2  ;;  %v3062_v26 = vmul.f32 %v13214_v27, %v3030_v49  ;;  %v3860_v30 = vmul.f32 %v13215_v9, %v3828_v12  ;;  %v3928_v17 = vadd.f32 %v10886_v51, %v3890_v43  ;;  %v3222_v45 = vmul.f32 %v13216_v33, %v3190_v4  ;;  %v13218_v4 = vld [vmem:[#allocation130_spill] sm:$0xff]  ;;  %v13220_v9 = vld [vmem:[#allocation133_spill] sm:$0xff] }
 0x2d0   : > { %v2576_v25 = vadd.f32 %v2575_v28, %v2527_v32  ;;  %v2624_v0 = vpop.f32.mrf.mxu3  ;;  %v3572_v58 = vadd.f32 %v3540_v10, %v3412_v15  ;;  %v2934_v22 = vadd.f32 %v2902_v55, %v2774_v8  ;;  %v2530_v8 = vadd.f32 %v10853_v44, %v10759_v61  ;;  %v13217_v28 = vld [vmem:[#allocation65_spill] sm:$0xff]  ;;  %v10916_v23 = vpop.f32.mrf.mxu1 }
 0x2d1   : > { %v3382_v12 = vmul.f32 %v13217_v28, %v3350_v60  ;;  %v3542_v44 = vmul.f32 %v13220_v9, %v3510_v16  ;;  %v13221_v28 = vld [vmem:[#allocation63_spill] sm:$0xff]  ;;  %v13223_v16 = vld [vmem:[#allocation66_spill] sm:$0xff] }
 0x2d2   : > { %v10893_v52 = vadd.f32 %v2624_v0, %v2576_v25  ;;  %v3732_v35 = vadd.f32 %v3700_v46, %v3572_v58  ;;  %v3094_v62 = vadd.f32 %v3062_v26, %v2934_v22  ;;  %v3670_v46 = vperm.slane %v10869_v37, 6  ;;  %v13219_v0 = vld [vmem:[#allocation64_spill] sm:$0xff] }
 0x2d3   : > { %v3960_v26 = vmax.f32 %v3928_v17, 0.0 }
 0x2d4   : > { %v3892_v32 = vadd.f32 %v3860_v30, %v3732_v35  ;;  %v2744_v10 = vperm.slane %v10893_v52, 0  ;;  %v2872_v15 = vperm.slane %v10893_v52, 1  ;;  %v3032_v49 = vperm.slane %v10893_v52, 2 }
 0x2d5   : > { %v3254_v55 = vadd.f32 %v3222_v45, %v3094_v62  ;;  %v3192_v58 = vperm.slane %v10893_v52, 3  ;;  %v3352_v35 = vperm.slane %v10893_v52, 4 }
 0x2d6   : > { %v3930_v43 = vadd.f32 %v10886_v51, %v3892_v32  ;;  %v2776_v25 = vmul.f32 %v13218_v4, %v2744_v10  ;;  %v2904_v30 = vmul.f32 %v13219_v0, %v2872_v15  ;;  %v3064_v27 = vmul.f32 %v13221_v28, %v3032_v49  ;;  %v13222_v4 = vld [vmem:[#allocation101_spill] sm:$0xff] }
 0x2d7   : > { %v2578_v22 = vpop.f32.mrf.mxu2  ;;  %v3414_v33 = vadd.f32 %v3382_v12, %v3254_v55  ;;  %v3512_v32 = vperm.slane %v10893_v52, 5  ;;  %v3702_v15 = vmul.f32 %v13222_v4, %v3670_v46  ;;  %v3830_v0 = vperm.slane %v10869_v37, 7 }
 0x2d8   : > { %v2579_v61 = vadd.f32 %v2578_v22, %v2530_v8  ;;  %v2627_v45 = vpop.f32.mrf.mxu3  ;;  %v3962_v62 = vmax.f32 %v3930_v43, 0.0  ;;  %v2936_v60 = vadd.f32 %v2904_v30, %v2776_v25  ;;  %v3224_v8 = vmul.f32 %v13223_v16, %v3192_v58  ;;  %v13224_v22 = vld [vmem:[#allocation21_spill] sm:$0xff] }
 0x2d9   : > { %v3574_v10 = vadd.f32 %v3542_v44, %v3414_v33  ;;  %v3384_v43 = vmul.f32 %v13224_v22, %v3352_v35  ;;  %v3672_v25 = vperm.slane %v10893_v52, 6  ;;  %v2532_v44 = vadd.f32 %v10862_v38, %v10767_v13  ;;  %v13230_v22 = vld [vmem:[#allocation70_spill] sm:$0xff] }
 0x2da   : > { %v10918_v17 = vadd.f32 %v2627_v45, %v2579_v61  ;;  %v3992_v55 = vpack.c.bf16 %v3962_v62, %v3960_v26  ;;  %v3096_v12 = vadd.f32 %v3064_v27, %v2936_v60  ;;  %v13225_v26 = vld [vmem:[#allocation132_spill] sm:$0xff]  ;;  %v3832_v35 = vperm.slane %v10893_v52, 7  ;;  %v13227_v62 = vld [vmem:[#allocation103_spill] sm:$0xff] }
 0x2db   : > { %v3734_v49 = vadd.f32 %v3702_v15, %v3574_v10  ;;  %v3544_v27 = vmul.f32 %v13225_v26, %v3512_v32  ;;  %v13226_v61 = vld [vmem:[#allocation100_spill] sm:$0xff]  ;;  %v13228_v10 = vld [vmem:[#allocation102_spill] sm:$0xff]  ;;  %v3704_v16 = vmul.f32 %v13230_v22, %v3672_v25 }
 0x2dc   : > { %4192 = vmatmul.bf16.vlgmr.msra.gmra.mxu1 %v3992_v55  ;;  %v3256_v30 = vadd.f32 %v3224_v8, %v3096_v12  ;;  %v2746_v33 = vperm.slane %v10918_v17, 0  ;;  %v2874_v46 = vperm.slane %v10918_v17, 1  ;;  %v3034_v37 = vperm.slane %v10918_v17, 2  ;;  %v13229_v55 = vld [vmem:[#allocation155_spill] sm:$0xff]  ;;  %v13232_v52 = vld [vmem:[#allocation32_spill] sm:$0xff] }
 0x2dd   : > { %v3862_v58 = vmul.f32 %v13226_v61, %v3830_v0  ;;  %v2344_v12 = vadd.f32 %v10713_v57, %v13229_v55  ;;  %v3194_v13 = vperm.slane %v10918_v17, 3  ;;  %v3354_v25 = vperm.slane %v10918_v17, 4 }
 0x2de   : > { %v3416_v45 = vadd.f32 %v3384_v43, %v3256_v30  ;;  %v2778_v60 = vmul.f32 %v13227_v62, %v2746_v33  ;;  %v2906_v15 = vmul.f32 %v13228_v10, %v2874_v46  ;;  %v13231_v43 = vld [vmem:[#allocation140_spill] sm:$0xff]  ;;  %v2346_v33 = vadd.f32 %v10740_v24, %v13232_v52  ;;  %v13233_v62 = vld [vmem:[#allocation158_spill] sm:$0xff] }
 0x2df   : > { %v2580_v8 = vpop.f32.mrf.mxu2  ;;  %v3894_v28 = vadd.f32 %v3862_v58, %v3734_v49  ;;  %v3066_v30 = vmul.f32 %v13231_v43, %v3034_v37  ;;  %v2349_v46 = vadd.f32 %v10751_v21, %v13233_v62  ;;  %v13234_v10 = vld [vmem:[#allocation166_spill] sm:$0xff]  ;;  %v13235_v58 = vld [vmem:[#allocation99_spill] sm:$0xff]  ;;  %v2393_v37 = vadd.f32 %v10781_v34, %v2344_v12 }
 0x2e0   : > { %v2581_v38 = vadd.f32 %v2580_v8, %v2532_v44  ;;  %v2629_v32 = vpop.f32.mrf.mxu3  ;;  %v3576_v26 = vadd.f32 %v3544_v27, %v3416_v45  ;;  %v2938_v0 = vadd.f32 %v2906_v15, %v2778_v60  ;;  %v10944_v57 = vadd.f32 %v10757_v39, %v13234_v10  ;;  %v10950_v60 = vpop.f32.mrf.mxu0  ;;  %v13236_v15 = vld [vmem:[#allocation110_spill] sm:$0xff] }
 0x2e1   : > { %v3864_v27 = vmul.f32 %v13235_v58, %v3832_v35  ;;  %v3932_v24 = vadd.f32 %v10886_v51, %v3894_v28  ;;  %v3226_v21 = vmul.f32 %v13236_v15, %v3194_v13  ;;  %v3514_v62 = vperm.slane %v10918_v17, 5  ;;  %v10956_v39 = vpop.f32.mrf.mxu1  ;;  %v13237_v34 = vld [vmem:[#allocation106_spill] sm:$0xff] }
 0x2e2   : > { %v10947_v49 = vadd.f32 %v2629_v32, %v2581_v38  ;;  %v3736_v44 = vadd.f32 %v3704_v16, %v3576_v26  ;;  %v3098_v45 = vadd.f32 %v3066_v30, %v2938_v0  ;;  %v2535_v35 = vadd.f32 %v10889_v5, %v10773_v11  ;;  %v13238_v38 = vld [vmem:[#allocation73_spill] sm:$0xff]  ;;  %v13239_v0 = vld [vmem:[#allocation72_spill] sm:$0xff]  ;;  %v13240_v43 = vld [vmem:[#allocation114_spill] sm:$0xff] }
 0x2e3   : > { %v3386_v12 = vmul.f32 %v13237_v34, %v3354_v25  ;;  %v3674_v28 = vperm.slane %v10918_v17, 6  ;;  %v3546_v11 = vmul.f32 %v13240_v43, %v3514_v62  ;;  %v13241_v34 = vld [vmem:[#allocation139_spill] sm:$0xff]  ;;  %v2442_v62 = vadd.f32 %v10783_v31, %v2393_v37  ;;  %v13245_v37 = vld [vmem:[#allocation113_spill] sm:$0xff] }
 0x2e4   : > { %v3896_v10 = vadd.f32 %v3864_v27, %v3736_v44  ;;  %v2748_v55 = vperm.slane %v10947_v49, 0  ;;  %v2876_v16 = vperm.slane %v10947_v49, 1  ;;  %v3036_v26 = vperm.slane %v10947_v49, 2 }
 0x2e5   : > { %v3258_v8 = vadd.f32 %v3226_v21, %v3098_v45  ;;  %v3196_v52 = vperm.slane %v10947_v49, 3  ;;  %v3964_v27 = vmax.f32 %v3932_v24, 0.0  ;;  %v3356_v15 = vperm.slane %v10947_v49, 4 }
 0x2e6   : > { %v3934_v13 = vadd.f32 %v10886_v51, %v3896_v10  ;;  %v2780_v32 = vmul.f32 %v13238_v38, %v2748_v55  ;;  %v2908_v30 = vmul.f32 %v13239_v0, %v2876_v16  ;;  %v3068_v22 = vmul.f32 %v13241_v34, %v3036_v26  ;;  %v13242_v38 = vld [vmem:[#allocation112_spill] sm:$0xff] }
 0x2e7   : > { %v2583_v44 = vpop.f32.mrf.mxu2  ;;  %v3418_v58 = vadd.f32 %v3386_v12, %v3258_v8  ;;  %v3516_v10 = vperm.slane %v10947_v49, 5  ;;  %v3706_v16 = vmul.f32 %v13242_v38, %v3674_v28  ;;  %v3834_v0 = vperm.slane %v10918_v17, 7  ;;  %v13243_v8 = vld [vmem:[#allocation109_spill] sm:$0xff] }
 0x2e8   : > { %v2584_v5 = vadd.f32 %v2583_v44, %v2535_v35  ;;  %v2632_v45 = vpop.f32.mrf.mxu3  ;;  %v3966_v25 = vmax.f32 %v3934_v13, 0.0  ;;  %v2940_v21 = vadd.f32 %v2908_v30, %v2780_v32  ;;  %v3228_v12 = vmul.f32 %v13243_v8, %v3196_v52  ;;  %v13244_v35 = vld [vmem:[#allocation104_spill] sm:$0xff]  ;;  %v10984_v44 = vpop.f32.mrf.mxu0  ;;  %v13246_v52 = vld [vmem:[#allocation145_spill] sm:$0xff] }
 0x2e9   : > { %v3578_v55 = vadd.f32 %v3546_v11, %v3418_v58  ;;  %v3388_v13 = vmul.f32 %v13244_v35, %v3356_v15  ;;  %v3676_v32 = vperm.slane %v10947_v49, 6  ;;  %v2537_v31 = vadd.f32 %v10916_v23, %v10785_v50  ;;  %v10991_v11 = vpop.f32.mrf.mxu1  ;;  %v13250_v35 = vld [vmem:[#allocation123_spill] sm:$0xff] }
 0x2ea   : > { %v10975_v61 = vadd.f32 %v2632_v45, %v2584_v5  ;;  %v3994_v24 = vpack.c.bf16 %v3966_v25, %v3964_v27  ;;  %v3100_v4 = vadd.f32 %v3068_v22, %v2940_v21  ;;  %v2395_v22 = vadd.f32 %v10787_v6, %v2346_v33  ;;  %v13247_v45 = vld [vmem:[#allocation118_spill] sm:$0xff]  ;;  %v13248_v21 = vld [vmem:[#allocation116_spill] sm:$0xff]  ;;  %v13249_v6 = vld [vmem:[#allocation111_spill] sm:$0xff] }
 0x2eb   : > { %v3738_v26 = vadd.f32 %v3706_v16, %v3578_v55  ;;  %v3548_v15 = vmul.f32 %v13245_v37, %v3516_v10  ;;  %v3866_v27 = vmul.f32 %v13246_v52, %v3834_v0  ;;  %v3836_v5 = vperm.slane %v10947_v49, 7 }
 0x2ec   : > { %4197 = vmatmul.bf16.gmra.mxu1 %v3994_v24  ;;  %v3260_v30 = vadd.f32 %v3228_v12, %v3100_v4  ;;  %v2750_v58 = vperm.slane %v10975_v61, 0  ;;  %v2878_v28 = vperm.slane %v10975_v61, 1  ;;  %v3038_v17 = vperm.slane %v10975_v61, 2 }
 0x2ed   : > { %v2398_v16 = vadd.f32 %v10796_v18, %v2349_v46  ;;  %v3708_v33 = vmul.f32 %v13249_v6, %v3676_v32  ;;  %v3898_v12 = vadd.f32 %v3866_v27, %v3738_v26  ;;  %v3198_v50 = vperm.slane %v10975_v61, 3  ;;  %v13252_v26 = vld [vmem:[#allocation144_spill] sm:$0xff] }
 0x2ee   : > { %v3420_v4 = vadd.f32 %v3388_v13, %v3260_v30  ;;  %v2782_v25 = vmul.f32 %v13247_v45, %v2750_v58  ;;  %v2910_v55 = vmul.f32 %v13248_v21, %v2878_v28  ;;  %v3070_v13 = vmul.f32 %v13250_v35, %v3038_v17  ;;  %v13251_v30 = vld [vmem:[#allocation169_spill] sm:$0xff] }
 0x2ef   : > { %v2585_v24 = vpop.f32.mrf.mxu2  ;;  %v2354_v49 = vadd.f32 %v10769_v29, %v13251_v30  ;;  %v2444_v58 = vadd.f32 %v10791_v63, %v2395_v22  ;;  %v2491_v28 = vadd.f32 %v10950_v60, %v2442_v62  ;;  %v3358_v18 = vperm.slane %v10975_v61, 4 }
 0x2f0   : > { %v2586_v23 = vadd.f32 %v2585_v24, %v2537_v31  ;;  %v2634_v10 = vpop.f32.mrf.mxu3  ;;  %v3580_v0 = vadd.f32 %v3548_v15, %v3420_v4  ;;  %v2942_v37 = vadd.f32 %v2910_v55, %v2782_v25  ;;  %v3868_v27 = vmul.f32 %v13252_v26, %v3836_v5  ;;  %v13253_v4 = vld [vmem:[#allocation121_spill] sm:$0xff] }
 0x2f1   : > { %v11009_v15 = vadd.f32 %v10798_v47, %v2398_v16  ;;  %v3936_v17 = vadd.f32 %v10886_v51, %v3898_v12  ;;  %v3230_v25 = vmul.f32 %v13253_v4, %v3198_v50  ;;  %v3518_v29 = vperm.slane %v10975_v61, 5  ;;  %v13256_v50 = vld [vmem:[#allocation115_spill] sm:$0xff] }
 0x2f2   : > { %v11005_v46 = vadd.f32 %v2634_v10, %v2586_v23  ;;  %v3740_v32 = vadd.f32 %v3708_v33, %v3580_v0  ;;  %v3102_v31 = vadd.f32 %v3070_v13, %v2942_v37  ;;  %v2540_v55 = vadd.f32 %v10956_v39, %v2491_v28  ;;  %v13254_v37 = vld [vmem:[#allocation152_spill] sm:$0xff]  ;;  %v13255_v33 = vld [vmem:[#allocation117_spill] sm:$0xff]  ;;  %v2495_v0 = vpop.f32.mrf.mxu0 }
 0x2f3   : > { %v3390_v24 = vmul.f32 %v13254_v37, %v3358_v18  ;;  %v3678_v47 = vperm.slane %v10975_v61, 6  ;;  %v3968_v30 = vmax.f32 %v3936_v17, 0.0  ;;  %v13257_v39 = vld [vmem:[#allocation129_spill] sm:$0xff] }
 0x2f4   : > { %v3900_v63 = vadd.f32 %v3868_v27, %v3740_v32  ;;  %v2752_v60 = vperm.slane %v11005_v46, 0  ;;  %v2880_v62 = vperm.slane %v11005_v46, 1  ;;  %v3040_v22 = vperm.slane %v11005_v46, 2 }
 0x2f5   : > { %v3262_v5 = vadd.f32 %v3230_v25, %v3102_v31  ;;  %v3200_v10 = vperm.slane %v11005_v46, 3  ;;  %v3360_v32 = vperm.slane %v11005_v46, 4  ;;  %v3550_v28 = vmul.f32 %v13257_v39, %v3518_v29  ;;  %v2544_v31 = vpop.f32.mrf.mxu1 }
 0x2f6   : > { %v3938_v16 = vadd.f32 %v10886_v51, %v3900_v63  ;;  %v2784_v12 = vmul.f32 %v13255_v33, %v2752_v60  ;;  %v2912_v23 = vmul.f32 %v13256_v50, %v2880_v62  ;;  %v13258_v63 = vld [vmem:[#allocation122_spill] sm:$0xff]  ;;  %v3520_v60 = vperm.slane %v11005_v46, 5 }
 0x2f7   : > { %v2588_v13 = vpop.f32.mrf.mxu2  ;;  %v3422_v27 = vadd.f32 %v3390_v24, %v3262_v5  ;;  %v3072_v26 = vmul.f32 %v13258_v63, %v3040_v22  ;;  %v3710_v50 = vmul.f32 %v13105_v3, %v3678_v47  ;;  %v3838_v33 = vperm.slane %v10975_v61, 7  ;;  %v13259_v24 = vld [vmem:[#allocation120_spill] sm:$0xff] }
 0x2f8   : > { %v2589_v18 = vadd.f32 %v2588_v13, %v2540_v55  ;;  %v2637_v25 = vpop.f32.mrf.mxu3  ;;  %v3970_v37 = vmax.f32 %v3938_v16, 0.0  ;;  %v2944_v4 = vadd.f32 %v2912_v23, %v2784_v12  ;;  %v3232_v29 = vmul.f32 %v13259_v24, %v3200_v10 }
 0x2f9   : > { %v3582_v62 = vadd.f32 %v3550_v28, %v3422_v27  ;;  %v2493_v55 = vadd.f32 %v10984_v44, %v2444_v58  ;;  %v3392_v16 = vmul.f32 %v10225_v36, %v3360_v32  ;;  %v3680_v12 = vperm.slane %v11005_v46, 6 }
 0x2fa   : > { %v11030_v17 = vadd.f32 %v2637_v25, %v2589_v18  ;;  %v3996_v35 = vpack.c.bf16 %v3970_v37, %v3968_v30  ;;  %v3104_v5 = vadd.f32 %v3072_v26, %v2944_v4  ;;  %v2400_v26 = vadd.f32 %v10802_v41, %v10944_v57  ;;  %v13261_v30 = vld [vmem:[#allocation95_spill] sm:$0xff] }
 0x2fb   : > { %v3742_v22 = vadd.f32 %v3710_v50, %v3582_v62  ;;  %v2542_v4 = vadd.f32 %v10991_v11, %v2493_v55  ;;  %v3552_v44 = vmul.f32 %v13104_v7, %v3520_v60  ;;  %v3870_v58 = vmul.f32 %v13110_v42, %v3838_v33  ;;  %v13262_v33 = vld [vmem:[#allocation138_spill] sm:$0xff]  ;;  %v2497_v55 = vpop.f32.mrf.mxu0 }
 0x2fc   : > { %4202 = vmatmul.bf16.gmra.mxu1 %v3996_v35  ;;  %v3264_v23 = vadd.f32 %v3232_v29, %v3104_v5  ;;  %v2754_v13 = vperm.slane %v11030_v17, 0  ;;  %v2882_v47 = vperm.slane %v11030_v17, 1  ;;  %v3042_v61 = vperm.slane %v11030_v17, 2  ;;  %v13260_v35 = vld [vmem:[#allocation23_spill] sm:$0xff] }
 0x2fd   : > { %v3840_v50 = vperm.slane %v11005_v46, 7  ;;  %v2403_v27 = vadd.f32 %v10808_v20, %v2354_v49  ;;  %v3712_v18 = vmul.f32 %v13106_v54, %v3680_v12  ;;  %v3902_v25 = vadd.f32 %v3870_v58, %v3742_v22  ;;  %v13263_v29 = vld [vmem:[#allocation127_spill] sm:$0xff]  ;;  %v2546_v12 = vpop.f32.mrf.mxu1 }
 0x2fe   : > { %v3424_v37 = vadd.f32 %v3392_v16, %v3264_v23  ;;  %v2786_v10 = vmul.f32 %v13260_v35, %v2754_v13  ;;  %v2914_v32 = vmul.f32 %v13261_v30, %v2882_v47  ;;  %v3202_v41 = vperm.slane %v11030_v17, 3  ;;  %v13264_v13 = vld [vmem:[#allocation24_spill] sm:$0xff] }
 0x2ff   : > { %v2590_v28 = vpop.f32.mrf.mxu2  ;;  %v3074_v5 = vmul.f32 %v13262_v33, %v3042_v61  ;;  %v2356_v46 = vadd.f32 %v10779_v14, %v13263_v29  ;;  %v2449_v16 = vadd.f32 %v10804_v48, %v2400_v26  ;;  %v2496_v20 = vadd.f32 %v2495_v0, %v11009_v15  ;;  %v13265_v14 = vld [vmem:[#allocation135_spill] sm:$0xff] }
 0x300   : > { %v2591_v57 = vadd.f32 %v2590_v28, %v2542_v4  ;;  %v2639_v11 = vpop.f32.mrf.mxu3  ;;  %v3584_v60 = vadd.f32 %v3552_v44, %v3424_v37  ;;  %v2946_v62 = vadd.f32 %v2914_v32, %v2786_v10  ;;  %v3362_v49 = vperm.slane %v11030_v17, 4 }
 0x301   : > { %v3872_v47 = vmul.f32 %v13264_v13, %v3840_v50  ;;  %v11060_v44 = vadd.f32 %v10810_v19, %v2403_v27  ;;  %v3940_v61 = vadd.f32 %v10886_v51, %v3902_v25  ;;  %v3234_v58 = vmul.f32 %v13265_v14, %v3202_v41  ;;  %v13266_v50 = vld [vmem:[#allocation143_spill] sm:$0xff]  ;;  %v13268_v41 = vld [vmem:[#allocation33_spill] sm:$0xff] }
 0x302   : > { %v11056_v22 = vadd.f32 %v2639_v11, %v2591_v57  ;;  %v3744_v23 = vadd.f32 %v3712_v18, %v3584_v60  ;;  %v3106_v4 = vadd.f32 %v3074_v5, %v2946_v62  ;;  %v3522_v48 = vperm.slane %v11030_v17, 5  ;;  %v13267_v18 = vld [vmem:[#allocation22_spill] sm:$0xff] }
 0x303   : > { %v2545_v10 = vadd.f32 %v2544_v31, %v2496_v20  ;;  %v3394_v28 = vmul.f32 %v13266_v50, %v3362_v49  ;;  %v3682_v19 = vperm.slane %v11030_v17, 6  ;;  %v3972_v62 = vmax.f32 %v3940_v61, 0.0 }
 0x304   : > { %v3904_v26 = vadd.f32 %v3872_v47, %v3744_v23  ;;  %v2756_v15 = vperm.slane %v11056_v22, 0  ;;  %v2884_v0 = vperm.slane %v11056_v22, 1  ;;  %v3044_v37 = vperm.slane %v11056_v22, 2  ;;  %v13269_v23 = vld [vmem:[#allocation141_spill] sm:$0xff] }
 0x305   : > { %v3266_v32 = vadd.f32 %v3234_v58, %v3106_v4  ;;  %v3204_v11 = vperm.slane %v11056_v22, 3  ;;  %v3364_v5 = vperm.slane %v11056_v22, 4  ;;  %v3554_v31 = vmul.f32 %v13269_v23, %v3522_v48  ;;  %v2500_v48 = vpop.f32.mrf.mxu0 }
 0x306   : > { %v3942_v27 = vadd.f32 %v10886_v51, %v3904_v26  ;;  %v2788_v25 = vmul.f32 %v13267_v18, %v2756_v15  ;;  %v2916_v57 = vmul.f32 %v13268_v41, %v2884_v0  ;;  %v3076_v58 = vmul.f32 %v13120_v40, %v3044_v37  ;;  %v13270_v18 = vld [vmem:[#allocation35_spill] sm:$0xff] }
 0x307   : > { %v2593_v60 = vpop.f32.mrf.mxu2  ;;  %v3426_v29 = vadd.f32 %v3394_v28, %v3266_v32  ;;  %v3524_v26 = vperm.slane %v11056_v22, 5  ;;  %v3714_v0 = vmul.f32 %v13270_v18, %v3682_v19  ;;  %v3842_v41 = vperm.slane %v11030_v17, 7 }
 0x308   : > { %v2594_v20 = vadd.f32 %v2593_v60, %v2545_v10  ;;  %v2642_v47 = vpop.f32.mrf.mxu3  ;;  %v3974_v49 = vmax.f32 %v3942_v27, 0.0  ;;  %v2948_v4 = vadd.f32 %v2916_v57, %v2788_v25  ;;  %v3236_v32 = vmul.f32 %v13121_v2, %v3204_v11  ;;  %v2549_v25 = vpop.f32.mrf.mxu1  ;;  %v13272_v11 = vld [vmem:[#allocation77_spill] sm:$0xff] }
 0x309   : > { %v3586_v15 = vadd.f32 %v3554_v31, %v3426_v29  ;;  %v2498_v10 = vadd.f32 %v2497_v55, %v2449_v16  ;;  %v3396_v28 = vmul.f32 %v13123_v53, %v3364_v5  ;;  %v3684_v27 = vperm.slane %v11056_v22, 6  ;;  %v13273_v55 = vld [vmem:[#allocation147_spill] sm:$0xff]  ;;  %v13278_v53 = vld [vmem:[#allocation34_spill] sm:$0xff] }
 0x30a   : > { %v11080_v50 = vadd.f32 %v2642_v47, %v2594_v20  ;;  %v3998_v61 = vpack.c.bf16 %v3974_v49, %v3972_v62  ;;  %v3108_v14 = vadd.f32 %v3076_v58, %v2948_v4  ;;  %v13271_v62 = vld [vmem:[#allocation51_spill] sm:$0xff]  ;;  %v3556_v20 = vmul.f32 %v13272_v11, %v3524_v26 }
 0x30b   : > { %v3746_v37 = vadd.f32 %v3714_v0, %v3586_v15  ;;  %v2405_v29 = vadd.f32 %v13271_v62, %v2356_v46  ;;  %v2547_v31 = vadd.f32 %v2546_v12, %v2498_v10  ;;  %v3874_v16 = vmul.f32 %v13273_v55, %v3842_v41  ;;  %v13274_v49 = vld [vmem:[#allocation27_spill] sm:$0xff]  ;;  %v13276_v15 = vld [vmem:[#allocation25_spill] sm:$0xff]  ;;  %v13281_v62 = vld [vmem:[#allocation50_spill] sm:$0xff] }
 0x30c   : > { %4207 = vmatmul.bf16.gmra.mxu1 %v3998_v61  ;;  %v3268_v57 = vadd.f32 %v3236_v32, %v3108_v14  ;;  %v2758_v19 = vperm.slane %v11080_v50, 0  ;;  %v2886_v17 = vperm.slane %v11080_v50, 1  ;;  %v3046_v60 = vperm.slane %v11080_v50, 2  ;;  %v13275_v58 = vld [vmem:[#allocation151_spill] sm:$0xff]  ;;  %v13277_v0 = vld [vmem:[#allocation37_spill] sm:$0xff] }
 0x30d   : > { %v3844_v47 = vperm.slane %v11056_v22, 7  ;;  %v2359_v61 = vadd.f32 %v13277_v0, %v13276_v15  ;;  %v3716_v2 = vmul.f32 %v13278_v53, %v3684_v27  ;;  %v3906_v40 = vadd.f32 %v3874_v16, %v3746_v37  ;;  %v13280_v22 = vld [vmem:[#allocation47_spill] sm:$0xff]  ;;  %v13283_v37 = vld [vmem:[#allocation28_spill] sm:$0xff] }
 0x30e   : > { %v3428_v5 = vadd.f32 %v3396_v28, %v3268_v57  ;;  %v2790_v4 = vmul.f32 %v13274_v49, %v2758_v19  ;;  %v2918_v14 = vmul.f32 %v13275_v58, %v2886_v17  ;;  %v3206_v46 = vperm.slane %v11080_v50, 3  ;;  %v13279_v28 = vld [vmem:[#allocation149_spill] sm:$0xff] }
 0x30f   : > { %v2595_v32 = vpop.f32.mrf.mxu2  ;;  %v3078_v57 = vmul.f32 %v13279_v28, %v3046_v60  ;;  %v2361_v19 = vadd.f32 %v13281_v62, %v13280_v22  ;;  %v13282_v49 = vld [vmem:[#allocation81_spill] sm:$0xff]  ;;  %v2501_v58 = vadd.f32 %v2500_v48, %v11060_v44  ;;  %v3366_v15 = vperm.slane %v11080_v50, 4  ;;  %v13290_v28 = vld [vmem:[#allocation148_spill] sm:$0xff] }
 0x310   : > { %v2596_v12 = vadd.f32 %v2595_v32, %v2547_v31  ;;  %v2644_v26 = vpop.f32.mrf.mxu3  ;;  %v3588_v10 = vadd.f32 %v3556_v20, %v3428_v5  ;;  %v2950_v41 = vadd.f32 %v2918_v14, %v2790_v4  ;;  %v2454_v17 = vadd.f32 %v13282_v49, %v2405_v29  ;;  %v13284_v32 = vld [vmem:[#allocation52_spill] sm:$0xff]  ;;  %v13285_v60 = vld [vmem:[#allocation161_spill] sm:$0xff]  ;;  %v2502_v49 = vpop.f32.mrf.mxu0 }
 0x311   : > { %v3876_v16 = vmul.f32 %v13283_v37, %v3844_v47  ;;  %v2408_v20 = vadd.f32 %v13284_v32, %v2359_v61  ;;  %v3944_v5 = vadd.f32 %v10886_v51, %v3906_v40  ;;  %v3238_v4 = vmul.f32 %v13285_v60, %v3206_v46  ;;  %v13286_v47 = vld [vmem:[#allocation31_spill] sm:$0xff]  ;;  %v13287_v46 = vld [vmem:[#allocation26_spill] sm:$0xff] }
 0x312   : > { %v11104_v0 = vadd.f32 %v2644_v26, %v2596_v12  ;;  %v3748_v27 = vadd.f32 %v3716_v2, %v3588_v10  ;;  %v3110_v31 = vadd.f32 %v3078_v57, %v2950_v41  ;;  %v3526_v14 = vperm.slane %v11080_v50, 5  ;;  %v2551_v10 = vpop.f32.mrf.mxu1  ;;  %v13288_v57 = vld [vmem:[#allocation150_spill] sm:$0xff] }
 0x313   : > { %v2550_v2 = vadd.f32 %v2549_v25, %v2501_v58  ;;  %v3398_v26 = vmul.f32 %v13286_v47, %v3366_v15  ;;  %v3686_v61 = vperm.slane %v11080_v50, 6  ;;  %v3976_v32 = vmax.f32 %v3944_v5, 0.0  ;;  %v13289_v25 = vld [vmem:[#allocation154_spill] sm:$0xff] }
 0x314   : > { %v3908_v22 = vadd.f32 %v3876_v16, %v3748_v27  ;;  %v2760_v29 = vperm.slane %v11104_v0, 0  ;;  %v2888_v44 = vperm.slane %v11104_v0, 1  ;;  %v3048_v48 = vperm.slane %v11104_v0, 2 }
 0x315   : > { %v3270_v12 = vadd.f32 %v3238_v4, %v3110_v31  ;;  %v3208_v27 = vperm.slane %v11104_v0, 3  ;;  %v3368_v60 = vperm.slane %v11104_v0, 4  ;;  %v3558_v58 = vmul.f32 %v13289_v25, %v3526_v14 }
 0x316   : > { %v3946_v40 = vadd.f32 %v10886_v51, %v3908_v22  ;;  %v2792_v41 = vmul.f32 %v13287_v46, %v2760_v29  ;;  %v2920_v62 = vmul.f32 %v13288_v57, %v2888_v44  ;;  %v3080_v53 = vmul.f32 %v13290_v28, %v3048_v48  ;;  %v13291_v46 = vld [vmem:[#allocation157_spill] sm:$0xff] }
 0x317   : > { %v2598_v16 = vpop.f32.mrf.mxu2  ;;  %v3430_v37 = vadd.f32 %v3398_v26, %v3270_v12  ;;  %v3528_v22 = vperm.slane %v11104_v0, 5  ;;  %v3718_v44 = vmul.f32 %v13291_v46, %v3686_v61  ;;  %v3846_v57 = vperm.slane %v11080_v50, 7  ;;  %v13292_v12 = vld [vmem:[#allocation38_spill] sm:$0xff] }
 0x318   : > { %v2599_v31 = vadd.f32 %v2598_v16, %v2550_v2  ;;  %v2647_v15 = vpop.f32.mrf.mxu3  ;;  %v3978_v4 = vmax.f32 %v3946_v40, 0.0  ;;  %v2952_v47 = vadd.f32 %v2920_v62, %v2792_v41  ;;  %v3240_v26 = vmul.f32 %v13292_v12, %v3208_v27  ;;  %v13293_v2 = vld [vmem:[#allocation30_spill] sm:$0xff]  ;;  %v13294_v62 = vld [vmem:[#allocation53_spill] sm:$0xff]  ;;  %v13296_v27 = vld [vmem:[#allocation71_spill] sm:$0xff] }
 0x319   : > { %v3590_v29 = vadd.f32 %v3558_v58, %v3430_v37  ;;  %v2503_v14 = vadd.f32 %v2502_v49, %v2454_v17  ;;  %v3400_v16 = vmul.f32 %v13293_v2, %v3368_v60  ;;  %v3688_v40 = vperm.slane %v11104_v0, 6  ;;  %v13300_v2 = vld [vmem:[#allocation156_spill] sm:$0xff] }
 0x31a   : > { %v11126_v11 = vadd.f32 %v2647_v15, %v2599_v31  ;;  %v4000_v5 = vpack.c.bf16 %v3978_v4, %v3976_v32  ;;  %v3112_v55 = vadd.f32 %v3080_v53, %v2952_v47  ;;  %v2410_v58 = vadd.f32 %v13294_v62, %v2361_v19  ;;  %v13295_v53 = vld [vmem:[#allocation153_spill] sm:$0xff]  ;;  %v13297_v31 = vld [vmem:[#allocation40_spill] sm:$0xff]  ;;  %v13298_v4 = vld [vmem:[#allocation74_spill] sm:$0xff] }
 0x31b   : > { %v3750_v41 = vadd.f32 %v3718_v44, %v3590_v29  ;;  %v2552_v32 = vadd.f32 %v2551_v10, %v2503_v14  ;;  %v3560_v47 = vmul.f32 %v13295_v53, %v3528_v22  ;;  %v3878_v17 = vmul.f32 %v13296_v27, %v3846_v57  ;;  %v2505_v29 = vpop.f32.mrf.mxu0  ;;  %v13299_v44 = vld [vmem:[#allocation170_spill] sm:$0xff]  ;;  %v2554_v10 = vpop.f32.mrf.mxu1 }
 0x31c   : > { %4212 = vmatmul.bf16.gmra.mxu1 %v4000_v5  ;;  %v3272_v48 = vadd.f32 %v3240_v26, %v3112_v55  ;;  %v2762_v37 = vperm.slane %v11126_v11, 0  ;;  %v2890_v61 = vperm.slane %v11126_v11, 1  ;;  %v3050_v50 = vperm.slane %v11126_v11, 2  ;;  %v13302_v62 = vld [vmem:[#allocation54_spill] sm:$0xff] }
 0x31d   : > { %v3848_v60 = vperm.slane %v11104_v0, 7  ;;  %v2457_v5 = vadd.f32 %v13299_v44, %v2408_v20  ;;  %v3720_v12 = vmul.f32 %v13300_v2, %v3688_v40  ;;  %v3910_v28 = vadd.f32 %v3878_v17, %v3750_v41  ;;  %v13303_v44 = vld [vmem:[#allocation83_spill] sm:$0xff]  ;;  %v13304_v2 = vld [vmem:[#allocation165_spill] sm:$0xff] }
 0x31e   : > { %v3432_v49 = vadd.f32 %v3400_v16, %v3272_v48  ;;  %v2794_v15 = vmul.f32 %v13297_v31, %v2762_v37  ;;  %v2922_v55 = vmul.f32 %v13298_v4, %v2890_v61  ;;  %v3210_v19 = vperm.slane %v11126_v11, 3  ;;  %v13301_v48 = vld [vmem:[#allocation159_spill] sm:$0xff] }
 0x31f   : > { %v2600_v26 = vpop.f32.mrf.mxu2  ;;  %v3082_v0 = vmul.f32 %v13301_v48, %v3050_v50  ;;  %v2459_v37 = vadd.f32 %v13302_v62, %v2410_v58  ;;  %v3370_v61 = vperm.slane %v11126_v11, 4  ;;  %v3880_v31 = vmul.f32 %v13303_v44, %v3848_v60 }
 0x320   : > { %v2601_v22 = vadd.f32 %v2600_v26, %v2552_v32  ;;  %v2649_v14 = vpop.f32.mrf.mxu3  ;;  %v3592_v57 = vadd.f32 %v3560_v47, %v3432_v49  ;;  %v2954_v16 = vadd.f32 %v2922_v55, %v2794_v15  ;;  %v2506_v41 = vadd.f32 %v2505_v29, %v2457_v5 }
 0x321   : > { %v3948_v17 = vadd.f32 %v10886_v51, %v3910_v28  ;;  %v3242_v32 = vmul.f32 %v13304_v2, %v3210_v19  ;;  %v3530_v47 = vperm.slane %v11126_v11, 5  ;;  %v3690_v60 = vperm.slane %v11126_v11, 6  ;;  %v13306_v28 = vld [vmem:[#allocation39_spill] sm:$0xff]  ;;  %v13307_v19 = vld [vmem:[#allocation160_spill] sm:$0xff] }
 0x322   : > { %v11146_v4 = vadd.f32 %v2649_v14, %v2601_v22  ;;  %v3752_v20 = vadd.f32 %v3720_v12, %v3592_v57  ;;  %v3114_v40 = vadd.f32 %v3082_v0, %v2954_v16  ;;  %v2555_v55 = vadd.f32 %v2554_v10, %v2506_v41  ;;  %v13305_v12 = vld [vmem:[#allocation163_spill] sm:$0xff] }
 0x323   : > { %v3402_v22 = vmul.f32 %v13305_v12, %v3370_v61  ;;  %v3980_v16 = vmax.f32 %v3948_v17, 0.0  ;;  %v13309_v12 = vld [vmem:[#allocation36_spill] sm:$0xff]  ;;  %v2507_v44 = vpop.f32.mrf.mxu0  ;;  %v2556_v17 = vpop.f32.mrf.mxu1 }
 0x324   : > { %v3912_v49 = vadd.f32 %v3880_v31, %v3752_v20  ;;  %v2764_v50 = vperm.slane %v11146_v4, 0  ;;  %v2892_v58 = vperm.slane %v11146_v4, 1  ;;  %v3052_v15 = vperm.slane %v11146_v4, 2  ;;  %v13308_v20 = vld [vmem:[#allocation173_spill] sm:$0xff] }
 0x325   : > { %v3274_v26 = vadd.f32 %v3242_v32, %v3114_v40  ;;  %v3212_v31 = vperm.slane %v11146_v4, 3  ;;  %v3372_v0 = vperm.slane %v11146_v4, 4  ;;  %v3562_v10 = vmul.f32 %v13308_v20, %v3530_v47  ;;  %v13311_v47 = vld [vmem:[#allocation164_spill] sm:$0xff] }
 0x326   : > { %v3950_v29 = vadd.f32 %v10886_v51, %v3912_v49  ;;  %v2796_v5 = vmul.f32 %v13306_v28, %v2764_v50  ;;  %v2924_v14 = vmul.f32 %v13307_v19, %v2892_v58  ;;  %v3084_v2 = vmul.f32 %v13309_v12, %v3052_v15  ;;  %v13310_v28 = vld [vmem:[#allocation171_spill] sm:$0xff] }
 0x327   : > { %v2603_v57 = vpop.f32.mrf.mxu2  ;;  %v3434_v62 = vadd.f32 %v3402_v22, %v3274_v26  ;;  %v3532_v49 = vperm.slane %v11146_v4, 5  ;;  %v3722_v58 = vmul.f32 %v13310_v28, %v3690_v60  ;;  %v3850_v19 = vperm.slane %v11126_v11, 7 }
 0x328   : > { %v2604_v40 = vadd.f32 %v2603_v57, %v2555_v55  ;;  %v2652_v41 = vpop.f32.mrf.mxu3  ;;  %v3982_v61 = vmax.f32 %v3950_v29, 0.0  ;;  %v2956_v32 = vadd.f32 %v2924_v14, %v2796_v5  ;;  %v3244_v55 = vmul.f32 %v13311_v47, %v3212_v31  ;;  %v13312_v29 = vld [vmem:[#allocation162_spill] sm:$0xff] }
 0x329   : > { %v3594_v50 = vadd.f32 %v3562_v10, %v3434_v62  ;;  %v2508_v57 = vadd.f32 %v2507_v44, %v2459_v37  ;;  %v3404_v5 = vmul.f32 %v13312_v29, %v3372_v0  ;;  %v3692_v15 = vperm.slane %v11146_v4, 6  ;;  %v13315_v44 = vld [vmem:[#allocation177_spill] sm:$0xff] }
 0x32a   : > { %v11167_v48 = vadd.f32 %v2652_v41, %v2604_v40  ;;  %v4002_v26 = vpack.c.bf16 %v3982_v61, %v3980_v16  ;;  %v3116_v22 = vadd.f32 %v3084_v2, %v2956_v32  ;;  %v13313_v41 = vld [vmem:[#allocation172_spill] sm:$0xff]  ;;  %v13314_v2 = vld [vmem:[#allocation167_spill] sm:$0xff]  ;;  %v3852_v37 = vperm.slane %v11146_v4, 7 }
 0x32b   : > { %v3754_v14 = vadd.f32 %v3722_v58, %v3594_v50  ;;  %v2557_v40 = vadd.f32 %v2556_v17, %v2508_v57  ;;  %v3564_v16 = vmul.f32 %v13313_v41, %v3532_v49  ;;  %v3882_v61 = vmul.f32 %v13314_v2, %v3850_v19  ;;  %v13316_v32 = vld [vmem:[#allocation175_spill] sm:$0xff]  ;;  %v13318_v49 = vld [vmem:[#allocation126_spill] sm:$0xff] }
 0x32c   : > { %4217 = vmatmul.bf16.gmra.mxu1 %v4002_v26  ;;  %v3276_v62 = vadd.f32 %v3244_v55, %v3116_v22  ;;  %v2766_v60 = vperm.slane %v11167_v48, 0  ;;  %v2894_v11 = vperm.slane %v11167_v48, 1  ;;  %v3054_v10 = vperm.slane %v11167_v48, 2  ;;  %v13317_v26 = vld [vmem:[#allocation168_spill] sm:$0xff] }
 0x32d   : > { %v3724_v22 = vmul.f32 %v13317_v26, %v3692_v15  ;;  %v3914_v55 = vadd.f32 %v3882_v61, %v3754_v14  ;;  %v3214_v29 = vperm.slane %v11167_v48, 3  ;;  %v3374_v19 = vperm.slane %v11167_v48, 4 }
 0x32e   : > { %v3436_v31 = vadd.f32 %v3404_v5, %v3276_v62  ;;  %v2798_v0 = vmul.f32 %v13315_v44, %v2766_v60  ;;  %v2926_v50 = vmul.f32 %v13316_v32, %v2894_v11  ;;  %v3086_v41 = vmul.f32 %v13318_v49, %v3054_v10  ;;  %v13319_v62 = vld [vmem:[#allocation41_spill] sm:$0xff] }
 0x32f   : > { %v2605_v58 = vpop.f32.mrf.mxu2  ;;  %v3884_v60 = vmul.f32 %v13319_v62, %v3852_v37  ;;  %v3952_v11 = vadd.f32 %v10886_v51, %v3914_v55  ;;  %v13320_v32 = vld [vmem:[#allocation45_spill] sm:$0xff]  ;;  %v3534_v14 = vperm.slane %v11167_v48, 5  ;;  %v13325_v62 = vld [vmem:[#allocation128_spill] sm:$0xff]  ;;  %v3854_v26 = vperm.slane %v11167_v48, 7 }
 0x330   : > { %v2606_v47 = vadd.f32 %v2605_v58, %v2557_v40  ;;  %v2654_v12 = vpop.f32.mrf.mxu3  ;;  %v3596_v17 = vadd.f32 %v3564_v16, %v3436_v31  ;;  %v2958_v57 = vadd.f32 %v2926_v50, %v2798_v0  ;;  %v3246_v15 = vmul.f32 %v13320_v32, %v3214_v29  ;;  %v13321_v0 = vld [vmem:[#allocation43_spill] sm:$0xff] }
 0x331   : > { %v3406_v10 = vmul.f32 %v13321_v0, %v3374_v19  ;;  %v3694_v50 = vperm.slane %v11167_v48, 6  ;;  %v13326_v19 = vld [vmem:[#allocation84_spill] sm:$0xff] }
 0x332   : > { %v2655_v5 = vadd.f32 %v2654_v12, %v2606_v47  ;;  %v3756_v4 = vadd.f32 %v3724_v22, %v3596_v17  ;;  %v3118_v44 = vadd.f32 %v3086_v41, %v2958_v57  ;;  %v13322_v47 = vld [vmem:[#allocation176_spill] sm:$0xff]  ;;  %v13323_v41 = vld [vmem:[#allocation174_spill] sm:$0xff]  ;;  %v3984_v17 = vmax.f32 %v3952_v11, 0.0 }
 0x333   : > { %v13324_v57 = vld [vmem:[#allocation48_spill] sm:$0xff]  ;;  %v3726_v0 = vmul.f32 %v13326_v19, %v3694_v50 }
 0x334   : > { %v3916_v61 = vadd.f32 %v3884_v60, %v3756_v4  ;;  %v2768_v40 = vperm.slane %v2655_v5, 0  ;;  %v2896_v58 = vperm.slane %v2655_v5, 1  ;;  %v3056_v16 = vperm.slane %v2655_v5, 2 }
 0x335   : > { %v3278_v31 = vadd.f32 %v3246_v15, %v3118_v44  ;;  %v3216_v55 = vperm.slane %v2655_v5, 3  ;;  %v3566_v32 = vmul.f32 %v13324_v57, %v3534_v14  ;;  %v3376_v44 = vperm.slane %v2655_v5, 4  ;;  %v13328_v14 = vld [vmem:[#allocation42_spill] sm:$0xff] }
 0x336   : > { %v3954_v12 = vadd.f32 %v10886_v51, %v3916_v61  ;;  %v2800_v37 = vmul.f32 %v13322_v47, %v2768_v40  ;;  %v2928_v22 = vmul.f32 %v13323_v41, %v2896_v58  ;;  %v3088_v49 = vmul.f32 %v13325_v62, %v3056_v16  ;;  %v13327_v40 = vld [vmem:[#allocation44_spill] sm:$0xff]  ;;  %v11198_v41 = vpop.f32.mrf.mxu0 }
 0x337   : > { %v3438_v29 = vadd.f32 %v3406_v10, %v3278_v31  ;;  %v3248_v47 = vmul.f32 %v13327_v40, %v3216_v55  ;;  %v3536_v58 = vperm.slane %v2655_v5, 5  ;;  %v3408_v31 = vmul.f32 %v13328_v14, %v3376_v44  ;;  %v4682_v44 = vld [vmem:[%s12507_s8 + $0x68] sm:$0xff] }
 0x338   : > { %v3986_v4 = vmax.f32 %v3954_v12, 0.0  ;;  %v2960_v60 = vadd.f32 %v2928_v22, %v2800_v37  ;;  %v3696_v10 = vperm.slane %v2655_v5, 6  ;;  %v3856_v50 = vperm.slane %v2655_v5, 7  ;;  %v13330_v22 = vld [vmem:[#allocation85_spill] sm:$0xff] }
 0x339   : > { %v3598_v15 = vadd.f32 %v3566_v32, %v3438_v29  ;;  %v13329_v32 = vld [vmem:[#allocation46_spill] sm:$0xff]  ;;  %v3886_v48 = vmul.f32 %v13330_v22, %v3854_v26  ;;  %v4684_v5 = vld [vmem:[%s12507_s8 + $0x78] sm:$0xff] }
 0x33a   : > { %v4004_v61 = vpack.c.bf16 %v3986_v4, %v3984_v17  ;;  %v3120_v2 = vadd.f32 %v3088_v49, %v2960_v60  ;;  %v3568_v37 = vmul.f32 %v13329_v32, %v3536_v58  ;;  %v13331_v49 = vld [vmem:[#allocation18_spill] sm:$0xff]  ;;  %v13332_v60 = vld [vmem:[#allocation49_spill] sm:$0xff]  ;;  %4925 = vmatpush.msrb.mxu3 %v4684_v5 }
 0x33b   : > { %v3758_v16 = vadd.f32 %v3726_v0, %v3598_v15  ;;  %v3728_v29 = vmul.f32 %v13331_v49, %v3696_v10  ;;  %v3888_v40 = vmul.f32 %v13332_v60, %v3856_v50  ;;  %v4683_v0 = vld [vmem:[%s12507_s8 + $0x70] sm:$0xff]  ;;  %v4681_v26 = vld [vmem:[%s12507_s8 + $0x60] sm:$0xff]  ;;  %v4680_v58 = vld [vmem:[%s12507_s8 + $0x58] sm:$0xff] }
 0x33c   : > { %4222 = vmatmul.bf16.gmra.mxu1 %v4004_v61  ;;  %v3280_v11 = vadd.f32 %v3248_v47, %v3120_v2  ;;  %8205 = vmatpush.msrb.mxu2 %v4683_v0  ;;  %v4678_v10 = vld [vmem:[%s12507_s8 + $0x48] sm:$0xff]  ;;  %v673_v50 = vld [vmem:[%s11233_s1] sm:$0xff] }
 0x33d   : > { %v3918_v55 = vadd.f32 %v3886_v48, %v3758_v16  ;;  %4860 = vmatpush.msrb.mxu1 %v4683_v0  ;;  %4926 = vmatpush.msrb.mxu3 %v4682_v44  ;;  %v677_v48 = vld [vmem:[%s11233_s1 + $0x20] sm:$0xff]  ;;  %v4670_v0 = vld [vmem:[%s12507_s8 + $0x8] sm:$0xff] }
 0x33e   : > { %v3440_v12 = vadd.f32 %v3408_v31, %v3280_v11  ;;  %v11216_v47 = vpop.f32.mrf.mxu0  ;;  %v4677_v31 = vld [vmem:[%s12507_s8 + $0x40] sm:$0xff]  ;;  %8206 = vmatpush.msrb.mxu2 %v4681_v26  ;;  %4688 = vperm.xlu1 %8671, %v673_v50   ;;  %v674_v5 = vld [vmem:[%s11233_s1 + $0x8] sm:$0xff] }
 0x33f   : > { %v3956_v2 = vadd.f32 %v10886_v51, %v3918_v55  ;;  %4861 = vmatpush.msrb.mxu1 %v4681_v26  ;;  %4927 = vmatpush.msrb.mxu3 %v4680_v58  ;;  %v4671_v55 = vld [vmem:[%s12507_s8 + $0x10] sm:$0xff] }
 0x340   : > { %v3600_v17 = vadd.f32 %v3568_v37, %v3440_v12  ;;  %v4675_v12 = vld [vmem:[%s12507_s8 + $0x30] sm:$0xff]  ;;  %v4676_v37 = vld [vmem:[%s12507_s8 + $0x38] sm:$0xff]  ;;  %4708 = vperm.xlu0 %8673, %v677_v48  }
 0x341   : > { %4928 = vmatpush.msrb.mxu3 %v4678_v10 }
 0x342   : > { %v3760_v4 = vadd.f32 %v3728_v29, %v3600_v17  ;;  %v4673_v17 = vld [vmem:[%s12507_s8 + $0x20] sm:$0xff]  ;;  %v4674_v29 = vld [vmem:[%s12507_s8 + $0x28] sm:$0xff] }
 0x343   : > { %4929 = vmatpush.msrb.mxu3 %v4676_v37 }
 0x344   : > { %v3920_v61 = vadd.f32 %v3888_v40, %v3760_v4  ;;  %v4679_v40 = vld [vmem:[%s12507_s8 + $0x50] sm:$0xff]  ;;  %v4672_v4 = vld [vmem:[%s12507_s8 + $0x18] sm:$0xff] }
 0x345   : > { %4862 = vmatpush.msrb.mxu1 %v4679_v40  ;;  %8207 = vmatpush.msrb.mxu2 %v4679_v40  ;;  %v679_v40 = vld [vmem:[%s11233_s1 + $0x30] sm:$0xff] }
 0x346   : > { %v3958_v15 = vadd.f32 %v10886_v51, %v3920_v61  ;;  %v3988_v51 = vmax.f32 %v3956_v2, 0.0  ;;  %v4149_v61 = vpop.f32.mrf.mxu0  ;;  %4930 = vmatpush.msrb.mxu3 %v4674_v29  ;;  %v4669_v2 = vld [vmem:[%s12507_s8] sm:$0xff]  ;;  %4693 = vperm.xlu1 %8671, %v674_v5  }
 0x347   : > { %4863 = vmatpush.msrb.mxu1 %v4677_v31  ;;  %8208 = vmatpush.msrb.mxu2 %v4677_v31  ;;  %v13333_v31 = vld [vmem:[#allocation108_spill] sm:$0xff] }
 0x348   : > { %v3990_v11 = vmax.f32 %v3958_v15, 0.0  ;;  %4931 = vmatpush.msrb.mxu3 %v4672_v4 }
 0x349   : > { %4864 = vmatpush.msrb.mxu1 %v4675_v12  ;;  %8209 = vmatpush.msrb.mxu2 %v4675_v12 }
 0x34a   : > { %v4006_v16 = vpack.c.bf16 %v3990_v11, %v3988_v51  ;;  %4932 = vmatpush.msrb.mxu3 %v4670_v0  ;;  %v13336_v0 = vld [vmem:[#allocation94_spill] sm:$0xff] }
 0x34b   : > { %4865 = vmatpush.msrb.mxu1 %v4673_v17  ;;  %8210 = vmatpush.msrb.mxu2 %v4673_v17  ;;  %v13335_v17 = vld [vmem:[#allocation90_spill] sm:$0xff] }
 0x34c   : > { %4227 = vmatmul.bf16.gmra.mxu1 %v4006_v16  ;;  %v13334_v16 = vld [vmem:[#allocation107_spill] sm:$0xff] }
 0x34d   : > { %4866 = vmatpush.msrb.mxu1 %v4671_v55  ;;  %8211 = vmatpush.msrb.mxu2 %v4671_v55 }
 0x34e   : > { %v11268_v26 = vpop.f32.mrf.mxu0  ;;  %4718 = vperm.xlu1 %8671, %v679_v40   ;;  %v13337_v40 = vld [vmem:[#allocation87_spill] sm:$0xff] }
 0x34f   : > { %4867 = vmatpush.msrb.mxu1 %v4669_v2  ;;  %8212 = vmatpush.msrb.mxu2 %v4669_v2 }
 0x356   : > { %v11278_v60 = vpop.f32.mrf.mxu0 }
 0x359   : > { %v4193_v44 = vpop.f32.mrf.mxu1 }
 0x35a   : > { %v4194_v15 = vadd.f32 %v4193_v44, %v11198_v41  ;;  %v680_v44 = vld [vmem:[%s11233_s1 + $0x38] sm:$0xff] }
 0x35b   : > { %4723 = vperm.xlu1 %8671, %v680_v44  }
 0x35c   : > { %v4233_v58 = vperm.slane %v4194_v15, 0  ;;  %v4265_v51 = vperm.slane %v4194_v15, 1  ;;  %v4313_v11 = vperm.slane %v4194_v15, 2  ;;  %v4361_v37 = vperm.slane %v4194_v15, 3 }
 0x35d   : > { %v4409_v50 = vperm.slane %v4194_v15, 4  ;;  %v4457_v4 = vperm.slane %v4194_v15, 5 }
 0x35e   : > { %v4249_v10 = vmul.f32 %v13333_v31, %v4233_v58  ;;  %v4281_v12 = vmul.f32 %v13334_v16, %v4265_v51  ;;  %v4329_v29 = vmul.f32 %v13335_v17, %v4313_v11  ;;  %v4377_v5 = vmul.f32 %v13336_v0, %v4361_v37  ;;  %v13338_v17 = vld [vmem:[#allocation124_spill] sm:$0xff] }
 0x35f   : > { %v4425_v49 = vmul.f32 %v13337_v40, %v4409_v50  ;;  %v4505_v58 = vperm.slane %v4194_v15, 6  ;;  %v4473_v11 = vmul.f32 %v13204_v56, %v4457_v4  ;;  %v13341_v4 = vld [vmem:[#allocation93_spill] sm:$0xff] }
 0x360   : > { %v4297_v48 = vadd.f32 %v4281_v12, %v4249_v10  ;;  %v4553_v10 = vperm.slane %v4194_v15, 7 }
 0x361   : > { %v4195_v55 = vpop.f32.mrf.mxu1  ;;  %v4521_v14 = vmul.f32 %v13206_v59, %v4505_v58  ;;  %v13342_v59 = vld [vmem:[#allocation86_spill] sm:$0xff] }
 0x362   : > { %v4196_v2 = vadd.f32 %v4195_v55, %v11216_v47  ;;  %v4345_v41 = vadd.f32 %v4329_v29, %v4297_v48  ;;  %v13339_v48 = vld [vmem:[#allocation119_spill] sm:$0xff] }
 0x364   : > { %v4234_v31 = vperm.slane %v4196_v2, 0  ;;  %v4266_v51 = vperm.slane %v4196_v2, 1  ;;  %v4393_v16 = vadd.f32 %v4377_v5, %v4345_v41  ;;  %v4314_v32 = vperm.slane %v4196_v2, 2  ;;  %v13340_v41 = vld [vmem:[#allocation96_spill] sm:$0xff] }
 0x365   : > { %v4362_v37 = vperm.slane %v4196_v2, 3  ;;  %v4410_v55 = vperm.slane %v4196_v2, 4  ;;  %v4569_v5 = vmul.f32 %v13340_v41, %v4553_v10  ;;  %v4458_v44 = vperm.slane %v4196_v2, 5 }
 0x366   : > { %v4441_v12 = vadd.f32 %v4425_v49, %v4393_v16  ;;  %v4250_v47 = vmul.f32 %v13338_v17, %v4234_v31  ;;  %v4282_v29 = vmul.f32 %v13339_v48, %v4266_v51  ;;  %v4330_v40 = vmul.f32 %v13205_v1, %v4314_v32  ;;  %v11292_v49 = vld [vmem:[%s12506_s7] ss:$0 sm:$0xff] }
 0x367   : > { %v4378_v31 = vmul.f32 %v13341_v4, %v4362_v37  ;;  %v4426_v58 = vmul.f32 %v13342_v59, %v4410_v55  ;;  %v4506_v51 = vperm.slane %v4196_v2, 6  ;;  %v4554_v10 = vperm.slane %v4196_v2, 7  ;;  %v13345_v55 = vld [vmem:[#allocation20_spill] sm:$0xff]  ;;  %v13348_v59 = vld [vmem:[#allocation58_spill] sm:$0xff] }
 0x368   : > { %v4489_v0 = vadd.f32 %v4473_v11, %v4441_v12  ;;  %v4298_v50 = vadd.f32 %v4282_v29, %v4250_v47  ;;  %v13344_v29 = vld [vmem:[#allocation131_spill] sm:$0xff]  ;;  %v8905_v4 = vmov 0.0  }
 0x369   : > { %v4198_v22 = vpop.f32.mrf.mxu1 }
 0x36a   : > { %v11287_v62 = vadd.f32 %v4198_v22, %v4149_v61  ;;  %v4537_v56 = vadd.f32 %v4521_v14, %v4489_v0  ;;  %v4346_v15 = vadd.f32 %v4330_v40, %v4298_v50  ;;  %v11298_v61 = vpop.f32.mrf.mxu0  ;;  %v13343_v14 = vld [vmem:[#allocation91_spill] sm:$0xff] }
 0x36b   : > { %v4474_v11 = vmul.f32 %v13343_v14, %v4458_v44  ;;  %v13346_v50 = vld [vmem:[#allocation59_spill] sm:$0xff]  ;;  %v13347_v44 = vld [vmem:[#allocation97_spill] sm:$0xff] }
 0x36c   : > { %v4585_v1 = vadd.f32 %v4569_v5, %v4537_v56  ;;  %v4394_v32 = vadd.f32 %v4378_v31, %v4346_v15  ;;  %v4235_v16 = vperm.slane %v11287_v62, 0  ;;  %v4267_v22 = vperm.slane %v11287_v62, 1 }
 0x36d   : > { %v4315_v12 = vperm.slane %v11287_v62, 2  ;;  %v4363_v17 = vperm.slane %v11287_v62, 3  ;;  %v4522_v40 = vmul.f32 %v13346_v50, %v4506_v51  ;;  %v4411_v41 = vperm.slane %v11287_v62, 4 }
 0x36e   : > { %v4605_v47 = vadd.f32 %v11292_v49, %v4585_v1  ;;  %v4442_v48 = vadd.f32 %v4426_v58, %v4394_v32  ;;  %v4251_v37 = vmul.f32 %v13344_v29, %v4235_v16  ;;  %v4283_v0 = vmul.f32 %v13345_v55, %v4267_v22  ;;  %v13349_v1 = vld [vmem:[#allocation98_spill] sm:$0xff] }
 0x36f   : > { %v4331_v56 = vmul.f32 %v13347_v44, %v4315_v12  ;;  %v4570_v58 = vmul.f32 %v13348_v59, %v4554_v10  ;;  %v4379_v51 = vmul.f32 %v13349_v1, %v4363_v17  ;;  %v4459_v32 = vperm.slane %v11287_v62, 5  ;;  %v13353_v59 = vld [vmem:[#allocation101_spill] sm:$0xff] }
 0x370   : > { %7834 = vmatmul.msk.f32.vlgmr.msrb.gmra.mxu1 %vm4803_vm0, %v4605_v47  ;;  %7850 = vmatmul.msk.f32.vlgmr.msrb.gmra.mxu3 %vm4803_vm0, %v4605_v47  ;;  %vm4621_vm1 = vcmp.eq.f32.partialorder %v4605_v47, 0.0  ;;  %v4490_v2 = vadd.f32 %v4474_v11, %v4442_v48  ;;  %v4299_v5 = vadd.f32 %v4283_v0, %v4251_v37  ;;  %v675_v11 = vld [vmem:[%s11233_s1 + $0x10] sm:$0xff]  ;;  %v13350_v48 = vld [vmem:[#allocation65_spill] sm:$0xff]  ;;  %v4507_v12 = vperm.slane %v11287_v62, 6 }
 0x371   : > { %v4200_v15 = vpop.f32.mrf.mxu1  ;;  %v7818_v31 = vsel %vm4621_vm1, 1.0, %v8905_v4  ;;  %v4427_v29 = vmul.f32 %v13350_v48, %v4411_v41  ;;  %4698 = vperm.xlu2 %8672, %v675_v11   ;;  %v4555_v0 = vperm.slane %v11287_v62, 7 }
 0x372   : > { %v11316_v16 = vadd.f32 %v4200_v15, %v11268_v26  ;;  %v5036_v22 = vmul.f32 -1e+30, %v7818_v31  ;;  %v4538_v14 = vadd.f32 %v4522_v40, %v4490_v2  ;;  %v4347_v47 = vadd.f32 %v4331_v56, %v4299_v5  ;;  %v13351_v5 = vld [vmem:[#allocation130_spill] sm:$0xff]  ;;  %v13352_v56 = vld [vmem:[#allocation64_spill] sm:$0xff]  ;;  %v11333_v31 = vpop.f32.mrf.mxu0 }
 0x373   : > { %v4475_v26 = vmul.f32 %v13220_v9, %v4459_v32 }
 0x374   : > { %5132 = vrot.lane.b32.xlu0 %v5036_v22, %s8906_s26  ;;  %v4586_v10 = vadd.f32 %v4570_v58, %v4538_v14  ;;  %v4395_v37 = vadd.f32 %v4379_v51, %v4347_v47  ;;  %v4236_v17 = vperm.slane %v11316_v16, 0  ;;  %v4268_v55 = vperm.slane %v11316_v16, 1  ;;  %v13354_v51 = vld [vmem:[#allocation63_spill] sm:$0xff]  ;;  %v13355_v14 = vld [vmem:[#allocation100_spill] sm:$0xff] }
 0x375   : > { %v4316_v50 = vperm.slane %v11316_v16, 2  ;;  %v4364_v40 = vperm.slane %v11316_v16, 3  ;;  %v4523_v58 = vmul.f32 %v13353_v59, %v4507_v12  ;;  %v4412_v9 = vperm.slane %v11316_v16, 4 }
 0x376   : > { %v11329_v41 = vadd.f32 %v11292_v49, %v4586_v10  ;;  %v4443_v2 = vadd.f32 %v4427_v29, %v4395_v37  ;;  %v4252_v44 = vmul.f32 %v13351_v5, %v4236_v17  ;;  %v4284_v15 = vmul.f32 %v13352_v56, %v4268_v55  ;;  %v13356_v10 = vld [vmem:[#allocation66_spill] sm:$0xff]  ;;  %v676_v17 = vld [vmem:[%s11233_s1 + $0x18] sm:$0xff] }
 0x377   : > { %v4332_v32 = vmul.f32 %v13354_v51, %v4316_v50  ;;  %v4571_v47 = vmul.f32 %v13355_v14, %v4555_v0  ;;  %v4460_v11 = vperm.slane %v11316_v16, 5  ;;  %v4380_v37 = vmul.f32 %v13356_v10, %v4364_v40  ;;  %v13357_v55 = vld [vmem:[#allocation21_spill] sm:$0xff] }
 0x378   : > { %7835 = vmatmul.msk.f32.vlgmr.msrb.gmra.mxu2 %vm4803_vm0, %v11329_v41  ;;  %7851 = vmatmul.msk.f32.gmra.mxu3 %vm4803_vm0, %v11329_v41  ;;  %v4491_v62 = vadd.f32 %v4475_v26, %v4443_v2  ;;  %v4300_v1 = vadd.f32 %v4284_v15, %v4252_v44  ;;  %v4428_v5 = vmul.f32 %v13357_v55, %v4412_v9  ;;  %v4508_v56 = vperm.slane %v11316_v16, 6  ;;  %v13358_v15 = vld [vmem:[#allocation132_spill] sm:$0xff]  ;;  %v13360_v9 = vld [vmem:[#allocation102_spill] sm:$0xff] }
 0x379   : > { %v4203_v22 = vpop.f32.mrf.mxu1  ;;  %4703 = vperm.xlu2 %8672, %v676_v17   ;;  %v4476_v0 = vmul.f32 %v13358_v15, %v4460_v11  ;;  %v4556_v59 = vperm.slane %v11316_v16, 7  ;;  %v13363_v17 = vld [vmem:[#allocation99_spill] sm:$0xff]  ;;  %vm4622_vm4 = vcmp.eq.f32.partialorder %v11329_v41, 0.0 }
 0x37a   : > { %v4204_v48 = vadd.f32 %v4203_v22, %v11278_v60  ;;  %v4539_v29 = vadd.f32 %v4523_v58, %v4491_v62  ;;  %v4348_v12 = vadd.f32 %v4332_v32, %v4300_v1  ;;  %v13359_v62 = vld [vmem:[#allocation103_spill] sm:$0xff]  ;;  %v13361_v22 = vld [vmem:[#allocation70_spill] sm:$0xff]  ;;  %v11362_v10 = vpop.f32.mrf.mxu0 }
 0x37b   : > { %v4524_v14 = vmul.f32 %v13361_v22, %v4508_v56  ;;  %v4572_v55 = vmul.f32 %v13363_v17, %v4556_v59  ;;  %v678_v15 = vld [vmem:[%s11233_s1 + $0x28] sm:$0xff] }
 0x37c   : > { %v4587_v26 = vadd.f32 %v4571_v47, %v4539_v29  ;;  %v4396_v2 = vadd.f32 %v4380_v37, %v4348_v12  ;;  %v4237_v50 = vperm.slane %v4204_v48, 0  ;;  %v4269_v44 = vperm.slane %v4204_v48, 1  ;;  %v13362_v29 = vld [vmem:[#allocation140_spill] sm:$0xff] }
 0x37d   : > { %v4317_v51 = vperm.slane %v4204_v48, 2  ;;  %v4365_v60 = vperm.slane %v4204_v48, 3  ;;  %v4413_v47 = vperm.slane %v4204_v48, 4  ;;  %v4509_v22 = vperm.slane %v4204_v48, 6 }
 0x37e   : > { %v11352_v58 = vadd.f32 %v11292_v49, %v4587_v26  ;;  %v4444_v40 = vadd.f32 %v4428_v5, %v4396_v2  ;;  %v4253_v1 = vmul.f32 %v13359_v62, %v4237_v50  ;;  %v4285_v32 = vmul.f32 %v13360_v9, %v4269_v44  ;;  %v13364_v50 = vld [vmem:[#allocation110_spill] sm:$0xff] }
 0x37f   : > { %v4333_v12 = vmul.f32 %v13362_v29, %v4317_v51  ;;  %v4461_v5 = vperm.slane %v4204_v48, 5  ;;  %v4381_v44 = vmul.f32 %v13364_v50, %v4365_v60  ;;  %v13365_v62 = vld [vmem:[#allocation106_spill] sm:$0xff]  ;;  %v4557_v29 = vperm.slane %v4204_v48, 7 }
 0x380   : > { %7836 = vmatmul.msk.f32.gmra.mxu2 %vm4803_vm0, %v11352_v58  ;;  %7852 = vmatmul.msk.f32.gmra.mxu3 %vm4803_vm0, %v11352_v58  ;;  %v4492_v16 = vadd.f32 %v4476_v0, %v4444_v40  ;;  %v4301_v11 = vadd.f32 %v4285_v32, %v4253_v1  ;;  %v4429_v9 = vmul.f32 %v13365_v62, %v4413_v47  ;;  %vm4623_vm2 = vcmp.eq.f32.partialorder %v11352_v58, 0.0 }
 0x381   : > { %v4205_v37 = vpop.f32.mrf.mxu1  ;;  %4713 = vperm.xlu2 %8672, %v678_v15   ;;  %v4477_v32 = vmul.f32 %v13240_v43, %v4461_v5  ;;  %v4525_v47 = vmul.f32 %v13242_v38, %v4509_v22 }
 0x382   : > { %v4206_v26 = vadd.f32 %v4205_v37, %v11298_v61  ;;  %v4540_v56 = vadd.f32 %v4524_v14, %v4492_v16  ;;  %v4349_v2 = vadd.f32 %v4333_v12, %v4301_v11  ;;  %v13366_v16 = vld [vmem:[#allocation73_spill] sm:$0xff]  ;;  %v13367_v11 = vld [vmem:[#allocation72_spill] sm:$0xff]  ;;  %v4164_v62 = vpop.f32.mrf.mxu0 }
 0x384   : > { %v4588_v0 = vadd.f32 %v4572_v55, %v4540_v56  ;;  %v4397_v40 = vadd.f32 %v4381_v44, %v4349_v2  ;;  %v4238_v51 = vperm.slane %v4206_v26, 0  ;;  %v4270_v1 = vperm.slane %v4206_v26, 1 }
 0x385   : > { %v4318_v59 = vperm.slane %v4206_v26, 2  ;;  %v4366_v17 = vperm.slane %v4206_v26, 3  ;;  %v4414_v37 = vperm.slane %v4206_v26, 4  ;;  %v4573_v56 = vmul.f32 %v13246_v52, %v4557_v29 }
 0x386   : > { %v11371_v61 = vadd.f32 %v11292_v49, %v4588_v0  ;;  %v4445_v14 = vadd.f32 %v4429_v9, %v4397_v40  ;;  %v4254_v60 = vmul.f32 %v13366_v16, %v4238_v51  ;;  %v4286_v12 = vmul.f32 %v13367_v11, %v4270_v1  ;;  %v13368_v9 = vld [vmem:[#allocation104_spill] sm:$0xff] }
 0x387   : > { %v4334_v55 = vmul.f32 %v13241_v34, %v4318_v59  ;;  %v4462_v2 = vperm.slane %v4206_v26, 5  ;;  %v4382_v38 = vmul.f32 %v13243_v8, %v4366_v17  ;;  %v4430_v22 = vmul.f32 %v13368_v9, %v4414_v37 }
 0x388   : > { %7837 = vmatmul.msk.f32.gmra.mxu2 %vm4803_vm0, %v11371_v61  ;;  %7853 = vmatmul.msk.f32.gmra.mxu3 %vm4803_vm0, %v11371_v61  ;;  %v4493_v43 = vadd.f32 %v4477_v32, %v4445_v14  ;;  %v4302_v48 = vadd.f32 %v4286_v12, %v4254_v60  ;;  %v4510_v0 = vperm.slane %v4206_v26, 6  ;;  %v13369_v14 = vld [vmem:[#allocation113_spill] sm:$0xff]  ;;  %v4558_v59 = vperm.slane %v4206_v26, 7 }
 0x389   : > { %v4208_v5 = vpop.f32.mrf.mxu1  ;;  %v4478_v34 = vmul.f32 %v13369_v14, %v4462_v2  ;;  %vm4624_vm3 = vcmp.eq.f32.partialorder %v11371_v61, 0.0 }
 0x38a   : > { %v4209_v50 = vadd.f32 %v4208_v5, %v11333_v31  ;;  %v4541_v44 = vadd.f32 %v4525_v47, %v4493_v43  ;;  %v4350_v15 = vadd.f32 %v4334_v55, %v4302_v48  ;;  %v4526_v17 = vmul.f32 %v13249_v6, %v4510_v0  ;;  %v13370_v47 = vld [vmem:[#allocation123_spill] sm:$0xff]  ;;  %v13371_v48 = vld [vmem:[#allocation144_spill] sm:$0xff]  ;;  %v13372_v6 = vld [vmem:[#allocation121_spill] sm:$0xff] }
 0x38b   : > { %v4574_v55 = vmul.f32 %v13371_v48, %v4558_v59 }
 0x38c   : > { %v4589_v40 = vadd.f32 %v4573_v56, %v4541_v44  ;;  %v4398_v51 = vadd.f32 %v4382_v38, %v4350_v15  ;;  %v4239_v1 = vperm.slane %v4209_v50, 0  ;;  %v4271_v32 = vperm.slane %v4209_v50, 1  ;;  %v13373_v44 = vld [vmem:[#allocation152_spill] sm:$0xff] }
 0x38d   : > { %v4319_v16 = vperm.slane %v4209_v50, 2  ;;  %v4367_v52 = vperm.slane %v4209_v50, 3  ;;  %v4415_v11 = vperm.slane %v4209_v50, 4  ;;  %v4463_v5 = vperm.slane %v4209_v50, 5 }
 0x38e   : > { %v11387_v29 = vadd.f32 %v11292_v49, %v4589_v40  ;;  %v4446_v31 = vadd.f32 %v4430_v22, %v4398_v51  ;;  %v4255_v60 = vmul.f32 %v13247_v45, %v4239_v1  ;;  %v4287_v8 = vmul.f32 %v13248_v21, %v4271_v32  ;;  %v4166_v51 = vpop.f32.mrf.mxu0 }
 0x38f   : > { %v4335_v37 = vmul.f32 %v13370_v47, %v4319_v16  ;;  %v4383_v2 = vmul.f32 %v13372_v6, %v4367_v52  ;;  %v4431_v15 = vmul.f32 %v13373_v44, %v4415_v11  ;;  %v4511_v38 = vperm.slane %v4209_v50, 6  ;;  %v13374_v16 = vld [vmem:[#allocation117_spill] sm:$0xff]  ;;  %v13375_v52 = vld [vmem:[#allocation115_spill] sm:$0xff] }
 0x390   : > { %7838 = vmatmul.msk.f32.gmra.mxu2 %vm4803_vm0, %v11387_v29  ;;  %7854 = vmatmul.msk.f32.gmra.mxu3 %vm4803_vm0, %v11387_v29  ;;  %v4494_v26 = vadd.f32 %v4478_v34, %v4446_v31  ;;  %v4303_v12 = vadd.f32 %v4287_v8, %v4255_v60  ;;  %v4479_v1 = vmul.f32 %v13257_v39, %v4463_v5  ;;  %v4559_v32 = vperm.slane %v4209_v50, 7 }
 0x391   : > { %v4210_v43 = vpop.f32.mrf.mxu1  ;;  %v4527_v8 = vmul.f32 %v13105_v3, %v4511_v38  ;;  %vm4625_vm5 = vcmp.eq.f32.partialorder %v11387_v29, 0.0 }
 0x392   : > { %v4211_v45 = vadd.f32 %v4210_v43, %v11362_v10  ;;  %v4542_v21 = vadd.f32 %v4526_v17, %v4494_v26  ;;  %v4351_v56 = vadd.f32 %v4335_v37, %v4303_v12  ;;  %v4575_v12 = vmul.f32 %v13110_v42, %v4559_v32 }
 0x394   : > { %v4590_v9 = vadd.f32 %v4574_v55, %v4542_v21  ;;  %v4399_v22 = vadd.f32 %v4383_v2, %v4351_v56  ;;  %v4240_v0 = vperm.slane %v4211_v45, 0  ;;  %v4272_v40 = vperm.slane %v4211_v45, 1 }
 0x395   : > { %v4320_v14 = vperm.slane %v4211_v45, 2  ;;  %v4368_v34 = vperm.slane %v4211_v45, 3  ;;  %v4416_v17 = vperm.slane %v4211_v45, 4  ;;  %v4464_v47 = vperm.slane %v4211_v45, 5 }
 0x396   : > { %v11403_v59 = vadd.f32 %v11292_v49, %v4590_v9  ;;  %v4447_v10 = vadd.f32 %v4431_v15, %v4399_v22  ;;  %v4256_v31 = vmul.f32 %v13374_v16, %v4240_v0  ;;  %v4288_v60 = vmul.f32 %v13375_v52, %v4272_v40  ;;  %v4169_v22 = vpop.f32.mrf.mxu0  ;;  %v13377_v16 = vld [vmem:[#allocation143_spill] sm:$0xff] }
 0x397   : > { %v4336_v11 = vmul.f32 %v13258_v63, %v4320_v14  ;;  %v4384_v3 = vmul.f32 %v13259_v24, %v4368_v34  ;;  %v4432_v55 = vmul.f32 %v10225_v36, %v4416_v17  ;;  %v4512_v5 = vperm.slane %v4211_v45, 6 }
 0x398   : > { %7839 = vmatmul.msk.f32.gmra.mxu2 %vm4803_vm0, %v11403_v59  ;;  %7855 = vmatmul.msk.f32.gmra.mxu3 %vm4803_vm0, %v11403_v59  ;;  %v4495_v39 = vadd.f32 %v4479_v1, %v4447_v10  ;;  %v4304_v50 = vadd.f32 %v4288_v60, %v4256_v31  ;;  %v4480_v44 = vmul.f32 %v13104_v7, %v4464_v47  ;;  %v4560_v15 = vperm.slane %v4211_v45, 7  ;;  %v13376_v10 = vld [vmem:[#allocation135_spill] sm:$0xff] }
 0x399   : > { %v4213_v26 = vpop.f32.mrf.mxu1  ;;  %v4528_v36 = vmul.f32 %v13106_v54, %v4512_v5  ;;  %v13380_v5 = vld [vmem:[#allocation136_spill] sm:$0xff]  ;;  %vm4626_vm8 = vcmp.eq.f32.partialorder %v11403_v59, 0.0 }
 0x39a   : > { %v4214_v37 = vadd.f32 %v4213_v26, %v4164_v62  ;;  %v4543_v43 = vadd.f32 %v4527_v8, %v4495_v39  ;;  %v4352_v48 = vadd.f32 %v4336_v11, %v4304_v50  ;;  %v4576_v32 = vmul.f32 %v13264_v13, %v4560_v15 }
 0x39c   : > { %v4591_v21 = vadd.f32 %v4575_v12, %v4543_v43  ;;  %v4400_v56 = vadd.f32 %v4384_v3, %v4352_v48  ;;  %v4241_v6 = vperm.slane %v4214_v37, 0  ;;  %v4273_v2 = vperm.slane %v4214_v37, 1  ;;  %v13378_v12 = vld [vmem:[#allocation22_spill] sm:$0xff]  ;;  %v13379_v43 = vld [vmem:[#allocation33_spill] sm:$0xff] }
 0x39d   : > { %v4321_v63 = vperm.slane %v4214_v37, 2  ;;  %v4369_v38 = vperm.slane %v4214_v37, 3  ;;  %v4417_v0 = vperm.slane %v4214_v37, 4  ;;  %v4513_v52 = vperm.slane %v4214_v37, 6 }
 0x39e   : > { %v11418_v42 = vadd.f32 %v11292_v49, %v4591_v21  ;;  %v4448_v62 = vadd.f32 %v4432_v55, %v4400_v56  ;;  %v4257_v9 = vmul.f32 %v13260_v35, %v4241_v6  ;;  %v4289_v24 = vmul.f32 %v13261_v30, %v4273_v2  ;;  %v4171_v56 = vpop.f32.mrf.mxu0  ;;  %v13381_v2 = vld [vmem:[#allocation147_spill] sm:$0xff] }
 0x39f   : > { %v4337_v40 = vmul.f32 %v13262_v33, %v4321_v63  ;;  %v4465_v35 = vperm.slane %v4214_v37, 5  ;;  %v4385_v54 = vmul.f32 %v13376_v10, %v4369_v38  ;;  %v4433_v31 = vmul.f32 %v13377_v16, %v4417_v0  ;;  %v13385_v16 = vld [vmem:[#allocation27_spill] sm:$0xff] }
 0x3a0   : > { %7840 = vmatmul.msk.f32.gmra.mxu2 %vm4803_vm0, %v11418_v42  ;;  %7856 = vmatmul.msk.f32.gmra.mxu3 %vm4803_vm0, %v11418_v42  ;;  %v4496_v7 = vadd.f32 %v4480_v44, %v4448_v62  ;;  %v4305_v45 = vadd.f32 %v4289_v24, %v4257_v9  ;;  %v4561_v11 = vperm.slane %v4214_v37, 7  ;;  %v4529_v3 = vmul.f32 %v13270_v18, %v4513_v52  ;;  %v13382_v18 = vld [vmem:[#allocation134_spill] sm:$0xff]  ;;  %v13386_v52 = vld [vmem:[#allocation151_spill] sm:$0xff] }
 0x3a1   : > { %v4215_v1 = vpop.f32.mrf.mxu1  ;;  %v4481_v50 = vmul.f32 %v13269_v23, %v4465_v35  ;;  %v13383_v24 = vld [vmem:[#allocation142_spill] sm:$0xff]  ;;  %vm4627_vm6 = vcmp.eq.f32.partialorder %v11418_v42, 0.0 }
 0x3a2   : > { %v4216_v14 = vadd.f32 %v4215_v1, %v4166_v51  ;;  %v4544_v30 = vadd.f32 %v4528_v36, %v4496_v7  ;;  %v4353_v34 = vadd.f32 %v4337_v40, %v4305_v45  ;;  %v4577_v44 = vmul.f32 %v13381_v2, %v4561_v11  ;;  %v13388_v11 = vld [vmem:[#allocation149_spill] sm:$0xff] }
 0x3a4   : > { %v4592_v60 = vadd.f32 %v4576_v32, %v4544_v30  ;;  %v4401_v8 = vadd.f32 %v4385_v54, %v4353_v34  ;;  %v4242_v17 = vperm.slane %v4216_v14, 0  ;;  %v4274_v39 = vperm.slane %v4216_v14, 1  ;;  %v13384_v32 = vld [vmem:[#allocation77_spill] sm:$0xff] }
 0x3a5   : > { %v4322_v33 = vperm.slane %v4216_v14, 2  ;;  %v4370_v26 = vperm.slane %v4216_v14, 3  ;;  %v4418_v55 = vperm.slane %v4216_v14, 4  ;;  %v4466_v15 = vperm.slane %v4216_v14, 5 }
 0x3a6   : > { %v11433_v13 = vadd.f32 %v11292_v49, %v4592_v60  ;;  %v4449_v51 = vadd.f32 %v4433_v31, %v4401_v8  ;;  %v4258_v47 = vmul.f32 %v13378_v12, %v4242_v17  ;;  %v4290_v48 = vmul.f32 %v13379_v43, %v4274_v39  ;;  %v13387_v8 = vld [vmem:[#allocation34_spill] sm:$0xff] }
 0x3a7   : > { %v4338_v21 = vmul.f32 %v13380_v5, %v4322_v33  ;;  %v4386_v9 = vmul.f32 %v13382_v18, %v4370_v26  ;;  %v4434_v36 = vmul.f32 %v13383_v24, %v4418_v55  ;;  %v4514_v0 = vperm.slane %v4216_v14, 6  ;;  %v13390_v55 = vld [vmem:[#allocation161_spill] sm:$0xff]  ;;  %v13391_v5 = vld [vmem:[#allocation31_spill] sm:$0xff] }
 0x3a8   : > { %7841 = vmatmul.msk.f32.gmra.mxu2 %vm4803_vm0, %v11433_v13  ;;  %7857 = vmatmul.msk.f32.gmra.mxu3 %vm4803_vm0, %v11433_v13  ;;  %v4497_v23 = vadd.f32 %v4481_v50, %v4449_v51  ;;  %v4306_v37 = vadd.f32 %v4290_v48, %v4258_v47  ;;  %v4482_v35 = vmul.f32 %v13384_v32, %v4466_v15  ;;  %v4562_v30 = vperm.slane %v4216_v14, 7  ;;  %v13389_v51 = vld [vmem:[#allocation28_spill] sm:$0xff] }
 0x3a9   : > { %v4218_v6 = vpop.f32.mrf.mxu1  ;;  %v4530_v17 = vmul.f32 %v13387_v8, %v4514_v0  ;;  %v13392_v0 = vld [vmem:[#allocation26_spill] sm:$0xff]  ;;  %vm4628_vm7 = vcmp.eq.f32.partialorder %v11433_v13, 0.0 }
 0x3aa   : > { %v4219_v63 = vadd.f32 %v4218_v6, %v4169_v22  ;;  %v4545_v38 = vadd.f32 %v4529_v3, %v4497_v23  ;;  %v4354_v62 = vadd.f32 %v4338_v21, %v4306_v37  ;;  %v4578_v12 = vmul.f32 %v13389_v51, %v4562_v30  ;;  %v4174_v37 = vpop.f32.mrf.mxu0  ;;  %v13396_v8 = vld [vmem:[#allocation30_spill] sm:$0xff] }
 0x3ac   : > { %v4593_v7 = vadd.f32 %v4577_v44, %v4545_v38  ;;  %v4402_v45 = vadd.f32 %v4386_v9, %v4354_v62  ;;  %v4243_v40 = vperm.slane %v4219_v63, 0  ;;  %v4275_v1 = vperm.slane %v4219_v63, 1 }
 0x3ad   : > { %v4323_v34 = vperm.slane %v4219_v63, 2  ;;  %v4371_v10 = vperm.slane %v4219_v63, 3  ;;  %v4419_v39 = vperm.slane %v4219_v63, 4  ;;  %v4467_v47 = vperm.slane %v4219_v63, 5 }
 0x3ae   : > { %v11448_v54 = vadd.f32 %v11292_v49, %v4593_v7  ;;  %v4450_v22 = vadd.f32 %v4434_v36, %v4402_v45  ;;  %v4259_v31 = vmul.f32 %v13385_v16, %v4243_v40  ;;  %v4291_v60 = vmul.f32 %v13386_v52, %v4275_v1  ;;  %v13393_v45 = vld [vmem:[#allocation150_spill] sm:$0xff] }
 0x3af   : > { %v4339_v33 = vmul.f32 %v13388_v11, %v4323_v34  ;;  %v4387_v23 = vmul.f32 %v13390_v55, %v4371_v10  ;;  %v4435_v21 = vmul.f32 %v13391_v5, %v4419_v39  ;;  %v4515_v6 = vperm.slane %v4219_v63, 6  ;;  %v13397_v55 = vld [vmem:[#allocation40_spill] sm:$0xff] }
 0x3b0   : > { %7842 = vmatmul.msk.f32.gmra.mxu2 %vm4803_vm0, %v11448_v54  ;;  %7858 = vmatmul.msk.f32.gmra.mxu3 %vm4803_vm0, %v11448_v54  ;;  %v4498_v14 = vadd.f32 %v4482_v35, %v4450_v22  ;;  %v4307_v50 = vadd.f32 %v4291_v60, %v4259_v31  ;;  %v4483_v62 = vmul.f32 %v13289_v25, %v4467_v47  ;;  %v4563_v18 = vperm.slane %v4219_v63, 7  ;;  %v13394_v35 = vld [vmem:[#allocation148_spill] sm:$0xff]  ;;  %v13395_v60 = vld [vmem:[#allocation38_spill] sm:$0xff] }
 0x3b1   : > { %v4220_v26 = vpop.f32.mrf.mxu1  ;;  %v4531_v1 = vmul.f32 %v13291_v46, %v4515_v6  ;;  %vm4629_vm9 = vcmp.eq.f32.partialorder %v11448_v54, 0.0 }
 0x3b2   : > { %v4221_v43 = vadd.f32 %v4220_v26, %v4171_v56  ;;  %v4546_v48 = vadd.f32 %v4530_v17, %v4498_v14  ;;  %v4355_v3 = vadd.f32 %v4339_v33, %v4307_v50  ;;  %v4579_v10 = vmul.f32 %v13296_v27, %v4563_v18  ;;  %v4176_v26 = vpop.f32.mrf.mxu0  ;;  %v4709_v41 = vpop.permute.xlu0 %4708 }
 0x3b3   : > { %v7826_v59 = vsel %vm4629_vm9, 1.0, %v8905_v4  ;;  %vm6442_vm9 = vcmask 1045509  }
 0x3b4   : > { %v4594_v2 = vadd.f32 %v4578_v12, %v4546_v48  ;;  %v4403_v44 = vadd.f32 %v4387_v23, %v4355_v3  ;;  %v4244_v15 = vperm.slane %v4221_v43, 0  ;;  %v4276_v38 = vperm.slane %v4221_v43, 1 }
 0x3b5   : > { %v4324_v9 = vperm.slane %v4221_v43, 2  ;;  %v4372_v24 = vperm.slane %v4221_v43, 3  ;;  %v4420_v32 = vperm.slane %v4221_v43, 4  ;;  %v4468_v22 = vperm.slane %v4221_v43, 5 }
 0x3b6   : > { %v11463_v36 = vadd.f32 %v11292_v49, %v4594_v2  ;;  %v4451_v56 = vadd.f32 %v4435_v21, %v4403_v44  ;;  %v4260_v7 = vmul.f32 %v13392_v0, %v4244_v15  ;;  %v4292_v40 = vmul.f32 %v13393_v45, %v4276_v38  ;;  %v13399_v21 = vld [vmem:[#allocation156_spill] sm:$0xff]  ;;  %v13400_v44 = vld [vmem:[#allocation159_spill] sm:$0xff] }
 0x3b7   : > { %v4340_v30 = vmul.f32 %v13394_v35, %v4324_v9  ;;  %v4388_v46 = vmul.f32 %v13395_v60, %v4372_v24  ;;  %v4436_v17 = vmul.f32 %v13396_v8, %v4420_v32  ;;  %v4516_v39 = vperm.slane %v4221_v43, 6 }
 0x3b8   : > { %7843 = vmatmul.msk.f32.gmra.mxu2 %vm4803_vm0, %v11463_v36  ;;  %7859 = vmatmul.msk.f32.gmra.mxu3 %vm4803_vm0, %v11463_v36  ;;  %v4499_v25 = vadd.f32 %v4483_v62, %v4451_v56  ;;  %v4308_v63 = vadd.f32 %v4292_v40, %v4260_v7  ;;  %v4484_v51 = vmul.f32 %v13295_v53, %v4468_v22  ;;  %v4564_v12 = vperm.slane %v4221_v43, 7  ;;  %v13401_v62 = vld [vmem:[#allocation83_spill] sm:$0xff]  ;;  %v13402_v7 = vld [vmem:[#allocation165_spill] sm:$0xff] }
 0x3b9   : > { %v4223_v34 = vpop.f32.mrf.mxu1  ;;  %v4532_v6 = vmul.f32 %v13399_v21, %v4516_v39  ;;  %v13403_v40 = vld [vmem:[#allocation163_spill] sm:$0xff]  ;;  %vm4630_vm11 = vcmp.eq.f32.partialorder %v11463_v36, 0.0 }
 0x3ba   : > { %v4224_v16 = vadd.f32 %v4223_v34, %v4174_v37  ;;  %v4547_v31 = vadd.f32 %v4531_v1, %v4499_v25  ;;  %v4356_v52 = vadd.f32 %v4340_v30, %v4308_v63  ;;  %v13398_v37 = vld [vmem:[#allocation74_spill] sm:$0xff]  ;;  %v4580_v18 = vmul.f32 %v13401_v62, %v4564_v12  ;;  %v13407_v12 = vld [vmem:[#allocation167_spill] sm:$0xff] }
 0x3bc   : > { %v4595_v14 = vadd.f32 %v4579_v10, %v4547_v31  ;;  %v4404_v50 = vadd.f32 %v4388_v46, %v4356_v52  ;;  %v4245_v11 = vperm.slane %v4224_v16, 0  ;;  %v4277_v33 = vperm.slane %v4224_v16, 1  ;;  %v13404_v46 = vld [vmem:[#allocation39_spill] sm:$0xff] }
 0x3bd   : > { %v4325_v47 = vperm.slane %v4224_v16, 2  ;;  %v4373_v48 = vperm.slane %v4224_v16, 3  ;;  %v4421_v2 = vperm.slane %v4224_v16, 4  ;;  %v4469_v9 = vperm.slane %v4224_v16, 5 }
 0x3be   : > { %v11478_v27 = vadd.f32 %v11292_v49, %v4595_v14  ;;  %v4452_v3 = vadd.f32 %v4436_v17, %v4404_v50  ;;  %v4261_v23 = vmul.f32 %v13397_v55, %v4245_v11  ;;  %v4293_v5 = vmul.f32 %v13398_v37, %v4277_v33  ;;  %v13405_v17 = vld [vmem:[#allocation160_spill] sm:$0xff]  ;;  %v4179_v14 = vpop.f32.mrf.mxu0 }
 0x3bf   : > { %v4341_v15 = vmul.f32 %v13400_v44, %v4325_v47  ;;  %v4389_v45 = vmul.f32 %v13402_v7, %v4373_v48  ;;  %v4437_v1 = vmul.f32 %v13403_v40, %v4421_v2  ;;  %v4517_v32 = vperm.slane %v4224_v16, 6  ;;  %v13406_v33 = vld [vmem:[#allocation36_spill] sm:$0xff]  ;;  %v13411_v7 = vld [vmem:[#allocation177_spill] sm:$0xff]  ;;  %v13412_v40 = vld [vmem:[#allocation175_spill] sm:$0xff] }
 0x3c0   : > { %7844 = vmatmul.msk.f32.gmra.mxu2 %vm4803_vm0, %v11478_v27  ;;  %7860 = vmatmul.msk.f32.gmra.mxu3 %vm4803_vm0, %v11478_v27  ;;  %v4500_v53 = vadd.f32 %v4484_v51, %v4452_v3  ;;  %v4309_v43 = vadd.f32 %v4293_v5, %v4261_v23  ;;  %v4485_v34 = vmul.f32 %v13308_v20, %v4469_v9  ;;  %v4565_v10 = vperm.slane %v4224_v16, 7  ;;  %v13408_v37 = vld [vmem:[#allocation164_spill] sm:$0xff]  ;;  %v13409_v5 = vld [vmem:[#allocation162_spill] sm:$0xff] }
 0x3c1   : > { %v4225_v38 = vpop.f32.mrf.mxu1  ;;  %v4533_v50 = vmul.f32 %v13310_v28, %v4517_v32  ;;  %v13413_v32 = vld [vmem:[#allocation168_spill] sm:$0xff]  ;;  %vm4631_vm13 = vcmp.eq.f32.partialorder %v11478_v27, 0.0 }
 0x3c2   : > { %v4226_v24 = vadd.f32 %v4225_v38, %v4176_v26  ;;  %v4548_v56 = vadd.f32 %v4532_v6, %v4500_v53  ;;  %v4357_v0 = vadd.f32 %v4341_v15, %v4309_v43  ;;  %v4581_v47 = vmul.f32 %v13407_v12, %v4565_v10  ;;  %v13410_v15 = vld [vmem:[#allocation172_spill] sm:$0xff] }
 0x3c4   : > { %v4596_v25 = vadd.f32 %v4580_v18, %v4548_v56  ;;  %v4405_v63 = vadd.f32 %v4389_v45, %v4357_v0  ;;  %v4246_v35 = vperm.slane %v4226_v24, 0  ;;  %v4278_v30 = vperm.slane %v4226_v24, 1 }
 0x3c5   : > { %v4326_v22 = vperm.slane %v4226_v24, 2  ;;  %v4374_v31 = vperm.slane %v4226_v24, 3  ;;  %v4422_v11 = vperm.slane %v4226_v24, 4  ;;  %v4470_v48 = vperm.slane %v4226_v24, 5 }
 0x3c6   : > { %v11493_v52 = vadd.f32 %v11292_v49, %v4596_v25  ;;  %v4453_v60 = vadd.f32 %v4437_v1, %v4405_v63  ;;  %v4262_v8 = vmul.f32 %v13404_v46, %v4246_v35  ;;  %v4294_v39 = vmul.f32 %v13405_v17, %v4278_v30  ;;  %v13414_v30 = vld [vmem:[#allocation126_spill] sm:$0xff]  ;;  %v4181_v10 = vpop.f32.mrf.mxu0 }
 0x3c7   : > { %v4342_v26 = vmul.f32 %v13406_v33, %v4326_v22  ;;  %v4390_v28 = vmul.f32 %v13408_v37, %v4374_v31  ;;  %v4438_v21 = vmul.f32 %v13409_v5, %v4422_v11  ;;  %v4518_v6 = vperm.slane %v4226_v24, 6  ;;  %v13415_v31 = vld [vmem:[#allocation41_spill] sm:$0xff]  ;;  %v13417_v11 = vld [vmem:[#allocation43_spill] sm:$0xff]  ;;  %v13418_v5 = vld [vmem:[#allocation176_spill] sm:$0xff] }
 0x3c8   : > { %7845 = vmatmul.msk.f32.gmra.mxu2 %vm4803_vm0, %v11493_v52  ;;  %7861 = vmatmul.msk.f32.gmra.mxu3 %vm4803_vm0, %v11493_v52  ;;  %v4501_v20 = vadd.f32 %v4485_v34, %v4453_v60  ;;  %v4310_v16 = vadd.f32 %v4294_v39, %v4262_v8  ;;  %v4486_v38 = vmul.f32 %v13410_v15, %v4470_v48  ;;  %v4566_v62 = vperm.slane %v4226_v24, 7 }
 0x3c9   : > { %v4228_v51 = vpop.f32.mrf.mxu1  ;;  %v4534_v25 = vmul.f32 %v13413_v32, %v4518_v6  ;;  %v13419_v6 = vld [vmem:[#allocation174_spill] sm:$0xff]  ;;  %vm4632_vm12 = vcmp.eq.f32.partialorder %v11493_v52, 0.0 }
 0x3ca   : > { %v4229_v3 = vadd.f32 %v4228_v51, %v4179_v14  ;;  %v4549_v55 = vadd.f32 %v4533_v50, %v4501_v20  ;;  %v4358_v23 = vadd.f32 %v4342_v26, %v4310_v16  ;;  %v4582_v60 = vmul.f32 %v13415_v31, %v4566_v62  ;;  %v13416_v14 = vld [vmem:[#allocation45_spill] sm:$0xff] }
 0x3cc   : > { %v4597_v2 = vadd.f32 %v4581_v47, %v4549_v55  ;;  %v4406_v53 = vadd.f32 %v4390_v28, %v4358_v23  ;;  %v4247_v43 = vperm.slane %v4229_v3, 0  ;;  %v4279_v44 = vperm.slane %v4229_v3, 1 }
 0x3cd   : > { %v4327_v18 = vperm.slane %v4229_v3, 2  ;;  %v4375_v9 = vperm.slane %v4229_v3, 3  ;;  %v4423_v63 = vperm.slane %v4229_v3, 4  ;;  %v4471_v46 = vperm.slane %v4229_v3, 5 }
 0x3ce   : > { %v11508_v56 = vadd.f32 %v11292_v49, %v4597_v2  ;;  %v4454_v0 = vadd.f32 %v4438_v21, %v4406_v53  ;;  %v4263_v45 = vmul.f32 %v13411_v7, %v4247_v43  ;;  %v4295_v1 = vmul.f32 %v13412_v40, %v4279_v44  ;;  %v13420_v43 = vld [vmem:[#allocation128_spill] sm:$0xff] }
 0x3cf   : > { %v4343_v34 = vmul.f32 %v13414_v30, %v4327_v18  ;;  %v4391_v50 = vmul.f32 %v13416_v14, %v4375_v9  ;;  %v4439_v20 = vmul.f32 %v13417_v11, %v4423_v63  ;;  %v4519_v16 = vperm.slane %v4229_v3, 6  ;;  %v4689_v11 = vpop.permute.xlu1 %4688 }
 0x3d0   : > { %7846 = vmatmul.msk.f32.gmra.mxu2 %vm4803_vm0, %v11508_v56  ;;  %7862 = vmatmul.msk.f32.gmra.mxu3 %vm4803_vm0, %v11508_v56  ;;  %v4502_v24 = vadd.f32 %v4486_v38, %v4454_v0  ;;  %v4311_v35 = vadd.f32 %v4295_v1, %v4263_v45  ;;  %v4487_v47 = vmul.f32 %v13324_v57, %v4471_v46  ;;  %v4567_v48 = vperm.slane %v4229_v3, 7  ;;  %v13421_v38 = vld [vmem:[#allocation85_spill] sm:$0xff]  ;;  %v13422_v0 = vld [vmem:[#allocation44_spill] sm:$0xff]  ;;  %v13423_v1 = vld [vmem:[#allocation42_spill] sm:$0xff] }
 0x3d1   : > { %v4230_v22 = vpop.f32.mrf.mxu1  ;;  %v4535_v53 = vmul.f32 %v13326_v19, %v4519_v16  ;;  %v13426_v46 = vld [vmem:[#allocation49_spill] sm:$0xff]  ;;  %vm4633_vm15 = vcmp.eq.f32.partialorder %v11508_v56, 0.0 }
 0x3d2   : > { %v4231_v8 = vadd.f32 %v4230_v22, %v4181_v10  ;;  %v4550_v17 = vadd.f32 %v4534_v25, %v4502_v24  ;;  %v4359_v39 = vadd.f32 %v4343_v34, %v4311_v35  ;;  %v4583_v62 = vmul.f32 %v13421_v38, %v4567_v48  ;;  %v13424_v35 = vld [vmem:[#allocation46_spill] sm:$0xff] }
 0x3d3   : > { %v13425_v22 = vld [vmem:[#allocation18_spill] sm:$0xff] }
 0x3d4   : > { %v4598_v33 = vadd.f32 %v4582_v60, %v4550_v17  ;;  %v4407_v26 = vadd.f32 %v4391_v50, %v4359_v39  ;;  %v4248_v51 = vperm.slane %v4231_v8, 0  ;;  %v4280_v12 = vperm.slane %v4231_v8, 1  ;;  %v4685_v39 = vld [vmem:[%s12508_s9] sm:$0x3] }
 0x3d5   : > { %v4328_v55 = vperm.slane %v4231_v8, 2  ;;  %v4376_v23 = vperm.slane %v4231_v8, 3  ;;  %v4424_v15 = vperm.slane %v4231_v8, 4  ;;  %v4472_v45 = vperm.slane %v4231_v8, 5 }
 0x3d6   : > { %v11523_v37 = vadd.f32 %v11292_v49, %v4598_v33  ;;  %v4455_v28 = vadd.f32 %v4439_v20, %v4407_v26  ;;  %v4264_v21 = vmul.f32 %v13418_v5, %v4248_v51  ;;  %v4296_v2 = vmul.f32 %v13419_v6, %v4280_v12  ;;  %v11561_v20 = vld [vmem:[%s12509_s10] sm:$0x3] }
 0x3d7   : > { %v4344_v44 = vmul.f32 %v13420_v43, %v4328_v55  ;;  %v4392_v7 = vmul.f32 %v13422_v0, %v4376_v23  ;;  %v4440_v32 = vmul.f32 %v13423_v1, %v4424_v15  ;;  %v4520_v25 = vperm.slane %v4231_v8, 6  ;;  %v4699_v43 = vpop.permute.xlu2 %4698 }
 0x3d8   : > { %7847 = vmatmul.msk.f32.gmra.mxu2 %vm4803_vm0, %v11523_v37  ;;  %7863 = vmatmul.msk.f32.gmra.mxu3 %vm4803_vm0, %v11523_v37  ;;  %v4503_v57 = vadd.f32 %v4487_v47, %v4455_v28  ;;  %v4312_v3 = vadd.f32 %v4296_v2, %v4264_v21  ;;  %v4488_v30 = vmul.f32 %v13424_v35, %v4472_v45  ;;  %v4568_v34 = vperm.slane %v4231_v8, 7  ;;  %v4694_v28 = vpop.permute.xlu1 %4693 }
 0x3d9   : > { %v4536_v31 = vmul.f32 %v13425_v22, %v4520_v25  ;;  %v11549_v50 = vperm.slane %v4685_v39, 0  ;;  %v11564_v33 = vperm.slane %v4685_v39, 1  ;;  %v11567_v26 = vperm.slane %v11561_v20, 0  ;;  %v681_v39 = vld [vmem:[%s11233_s1 + $0x40] sm:$0xff] }
 0x3da   : > { %v4551_v18 = vadd.f32 %v4535_v53, %v4503_v57  ;;  %v4360_v9 = vadd.f32 %v4344_v44, %v4312_v3  ;;  %v4584_v17 = vmul.f32 %v13426_v46, %v4568_v34  ;;  %v7820_v23 = vsel %vm4623_vm2, 1.0, %v8905_v4 }
 0x3db   : > { %v4771_v16 = vmul.f32 %v11549_v50, %v4689_v11  ;;  %v4772_v12 = vmul.f32 %v11564_v33, %v4689_v11  ;;  %v4773_v5 = vmul.f32 %v11549_v50, %v4694_v28  ;;  %v4774_v21 = vmul.f32 %v11564_v33, %v4694_v28 }
 0x3dc   : > { %v4599_v40 = vadd.f32 %v4583_v62, %v4551_v18  ;;  %v4408_v19 = vadd.f32 %v4392_v7, %v4360_v9  ;;  %v5038_v6 = vmul.f32 -1e+30, %v7820_v23  ;;  %v4775_v44 = vmul.f32 %v11549_v50, %v4699_v43 }
 0x3dd   : > { %v4776_v15 = vmul.f32 %v11564_v33, %v4699_v43  ;;  %v7821_v18 = vsel %vm4624_vm3, 1.0, %v8905_v4  ;;  %v7819_v25 = vsel %vm4622_vm4, 1.0, %v8905_v4  ;;  %v4780_v22 = vmul.f32 %v11564_v33, %v4709_v41 }
 0x3de   : > { %v11537_v63 = vadd.f32 %v11292_v49, %v4599_v40  ;;  %v4456_v24 = vadd.f32 %v4440_v32, %v4408_v19  ;;  %v5039_v45 = vmul.f32 -1e+30, %v7821_v18  ;;  %v5037_v34 = vmul.f32 -1e+30, %v7819_v25 }
 0x3df   : > { %v4704_v61 = vpop.permute.xlu2 %4703  ;;  %v4779_v11 = vmul.f32 %v11549_v50, %v4709_v41  ;;  %v688_v41 = vld [vmem:[%s11233_s1 + $0x78] sm:$0xff]  ;;  %vm4634_vm14 = vcmp.eq.f32.partialorder %v11523_v37, 0.0  ;;  %vm5613_vm3 = vcmask 64512  }
 0x3e0   : > { %7848 = vmatmul.msk.f32.gmra.mxu2 %vm4803_vm0, %v11537_v63  ;;  %7864 = vmatmul.msk.f32.gmra.mxu3 %vm4803_vm0, %v11537_v63  ;;  %v4504_v10 = vadd.f32 %v4488_v30, %v4456_v24  ;;  %v4777_v40 = vmul.f32 %v11549_v50, %v4704_v61  ;;  %v4778_v19 = vmul.f32 %v11564_v33, %v4704_v61  ;;  %v4719_v28 = vpop.permute.xlu1 %4718  ;;  %vm4635_vm2 = vcmp.eq.f32.partialorder %v11537_v63, 0.0 }
 0x3e2   : > { %v4552_v60 = vadd.f32 %v4536_v31, %v4504_v10  ;;  %v682_v10 = vld [vmem:[%s11233_s1 + $0x48] sm:$0xff] }
 0x3e4   : > { %v4600_v14 = vadd.f32 %v4584_v17, %v4552_v60  ;;  %v7822_v17 = vsel %vm4625_vm5, 1.0, %v8905_v4  ;;  %vm6434_vm5 = vcmask 1041409  }
 0x3e6   : > { %v11552_v8 = vadd.f32 %v11292_v49, %v4600_v14  ;;  %v683_v14 = vld [vmem:[%s11233_s1 + $0x50] sm:$0xff] }
 0x3e8   : > { %7849 = vmatmul.msk.f32.gmra.mxu2 %vm4803_vm0, %v11552_v8  ;;  %7865 = vmatmul.msk.f32.gmra.mxu3 %vm4803_vm0, %v11552_v8  ;;  %vm4636_vm1 = vcmp.eq.f32.partialorder %v11552_v8, 0.0 }
 0x3ed   : > { %v4869_v49 = vpop.f32.mrf.mxu1 }
 0x3ee   : > { %v4870_v51 = vadd.f32 %v4869_v49, %v4771_v16  ;;  %v11622_v16 = vpop.permute.xlu2 %4713  ;;  %v5040_v49 = vmul.f32 -1e+30, %v7822_v17 }
 0x3ef   : > { %v4781_v29 = vmul.f32 %v11549_v50, %v11622_v16 }
 0x3f0   : > { %v11571_v47 = vadd.f32 %v11567_v26, %v4870_v51 }
 0x3f2   : > { %5068 = vrot.lane.b32.xlu2 %v11571_v47, %s8906_s26  ;;  %v5020_v54 = vsel %vm4803_vm0, %v11571_v47, 1.0 }
 0x3f3   : > { %v4934_v48 = vpop.f32.mrf.mxu3 }
 0x3f4   : > { %v11576_v55 = vadd.f32 %v4934_v48, %v4772_v12 }
 0x3fa   : > { %5136 = vrot.lane.b32.xlu2 %v5038_v6, %s8906_s26 }
 0x3fb   : > { %v4872_v2 = vpop.f32.mrf.mxu2  ;;  %v4937_v53 = vpop.f32.mrf.mxu3 }
 0x3fc   : > { %v4873_v57 = vadd.f32 %v4872_v2, %v4773_v5  ;;  %v11582_v3 = vadd.f32 %v4937_v53, %v4774_v21  ;;  %v684_v5 = vld [vmem:[%s11233_s1 + $0x58] sm:$0xff]  ;;  %v4783_v2 = vmul.f32 %v11549_v50, %v4719_v28  ;;  %v4784_v53 = vmul.f32 %v11564_v33, %v4719_v28 }
 0x3fe   : > { %v11585_v58 = vadd.f32 %v11567_v26, %v4873_v57 }
 0x400   : > { %5070 = vrot.lane.b32.xlu0 %v11585_v58, %s8906_s26 }
 0x403   : > { %v4875_v38 = vpop.f32.mrf.mxu2  ;;  %v4940_v62 = vpop.f32.mrf.mxu3 }
 0x404   : > { %v4876_v9 = vadd.f32 %v4875_v38, %v4775_v44  ;;  %v11593_v0 = vadd.f32 %v4940_v62, %v4776_v15  ;;  %v7824_v44 = vsel %vm4627_vm6, 1.0, %v8905_v4  ;;  %v7825_v62 = vsel %vm4628_vm7, 1.0, %v8905_v4 }
 0x405   : > { %v5042_v18 = vmul.f32 -1e+30, %v7824_v44  ;;  %v5043_v13 = vmul.f32 -1e+30, %v7825_v62  ;;  %vm6436_vm6 = vcmask 1042434   ;;  %vm6438_vm7 = vcmask 1043459  }
 0x406   : > { %v11596_v7 = vadd.f32 %v11567_v26, %v4876_v9  ;;  %v11651_v9 = vpop.permute.xlu1 %4723 }
 0x408   : > { %5072 = vrot.lane.b32.xlu1 %v11596_v7, %s8906_s26  ;;  %5138 = vrot.lane.b32.xlu0 %v5039_v45, %s8906_s26  ;;  %v4785_v45 = vmul.f32 %v11549_v50, %v11651_v9 }
 0x40b   : > { %v4878_v1 = vpop.f32.mrf.mxu2  ;;  %v4943_v32 = vpop.f32.mrf.mxu3 }
 0x40c   : > { %v4879_v24 = vadd.f32 %v4878_v1, %v4777_v40  ;;  %v11605_v35 = vadd.f32 %v4943_v32, %v4778_v19  ;;  %v7823_v40 = vsel %vm4626_vm8, 1.0, %v8905_v4  ;;  %v686_v32 = vld [vmem:[%s11233_s1 + $0x68] sm:$0xff]  ;;  %vm6440_vm8 = vcmask 1044484  }
 0x40d   : > { %v5041_v25 = vmul.f32 -1e+30, %v7823_v40 }
 0x40e   : > { %v11608_v30 = vadd.f32 %v11567_v26, %v4879_v24  ;;  %v685_v24 = vld [vmem:[%s11233_s1 + $0x60] sm:$0xff] }
 0x410   : > { %5134 = vrot.lane.b32.xlu1 %v5037_v34, %s8906_s26  ;;  %5074 = vrot.lane.b32.xlu2 %v11608_v30, %s8906_s26  ;;  %v687_v34 = vld [vmem:[%s11233_s1 + $0x70] sm:$0xff]  ;;  %s6979_s1 = sshll.u32 %s9099_s14, 4 }
 0x411   : > { %4733 = vperm.xlu0 %8673, %v682_v10   ;;  %v5044_v10 = vmul.f32 -1e+30, %v7826_v59 }
 0x413   : > { %v4881_v31 = vpop.f32.mrf.mxu2  ;;  %v4946_v60 = vpop.f32.mrf.mxu3 }
 0x414   : > { %v11616_v46 = vadd.f32 %v4946_v60, %v4780_v22  ;;  %v4882_v51 = vadd.f32 %v4881_v31, %v4779_v11  ;;  %v5133_v22 = vpop.permute.xlu0 %5132 }
 0x416   : > { %v11631_v21 = vadd.f32 %v11567_v26, %v4882_v51 }
 0x418   : > { %4728 = vperm.xlu1 %8671, %v681_v39   ;;  %4738 = vperm.xlu2 %8672, %v683_v14  }
 0x419   : > { %5140 = vrot.lane.b32.xlu0 %v5040_v49, %s8906_s26 }
 0x41b   : > { %v4884_v12 = vpop.f32.mrf.mxu2  ;;  %v11627_v48 = vpop.f32.mrf.mxu3 }
 0x41c   : > { %v4885_v23 = vadd.f32 %v4884_v12, %v4781_v29 }
 0x41e   : > { %v11634_v6 = vadd.f32 %v11567_v26, %v4885_v23 }
 0x420   : > { %4743 = vperm.xlu1 %8671, %v684_v5   ;;  %5076 = vrot.lane.b32.xlu2 %v11631_v21, %s8906_s26 }
 0x421   : > { %5078 = vrot.lane.b32.xlu0 %v11634_v6, %s8906_s26 }
 0x423   : > { %v4887_v57 = vpop.f32.mrf.mxu2  ;;  %v4952_v43 = vpop.f32.mrf.mxu3 }
 0x424   : > { %v4888_v15 = vadd.f32 %v4887_v57, %v4783_v2  ;;  %v11645_v38 = vadd.f32 %v4952_v43, %v4784_v53 }
 0x426   : > { %v11649_v42 = vadd.f32 %v11567_v26, %v4888_v15 }
 0x428   : > { %5144 = vrot.lane.b32.xlu2 %v5042_v18, %s8906_s26  ;;  %5080 = vrot.lane.b32.xlu1 %v11649_v42, %s8906_s26 }
 0x429   : > { %5146 = vrot.lane.b32.xlu0 %v5043_v13, %s8906_s26 }
 0x42b   : > { %v4890_v61 = vpop.f32.mrf.mxu2  ;;  %v11679_v17 = vpop.f32.mrf.mxu3 }
 0x42c   : > { %v4891_v19 = vadd.f32 %v4890_v61, %v4785_v45  ;;  %v7827_v45 = vsel %vm4630_vm11, 1.0, %v8905_v4  ;;  %v5022_v61 = vsel %vm4803_vm0, %v11596_v7, 1.0  ;;  %vm6446_vm11 = vcmask 1047559  }
 0x42d   : > { %v5045_v40 = vmul.f32 -1e+30, %v7827_v45 }
 0x42e   : > { %v11662_v1 = vadd.f32 %v11567_v26, %v4891_v19 }
 0x430   : > { %5142 = vrot.lane.b32.xlu1 %v5041_v25, %s8906_s26  ;;  %5082 = vrot.lane.b32.xlu2 %v11662_v1, %s8906_s26 }
 0x431   : > { %4753 = vperm.xlu0 %8673, %v686_v32  }
 0x433   : > { %v4893_v39 = vpop.f32.mrf.mxu2  ;;  %v11681_v14 = vpop.f32.mrf.mxu3 }
 0x438   : > { %4748 = vperm.xlu1 %8671, %v685_v24   ;;  %4758 = vperm.xlu2 %8672, %v687_v34  }
 0x439   : > { %5148 = vrot.lane.b32.xlu0 %v5044_v10, %s8906_s26  ;;  %v5021_v10 = vsel %vm4803_vm0, %v11585_v58, 1.0 }
 0x43b   : > { %v4896_v11 = vpop.f32.mrf.mxu2  ;;  %v11683_v29 = vpop.f32.mrf.mxu3 }
 0x440   : > { %4763 = vperm.xlu1 %8671, %v688_v41  }
 0x443   : > { %v4899_v12 = vpop.f32.mrf.mxu2  ;;  %v4964_v47 = vpop.f32.mrf.mxu3 }
 0x44b   : > { %v4902_v43 = vpop.f32.mrf.mxu2 }
 0x44c   : > { %v5069_v31 = vpop.permute.xlu2 %5068 }
 0x44d   : > { %v5180_v60 = vsel %vm4803_vm0, %v5069_v31, %v5133_v22 }
 0x44e   : > { %7866 = vmatpush.xpose.msk.msrb.mxu0 %vm5196_vm10, %v5180_v60 }
 0x451   : > { %7867 = vmatmul.msk.f32.vlgmr.msrb.gmra.mxu0 %vm5196_vm10, %v5020_v54 }
 0x453   : > { %v11700_v19 = vpop.f32.mrf.mxu2 }
 0x454   : > { %v5137_v49 = vpop.permute.xlu2 %5136 }
 0x45b   : > { %v4908_v22 = vpop.f32.mrf.mxu2 }
 0x46a   : > { %v5075_v51 = vpop.permute.xlu2 %5074 }
 0x472   : > { %v4739_v23 = vpop.permute.xlu2 %4738  ;;  %v5071_v28 = vpop.permute.xlu0 %5070 }
 0x473   : > { %v4791_v5 = vmul.f32 %v11549_v50, %v4739_v23  ;;  %v4792_v2 = vmul.f32 %v11564_v33, %v4739_v23  ;;  %v5024_v23 = vsel %vm4803_vm0, %v11631_v21, 1.0 }
 0x475   : > { %v4900_v53 = vadd.f32 %v4899_v12, %v4791_v5  ;;  %v11687_v57 = vadd.f32 %v4964_v47, %v4792_v2  ;;  %v5023_v12 = vsel %vm4803_vm0, %v11608_v30, 1.0  ;;  %v4911_v2 = vpop.f32.mrf.mxu2 }
 0x477   : > { %v11690_v44 = vadd.f32 %v11567_v26, %v4900_v53  ;;  %v7828_v53 = vsel %vm4631_vm13, 1.0, %v8905_v4 }
 0x479   : > { %5088 = vrot.lane.b32.xlu1 %v11690_v44, %s8906_s26 }
 0x47a   : > { %v5077_v15 = vpop.permute.xlu2 %5076  ;;  %v5139_v62 = vpop.permute.xlu0 %5138 }
 0x47b   : > { %v5073_v18 = vpop.permute.xlu1 %5072  ;;  %v5183_v34 = vsel %vm4803_vm0, %v5075_v51, %v5139_v62 }
 0x47c   : > { %v5182_v13 = vsel %vm4803_vm0, %v5073_v18, %v5137_v49  ;;  %v7829_v49 = vsel %vm4632_vm12, 1.0, %v8905_v4  ;;  %v5046_v18 = vmul.f32 -1e+30, %v7828_v53 }
 0x47d   : > { %7870 = vmatpush.xpose.msk.msra.mxu2 %vm5196_vm10, %v5182_v13  ;;  %v5047_v52 = vmul.f32 -1e+30, %v7829_v49 }
 0x480   : > { %7871 = vmatmul.msk.f32.vlgmr.msra.gmra.mxu2 %vm5196_vm10, %v5022_v61 }
 0x481   : > { %5150 = vrot.lane.b32.xlu1 %v5045_v40, %s8906_s26 }
 0x482   : > { %v5145_v36 = vpop.permute.xlu2 %5144 }
 0x483   : > { %v11704_v32 = vpop.permute.xlu0 %4733  ;;  %v5135_v25 = vpop.permute.xlu1 %5134 }
 0x484   : > { %v4789_v59 = vmul.f32 %v11549_v50, %v11704_v32  ;;  %v5181_v24 = vsel %vm4803_vm0, %v5071_v28, %v5135_v25  ;;  %v7831_v25 = vsel %vm4634_vm14, 1.0, %v8905_v4 }
 0x485   : > { %7868 = vmatpush.xpose.msk.msra.mxu1 %vm5196_vm10, %v5181_v24  ;;  %v5027_v24 = vsel %vm4803_vm0, %v11662_v1, 1.0  ;;  %v5049_v37 = vmul.f32 -1e+30, %v7831_v25  ;;  %v7830_v1 = vsel %vm4633_vm15, 1.0, %v8905_v4 }
 0x486   : > { %v4897_v7 = vadd.f32 %v4896_v11, %v4789_v59  ;;  %v5026_v59 = vsel %vm4803_vm0, %v11649_v42, 1.0 }
 0x488   : > { %7869 = vmatmul.msk.f32.vlgmr.msra.gmra.mxu1 %vm5196_vm10, %v5021_v10  ;;  %v11716_v41 = vadd.f32 %v11567_v26, %v4897_v7  ;;  %v5025_v7 = vsel %vm4803_vm0, %v11634_v6, 1.0 }
 0x489   : > { %7872 = vmatpush.xpose.msk.msrb.mxu1 %vm5196_vm10, %v5183_v34 }
 0x48a   : > { %5086 = vrot.lane.b32.xlu0 %v11716_v41, %s8906_s26  ;;  %v5083_v31 = vpop.permute.xlu2 %5082 }
 0x48b   : > { %v5141_v60 = vpop.permute.xlu0 %5140  ;;  %v11721_v54 = vpop.permute.xlu1 %4728 }
 0x48c   : > { %v5184_v11 = vsel %vm4803_vm0, %v5077_v15, %v5141_v60  ;;  %v4787_v58 = vmul.f32 %v11549_v50, %v11721_v54 }
 0x48d   : > { %7874 = vmatpush.xpose.msk.msra.mxu0 %vm5196_vm10, %v5184_v11 }
 0x48e   : > { %v4894_v51 = vadd.f32 %v4893_v39, %v4787_v58 }
 0x490   : > { %7873 = vmatmul.msk.f32.vlgmr.msrb.gmra.mxu1 %vm5196_vm10, %v5023_v12  ;;  %7875 = vmatmul.msk.f32.vlgmr.msra.gmra.mxu0 %vm5196_vm10, %v5024_v23  ;;  %v11735_v28 = vadd.f32 %v11567_v26, %v4894_v51  ;;  %v7832_v51 = vsel %vm4635_vm2, 1.0, %v8905_v4 }
 0x492   : > { %5154 = vrot.lane.b32.xlu0 %v5047_v52, %s8906_s26  ;;  %5084 = vrot.lane.b32.xlu2 %v11735_v28, %s8906_s26  ;;  %v11740_v39 = vpop.permute.xlu2 %4758  ;;  %v5050_v52 = vmul.f32 -1e+30, %v7832_v51 }
 0x493   : > { %v5079_v30 = vpop.permute.xlu0 %5078  ;;  %v4799_v21 = vmul.f32 %v11549_v50, %v11740_v39  ;;  %v11745_v5 = vpop.permute.xlu1 %4743 }
 0x494   : > { %v4793_v62 = vmul.f32 %v11549_v50, %v11745_v5 }
 0x495   : > { %v4912_v47 = vadd.f32 %v4911_v2, %v4799_v21 }
 0x496   : > { %v4903_v45 = vadd.f32 %v4902_v43, %v4793_v62  ;;  %v5028_v62 = vsel %vm4803_vm0, %v11735_v28, 1.0 }
 0x497   : > { %v11749_v15 = vadd.f32 %v11567_v26, %v4912_v47 }
 0x498   : > { %v11769_v43 = vadd.f32 %v11567_v26, %v4903_v45 }
 0x49a   : > { %5096 = vrot.lane.b32.xlu0 %v11749_v15, %s8906_s26  ;;  %5152 = vrot.lane.b32.xlu2 %v5046_v18, %s8906_s26 }
 0x49b   : > { %v5147_v27 = vpop.permute.xlu0 %5146  ;;  %v5081_v13 = vpop.permute.xlu1 %5080 }
 0x49c   : > { %v5187_v61 = vsel %vm4803_vm0, %v5083_v31, %v5147_v27  ;;  %v5186_v40 = vsel %vm4803_vm0, %v5081_v13, %v5145_v36  ;;  %v5048_v31 = vmul.f32 -1e+30, %v7830_v1  ;;  %v11833_v27 = vpop.f32.mrf.mxu3 }
 0x49d   : > { %7878 = vmatpush.xpose.msk.msrb.mxu2 %vm5196_vm10, %v5186_v40  ;;  %7880 = vmatpush.xpose.msk.msra.mxu3 %vm5196_vm10, %v5187_v61  ;;  %v5030_v61 = vsel %vm4803_vm0, %v11690_v44, 1.0  ;;  %v658_v44 = vld [vmem:[%s11821_s28 + $0x8] sm:$0xff] }
 0x4a0   : > { %7879 = vmatmul.msk.f32.vlgmr.msrb.gmra.mxu2 %vm5196_vm10, %v5026_v59  ;;  %7881 = vmatmul.msk.f32.vlgmr.msra.gmra.mxu3 %vm5196_vm10, %v5027_v24  ;;  %v5029_v24 = vsel %vm4803_vm0, %v11716_v41, 1.0 }
 0x4a2   : > { %5158 = vrot.lane.b32.xlu0 %v5049_v37, %s8906_s26  ;;  %5090 = vrot.lane.b32.xlu2 %v11769_v43, %s8906_s26 }
 0x4a3   : > { %v5143_v36 = vpop.permute.xlu1 %5142  ;;  %v11776_v34 = vpop.permute.xlu0 %4753 }
 0x4a4   : > { %v5185_v42 = vsel %vm4803_vm0, %v5079_v30, %v5143_v36  ;;  %v4797_v10 = vmul.f32 %v11549_v50, %v11776_v34  ;;  %v4914_v30 = vpop.f32.mrf.mxu2  ;;  %v11840_v28 = vpop.f32.mrf.mxu3  ;;  %v659_v36 = vld [vmem:[%s11821_s28 + $0x10] sm:$0xff] }
 0x4a5   : > { %7876 = vmatpush.xpose.msk.msra.mxu1 %vm5196_vm10, %v5185_v42 }
 0x4a6   : > { %v4909_v60 = vadd.f32 %v4908_v22, %v4797_v10 }
 0x4a8   : > { %7877 = vmatmul.msk.f32.vlgmr.msra.gmra.mxu1 %vm5196_vm10, %v5025_v7  ;;  %v11792_v49 = vadd.f32 %v11567_v26, %v4909_v60 }
 0x4aa   : > { %5156 = vrot.lane.b32.xlu2 %v5048_v31, %s8906_s26 }
 0x4ab   : > { %v11786_v56 = vpop.permute.xlu1 %4748 }
 0x4ac   : > { %v4795_v11 = vmul.f32 %v11549_v50, %v11786_v56 }
 0x4ae   : > { %v4906_v58 = vadd.f32 %v11700_v19, %v4795_v11  ;;  %v7833_v19 = vsel %vm4636_vm1, 1.0, %v8905_v4  ;;  %v657_v4 = vld [vmem:[%s11821_s28] sm:$0xff]  ;;  %v11857_v11 = vpop.f32.mrf.mxu3 }
 0x4af   : > { %v5051_v23 = vmul.f32 -1e+30, %v7833_v19 }
 0x4b0   : > { %v11795_v6 = vadd.f32 %v11567_v26, %v4906_v58  ;;  %v5031_v58 = vsel %vm4803_vm0, %v11769_v43, 1.0 }
 0x4b2   : > { %5094 = vrot.lane.b32.xlu2 %v11792_v49, %s8906_s26  ;;  %5092 = vrot.lane.b32.xlu1 %v11795_v6, %s8906_s26 }
 0x4b3   : > { %v11803_v22 = vpop.permute.xlu1 %4763 }
 0x4b4   : > { %v4801_v12 = vmul.f32 %v11549_v50, %v11803_v22 }
 0x4b6   : > { %v4915_v21 = vadd.f32 %v4914_v30, %v4801_v12  ;;  %v660_v12 = vld [vmem:[%s11821_s28 + $0x18] sm:$0xff] }
 0x4b8   : > { %v11812_v8 = vadd.f32 %v11567_v26, %v4915_v21  ;;  %v5149_v26 = vpop.permute.xlu0 %5148 }
 0x4ba   : > { %5162 = vrot.lane.b32.xlu2 %v5051_v23, %s8906_s26  ;;  %5160 = vrot.lane.b32.xlu1 %v5050_v52, %s8906_s26  ;;  %v661_v23 = vld [vmem:[%s11821_s28 + $0x20] sm:$0xff] }
 0x4c2   : > { %5098 = vrot.lane.b32.xlu1 %v11812_v8, %s8906_s26  ;;  %s6834_s26 = scalar_lea.sflag [#allocation5], %s9099_s14 }
 0x4ce   : > { %v5220_v63 = vpop.f32.mrf.mxu0 }
 0x4cf   : > { %v11824_v50 = vadd.f32 %v5220_v63, %v657_v4 }
 0x4d1   : > { %v5614_v2 = vsel %vm5613_vm3, %v11824_v50, -inf }
 0x4d2   : > { %5615 = vmax.xlane.f32.xlu0 %v5614_v2 }
 0x4eb   : > { %v5089_v18 = vpop.permute.xlu1 %5088 }
 0x4ec   : > { %v5085_v47 = vpop.permute.xlu2 %5084 }
 0x4ed   : > { %v5188_v53 = vsel %vm4803_vm0, %v5085_v47, %v5149_v26  ;;  %v11874_v26 = vpop.f32.mrf.mxu3  ;;  %v4782_v47 = vmul.f32 %v11564_v33, %v11622_v16  ;;  %v5033_v16 = vsel %vm4803_vm0, %v11792_v49, 1.0 }
 0x4ee   : > { %7882 = vmatpush.xpose.msk.msrb.mxu0 %vm5196_vm10, %v5188_v53  ;;  %v11879_v53 = vperm.slane %v11561_v20, 1 }
 0x4f1   : > { %7883 = vmatmul.msk.f32.vlgmr.msrb.gmra.mxu0 %vm5196_vm10, %v5028_v62  ;;  %v4950_v62 = vadd.f32 %v11627_v48, %v4782_v47  ;;  %v663_v48 = vld [vmem:[%s11821_s28 + $0x30] sm:$0xff] }
 0x4f3   : > { %v5151_v40 = vpop.permute.xlu1 %5150 }
 0x4f4   : > { %v5153_v13 = vpop.permute.xlu2 %5152 }
 0x4f5   : > { %v5190_v45 = vsel %vm4803_vm0, %v5089_v18, %v5153_v13  ;;  %v11890_v20 = vpop.f32.mrf.mxu3 }
 0x4f6   : > { %7886 = vmatpush.xpose.msk.msra.mxu2 %vm5196_vm10, %v5190_v45  ;;  %v4991_v45 = vadd.f32 %v11879_v53, %v11582_v3  ;;  %v662_v3 = vld [vmem:[%s11821_s28 + $0x28] sm:$0xff] }
 0x4f9   : > { %7887 = vmatmul.msk.f32.vlgmr.msra.gmra.mxu2 %vm5196_vm10, %v5030_v61 }
 0x4fc   : > { %v5087_v25 = vpop.permute.xlu0 %5086  ;;  %v5091_v37 = vpop.permute.xlu2 %5090 }
 0x4fd   : > { %v5189_v59 = vsel %vm4803_vm0, %v5087_v25, %v5151_v40  ;;  %v4999_v40 = vadd.f32 %v11879_v53, %v4950_v62  ;;  %v664_v25 = vld [vmem:[%s11821_s28 + $0x38] sm:$0xff] }
 0x4fe   : > { %7884 = vmatpush.xpose.msk.msrb.mxu1 %vm5196_vm10, %v5189_v59 }
 0x501   : > { %7885 = vmatmul.msk.f32.vlgmr.msrb.gmra.mxu1 %vm5196_vm10, %v5029_v24 }
 0x503   : > { %v5272_v42 = vpop.f32.mrf.mxu2 }
 0x504   : > { %v11849_v1 = vadd.f32 %v5272_v42, %v659_v36  ;;  %v5155_v7 = vpop.permute.xlu0 %5154  ;;  %v5157_v51 = vpop.permute.xlu2 %5156 }
 0x505   : > { %v5191_v10 = vsel %vm4803_vm0, %v5091_v37, %v5155_v7  ;;  %v5246_v31 = vpop.f32.mrf.mxu1 }
 0x506   : > { %v11852_v60 = vadd.f32 %v5246_v31, %v658_v44  ;;  %7888 = vmatpush.xpose.msk.msrb.mxu3 %vm5196_vm10, %v5191_v10  ;;  %v5620_v41 = vsel %vm5613_vm3, %v11849_v1, -inf  ;;  %v4989_v44 = vadd.f32 %v11879_v53, %v11576_v55  ;;  %v5032_v55 = vsel %vm4803_vm0, %v11795_v6, 1.0 }
 0x507   : > { %5621 = vmax.xlane.f32.xlu2 %v5620_v41  ;;  %v5034_v6 = vsel %vm4803_vm0, %v11749_v15, 1.0  ;;  %v5035_v15 = vsel %vm4803_vm0, %v11812_v8, 1.0 }
 0x508   : > { %v5617_v19 = vsel %vm5613_vm3, %v11852_v60, -inf }
 0x509   : > { %7889 = vmatmul.msk.f32.vlgmr.msrb.gmra.mxu3 %vm5196_vm10, %v5031_v58  ;;  %5618 = vmax.xlane.f32.xlu1 %v5617_v19  ;;  %v4997_v58 = vadd.f32 %v11879_v53, %v11616_v46  ;;  %v5001_v46 = vadd.f32 %v11879_v53, %v11645_v38 }
 0x50c   : > { %v5097_v52 = vpop.permute.xlu0 %5096  ;;  %v5095_v18 = vpop.permute.xlu2 %5094 }
 0x50d   : > { %v5298_v30 = vpop.f32.mrf.mxu1  ;;  %v5324_v21 = vpop.f32.mrf.mxu0 }
 0x50e   : > { %v11866_v4 = vadd.f32 %v5298_v30, %v660_v12  ;;  %v11868_v63 = vadd.f32 %v5324_v21, %v661_v23  ;;  %v4993_v12 = vadd.f32 %v11879_v53, %v11593_v0  ;;  %v4786_v30 = vmul.f32 %v11564_v33, %v11651_v9 }
 0x510   : > { %v5623_v2 = vsel %vm5613_vm3, %v11866_v4, -inf  ;;  %v5626_v43 = vsel %vm5613_vm3, %v11868_v63, -inf  ;;  %v4956_v21 = vadd.f32 %v11679_v17, %v4786_v30 }
 0x511   : > { %5624 = vmax.xlane.f32.xlu2 %v5623_v2  ;;  %5627 = vmax.xlane.f32.xlu0 %v5626_v43 }
 0x512   : > { %v5003_v38 = vadd.f32 %v11879_v53, %v4956_v21 }
 0x514   : > { %v5159_v13 = vpop.permute.xlu0 %5158  ;;  %v5163_v0 = vpop.permute.xlu2 %5162 }
 0x515   : > { %v5193_v61 = vsel %vm4803_vm0, %v5095_v18, %v5159_v13  ;;  %v665_v18 = vld [vmem:[%s11821_s28 + $0x40] sm:$0xff] }
 0x516   : > { %7892 = vmatpush.xpose.msk.msra.mxu1 %vm5196_vm10, %v5193_v61 }
 0x519   : > { %7893 = vmatmul.msk.f32.vlgmr.msra.gmra.mxu1 %vm5196_vm10, %v5033_v16 }
 0x51a   : > { %5831 = vmatpush.msrb.mxu1 %v4991_v45 }
 0x51c   : > { %5923 = vmatpush.msra.mxu1 %v4999_v40  ;;  %v667_v40 = vld [vmem:[%s11821_s28 + $0x50] sm:$0xff] }
 0x523   : > { %v5376_v59 = vpop.f32.mrf.mxu2  ;;  %v5402_v24 = vpop.f32.mrf.mxu3 }
 0x524   : > { %v11895_v37 = vadd.f32 %v5376_v59, %v663_v48  ;;  %v11897_v36 = vadd.f32 %v5402_v24, %v664_v25  ;;  %v5093_v42 = vpop.permute.xlu1 %5092 }
 0x525   : > { %v5192_v49 = vsel %vm4803_vm0, %v5093_v42, %v5157_v51  ;;  %v5350_v7 = vpop.f32.mrf.mxu1 }
 0x526   : > { %v11902_v10 = vadd.f32 %v5350_v7, %v662_v3  ;;  %7890 = vmatpush.xpose.msk.msra.mxu0 %vm5196_vm10, %v5192_v49  ;;  %v5632_v31 = vsel %vm5613_vm3, %v11895_v37, -inf  ;;  %v5635_v41 = vsel %vm5613_vm3, %v11897_v36, -inf }
 0x527   : > { %5633 = vmax.xlane.f32.xlu2 %v5632_v31  ;;  %5636 = vmax.xlane.f32.xlu0 %v5635_v41 }
 0x528   : > { %v5629_v19 = vsel %vm5613_vm3, %v11902_v10, -inf }
 0x529   : > { %7891 = vmatmul.msk.f32.vlgmr.msra.gmra.mxu0 %vm5196_vm10, %v5032_v55  ;;  %5630 = vmax.xlane.f32.xlu1 %v5629_v19 }
 0x52a   : > { %5808 = vmatpush.msrb.mxu0 %v4989_v44 }
 0x52c   : > { %5900 = vmatpush.msra.mxu0 %v4997_v58  ;;  %v5161_v51 = vpop.permute.xlu1 %5160  ;;  %v666_v58 = vld [vmem:[%s11821_s28 + $0x48] sm:$0xff] }
 0x52d   : > { %v5194_v23 = vsel %vm4803_vm0, %v5097_v52, %v5161_v51  ;;  %v4995_v52 = vadd.f32 %v11879_v53, %v11605_v35 }
 0x52e   : > { %7894 = vmatpush.xpose.msk.msrb.mxu2 %vm5196_vm10, %v5194_v23 }
 0x531   : > { %7895 = vmatmul.msk.f32.vlgmr.msrb.gmra.mxu2 %vm5196_vm10, %v5034_v6  ;;  %v668_v6 = vld [vmem:[%s11821_s28 + $0x58] sm:$0xff] }
 0x532   : > { %5854 = vmatpush.msra.mxu2 %v4993_v12 }
 0x534   : > { %5946 = vmatpush.msrb.mxu2 %v5001_v46  ;;  %v5099_v2 = vpop.permute.xlu1 %5098 }
 0x535   : > { %v5195_v43 = vsel %vm4803_vm0, %v5099_v2, %v5163_v0 }
 0x536   : > { %7896 = vmatpush.xpose.msk.msra.mxu3 %vm5196_vm10, %v5195_v43 }
 0x539   : > { %7897 = vmatmul.msk.f32.vlgmr.msra.gmra.mxu3 %vm5196_vm10, %v5035_v15  ;;  %vm6444_vm10 = vcmask 1046534  }
 0x53a   : > { %5877 = vmatpush.msrb.mxu3 %v4995_v52 }
 0x53c   : > { %5969 = vmatpush.msra.mxu3 %v5003_v38 }
 0x545   : > { %v5616_v9 = vpop.xlane.xlu0 %5615 }
 0x546   : > { %v5662_v17 = vsub.f32 %v11824_v50, %v5616_v9 }
 0x548   : > { %v5678_v47 = vmul.f32 1.442695, %v5662_v17 }
 0x54a   : > { %8679 = vpow2.f32 %v5678_v47 }
 0x550   : > { %v11937_v35 = vpop.eup %8679 }
 0x551   : > { %v5710_v62 = vsel %vm5613_vm3, %v11937_v35, 0.0 }
 0x552   : > { %5711 = vadd.xlane.f32.xlu1 %v5710_v62 }
 0x56e   : > { %v5428_v13 = vpop.f32.mrf.mxu0 }
 0x56f   : > { %v11942_v45 = vadd.f32 %v5428_v13, %v665_v18 }
 0x571   : > { %v5638_v8 = vsel %vm5613_vm3, %v11942_v45, -inf }
 0x572   : > { %5639 = vmax.xlane.f32.xlu1 %v5638_v8  ;;  %v669_v8 = vld [vmem:[%s11821_s28 + $0x60] sm:$0xff] }
 0x57a   : > { %v5622_v61 = vpop.xlane.xlu2 %5621 }
 0x57b   : > { %v5664_v50 = vsub.f32 %v11849_v1, %v5622_v61 }
 0x57c   : > { %v5480_v16 = vpop.f32.mrf.mxu2  ;;  %v5619_v48 = vpop.xlane.xlu1 %5618 }
 0x57d   : > { %v5682_v25 = vmul.f32 1.442695, %v5664_v50  ;;  %v11948_v59 = vadd.f32 %v5480_v16, %v667_v40  ;;  %v5663_v24 = vsub.f32 %v11852_v60, %v5619_v48 }
 0x57e   : > { %v5454_v55 = vpop.f32.mrf.mxu1 }
 0x57f   : > { %8681 = vpow2.f32 %v5682_v25  ;;  %v5680_v3 = vmul.f32 1.442695, %v5663_v24  ;;  %v5644_v42 = vsel %vm5613_vm3, %v11948_v59, -inf  ;;  %v11964_v23 = vadd.f32 %v5454_v55, %v666_v58  ;;  %v672_v58 = vld [vmem:[%s11821_s28 + $0x78] sm:$0xff] }
 0x580   : > { %5645 = vmax.xlane.f32.xlu1 %v5644_v42 }
 0x581   : > { %8683 = vpow2.f32 %v5680_v3 }
 0x584   : > { %v5625_v44 = vpop.xlane.xlu2 %5624  ;;  %v5628_v49 = vpop.xlane.xlu0 %5627 }
 0x585   : > { %v11953_v7 = vpop.eup %8681  ;;  %v5665_v1 = vsub.f32 %v11866_v4, %v5625_v44  ;;  %v5666_v31 = vsub.f32 %v11868_v63, %v5628_v49  ;;  %v5641_v4 = vsel %vm5613_vm3, %v11964_v23, -inf  ;;  %v671_v49 = vld [vmem:[%s11821_s28 + $0x70] sm:$0xff] }
 0x586   : > { %v5716_v41 = vsel %vm5613_vm3, %v11953_v7, 0.0 }
 0x587   : > { %v11959_v60 = vpop.eup %8683  ;;  %v5684_v19 = vmul.f32 1.442695, %v5665_v1  ;;  %5717 = vadd.xlane.f32.xlu0 %v5716_v41  ;;  %v5686_v12 = vmul.f32 1.442695, %v5666_v31 }
 0x588   : > { %v5713_v51 = vsel %vm5613_vm3, %v11959_v60, 0.0 }
 0x589   : > { %8685 = vpow2.f32 %v5684_v19  ;;  %5714 = vadd.xlane.f32.xlu2 %v5713_v51 }
 0x58a   : > { %8687 = vpow2.f32 %v5686_v12 }
 0x58c   : > { %v5506_v30 = vpop.f32.mrf.mxu3 }
 0x58d   : > { %v11975_v0 = vadd.f32 %v5506_v30, %v668_v6 }
 0x58f   : > { %v11968_v63 = vpop.eup %8685  ;;  %5642 = vmax.xlane.f32.xlu0 %v5641_v4  ;;  %v5647_v52 = vsel %vm5613_vm3, %v11975_v0, -inf  ;;  %v4788_v4 = vmul.f32 %v11564_v33, %v11721_v54 }
 0x590   : > { %v5719_v46 = vsel %vm5613_vm3, %v11968_v63, 0.0  ;;  %v11973_v21 = vpop.eup %8687 }
 0x591   : > { %5720 = vadd.xlane.f32.xlu2 %v5719_v46  ;;  %v5722_v2 = vsel %vm5613_vm3, %v11973_v21, 0.0  ;;  %v4959_v46 = vadd.f32 %v11681_v14, %v4788_v4 }
 0x596   : > { %v5558_v48 = vpop.f32.mrf.mxu1 }
 0x597   : > { %5723 = vadd.xlane.f32.xlu0 %v5722_v2  ;;  %v5005_v2 = vadd.f32 %v11879_v53, %v4959_v46 }
 0x599   : > { %5648 = vmax.xlane.f32.xlu2 %v5647_v52 }
 0x59a   : > { %v5634_v43 = vpop.xlane.xlu2 %5633  ;;  %v5637_v15 = vpop.xlane.xlu0 %5636 }
 0x59b   : > { %v5668_v38 = vsub.f32 %v11895_v37, %v5634_v43  ;;  %v5669_v62 = vsub.f32 %v11897_v36, %v5637_v15  ;;  %v670_v37 = vld [vmem:[%s11821_s28 + $0x68] sm:$0xff]  ;;  %s636_s28 = scalar_lea.vmem [#allocation8], %s6979_s1  ;;  %s8840_s1 = scalar_lea.hbm %s13430_s16, 32 }
 0x59c   : > { %v5631_v9 = vpop.xlane.xlu1 %5630  ;;  %v11998_v24 = vadd.f32 %v5558_v48, %v670_v37  ;;  %v5009_v37 = vadd.f32 %v11879_v53, %v11687_v57  ;;  %s6846_s22 = sshll.u32 %s636_s28, 4  ;;  %p8842_p2 = scmp.lt.s32.totalorder %s8840_s1, %s8836_s25  ;;  %s6847_s22 = int_to_ptr.vmem [resolvable:$true] %s6846_s22 }
 0x59d   : > { %v5690_v17 = vmul.f32 1.442695, %v5668_v38  ;;  %v5667_v47 = vsub.f32 %v11902_v10, %v5631_v9  ;;  %v5692_v13 = vmul.f32 1.442695, %v5669_v62  ;;  %v4790_v62 = vmul.f32 %v11564_v33, %v11704_v32 }
 0x59e   : > { %v5653_v42 = vsel %vm5613_vm3, %v11998_v24, -inf  ;;  %p8843_p10 = por %p8842_p2, %p8841_p9 }
 0x59f   : > { %8689 = vpow2.f32 %v5690_v17  ;;  %v5688_v18 = vmul.f32 1.442695, %v5667_v47 }
 0x5a0   : > { %p8844_p12 = pnand %p8843_p10, %p8839_p11 }
 0x5a1   : > { %8691 = vpow2.f32 %v5688_v18 }
 0x5a2   : > { %8693 = vpow2.f32 %v5692_v13 }
 0x5a5   : > { %v11985_v61 = vpop.eup %8689 }
 0x5a6   : > { %v5532_v40 = vpop.f32.mrf.mxu0  ;;  %v5728_v50 = vsel %vm5613_vm3, %v11985_v61, 0.0 }
 0x5a7   : > { %v11989_v16 = vpop.eup %8691  ;;  %v11992_v10 = vadd.f32 %v5532_v40, %v669_v8  ;;  %5729 = vadd.xlane.f32.xlu2 %v5728_v50  ;;  %v4962_v8 = vadd.f32 %v11683_v29, %v4790_v62 }
 0x5a8   : > { %v5725_v36 = vsel %vm5613_vm3, %v11989_v16, 0.0  ;;  %v12000_v3 = vpop.eup %8693 }
 0x5a9   : > { %5726 = vadd.xlane.f32.xlu1 %v5725_v36  ;;  %v5650_v25 = vsel %vm5613_vm3, %v11992_v10, -inf  ;;  %v5731_v44 = vsel %vm5613_vm3, %v12000_v3, 0.0 }
 0x5aa   : > { %5651 = vmax.xlane.f32.xlu0 %v5650_v25  ;;  %v5007_v25 = vadd.f32 %v11879_v53, %v4962_v8 }
 0x5af   : > { %5654 = vmax.xlane.f32.xlu2 %v5653_v42  ;;  %v4794_v42 = vmul.f32 %v11564_v33, %v11745_v5 }
 0x5b1   : > { %5732 = vadd.xlane.f32.xlu1 %v5731_v44  ;;  %v4968_v57 = vadd.f32 %v11833_v27, %v4794_v42 }
 0x5b3   : > { %v5011_v5 = vadd.f32 %v11879_v53, %v4968_v57  ;;  %v6165_v57 = vld [vmem:[%s12510_s11 + $0x38] sm:$0xff] }
 0x5b4   : > { %v5584_v1 = vpop.f32.mrf.mxu2 }
 0x5b5   : > { %v12007_v31 = vadd.f32 %v5584_v1, %v671_v49 }
 0x5b7   : > { %v5656_v41 = vsel %vm5613_vm3, %v12007_v31, -inf }
 0x5b8   : > { %5657 = vmax.xlane.f32.xlu0 %v5656_v41 }
 0x5bc   : > { %v5610_v55 = vpop.f32.mrf.mxu3 }
 0x5bd   : > { %v12012_v19 = vadd.f32 %v5610_v55, %v672_v58 }
 0x5bf   : > { %v5659_v51 = vsel %vm5613_vm3, %v12012_v19, -inf }
 0x5c0   : > { %5660 = vmax.xlane.f32.xlu1 %v5659_v51 }
 0x5c5   : > { %v5712_v12 = vpop.xlane.xlu1 %5711 }
 0x5c6   : > { %8695 = vrcp.f32 %v5712_v12 }
 0x5cc   : > { %v8696_v6 = vpop.eup %8695 }
 0x5cd   : > { %v5774_v30 = vmul.f32 %v8696_v6, %v11937_v35 }
 0x5cf   : > { %7898 = vmatmul.msk.f32.vlgmr.msrb.gmra.mxu0 %vm5613_vm3, %v5774_v30 }
 0x5d0   : > { %5992 = vmatpush.msrb.mxu0 %v5005_v2 }
 0x5e5   : > { %v5640_v52 = vpop.xlane.xlu1 %5639 }
 0x5e6   : > { %v5670_v43 = vsub.f32 %v11942_v45, %v5640_v52 }
 0x5e8   : > { %v5694_v38 = vmul.f32 1.442695, %v5670_v43 }
 0x5ea   : > { %8697 = vpow2.f32 %v5694_v38 }
 0x5f0   : > { %v12023_v15 = vpop.eup %8697 }
 0x5f1   : > { %v5734_v54 = vsel %vm5613_vm3, %v12023_v15, 0.0 }
 0x5f2   : > { %5735 = vadd.xlane.f32.xlu2 %v5734_v54 }
 0x5f3   : > { %v5646_v14 = vpop.xlane.xlu1 %5645 }
 0x5f4   : > { %v5672_v9 = vsub.f32 %v11948_v59, %v5646_v14 }
 0x5f6   : > { %v5698_v35 = vmul.f32 1.442695, %v5672_v9 }
 0x5f8   : > { %8699 = vpow2.f32 %v5698_v35 }
 0x5fa   : > { %v5718_v17 = vpop.xlane.xlu0 %5717 }
 0x5fb   : > { %8701 = vrcp.f32 %v5718_v17 }
 0x5fc   : > { %v5715_v47 = vpop.xlane.xlu2 %5714 }
 0x5fd   : > { %8703 = vrcp.f32 %v5715_v47 }
 0x5fe   : > { %v12030_v45 = vpop.eup %8699 }
 0x5ff   : > { %v5740_v18 = vsel %vm5613_vm3, %v12030_v45, 0.0 }
 0x600   : > { %5741 = vadd.xlane.f32.xlu1 %v5740_v18 }
 0x601   : > { %v8702_v13 = vpop.eup %8701 }
 0x602   : > { %v5776_v59 = vmul.f32 %v8702_v13, %v11953_v7  ;;  %v5643_v40 = vpop.xlane.xlu0 %5642 }
 0x603   : > { %v8704_v50 = vpop.eup %8703  ;;  %v5671_v48 = vsub.f32 %v11964_v23, %v5643_v40 }
 0x604   : > { %v5775_v32 = vmul.f32 %v8704_v50, %v11959_v60  ;;  %v5721_v36 = vpop.xlane.xlu2 %5720  ;;  %7900 = vmatmul.msk.f32.vlgmr.msra.gmra.mxu2 %vm5613_vm3, %v5776_v59  ;;  %v4796_v60 = vmul.f32 %v11564_v33, %v11786_v56 }
 0x605   : > { %v5696_v29 = vmul.f32 1.442695, %v5671_v48  ;;  %8705 = vrcp.f32 %v5721_v36  ;;  %6038 = vmatpush.msra.mxu2 %v5009_v37 }
 0x606   : > { %7899 = vmatmul.msk.f32.vlgmr.msrb.gmra.mxu1 %vm5613_vm3, %v5775_v32  ;;  %v4971_v58 = vadd.f32 %v11840_v28, %v4796_v60  ;;  %v4800_v28 = vmul.f32 %v11564_v33, %v11740_v39 }
 0x607   : > { %8707 = vpow2.f32 %v5696_v29  ;;  %6015 = vmatpush.msrb.mxu1 %v5007_v25 }
 0x608   : > { %v5013_v51 = vadd.f32 %v11879_v53, %v4971_v58  ;;  %v4977_v2 = vadd.f32 %v11874_v26, %v4800_v28  ;;  %v6158_v58 = vld [vmem:[%s12510_s11] sm:$0xff] }
 0x60a   : > { %v5724_v7 = vpop.xlane.xlu0 %5723  ;;  %v5017_v9 = vadd.f32 %v11879_v53, %v4977_v2 }
 0x60b   : > { %v8706_v23 = vpop.eup %8705  ;;  %8709 = vrcp.f32 %v5724_v7 }
 0x60c   : > { %v5777_v44 = vmul.f32 %v8706_v23, %v11968_v63  ;;  %v5649_v49 = vpop.xlane.xlu2 %5648 }
 0x60d   : > { %v12049_v1 = vpop.eup %8707  ;;  %v5673_v41 = vsub.f32 %v11975_v0, %v5649_v49  ;;  %v6161_v49 = vld [vmem:[%s12510_s11 + $0x18] sm:$0xff] }
 0x60e   : > { %7901 = vmatmul.msk.f32.vlgmr.msrb.gmra.mxu3 %vm5613_vm3, %v5777_v44  ;;  %v5737_v27 = vsel %vm5613_vm3, %v12049_v1, 0.0  ;;  %v6162_v44 = vld [vmem:[%s12510_s11 + $0x20] sm:$0xff] }
 0x60f   : > { %v5700_v55 = vmul.f32 1.442695, %v5673_v41  ;;  %6061 = vmatpush.msrb.mxu3 %v5011_v5  ;;  %5738 = vadd.xlane.f32.xlu0 %v5737_v27  ;;  %v6159_v41 = vld [vmem:[%s12510_s11 + $0x8] sm:$0xff] }
 0x611   : > { %v8710_v56 = vpop.eup %8709  ;;  %8711 = vpow2.f32 %v5700_v55 }
 0x612   : > { %v5778_v63 = vmul.f32 %v8710_v56, %v11973_v21  ;;  %v4798_v21 = vmul.f32 %v11564_v33, %v11776_v34 }
 0x614   : > { %7902 = vmatmul.msk.f32.vlgmr.msra.gmra.mxu0 %vm5613_vm3, %v5778_v63  ;;  %v4974_v38 = vadd.f32 %v11857_v11, %v4798_v21 }
 0x615   : > { %6084 = vmatpush.msra.mxu0 %v5013_v51 }
 0x616   : > { %v5015_v26 = vadd.f32 %v11879_v53, %v4974_v38 }
 0x617   : > { %v12060_v0 = vpop.eup %8711 }
 0x618   : > { %v5743_v12 = vsel %vm5613_vm3, %v12060_v0, 0.0 }
 0x619   : > { %5744 = vadd.xlane.f32.xlu2 %v5743_v12 }
 0x61a   : > { %v5730_v4 = vpop.xlane.xlu2 %5729 }
 0x61b   : > { %8713 = vrcp.f32 %v5730_v4 }
 0x61c   : > { %v5727_v46 = vpop.xlane.xlu1 %5726 }
 0x61d   : > { %8715 = vrcp.f32 %v5727_v46  ;;  %v5652_v6 = vpop.xlane.xlu0 %5651 }
 0x61e   : > { %v5674_v30 = vsub.f32 %v11992_v10, %v5652_v6  ;;  %v4802_v10 = vmul.f32 %v11564_v33, %v11803_v22 }
 0x620   : > { %v5702_v52 = vmul.f32 1.442695, %v5674_v30 }
 0x621   : > { %v8714_v43 = vpop.eup %8713 }
 0x622   : > { %v5780_v54 = vmul.f32 %v8714_v43, %v11985_v61  ;;  %8717 = vpow2.f32 %v5702_v52  ;;  %v5655_v14 = vpop.xlane.xlu2 %5654 }
 0x623   : > { %v8716_v39 = vpop.eup %8715  ;;  %v5675_v35 = vsub.f32 %v11998_v24, %v5655_v14  ;;  %v4980_v24 = vadd.f32 %v11890_v20, %v4802_v10 }
 0x624   : > { %v5779_v34 = vmul.f32 %v8716_v39, %v11989_v16  ;;  %v5733_v17 = vpop.xlane.xlu1 %5732  ;;  %7904 = vmatmul.msk.f32.vlgmr.msrb.gmra.mxu2 %vm5613_vm3, %v5780_v54 }
 0x625   : > { %v5704_v11 = vmul.f32 1.442695, %v5675_v35  ;;  %8719 = vrcp.f32 %v5733_v17  ;;  %6130 = vmatpush.msrb.mxu2 %v5017_v9  ;;  %v5019_v13 = vadd.f32 %v11879_v53, %v4980_v24 }
 0x626   : > { %7903 = vmatmul.msk.f32.vlgmr.msra.gmra.mxu1 %vm5613_vm3, %v5779_v34 }
 0x627   : > { %8721 = vpow2.f32 %v5704_v11  ;;  %6107 = vmatpush.msra.mxu1 %v5015_v26 }
 0x628   : > { %v12080_v61 = vpop.eup %8717 }
 0x629   : > { %v5746_v16 = vsel %vm5613_vm3, %v12080_v61, 0.0 }
 0x62a   : > { %5747 = vadd.xlane.f32.xlu0 %v5746_v16 }
 0x62b   : > { %v8720_v47 = vpop.eup %8719  ;;  %v5658_v62 = vpop.xlane.xlu0 %5657 }
 0x62c   : > { %v5781_v18 = vmul.f32 %v8720_v47, %v12000_v3  ;;  %v5676_v33 = vsub.f32 %v12007_v31, %v5658_v62 }
 0x62d   : > { %v8722_v22 = vpop.eup %8721 }
 0x62e   : > { %v5706_v8 = vmul.f32 1.442695, %v5676_v33  ;;  %7905 = vmatmul.msk.f32.vlgmr.msra.gmra.mxu3 %vm5613_vm3, %v5781_v18  ;;  %v5749_v59 = vsel %vm5613_vm3, %v8722_v22, 0.0  ;;  %v12149_v33 = vld [vmem:[%s12511_s12] ss:$0 sm:$0xff] }
 0x62f   : > { %6153 = vmatpush.msra.mxu3 %v5019_v13  ;;  %5750 = vadd.xlane.f32.xlu1 %v5749_v59 }
 0x630   : > { %8723 = vpow2.f32 %v5706_v8 }
 0x633   : > { %v5661_v20 = vpop.xlane.xlu1 %5660 }
 0x634   : > { %v5677_v40 = vsub.f32 %v12012_v19, %v5661_v20 }
 0x636   : > { %v8724_v50 = vpop.eup %8723  ;;  %v5708_v37 = vmul.f32 1.442695, %v5677_v40 }
 0x637   : > { %v5752_v3 = vsel %vm5613_vm3, %v8724_v50, 0.0 }
 0x638   : > { %8725 = vpow2.f32 %v5708_v37  ;;  %5753 = vadd.xlane.f32.xlu2 %v5752_v3  ;;  %v8907_v37 = vmov 8.0  }
 0x63e   : > { %v8726_v31 = vpop.eup %8725 }
 0x63f   : > { %v5755_v53 = vsel %vm5613_vm3, %v8726_v31, 0.0 }
 0x640   : > { %5756 = vadd.xlane.f32.xlu0 %v5755_v53 }
 0x64c   : > { %v5810_v28 = vpop.f32.mrf.mxu0 }
 0x665   : > { %v5736_v48 = vpop.xlane.xlu2 %5735 }
 0x666   : > { %8727 = vrcp.f32 %v5736_v48 }
 0x66c   : > { %v8728_v32 = vpop.eup %8727 }
 0x66d   : > { %v5782_v36 = vmul.f32 %v8728_v32, %v12023_v15  ;;  %v6164_v15 = vld [vmem:[%s12510_s11 + $0x30] sm:$0xff] }
 0x66f   : > { %7906 = vmatmul.msk.f32.vlgmr.msrb.gmra.mxu0 %vm5613_vm3, %v5782_v36 }
 0x670   : > { %6226 = vmatpush.msrb.mxu0 %v6165_v57 }
 0x672   : > { %6227 = vmatpush.msrb.mxu0 %v6164_v15 }
 0x673   : > { %v5742_v25 = vpop.xlane.xlu1 %5741 }
 0x674   : > { %8729 = vrcp.f32 %v5742_v25 }
 0x67a   : > { %v8730_v19 = vpop.eup %8729 }
 0x67b   : > { %v5784_v42 = vmul.f32 %v8730_v19, %v12030_v45  ;;  %v6163_v45 = vld [vmem:[%s12510_s11 + $0x28] sm:$0xff] }
 0x67c   : > { %6228 = vmatpush.msrb.mxu0 %v6163_v45 }
 0x67d   : > { %7908 = vmatmul.msk.f32.vlgmr.msra.gmra.mxu2 %vm5613_vm3, %v5784_v42 }
 0x67e   : > { %6229 = vmatpush.msrb.mxu0 %v6162_v44 }
 0x680   : > { %6230 = vmatpush.msrb.mxu0 %v6161_v49 }
 0x682   : > { %v5739_v29 = vpop.xlane.xlu0 %5738 }
 0x683   : > { %8731 = vrcp.f32 %v5739_v29  ;;  %v5833_v30 = vpop.f32.mrf.mxu1 }
 0x687   : > { %v5856_v43 = vpop.f32.mrf.mxu2 }
 0x689   : > { %v8732_v7 = vpop.eup %8731 }
 0x68a   : > { %v5783_v23 = vmul.f32 %v8732_v7, %v12049_v1  ;;  %v6160_v1 = vld [vmem:[%s12510_s11 + $0x10] sm:$0xff] }
 0x68b   : > { %6231 = vmatpush.msrb.mxu0 %v6160_v1 }
 0x68c   : > { %v5745_v60 = vpop.xlane.xlu2 %5744  ;;  %7907 = vmatmul.msk.f32.vlgmr.msrb.gmra.mxu1 %vm5613_vm3, %v5783_v23 }
 0x68d   : > { %8733 = vrcp.f32 %v5745_v60  ;;  %6232 = vmatpush.msrb.mxu0 %v6159_v41 }
 0x68f   : > { %6233 = vmatpush.msrb.mxu0 %v6158_v58 }
 0x691   : > { %v5879_v38 = vpop.f32.mrf.mxu3  ;;  %v5902_v54 = vpop.f32.mrf.mxu0 }
 0x693   : > { %v8734_v5 = vpop.eup %8733 }
 0x694   : > { %v5785_v27 = vmul.f32 %v8734_v5, %v12060_v0 }
 0x696   : > { %7909 = vmatmul.msk.f32.vlgmr.msrb.gmra.mxu3 %vm5613_vm3, %v5785_v27 }
 0x69d   : > { %v5748_v55 = vpop.xlane.xlu0 %5747 }
 0x69e   : > { %8735 = vrcp.f32 %v5748_v55 }
 0x6a2   : > { %v5751_v56 = vpop.xlane.xlu1 %5750 }
 0x6a3   : > { %8737 = vrcp.f32 %v5751_v56  ;;  %v5925_v14 = vpop.f32.mrf.mxu1 }
 0x6a4   : > { %v8736_v63 = vpop.eup %8735 }
 0x6a5   : > { %v5786_v51 = vmul.f32 %v8736_v63, %v12080_v61 }
 0x6a7   : > { %7910 = vmatmul.msk.f32.vlgmr.msra.gmra.mxu0 %vm5613_vm3, %v5786_v51  ;;  %v5948_v39 = vpop.f32.mrf.mxu2 }
 0x6a9   : > { %v8738_v12 = vpop.eup %8737 }
 0x6aa   : > { %v5787_v4 = vmul.f32 %v8738_v12, %v8722_v22 }
 0x6ab   : > { %v5754_v0 = vpop.xlane.xlu2 %5753 }
 0x6ac   : > { %8739 = vrcp.f32 %v5754_v0  ;;  %7911 = vmatmul.msk.f32.vlgmr.msra.gmra.mxu1 %vm5613_vm3, %v5787_v4 }
 0x6af   : > { %7914 = vmatmul.msk.f32.vlgmr.msrb.gmra.mxu0 %vm4803_vm0, %v5810_v28 }
 0x6b1   : > { %v5971_v9 = vpop.f32.mrf.mxu3 }
 0x6b2   : > { %v8740_v46 = vpop.eup %8739 }
 0x6b3   : > { %v5788_v21 = vmul.f32 %v8740_v46, %v8724_v50  ;;  %v5757_v6 = vpop.xlane.xlu0 %5756 }
 0x6b4   : > { %8741 = vrcp.f32 %v5757_v6 }
 0x6b5   : > { %7912 = vmatmul.msk.f32.vlgmr.msrb.gmra.mxu2 %vm5613_vm3, %v5788_v21  ;;  %8743 = vrcp.f32 %v8907_v37 }
 0x6b7   : > { %7915 = vmatmul.msk.f32.gmra.mxu0 %vm4803_vm0, %v5833_v30 }
 0x6ba   : > { %v8742_v2 = vpop.eup %8741 }
 0x6bb   : > { %v5789_v52 = vmul.f32 %v8742_v2, %v8726_v31  ;;  %v8744_v23 = vpop.eup %8743 }
 0x6bc   : > { %v6396_v1 = vmul.f32 8.0, %v8744_v23  ;;  %vm6400_vm4 = vweird.f32 %v8744_v23 }
 0x6bd   : > { %7913 = vmatmul.msk.f32.vlgmr.msra.gmra.mxu3 %vm5613_vm3, %v5789_v52 }
 0x6be   : > { %v6397_v12 = vsub.f32 1.0, %v6396_v1 }
 0x6bf   : > { %7916 = vmatmul.msk.f32.gmra.mxu0 %vm4803_vm0, %v5856_v43 }
 0x6c0   : > { %v6398_v43 = vmul.f32 %v8744_v23, %v6397_v12 }
 0x6c7   : > { %7917 = vmatmul.msk.f32.gmra.mxu0 %vm4803_vm0, %v5879_v38 }
 0x6cf   : > { %7918 = vmatmul.msk.f32.gmra.mxu0 %vm4803_vm0, %v5902_v54 }
 0x6d7   : > { %7919 = vmatmul.msk.f32.gmra.mxu0 %vm4803_vm0, %v5925_v14 }
 0x6df   : > { %7920 = vmatmul.msk.f32.gmra.mxu0 %vm4803_vm0, %v5948_v39 }
 0x6e7   : > { %7921 = vmatmul.msk.f32.gmra.mxu0 %vm4803_vm0, %v5971_v9 }
 0x6ec   : > { %v5994_v35 = vpop.f32.mrf.mxu0 }
 0x6ef   : > { %7922 = vmatmul.msk.f32.gmra.mxu0 %vm4803_vm0, %v5994_v35 }
 0x700   : > { %v6040_v17 = vpop.f32.mrf.mxu2 }
 0x709   : > { %v6017_v34 = vpop.f32.mrf.mxu1 }
 0x70a   : > { %7923 = vmatmul.msk.f32.gmra.mxu0 %vm4803_vm0, %v6017_v34 }
 0x712   : > { %7924 = vmatmul.msk.f32.gmra.mxu0 %vm4803_vm0, %v6040_v17 }
 0x719   : > { %v6063_v26 = vpop.f32.mrf.mxu3 }
 0x71a   : > { %7925 = vmatmul.msk.f32.gmra.mxu0 %vm4803_vm0, %v6063_v26 }
 0x724   : > { %v6086_v10 = vpop.f32.mrf.mxu0 }
 0x725   : > { %7926 = vmatmul.msk.f32.gmra.mxu0 %vm4803_vm0, %v6086_v10 }
 0x729   : > { %v6109_v11 = vpop.f32.mrf.mxu1 }
 0x72c   : > { %v6235_v61 = vpop.f32.mrf.mxu0 }
 0x72d   : > { %7927 = vmatmul.msk.f32.gmra.mxu0 %vm4803_vm0, %v6109_v11  ;;  %v6236_v59 = vadd.f32 %v12149_v33, %v6235_v61  ;;  %v6399_v11 = vadd.f32 %v8744_v23, %v6398_v43 }
 0x72f   : > { %v6283_v31 = vsel %vm4803_vm0, %v6236_v59, 0.0 }
 0x730   : > { %v6284_v42 = vrot.slane %v6283_v31, 4 }
 0x732   : > { %v6285_v44 = vadd.f32 %v6284_v42, %v6283_v31 }
 0x734   : > { %v6238_v24 = vpop.f32.mrf.mxu0  ;;  %v6286_v63 = vrot.slane %v6285_v44, 2 }
 0x735   : > { %v6239_v13 = vadd.f32 %v12149_v33, %v6238_v24 }
 0x736   : > { %v6287_v30 = vadd.f32 %v6286_v63, %v6285_v44 }
 0x737   : > { %v6290_v50 = vsel %vm4803_vm0, %v6239_v13, 0.0 }
 0x738   : > { %v6132_v16 = vpop.f32.mrf.mxu2  ;;  %v6291_v48 = vrot.slane %v6290_v50, 4  ;;  %v6288_v17 = vrot.slane %v6287_v30, 1 }
 0x739   : > { %7928 = vmatmul.msk.f32.gmra.mxu0 %vm4803_vm0, %v6132_v16 }
 0x73a   : > { %v6292_v15 = vadd.f32 %v6291_v48, %v6290_v50  ;;  %v6289_v13 = vadd.f32 %v6288_v17, %v6287_v30 }
 0x73c   : > { %v6241_v47 = vpop.f32.mrf.mxu0  ;;  %v6293_v41 = vrot.slane %v6292_v15, 2 }
 0x73d   : > { %v6242_v8 = vadd.f32 %v12149_v33, %v6241_v47 }
 0x73e   : > { %v6294_v28 = vadd.f32 %v6293_v41, %v6292_v15 }
 0x73f   : > { %v6297_v3 = vsel %vm4803_vm0, %v6242_v8, 0.0 }
 0x740   : > { %v6155_v62 = vpop.f32.mrf.mxu3  ;;  %v6298_v25 = vrot.slane %v6297_v3, 4  ;;  %v6295_v54 = vrot.slane %v6294_v28, 1 }
 0x741   : > { %7929 = vmatmul.msk.f32.gmra.mxu0 %vm4803_vm0, %v6155_v62 }
 0x742   : > { %v6299_v60 = vadd.f32 %v6298_v25, %v6297_v3  ;;  %v6296_v16 = vadd.f32 %v6295_v54, %v6294_v28 }
 0x744   : > { %v6244_v18 = vpop.f32.mrf.mxu0  ;;  %v6300_v55 = vrot.slane %v6299_v60, 2 }
 0x745   : > { %v6245_v20 = vadd.f32 %v12149_v33, %v6244_v18 }
 0x746   : > { %v6301_v6 = vadd.f32 %v6300_v55, %v6299_v60 }
 0x747   : > { %v6304_v53 = vsel %vm4803_vm0, %v6245_v20, 0.0  ;;  %v12167_v20 = vsel %vm6400_vm4, %v8744_v23, %v6399_v11 }
 0x748   : > { %v6305_v29 = vrot.slane %v6304_v53, 4  ;;  %v6302_v35 = vrot.slane %v6301_v6, 1  ;;  %v12170_v50 = vmul.f32 %v12167_v20, %v6296_v16  ;;  %v12176_v48 = vmul.f32 %v12167_v20, %v6289_v13 }
 0x74a   : > { %v6306_v49 = vadd.f32 %v6305_v29, %v6304_v53  ;;  %v6303_v18 = vadd.f32 %v6302_v35, %v6301_v6 }
 0x74c   : > { %v6247_v22 = vpop.f32.mrf.mxu0  ;;  %v6307_v51 = vrot.slane %v6306_v49, 2  ;;  %v12173_v31 = vmul.f32 %v12167_v20, %v6303_v18 }
 0x74d   : > { %v6248_v40 = vadd.f32 %v12149_v33, %v6247_v22 }
 0x74e   : > { %v6308_v2 = vadd.f32 %v6307_v51, %v6306_v49 }
 0x74f   : > { %v6311_v32 = vsel %vm4803_vm0, %v6248_v40, 0.0 }
 0x750   : > { %v6312_v57 = vrot.slane %v6311_v32, 4  ;;  %v6309_v26 = vrot.slane %v6308_v2, 1 }
 0x752   : > { %v6313_v5 = vadd.f32 %v6312_v57, %v6311_v32  ;;  %v6310_v8 = vadd.f32 %v6309_v26, %v6308_v2 }
 0x754   : > { %v6250_v36 = vpop.f32.mrf.mxu0  ;;  %v6314_v4 = vrot.slane %v6313_v5, 2  ;;  %v12179_v32 = vmul.f32 %v12167_v20, %v6310_v8 }
 0x755   : > { %v6251_v19 = vadd.f32 %v12149_v33, %v6250_v36 }
 0x756   : > { %v6315_v38 = vadd.f32 %v6314_v4, %v6313_v5 }
 0x757   : > { %v6318_v7 = vsel %vm4803_vm0, %v6251_v19, 0.0  ;;  %v6435_v19 = vsel %vm6434_vm5, %v12170_v50, %v12176_v48 }
 0x758   : > { %v6319_v45 = vrot.slane %v6318_v7, 4  ;;  %v6316_v61 = vrot.slane %v6315_v38, 1 }
 0x75a   : > { %v6320_v27 = vadd.f32 %v6319_v45, %v6318_v7  ;;  %v6317_v40 = vadd.f32 %v6316_v61, %v6315_v38  ;;  %v6437_v7 = vsel %vm6436_vm6, %v12173_v31, %v6435_v19 }
 0x75b   : > { %v6439_v15 = vsel %vm6438_vm7, %v12179_v32, %v6437_v7 }
 0x75c   : > { %v6253_v58 = vpop.f32.mrf.mxu0  ;;  %v6321_v46 = vrot.slane %v6320_v27, 2  ;;  %v12182_v25 = vmul.f32 %v12167_v20, %v6317_v40 }
 0x75d   : > { %v6254_v56 = vadd.f32 %v12149_v33, %v6253_v58 }
 0x75e   : > { %v6322_v14 = vadd.f32 %v6321_v46, %v6320_v27  ;;  %v6441_v45 = vsel %vm6440_vm8, %v12182_v25, %v6439_v15 }
 0x75f   : > { %v6325_v0 = vsel %vm4803_vm0, %v6254_v56, 0.0 }
 0x760   : > { %v6326_v21 = vrot.slane %v6325_v0, 4  ;;  %v6323_v47 = vrot.slane %v6322_v14, 1 }
 0x762   : > { %v6327_v52 = vadd.f32 %v6326_v21, %v6325_v0  ;;  %v6324_v37 = vadd.f32 %v6323_v47, %v6322_v14 }
 0x764   : > { %v6328_v39 = vrot.slane %v6327_v52, 2  ;;  %v6256_v9 = vpop.f32.mrf.mxu0  ;;  %v12188_v42 = vmul.f32 %v12167_v20, %v6324_v37 }
 0x765   : > { %v6257_v34 = vadd.f32 %v12149_v33, %v6256_v9 }
 0x766   : > { %v6329_v10 = vadd.f32 %v6328_v39, %v6327_v52  ;;  %v6443_v44 = vsel %vm6442_vm9, %v12188_v42, %v6441_v45 }
 0x767   : > { %v6332_v24 = vsel %vm4803_vm0, %v6257_v34, 0.0 }
 0x768   : > { %v6333_v62 = vrot.slane %v6332_v24, 4  ;;  %v6330_v22 = vrot.slane %v6329_v10, 1 }
 0x76a   : > { %v6334_v59 = vadd.f32 %v6333_v62, %v6332_v24  ;;  %v6331_v53 = vadd.f32 %v6330_v22, %v6329_v10 }
 0x76c   : > { %v6335_v3 = vrot.slane %v6334_v59, 2  ;;  %v12191_v57 = vmul.f32 %v12167_v20, %v6331_v53  ;;  %v6259_v41 = vpop.f32.mrf.mxu0 }
 0x76d   : > { %v6260_v12 = vadd.f32 %v12149_v33, %v6259_v41 }
 0x76e   : > { %v6336_v36 = vadd.f32 %v6335_v3, %v6334_v59  ;;  %v6445_v49 = vsel %vm6444_vm10, %v12191_v57, %v6443_v44 }
 0x76f   : > { %v6339_v30 = vsel %vm4803_vm0, %v6260_v12, 0.0 }
 0x770   : > { %v6337_v29 = vrot.slane %v6336_v36, 1  ;;  %v6340_v14 = vrot.slane %v6339_v30, 4 }
 0x772   : > { %v6338_v23 = vadd.f32 %v6337_v29, %v6336_v36  ;;  %v6341_v26 = vadd.f32 %v6340_v14, %v6339_v30 }
 0x774   : > { %v12200_v60 = vmul.f32 %v12167_v20, %v6338_v23  ;;  %v6342_v18 = vrot.slane %v6341_v26, 2 }
 0x776   : > { %v6447_v1 = vsel %vm6446_vm11, %v12200_v60, %v6445_v49  ;;  %v6343_v53 = vadd.f32 %v6342_v18, %v6341_v26 }
 0x777   : > { %v6457_v5 = vsel %vm4803_vm0, %v6447_v1, 0.0 }
 0x778   : > { %6458 = vadd.xlane.f32.xlu1 %v6457_v5  ;;  %v6344_v1 = vrot.slane %v6343_v53, 1 }
 0x787   : > { %v6262_v27 = vpop.f32.mrf.mxu0 }
 0x788   : > { %v6263_v63 = vadd.f32 %v12149_v33, %v6262_v27 }
 0x78a   : > { %v6346_v46 = vsel %vm4803_vm0, %v6263_v63, 0.0 }
 0x78b   : > { %v6347_v52 = vrot.slane %v6346_v46, 4 }
 0x78d   : > { %v6348_v35 = vadd.f32 %v6347_v52, %v6346_v46 }
 0x78f   : > { %v6265_v58 = vpop.f32.mrf.mxu0  ;;  %v6349_v61 = vrot.slane %v6348_v35, 2 }
 0x790   : > { %v6266_v51 = vadd.f32 %v12149_v33, %v6265_v58 }
 0x791   : > { %v6350_v59 = vadd.f32 %v6349_v61, %v6348_v35 }
 0x792   : > { %v6353_v6 = vsel %vm4803_vm0, %v6266_v51, 0.0 }
 0x793   : > { %v6354_v38 = vrot.slane %v6353_v6, 4  ;;  %v6351_v7 = vrot.slane %v6350_v59, 1 }
 0x795   : > { %v6355_v17 = vadd.f32 %v6354_v38, %v6353_v6 }
 0x797   : > { %v6268_v55 = vpop.f32.mrf.mxu0  ;;  %v6356_v47 = vrot.slane %v6355_v17, 2 }
 0x798   : > { %v6269_v4 = vadd.f32 %v12149_v33, %v6268_v55  ;;  %v6352_v55 = vadd.f32 %v6351_v7, %v6350_v59 }
 0x799   : > { %v6357_v3 = vadd.f32 %v6356_v47, %v6355_v17  ;;  %v8908_v47 = vmov 64.0  }
 0x79a   : > { %v6360_v2 = vsel %vm4803_vm0, %v6269_v4, 0.0  ;;  %v6345_v4 = vadd.f32 %v6344_v1, %v6343_v53  ;;  %8745 = vrcp.f32 %v8908_v47 }
 0x79b   : > { %v6361_v39 = vrot.slane %v6360_v2, 4  ;;  %v6358_v44 = vrot.slane %v6357_v3, 1 }
 0x79c   : > { %v12232_v52 = vmul.f32 %v12167_v20, %v6345_v4 }
 0x79d   : > { %v6362_v10 = vadd.f32 %v6361_v39, %v6360_v2  ;;  %v6359_v51 = vadd.f32 %v6358_v44, %v6357_v3 }
 0x79f   : > { %v6363_v22 = vrot.slane %v6362_v10, 2  ;;  %v12229_v30 = vmul.f32 %v12167_v20, %v6359_v51 }
 0x7a0   : > { %v8746_v18 = vpop.eup %8745 }
 0x7a1   : > { %v6364_v36 = vadd.f32 %v6363_v22, %v6362_v10  ;;  %v6464_v22 = vmul.f32 64.0, %v8746_v18  ;;  %vm6468_vm12 = vweird.f32 %v8746_v18 }
 0x7a2   : > { %v6271_v56 = vpop.f32.mrf.mxu0 }
 0x7a3   : > { %v6272_v0 = vadd.f32 %v12149_v33, %v6271_v56  ;;  %v6365_v5 = vrot.slane %v6364_v36, 1 }
 0x7a5   : > { %v6367_v43 = vsel %vm4803_vm0, %v6272_v0, 0.0  ;;  %v6366_v0 = vadd.f32 %v6365_v5, %v6364_v36 }
 0x7a6   : > { %v6368_v9 = vrot.slane %v6367_v43, 4 }
 0x7a8   : > { %v6369_v11 = vadd.f32 %v6368_v9, %v6367_v43  ;;  %v12235_v43 = vmul.f32 %v12167_v20, %v6366_v0 }
 0x7aa   : > { %v6274_v28 = vpop.f32.mrf.mxu0  ;;  %v6370_v13 = vrot.slane %v6369_v11, 2 }
 0x7ab   : > { %v6275_v21 = vadd.f32 %v12149_v33, %v6274_v28 }
 0x7ac   : > { %v6371_v29 = vadd.f32 %v6370_v13, %v6369_v11  ;;  %v6465_v13 = vsub.f32 1.0, %v6464_v22 }
 0x7ad   : > { %v6374_v54 = vsel %vm4803_vm0, %v6275_v21, 0.0  ;;  %v12226_v21 = vmul.f32 %v12167_v20, %v6352_v55 }
 0x7ae   : > { %v6375_v34 = vrot.slane %v6374_v54, 4  ;;  %v6372_v27 = vrot.slane %v6371_v29, 1 }
 0x7af   : > { %v6448_v14 = vsel %vm6434_vm5, %v12226_v21, %v12232_v52 }
 0x7b0   : > { %v6376_v24 = vadd.f32 %v6375_v34, %v6374_v54  ;;  %v6373_v46 = vadd.f32 %v6372_v27, %v6371_v29  ;;  %v6449_v34 = vsel %vm6436_vm6, %v12229_v30, %v6448_v14 }
 0x7b1   : > { %v6450_v26 = vsel %vm6438_vm7, %v12235_v43, %v6449_v34 }
 0x7b2   : > { %v6377_v40 = vrot.slane %v6376_v24, 2  ;;  %v12238_v54 = vmul.f32 %v12167_v20, %v6373_v46 }
 0x7b4   : > { %v6378_v23 = vadd.f32 %v6377_v40, %v6376_v24  ;;  %v6451_v10 = vsel %vm6440_vm8, %v12238_v54, %v6450_v26 }
 0x7b6   : > { %v6277_v16 = vpop.f32.mrf.mxu0  ;;  %v6379_v56 = vrot.slane %v6378_v23, 1 }
 0x7b7   : > { %v6278_v62 = vadd.f32 %v12149_v33, %v6277_v16 }
 0x7b8   : > { %v6380_v6 = vadd.f32 %v6379_v56, %v6378_v23 }
 0x7b9   : > { %v6381_v8 = vsel %vm4803_vm0, %v6278_v62, 0.0 }
 0x7ba   : > { %v6382_v37 = vrot.slane %v6381_v8, 4  ;;  %v12244_v39 = vmul.f32 %v12167_v20, %v6380_v6 }
 0x7bc   : > { %v6383_v19 = vadd.f32 %v6382_v37, %v6381_v8  ;;  %v6452_v61 = vsel %vm6442_vm9, %v12244_v39, %v6451_v10  ;;  %v6466_v8 = vmul.f32 %v8746_v18, %v6465_v13 }
 0x7be   : > { %v6384_v15 = vrot.slane %v6383_v19, 2  ;;  %v6280_v45 = vpop.f32.mrf.mxu0 }
 0x7bf   : > { %v6281_v49 = vadd.f32 %v12149_v33, %v6280_v45 }
 0x7c0   : > { %v6385_v41 = vadd.f32 %v6384_v15, %v6383_v19 }
 0x7c1   : > { %v6388_v58 = vsel %vm4803_vm0, %v6281_v49, 0.0 }
 0x7c2   : > { %v6389_v63 = vrot.slane %v6388_v58, 4  ;;  %v6386_v12 = vrot.slane %v6385_v41, 1 }
 0x7c4   : > { %v6390_v28 = vadd.f32 %v6389_v63, %v6388_v58  ;;  %v6387_v2 = vadd.f32 %v6386_v12, %v6385_v41 }
 0x7c6   : > { %v6391_v33 = vrot.slane %v6390_v28, 2  ;;  %v12247_v35 = vmul.f32 %v12167_v20, %v6387_v2 }
 0x7c8   : > { %v6392_v38 = vadd.f32 %v6391_v33, %v6390_v28  ;;  %v6453_v24 = vsel %vm6444_vm10, %v12247_v35, %v6452_v61 }
 0x7ca   : > { %v6393_v9 = vrot.slane %v6392_v38, 1 }
 0x7cc   : > { %v6394_v17 = vadd.f32 %v6393_v9, %v6392_v38 }
 0x7ce   : > { %v12256_v11 = vmul.f32 %v12167_v20, %v6394_v17  ;;  %v6467_v20 = vadd.f32 %v8746_v18, %v6466_v8 }
 0x7d0   : > { %v6454_v16 = vsel %vm6446_vm11, %v12256_v11, %v6453_v24  ;;  %v12265_v59 = vsel %vm6468_vm12, %v8746_v18, %v6467_v20 }
 0x7d1   : > { %v6460_v62 = vsel %vm4803_vm0, %v6454_v16, 0.0 }
 0x7d2   : > { %6461 = vadd.xlane.f32.xlu2 %v6460_v62 }
 0x7eb   : > { %v6459_v40 = vpop.xlane.xlu1 %6458 }
 0x7ec   : > { %v6470_v37 = vmul.f32 %v12265_v59, %v6459_v40 }
 0x7ee   : > { %v6474_v3 = vrot.slane %v6470_v37, 1  ;;  %v6475_v53 = vrot.slane %v6470_v37, 2  ;;  %v6476_v36 = vrot.slane %v6470_v37, 3  ;;  %v6477_v19 = vrot.slane %v6470_v37, 4 }
 0x7ef   : > { %v6478_v29 = vrot.slane %v6470_v37, 5  ;;  %v6479_v7 = vrot.slane %v6470_v37, 6  ;;  %v6480_v23 = vrot.slane %v6470_v37, 7  ;;  %v12269_v15 = vsub.f32 %v12176_v48, %v6470_v37 }
 0x7f0   : > { %v12272_v45 = vsub.f32 %v12170_v50, %v6474_v3  ;;  %v12275_v44 = vsub.f32 %v12173_v31, %v6475_v53  ;;  %v12278_v49 = vsub.f32 %v12179_v32, %v6476_v36  ;;  %v12281_v1 = vsub.f32 %v12182_v25, %v6477_v19 }
 0x7f1   : > { %v12284_v5 = vsub.f32 %v12188_v42, %v6478_v29  ;;  %v12287_v41 = vsub.f32 %v12191_v57, %v6479_v7  ;;  %v12290_v48 = vsub.f32 %v12200_v60, %v6480_v23  ;;  %v6520_v42 = vmul.f32 %v12269_v15, %v12269_v15 }
 0x7f2   : > { %v6521_v50 = vmul.f32 %v12272_v45, %v12272_v45  ;;  %v6522_v31 = vmul.f32 %v12275_v44, %v12275_v44  ;;  %v6523_v32 = vmul.f32 %v12278_v49, %v12278_v49  ;;  %v6524_v25 = vmul.f32 %v12281_v1, %v12281_v1 }
 0x7f3   : > { %v6525_v57 = vmul.f32 %v12284_v5, %v12284_v5  ;;  %v6526_v58 = vmul.f32 %v12287_v41, %v12287_v41  ;;  %v6527_v55 = vmul.f32 %v12290_v48, %v12290_v48 }
 0x7f4   : > { %v6552_v60 = vrot.slane %v6521_v50, 7  ;;  %v6554_v27 = vrot.slane %v6522_v31, 6  ;;  %v6556_v63 = vrot.slane %v6523_v32, 5  ;;  %v6558_v12 = vrot.slane %v6524_v25, 4 }
 0x7f5   : > { %v6560_v0 = vrot.slane %v6525_v57, 3  ;;  %v6562_v46 = vrot.slane %v6526_v58, 2  ;;  %v6564_v33 = vrot.slane %v6527_v55, 1  ;;  %v6707_v58 = vld [vmem:[%s12514_s15 + $0x38] sm:$0xff]  ;;  %v6706_v55 = vld [vmem:[%s12514_s15 + $0x30] sm:$0xff] }
 0x7f6   : > { %v6553_v56 = vsel %vm6434_vm5, %v6552_v60, %v6520_v42  ;;  %6768 = vmatpush.msrb.mxu1 %v6707_v58 }
 0x7f7   : > { %v6555_v51 = vsel %vm6436_vm6, %v6554_v27, %v6553_v56  ;;  %v6705_v56 = vld [vmem:[%s12514_s15 + $0x28] sm:$0xff] }
 0x7f8   : > { %v6557_v4 = vsel %vm6438_vm7, %v6556_v63, %v6555_v51  ;;  %6769 = vmatpush.msrb.mxu1 %v6706_v55  ;;  %v6704_v63 = vld [vmem:[%s12514_s15 + $0x20] sm:$0xff] }
 0x7f9   : > { %v6559_v28 = vsel %vm6440_vm8, %v6558_v12, %v6557_v4  ;;  %v6703_v4 = vld [vmem:[%s12514_s15 + $0x18] sm:$0xff] }
 0x7fa   : > { %v6561_v6 = vsel %vm6442_vm9, %v6560_v0, %v6559_v28  ;;  %6770 = vmatpush.msrb.mxu1 %v6705_v56  ;;  %v6702_v28 = vld [vmem:[%s12514_s15 + $0x10] sm:$0xff] }
 0x7fb   : > { %v6563_v2 = vsel %vm6444_vm10, %v6562_v46, %v6561_v6  ;;  %v6701_v46 = vld [vmem:[%s12514_s15 + $0x8] sm:$0xff]  ;;  %v6700_v6 = vld [vmem:[%s12514_s15] sm:$0xff] }
 0x7fc   : > { %v6565_v38 = vsel %vm6446_vm11, %v6564_v33, %v6563_v2  ;;  %6771 = vmatpush.msrb.mxu1 %v6704_v63 }
 0x7fd   : > { %v6582_v14 = vsel %vm4803_vm0, %v6565_v38, 0.0 }
 0x7fe   : > { %6583 = vadd.xlane.f32.xlu0 %v6582_v14  ;;  %6772 = vmatpush.msrb.mxu1 %v6703_v4 }
 0x800   : > { %6773 = vmatpush.msrb.mxu1 %v6702_v28 }
 0x802   : > { %6774 = vmatpush.msrb.mxu1 %v6701_v46 }
 0x804   : > { %6775 = vmatpush.msrb.mxu1 %v6700_v6 }
 0x845   : > { %v6462_v9 = vpop.xlane.xlu2 %6461 }
 0x846   : > { %v6471_v34 = vmul.f32 %v12265_v59, %v6462_v9 }
 0x848   : > { %v6481_v17 = vrot.slane %v6471_v34, 1  ;;  %v6482_v26 = vrot.slane %v6471_v34, 2  ;;  %v6483_v10 = vrot.slane %v6471_v34, 3  ;;  %v6484_v61 = vrot.slane %v6471_v34, 4 }
 0x849   : > { %v6485_v24 = vrot.slane %v6471_v34, 5  ;;  %v6486_v16 = vrot.slane %v6471_v34, 6  ;;  %v6487_v47 = vrot.slane %v6471_v34, 7  ;;  %v12318_v62 = vsub.f32 %v12232_v52, %v6471_v34 }
 0x84a   : > { %v12321_v18 = vsub.f32 %v12226_v21, %v6481_v17  ;;  %v12324_v22 = vsub.f32 %v12229_v30, %v6482_v26  ;;  %v12327_v13 = vsub.f32 %v12235_v43, %v6483_v10  ;;  %v12330_v8 = vsub.f32 %v12238_v54, %v6484_v61  ;;  %v12393_v17 = vld [vmem:[%s12512_s13] ss:$0 sm:$0xff] }
 0x84b   : > { %v12333_v20 = vsub.f32 %v12244_v39, %v6485_v24  ;;  %v12336_v40 = vsub.f32 %v12247_v35, %v6486_v16  ;;  %v12339_v52 = vsub.f32 %v12256_v11, %v6487_v47  ;;  %v6528_v39 = vmul.f32 %v12318_v62, %v12318_v62 }
 0x84c   : > { %v6529_v21 = vmul.f32 %v12321_v18, %v12321_v18  ;;  %v6530_v30 = vmul.f32 %v12324_v22, %v12324_v22  ;;  %v6531_v43 = vmul.f32 %v12327_v13, %v12327_v13  ;;  %v6532_v54 = vmul.f32 %v12330_v8, %v12330_v8 }
 0x84d   : > { %v6533_v35 = vmul.f32 %v12333_v20, %v12333_v20  ;;  %v6534_v3 = vmul.f32 %v12336_v40, %v12336_v40  ;;  %v6535_v53 = vmul.f32 %v12339_v52, %v12339_v52 }
 0x84e   : > { %v6566_v11 = vrot.slane %v6529_v21, 7  ;;  %v6568_v37 = vrot.slane %v6530_v30, 6  ;;  %v6570_v19 = vrot.slane %v6531_v43, 5  ;;  %v6572_v7 = vrot.slane %v6532_v54, 4 }
 0x84f   : > { %v6574_v50 = vrot.slane %v6533_v35, 3  ;;  %v6576_v32 = vrot.slane %v6534_v3, 2  ;;  %v6578_v42 = vrot.slane %v6535_v53, 1 }
 0x850   : > { %v6567_v36 = vsel %vm6434_vm5, %v6566_v11, %v6528_v39 }
 0x851   : > { %v6569_v29 = vsel %vm6436_vm6, %v6568_v37, %v6567_v36 }
 0x852   : > { %v6571_v23 = vsel %vm6438_vm7, %v6570_v19, %v6569_v29 }
 0x853   : > { %v6573_v31 = vsel %vm6440_vm8, %v6572_v7, %v6571_v23 }
 0x854   : > { %v6575_v25 = vsel %vm6442_vm9, %v6574_v50, %v6573_v31 }
 0x855   : > { %v6577_v57 = vsel %vm6444_vm10, %v6576_v32, %v6575_v25 }
 0x856   : > { %v6579_v60 = vsel %vm6446_vm11, %v6578_v42, %v6577_v57 }
 0x857   : > { %v6585_v27 = vsel %vm4803_vm0, %v6579_v60, 0.0 }
 0x858   : > { %6586 = vadd.xlane.f32.xlu1 %v6585_v27 }
 0x871   : > { %v6584_v51 = vpop.xlane.xlu0 %6583 }
 0x872   : > { %v6588_v12 = vmul.f32 %v6584_v51, %v12265_v59 }
 0x874   : > { %v6590_v0 = vadd.f32 1e-05, %v6588_v12 }
 0x876   : > { %8747 = vrsqrt.f32 %v6590_v0  ;;  %vm6598_vm14 = vweird.f32 %v6590_v0 }
 0x87c   : > { %v8748_v33 = vpop.eup %8747 }
 0x87d   : > { %v6593_v2 = vmul.f32 %v8748_v33, %v6590_v0  ;;  %vm6599_vm13 = vweird.f32 %v8748_v33 }
 0x87e   : > { %vm6600_vm15 = vmor %vm6598_vm14, %vm6599_vm13 }
 0x87f   : > { %v6594_v38 = vmul.f32 %v8748_v33, %v6593_v2 }
 0x881   : > { %v6595_v14 = vmul.f32 0.5, %v6594_v38 }
 0x883   : > { %v6596_v9 = vsub.f32 1.5, %v6595_v14 }
 0x885   : > { %v6597_v34 = vmul.f32 %v8748_v33, %v6596_v9 }
 0x887   : > { %v6601_v26 = vsel %vm6600_vm15, %v8748_v33, %v6597_v34 }
 0x888   : > { %v6614_v10 = vrot.slane %v6601_v26, 1  ;;  %v6615_v61 = vrot.slane %v6601_v26, 2  ;;  %v6616_v24 = vrot.slane %v6601_v26, 3  ;;  %v6617_v16 = vrot.slane %v6601_v26, 4 }
 0x889   : > { %v6644_v47 = vmul.f32 %v6601_v26, %v12269_v15  ;;  %v6618_v21 = vrot.slane %v6601_v26, 5  ;;  %v6619_v30 = vrot.slane %v6601_v26, 6  ;;  %v6620_v43 = vrot.slane %v6601_v26, 7 }
 0x88a   : > { %v6645_v54 = vmul.f32 %v6614_v10, %v12272_v45  ;;  %v6646_v39 = vmul.f32 %v6615_v61, %v12275_v44  ;;  %v6647_v35 = vmul.f32 %v6616_v24, %v12278_v49  ;;  %v6648_v11 = vmul.f32 %v6617_v16, %v12281_v1  ;;  %v12411_v49 = vld [vmem:[%s13428_s17] ss:$0 sm:$0xff] }
 0x88b   : > { %v6664_v37 = vmul.f32 %v12393_v17, %v6644_v47  ;;  %v6649_v3 = vmul.f32 %v6618_v21, %v12284_v5  ;;  %v6650_v53 = vmul.f32 %v6619_v30, %v12287_v41  ;;  %v6651_v36 = vmul.f32 %v6620_v43, %v12290_v48 }
 0x88c   : > { %v6665_v15 = vmul.f32 %v12393_v17, %v6645_v54  ;;  %v6666_v19 = vmul.f32 %v12393_v17, %v6646_v39  ;;  %v6667_v45 = vmul.f32 %v12393_v17, %v6647_v35  ;;  %v6668_v44 = vmul.f32 %v12393_v17, %v6648_v11 }
 0x88d   : > { %v6669_v1 = vmul.f32 %v12393_v17, %v6649_v3  ;;  %v6670_v5 = vmul.f32 %v12393_v17, %v6650_v53  ;;  %v6671_v41 = vmul.f32 %v12393_v17, %v6651_v36  ;;  %v6684_v50 = vadd.f32 %v12411_v49, %v6664_v37 }
 0x88e   : > { %v6685_v48 = vadd.f32 %v12411_v49, %v6665_v15  ;;  %v6686_v29 = vadd.f32 %v12411_v49, %v6666_v19  ;;  %v6687_v7 = vadd.f32 %v12411_v49, %v6667_v45  ;;  %v6688_v23 = vadd.f32 %v12411_v49, %v6668_v44 }
 0x88f   : > { %v6689_v31 = vadd.f32 %v12411_v49, %v6669_v1  ;;  %v6690_v42 = vadd.f32 %v12411_v49, %v6670_v5  ;;  %v6691_v57 = vadd.f32 %v12411_v49, %v6671_v41 }
 0x890   : > { %v6728_v32 = vrot.slane %v6685_v48, 7  ;;  %v6730_v25 = vrot.slane %v6686_v29, 6  ;;  %v6732_v27 = vrot.slane %v6687_v7, 5  ;;  %v6734_v55 = vrot.slane %v6688_v23, 4 }
 0x891   : > { %v6736_v63 = vrot.slane %v6689_v31, 3  ;;  %v6738_v12 = vrot.slane %v6690_v42, 2  ;;  %v6740_v0 = vrot.slane %v6691_v57, 1 }
 0x892   : > { %v6729_v60 = vsel %vm6434_vm5, %v6728_v32, %v6684_v50 }
 0x893   : > { %v6731_v58 = vsel %vm6436_vm6, %v6730_v25, %v6729_v60 }
 0x894   : > { %v6733_v56 = vsel %vm6438_vm7, %v6732_v27, %v6731_v58 }
 0x895   : > { %v6735_v51 = vsel %vm6440_vm8, %v6734_v55, %v6733_v56 }
 0x896   : > { %v6737_v4 = vsel %vm6442_vm9, %v6736_v63, %v6735_v51 }
 0x897   : > { %v6739_v28 = vsel %vm6444_vm10, %v6738_v12, %v6737_v4 }
 0x898   : > { %v6741_v46 = vsel %vm6446_vm11, %v6740_v0, %v6739_v28 }
 0x899   : > { %7930 = vmatmul.msk.f32.vlgmr.msrb.gmra.mxu1 %vm4803_vm0, %v6741_v46 }
 0x8cb   : > { %v6587_v6 = vpop.xlane.xlu1 %6586 }
 0x8cc   : > { %v6589_v33 = vmul.f32 %v6587_v6, %v12265_v59 }
 0x8ce   : > { %v6591_v2 = vadd.f32 1e-05, %v6589_v33 }
 0x8d0   : > { %8749 = vrsqrt.f32 %v6591_v2  ;;  %vm6608_vm2 = vweird.f32 %v6591_v2 }
 0x8d6   : > { %v8750_v38 = vpop.eup %8749 }
 0x8d7   : > { %v6603_v14 = vmul.f32 %v8750_v38, %v6591_v2  ;;  %vm6609_vm1 = vweird.f32 %v8750_v38 }
 0x8d8   : > { %vm6610_vm3 = vmor %vm6608_vm2, %vm6609_vm1 }
 0x8d9   : > { %v6604_v9 = vmul.f32 %v8750_v38, %v6603_v14 }
 0x8db   : > { %v6605_v34 = vmul.f32 0.5, %v6604_v9 }
 0x8dd   : > { %v6606_v26 = vsub.f32 1.5, %v6605_v34 }
 0x8df   : > { %v6607_v10 = vmul.f32 %v8750_v38, %v6606_v26 }
 0x8e1   : > { %v6611_v61 = vsel %vm6610_vm3, %v8750_v38, %v6607_v10 }
 0x8e2   : > { %v6621_v24 = vrot.slane %v6611_v61, 1  ;;  %v6622_v16 = vrot.slane %v6611_v61, 2  ;;  %v6652_v47 = vmul.f32 %v6611_v61, %v12318_v62  ;;  %v6623_v21 = vrot.slane %v6611_v61, 3 }
 0x8e3   : > { %v6624_v30 = vrot.slane %v6611_v61, 4  ;;  %v6625_v43 = vrot.slane %v6611_v61, 5  ;;  %v6626_v59 = vrot.slane %v6611_v61, 6  ;;  %v6627_v54 = vrot.slane %v6611_v61, 7 }
 0x8e4   : > { %v6653_v39 = vmul.f32 %v6621_v24, %v12321_v18  ;;  %v6654_v35 = vmul.f32 %v6622_v16, %v12324_v22  ;;  %v6655_v11 = vmul.f32 %v6623_v21, %v12327_v13  ;;  %v6672_v62 = vmul.f32 %v12393_v17, %v6652_v47 }
 0x8e5   : > { %v6656_v37 = vmul.f32 %v6624_v30, %v12330_v8  ;;  %v6657_v3 = vmul.f32 %v6625_v43, %v12333_v20  ;;  %v6658_v53 = vmul.f32 %v6626_v59, %v12336_v40  ;;  %v6659_v36 = vmul.f32 %v6627_v54, %v12339_v52 }
 0x8e6   : > { %v6673_v15 = vmul.f32 %v12393_v17, %v6653_v39  ;;  %v6674_v19 = vmul.f32 %v12393_v17, %v6654_v35  ;;  %v6675_v18 = vmul.f32 %v12393_v17, %v6655_v11  ;;  %v6692_v1 = vadd.f32 %v12411_v49, %v6672_v62 }
 0x8e7   : > { %v6676_v22 = vmul.f32 %v12393_v17, %v6656_v37  ;;  %v6677_v13 = vmul.f32 %v12393_v17, %v6657_v3  ;;  %v6678_v8 = vmul.f32 %v12393_v17, %v6658_v53  ;;  %v6679_v20 = vmul.f32 %v12393_v17, %v6659_v36 }
 0x8e8   : > { %v6693_v40 = vadd.f32 %v12411_v49, %v6673_v15  ;;  %v6694_v52 = vadd.f32 %v12411_v49, %v6674_v19  ;;  %v6695_v45 = vadd.f32 %v12411_v49, %v6675_v18 }
 0x8e9   : > { %v6696_v44 = vadd.f32 %v12411_v49, %v6676_v22  ;;  %v6697_v5 = vadd.f32 %v12411_v49, %v6677_v13  ;;  %v6698_v29 = vadd.f32 %v12411_v49, %v6678_v8  ;;  %v6699_v7 = vadd.f32 %v12411_v49, %v6679_v20  ;;  %v8678_v49 = vld [vmem:[#allocation2] ss:$0 sm:$0xff] }
 0x8ea   : > { %v6742_v41 = vrot.slane %v6693_v40, 7  ;;  %v6744_v48 = vrot.slane %v6694_v52, 6  ;;  %v6746_v23 = vrot.slane %v6695_v45, 5 }
 0x8eb   : > { %v6748_v31 = vrot.slane %v6696_v44, 4  ;;  %v6750_v25 = vrot.slane %v6697_v5, 3  ;;  %v6752_v57 = vrot.slane %v6698_v29, 2  ;;  %v6754_v27 = vrot.slane %v6699_v7, 1 }
 0x8ec   : > { %v6743_v17 = vsel %vm6434_vm5, %v6742_v41, %v6692_v1 }
 0x8ed   : > { %v6745_v50 = vsel %vm6436_vm6, %v6744_v48, %v6743_v17 }
 0x8ee   : > { %v6747_v32 = vsel %vm6438_vm7, %v6746_v23, %v6745_v50 }
 0x8ef   : > { %v6749_v42 = vsel %vm6440_vm8, %v6748_v31, %v6747_v32 }
 0x8f0   : > { %v6751_v60 = vsel %vm6442_vm9, %v6750_v25, %v6749_v42 }
 0x8f1   : > { %v6753_v58 = vsel %vm6444_vm10, %v6752_v57, %v6751_v60 }
 0x8f2   : > { %v6755_v55 = vsel %vm6446_vm11, %v6754_v27, %v6753_v58 }
 0x8f3   : > { %7931 = vmatmul.msk.f32.gmra.mxu1 %vm4803_vm0, %v6755_v55 }
 0x916   : > { %v6777_v56 = vpop.f32.mrf.mxu1 }
 0x917   : > { %v6778_v63 = vadd.f32 %v8678_v49, %v6777_v56 }
 0x919   : > { %v7932_v51 = vmul.f32 -1.442695, %v6778_v63 }
 0x91b   : > { %8751 = vpow2.f32 %v7932_v51 }
 0x921   : > { %v8752_v12 = vpop.eup %8751 }
 0x922   : > { %v6789_v4 = vadd.f32 1.0, %v8752_v12 }
 0x924   : > { %8753 = vrcp.f32 %v6789_v4  ;;  %v6802_v6 = vand.u32 2147483648, %v6789_v4  ;;  %v6800_v2 = vand.u32 2147483647, %v6789_v4  ;;  %vm6796_vm5 = vweird.f32 %v6789_v4 }
 0x926   : > { %v6803_v14 = vor.u32 1.1754944e-38, %v6802_v6  ;;  %vm6801_vm0 = vcmp.eq.f32.partialorder %v6800_v2, 8.507059e+37 }
 0x92a   : > { %v8754_v0 = vpop.eup %8753 }
 0x92b   : > { %v6792_v28 = vmul.f32 %v8754_v0, %v6789_v4  ;;  %vm6797_vm4 = vweird.f32 %v8754_v0 }
 0x92c   : > { %vm6798_vm6 = vmor %vm6796_vm5, %vm6797_vm4 }
 0x92d   : > { %v6793_v46 = vsub.f32 1.0, %v6792_v28 }
 0x92f   : > { %v6794_v33 = vmul.f32 %v8754_v0, %v6793_v46 }
 0x931   : > { %v6795_v38 = vadd.f32 %v8754_v0, %v6794_v33 }
 0x933   : > { %v6799_v9 = vsel %vm6798_vm6, %v8754_v0, %v6795_v38 }
 0x934   : > { %v6804_v34 = vsel %vm6801_vm0, %v6803_v14, %v6799_v9 }
 0x935   : > { %6823 = vperm.xlu2 %8672, %v6804_v34  }
 0x970   : > { %v6780_v26 = vpop.f32.mrf.mxu1 }
 0x971   : > { %v6781_v10 = vadd.f32 %v8678_v49, %v6780_v26 }
 0x973   : > { %v7933_v61 = vmul.f32 -1.442695, %v6781_v10 }
 0x975   : > { %8755 = vpow2.f32 %v7933_v61 }
 0x97b   : > { %v8756_v24 = vpop.eup %8755 }
 0x97c   : > { %v6790_v16 = vadd.f32 1.0, %v8756_v24 }
 0x97e   : > { %8757 = vrcp.f32 %v6790_v16  ;;  %v6817_v43 = vand.u32 2147483648, %v6790_v16  ;;  %v6815_v54 = vand.u32 2147483647, %v6790_v16  ;;  %vm6811_vm8 = vweird.f32 %v6790_v16 }
 0x980   : > { %v6818_v35 = vor.u32 1.1754944e-38, %v6817_v43  ;;  %vm6816_vm10 = vcmp.eq.f32.partialorder %v6815_v54, 8.507059e+37 }
 0x984   : > { %v8758_v47 = vpop.eup %8757 }
 0x985   : > { %v6807_v21 = vmul.f32 %v8758_v47, %v6790_v16  ;;  %vm6812_vm7 = vweird.f32 %v8758_v47 }
 0x986   : > { %vm6813_vm9 = vmor %vm6811_vm8, %vm6812_vm7 }
 0x987   : > { %v6808_v30 = vsub.f32 1.0, %v6807_v21 }
 0x989   : > { %v6809_v59 = vmul.f32 %v8758_v47, %v6808_v30 }
 0x98b   : > { %v6810_v39 = vadd.f32 %v8758_v47, %v6809_v59 }
 0x98d   : > { %v6814_v11 = vsel %vm6813_vm9, %v8758_v47, %v6810_v39 }
 0x98e   : > { %v6819_v37 = vsel %vm6816_vm10, %v6818_v35, %v6814_v11 }
 0x98f   : > { %6828 = vperm.xlu0 %8673, %v6819_v37   ;;  %v6824_v3 = vpop.permute.xlu2 %6823 }
 0x990   : > { %6831 = vst [vmem:[%s636_s28] sm:$0xff] %v6824_v3 }
 0xa01   : > { %v6829_v53 = vpop.permute.xlu0 %6828 }
 0xa02   : > { %6832 = vst [vmem:[%s636_s28 + $0x8] sm:$0xff] %v6829_v53 }
 0xa03   : > { %8847 = shalt.err (!%p8844_p12)
}
 0xa04   : > { %s8909_s14 = smov 128   ;;  %s8910_s28 = smov 8  }
 0xa05   : > { %8219 = dma.vmem_to_hbm [thread:$0]  (%p9071_p7), %s6847_s22, 256, %s6849_s0, %s6834_s26, %s8909_s14, %s8909_s14, %s8910_s28  }
 0xa06 PF: > { %s13431_s18 = sld [smem:[#allocation12_spill]]  ;;  %p13433_p13 = scmp.ge.s32.totalorder %s8890_s29, 2 }
 0xa08   : > { %p8230_p0 = pnand %p13433_p13, %p9039_p6 }
 0xa0a   : > { %p8231_p3 = pneg %p8230_p0 }
 0xa0c   : > { %s6863_s2 = sand.u32 1, %s13431_s18  }
 0xa0d   : > { %s6864_s19 = scalar_lea.sflag [#allocation5], %s6863_s2 }
 0xa0e   : > { %8873 = dma.done.wait (%p8231_p3), %s6864_s19, 256  }
 0xa0f   : > { %8875 = vsyncadd (%p8231_p3), %s6864_s19, 4294967040  ;;  %s13434_s29 = sld [smem:[#allocation15_spill]]  ;;  %s13437_s26 = smov %s8882_s27 }
 0xa10   : > { %s13435_s20 = sld [smem:[#allocation13_spill]] }
 0xa11   : > { %s13436_s28 = sld [smem:[#allocation16_spill]] }
 0xa15   : > { %p33_p5 = scmp.ge.s32.totalorder %s13434_s29, 4  }
 0xa16   : > { %s13438_s27 = smov %s13435_s20 }
 0xa17   :  { %35 = sbr.rel (!%p33_p5) target bundleno = 13 (0xd), region = 146 }
 0xa1c   :  { %6870 = vsyncpa [#allocation4], 1 }
 0xa1d   :  { %6872 = vsyncpa [#allocation4 + $0x1], 1 }
 0xa1e   :  { %6873 = vsyncpa [#allocation7], 1 }
 0xa1f   :  { %6874 = vsyncpa [#allocation5], 1 }
 0xa20   :  { %6876 = vsyncpa [#allocation5 + $0x1], 1 }

</bundles_post_ra>
